<compile_context>
chip_gen: v6e
topology: v6e:2x2x1
jax: 0.10.0
libtpu: 0.0.40
codegen_flags: <defaults>
</compile_context>

<pallas_src>
import jax
import jax.numpy as jnp
from jax import lax
from jax.experimental import pallas as pl
from jax.experimental.pallas import tpu as pltpu

EPS = 1e-5          # nn.BatchNorm2d default eps
FEATURES = 64       # DnCNN hardcodes features=64
_REF_PRECISION = jax.lax.Precision.HIGHEST


def _pick_row_tile(H, W, C):
    """Largest divisor of H whose (th+2, W+2, C) f32 halo slab is <= ~2 MiB."""
    bytes_per_row = (W + 2) * C * 4
    budget_rows = max(8, (2 << 20) // max(1, bytes_per_row))
    for cand in range(min(H, budget_rows), 0, -1):
        if H % cand == 0:
            return cand
    return H


def _make_conv_kernel(th, W, Cin, Cout, *, prologue_relu, residual, emit_stats):
    M = th * W

    def kernel(*refs):
        x_ref, w_ref, s_ref, b_ref = refs[:4]
        pos = 4
        res_ref = None
        if residual:
            res_ref = refs[pos]
            pos += 1
        o_ref = refs[pos]
        pos += 1
        stats_ref = refs[pos] if emit_stats else None

        # ---- prologue: previous layer's (folded-BN) affine + optional ReLU ----
        x = x_ref[0]                                   # (th+2, W+2, Cin)
        x = x * s_ref[...] + b_ref[...]                # (1, Cin) broadcasts on lanes
        if prologue_relu:
            x = jnp.maximum(x, 0.0)

        # ---- 3x3 conv == 9 shifted matmuls accumulated in f32 on the MXU ----
        acc = jnp.zeros((M, Cout), jnp.float32)
        for kh in range(3):
            for kw in range(3):
                patch = x[kh:kh + th, kw:kw + W, :].reshape(M, Cin)
                acc = acc + jnp.dot(patch, w_ref[kh, kw],
                                    preferred_element_type=jnp.float32)

        # ---- optional per-slab partial BatchNorm stats (sum, sum of squares) ----
        if emit_stats:
            s1 = jnp.sum(acc, axis=0, keepdims=True)
            s2 = jnp.sum(acc * acc, axis=0, keepdims=True)
            stats_ref[0] = jnp.concatenate([s1, s2], axis=0)

        # ---- optional fused residual epilogue: out = x - noise ----
        out = acc
        if residual:
            out = res_ref[0] - acc
        o_ref[0] = out.astype(o_ref.dtype)

    return kernel


def conv3x3_layer(x_nhwc, w_oihw, scale, offset, *, prologue_relu,
                  residual_nhwc=None, emit_stats=False, row_tile=None):
    """One fused (affine/ReLU prologue -> 3x3 conv -> optional residual) layer."""
    N, H, W, Cin = x_nhwc.shape
    Cout = w_oihw.shape[0]
    assert w_oihw.shape == (Cout, Cin, 3, 3)

    th = row_tile if row_tile is not None else _pick_row_tile(H, W, Cin)
    assert H % th == 0
    n_slabs = H // th
    NS = N * n_slabs
    Wp = W + 2
    M = th * W

    # Pad H/W with the per-channel value that the in-kernel prologue maps to
    # exactly 0 (zero for plain-ReLU layers; -offset/scale for folded BN).
    # (Degenerate gamma == 0 would make this inexact; clamped for safety.)
    scale = scale.astype(jnp.float32)
    offset = offset.astype(jnp.float32)
    safe = jnp.where(jnp.abs(scale) > 1e-20, scale, 1.0)
    pad_vals = jnp.where(jnp.abs(scale) > 1e-20, -offset / safe, 0.0)
    xp = jnp.broadcast_to(pad_vals.reshape(1, 1, 1, Cin),
                          (N, H + 2, Wp, Cin)).astype(jnp.float32)
    xp = lax.dynamic_update_slice(xp, x_nhwc.astype(jnp.float32), (0, 1, 1, 0))

    if n_slabs == 1:
        slabs = xp.reshape(NS, th + 2, Wp, Cin)
    else:  # overlapping halo row-slabs, materialized once (only 2/th row overhead)
        slabs = jnp.concatenate(
            [xp[:, i * th:i * th + th + 2][:, None] for i in range(n_slabs)],
            axis=1).reshape(NS, th + 2, Wp, Cin)

    w_hwio = jnp.transpose(w_oihw, (2, 3, 1, 0)).astype(jnp.float32)  # (3,3,Cin,Cout)

    inputs = [slabs, w_hwio, scale.reshape(1, Cin), offset.reshape(1, Cin)]
    in_specs = [
        pl.BlockSpec((1, th + 2, Wp, Cin), lambda i: (i, 0, 0, 0)),
        # constant index -> the weights are DMA'd once and stay VMEM-resident
        pl.BlockSpec((3, 3, Cin, Cout), lambda i: (0, 0, 0, 0)),
        pl.BlockSpec((1, Cin), lambda i: (0, 0)),
        pl.BlockSpec((1, Cin), lambda i: (0, 0)),
    ]
    if residual_nhwc is not None:
        res = residual_nhwc.astype(jnp.float32).reshape(NS, M, Cout)
        inputs.append(res)
        in_specs.append(pl.BlockSpec((1, M, Cout), lambda i: (i, 0, 0)))

    out_shapes = [jax.ShapeDtypeStruct((NS, M, Cout), jnp.float32)]
    out_specs = [pl.BlockSpec((1, M, Cout), lambda i: (i, 0, 0))]
    if emit_stats:
        out_shapes.append(jax.ShapeDtypeStruct((NS, 2, Cout), jnp.float32))
        out_specs.append(pl.BlockSpec((1, 2, Cout), lambda i: (i, 0, 0)))

    kernel = _make_conv_kernel(
        th, W, Cin, Cout,
        prologue_relu=prologue_relu,
        residual=residual_nhwc is not None,
        emit_stats=emit_stats)

    results = pl.pallas_call(
        kernel,
        out_shape=tuple(out_shapes),
        grid=(NS,),
        in_specs=in_specs,
        out_specs=tuple(out_specs),
        compiler_params=pltpu.CompilerParams(
            dimension_semantics=("parallel",)),
    )(*inputs)

    out = results[0].reshape(N, H, W, Cout)
    if emit_stats:
        return out, results[1]
    return out


def dncnn_rl_forward(x_nchw, params):
    """DnCNN_RL forward: out = x - DnCNN(x)."""
    N, C, H, W = x_nchw.shape
    Fch = params["w1"].shape[0]
    x_nhwc = jnp.transpose(x_nchw, (0, 2, 3, 1)).astype(jnp.float32)

    one_c, zero_c = jnp.ones((C,), jnp.float32), jnp.zeros((C,), jnp.float32)
    one_f, zero_f = jnp.ones((Fch,), jnp.float32), jnp.zeros((Fch,), jnp.float32)

    # Layer 1: Conv(C->F).  Its ReLU is deferred into layer 2's in-kernel prologue.
    z1 = conv3x3_layer(x_nhwc, params["w1"], one_c, zero_c, prologue_relu=False)

    # Layer 2: [ReLU prologue] + Conv(F->F), plus fused per-slab partial stats of
    # the raw conv output (so BatchNorm stats need no extra activation HBM pass).
    z2, stats = conv3x3_layer(z1, params["w2"], one_f, zero_f,
                              prologue_relu=True, emit_stats=True)

    cnt = jnp.float32(N * H * W)
    s1 = jnp.sum(stats[:, 0, :], axis=0)
    s2 = jnp.sum(stats[:, 1, :], axis=0)
    mean = s1 / cnt
    var = jnp.maximum(s2 / cnt - mean * mean, 0.0)     # biased var (train-mode BN)
    scale = params["gamma"] * lax.rsqrt(var + EPS)
    offset = params["beta"] - mean * scale

    # Layer 3: [folded BN affine + ReLU prologue] + Conv(F->C) + fused residual.
    out_nhwc = conv3x3_layer(z2, params["w3"], scale, offset,
                             prologue_relu=True, residual_nhwc=x_nhwc)
    return jnp.transpose(out_nhwc, (0, 3, 1, 2))


# ---------------- Pure-JAX reference ----------------

def _reference(x, params):
    def conv(a, w):
        return lax.conv_general_dilated(
            a, w, (1, 1), ((1, 1), (1, 1)),
            dimension_numbers=("NCHW", "OIHW", "NCHW"),
            precision=_REF_PRECISION)
    y = jnp.maximum(conv(x, params["w1"]), 0.0)
    z = conv(y, params["w2"])
    mean = jnp.mean(z, axis=(0, 2, 3), keepdims=True)
    var = jnp.mean((z - mean) ** 2, axis=(0, 2, 3), keepdims=True)
    zb = (z - mean) * lax.rsqrt(var + EPS) * params["gamma"].reshape(1, -1, 1, 1) \
        + params["beta"].reshape(1, -1, 1, 1)
    zb = jnp.maximum(zb, 0.0)
    noise = conv(zb, params["w3"])
    return x - noise


if __name__ == "__main__":
    key = jax.random.PRNGKey(0)
    kx, k1, k2, k3, kg, kb = jax.random.split(key, 6)

    # DnCNN_RL(channels=4, num_of_layers=3)
    N, C, H, W = 2, 4, 16, 16
    F = FEATURES

    x = jax.random.normal(kx, (N, C, H, W), jnp.float32)

    def conv_init(k, co, ci):
        bound = 1.0 / ((ci * 9) ** 0.5)
        return jax.random.uniform(k, (co, ci, 3, 3), jnp.float32, -bound, bound)

    params = {
        "w1": conv_init(k1, F, C),          # Conv2d(C, 64, 3, pad=1, bias=False)
        "w2": conv_init(k2, F, F),          # Conv2d(64, 64, 3, pad=1, bias=False)
        "w3": conv_init(k3, C, F),          # Conv2d(64, C, 3, pad=1, bias=False)
        "gamma": 1.0 + 0.1 * jax.random.normal(kg, (F,), jnp.float32),
        "beta": 0.1 * jax.random.normal(kb, (F,), jnp.float32),
    }

    fwd = jax.jit(dncnn_rl_forward)
    out = jax.block_until_ready(fwd(x, params))

    ref = _reference(x, params)
    assert out.shape == (N, C, H, W)
    assert jnp.allclose(out, ref, atol=2e-3, rtol=2e-3), (
        "mismatch vs reference: max abs err = %e"
        % float(jnp.max(jnp.abs(out - ref))))
    print("KERNEL_OK")
</pallas_src>

<mosaic_0001>
module attributes {stable_mosaic.version = 11 : i64} {
  func.func @kernel(%arg0: i32, %arg1: memref<1x18x18x4xf32, #tpu.memory_space<vmem>>, %arg2: memref<3x3x4x64xf32, #tpu.memory_space<vmem>>, %arg3: memref<1x4xf32, #tpu.memory_space<vmem>>, %arg4: memref<1x4xf32, #tpu.memory_space<vmem>>, %arg5: memref<1x256x64xf32, #tpu.memory_space<vmem>>) attributes {dimension_semantics = [#tpu.dimension_semantics<parallel>], iteration_bounds = array<i64: 2>, scalar_prefetch = 0 : i64, scratch_operands = 0 : i64, tpu.core_type = #tpu.core_type<tc>, window_params = [{transform_indices = @transform_0, window_bounds = array<i64: 1, 18, 18, 4>}, {pipeline_mode = #tpu.pipeline_mode<synchronous>, transform_indices = @transform_1, window_bounds = array<i64: 3, 3, 4, 64>}, {pipeline_mode = #tpu.pipeline_mode<synchronous>, transform_indices = @transform_2, window_bounds = array<i64: 1, 4>}, {pipeline_mode = #tpu.pipeline_mode<synchronous>, transform_indices = @transform_3, window_bounds = array<i64: 1, 4>}, {transform_indices = @transform_4, window_bounds = array<i64: 1, 256, 64>}]} {
    %c0 = arith.constant 0 : index
    %c0_0 = arith.constant 0 : index
    %c0_1 = arith.constant 0 : index
    %c0_2 = arith.constant 0 : index
    %0 = vector.load %arg1[%c0, %c0_0, %c0_1, %c0_2] : memref<1x18x18x4xf32, #tpu.memory_space<vmem>>, vector<1x18x18x4xf32>
    %1 = vector.shape_cast %0 : vector<1x18x18x4xf32> to vector<18x18x4xf32>
    %c0_3 = arith.constant 0 : index
    %c0_4 = arith.constant 0 : index
    %2 = vector.load %arg3[%c0_3, %c0_4] : memref<1x4xf32, #tpu.memory_space<vmem>>, vector<1x4xf32>
    %3 = vector.shape_cast %2 : vector<1x4xf32> to vector<1x1x4xf32>
    %4 = vector.broadcast %3 : vector<1x1x4xf32> to vector<18x18x4xf32>
    %5 = arith.mulf %1, %4 : vector<18x18x4xf32>
    %c0_5 = arith.constant 0 : index
    %c0_6 = arith.constant 0 : index
    %6 = vector.load %arg4[%c0_5, %c0_6] : memref<1x4xf32, #tpu.memory_space<vmem>>, vector<1x4xf32>
    %7 = vector.shape_cast %6 : vector<1x4xf32> to vector<1x1x4xf32>
    %8 = vector.broadcast %7 : vector<1x1x4xf32> to vector<18x18x4xf32>
    %9 = arith.addf %5, %8 : vector<18x18x4xf32>
    %cst = arith.constant 0.000000e+00 : f32
    %10 = vector.broadcast %cst : f32 to vector<256x64xf32>
    %11 = vector.extract_strided_slice %9 {offsets = [0, 0, 0], sizes = [16, 16, 4], strides = [1, 1, 1]} : vector<18x18x4xf32> to vector<16x16x4xf32>
    %12 = vector.shape_cast %11 : vector<16x16x4xf32> to vector<256x4xf32>
    %c0_7 = arith.constant 0 : index
    %c0_8 = arith.constant 0 : index
    %c0_9 = arith.constant 0 : index
    %c0_10 = arith.constant 0 : index
    %13 = vector.load %arg2[%c0_7, %c0_8, %c0_9, %c0_10] : memref<3x3x4x64xf32, #tpu.memory_space<vmem>>, vector<1x1x4x64xf32>
    %14 = vector.shape_cast %13 : vector<1x1x4x64xf32> to vector<4x64xf32>
    %cst_11 = arith.constant dense<0.000000e+00> : vector<256x64xf32>
    %15 = tpu.matmul %12, %14, %cst_11 {dimension_numbers = #tpu.dot_dimension_numbers<[1], [0], [0], [1], [0, 0, 1, 1], [], []>} : vector<256x4xf32>, vector<4x64xf32>, vector<256x64xf32> -> vector<256x64xf32>
    %16 = arith.addf %10, %15 : vector<256x64xf32>
    %17 = vector.extract_strided_slice %9 {offsets = [0, 1, 0], sizes = [16, 16, 4], strides = [1, 1, 1]} : vector<18x18x4xf32> to vector<16x16x4xf32>
    %18 = vector.shape_cast %17 : vector<16x16x4xf32> to vector<256x4xf32>
    %c0_12 = arith.constant 0 : index
    %c1 = arith.constant 1 : index
    %c0_13 = arith.constant 0 : index
    %c0_14 = arith.constant 0 : index
    %19 = vector.load %arg2[%c0_12, %c1, %c0_13, %c0_14] : memref<3x3x4x64xf32, #tpu.memory_space<vmem>>, vector<1x1x4x64xf32>
    %20 = vector.shape_cast %19 : vector<1x1x4x64xf32> to vector<4x64xf32>
    %cst_15 = arith.constant dense<0.000000e+00> : vector<256x64xf32>
    %21 = tpu.matmul %18, %20, %cst_15 {dimension_numbers = #tpu.dot_dimension_numbers<[1], [0], [0], [1], [0, 0, 1, 1], [], []>} : vector<256x4xf32>, vector<4x64xf32>, vector<256x64xf32> -> vector<256x64xf32>
    %22 = arith.addf %16, %21 : vector<256x64xf32>
    %23 = vector.extract_strided_slice %9 {offsets = [0, 2, 0], sizes = [16, 16, 4], strides = [1, 1, 1]} : vector<18x18x4xf32> to vector<16x16x4xf32>
    %24 = vector.shape_cast %23 : vector<16x16x4xf32> to vector<256x4xf32>
    %c0_16 = arith.constant 0 : index
    %c2 = arith.constant 2 : index
    %c0_17 = arith.constant 0 : index
    %c0_18 = arith.constant 0 : index
    %25 = vector.load %arg2[%c0_16, %c2, %c0_17, %c0_18] : memref<3x3x4x64xf32, #tpu.memory_space<vmem>>, vector<1x1x4x64xf32>
    %26 = vector.shape_cast %25 : vector<1x1x4x64xf32> to vector<4x64xf32>
    %cst_19 = arith.constant dense<0.000000e+00> : vector<256x64xf32>
    %27 = tpu.matmul %24, %26, %cst_19 {dimension_numbers = #tpu.dot_dimension_numbers<[1], [0], [0], [1], [0, 0, 1, 1], [], []>} : vector<256x4xf32>, vector<4x64xf32>, vector<256x64xf32> -> vector<256x64xf32>
    %28 = arith.addf %22, %27 : vector<256x64xf32>
    %29 = vector.extract_strided_slice %9 {offsets = [1, 0, 0], sizes = [16, 16, 4], strides = [1, 1, 1]} : vector<18x18x4xf32> to vector<16x16x4xf32>
    %30 = vector.shape_cast %29 : vector<16x16x4xf32> to vector<256x4xf32>
    %c1_20 = arith.constant 1 : index
    %c0_21 = arith.constant 0 : index
    %c0_22 = arith.constant 0 : index
    %c0_23 = arith.constant 0 : index
    %31 = vector.load %arg2[%c1_20, %c0_21, %c0_22, %c0_23] : memref<3x3x4x64xf32, #tpu.memory_space<vmem>>, vector<1x1x4x64xf32>
    %32 = vector.shape_cast %31 : vector<1x1x4x64xf32> to vector<4x64xf32>
    %cst_24 = arith.constant dense<0.000000e+00> : vector<256x64xf32>
    %33 = tpu.matmul %30, %32, %cst_24 {dimension_numbers = #tpu.dot_dimension_numbers<[1], [0], [0], [1], [0, 0, 1, 1], [], []>} : vector<256x4xf32>, vector<4x64xf32>, vector<256x64xf32> -> vector<256x64xf32>
    %34 = arith.addf %28, %33 : vector<256x64xf32>
    %35 = vector.extract_strided_slice %9 {offsets = [1, 1, 0], sizes = [16, 16, 4], strides = [1, 1, 1]} : vector<18x18x4xf32> to vector<16x16x4xf32>
    %36 = vector.shape_cast %35 : vector<16x16x4xf32> to vector<256x4xf32>
    %c1_25 = arith.constant 1 : index
    %c1_26 = arith.constant 1 : index
    %c0_27 = arith.constant 0 : index
    %c0_28 = arith.constant 0 : index
    %37 = vector.load %arg2[%c1_25, %c1_26, %c0_27, %c0_28] : memref<3x3x4x64xf32, #tpu.memory_space<vmem>>, vector<1x1x4x64xf32>
    %38 = vector.shape_cast %37 : vector<1x1x4x64xf32> to vector<4x64xf32>
    %cst_29 = arith.constant dense<0.000000e+00> : vector<256x64xf32>
    %39 = tpu.matmul %36, %38, %cst_29 {dimension_numbers = #tpu.dot_dimension_numbers<[1], [0], [0], [1], [0, 0, 1, 1], [], []>} : vector<256x4xf32>, vector<4x64xf32>, vector<256x64xf32> -> vector<256x64xf32>
    %40 = arith.addf %34, %39 : vector<256x64xf32>
    %41 = vector.extract_strided_slice %9 {offsets = [1, 2, 0], sizes = [16, 16, 4], strides = [1, 1, 1]} : vector<18x18x4xf32> to vector<16x16x4xf32>
    %42 = vector.shape_cast %41 : vector<16x16x4xf32> to vector<256x4xf32>
    %c1_30 = arith.constant 1 : index
    %c2_31 = arith.constant 2 : index
    %c0_32 = arith.constant 0 : index
    %c0_33 = arith.constant 0 : index
    %43 = vector.load %arg2[%c1_30, %c2_31, %c0_32, %c0_33] : memref<3x3x4x64xf32, #tpu.memory_space<vmem>>, vector<1x1x4x64xf32>
    %44 = vector.shape_cast %43 : vector<1x1x4x64xf32> to vector<4x64xf32>
    %cst_34 = arith.constant dense<0.000000e+00> : vector<256x64xf32>
    %45 = tpu.matmul %42, %44, %cst_34 {dimension_numbers = #tpu.dot_dimension_numbers<[1], [0], [0], [1], [0, 0, 1, 1], [], []>} : vector<256x4xf32>, vector<4x64xf32>, vector<256x64xf32> -> vector<256x64xf32>
    %46 = arith.addf %40, %45 : vector<256x64xf32>
    %47 = vector.extract_strided_slice %9 {offsets = [2, 0, 0], sizes = [16, 16, 4], strides = [1, 1, 1]} : vector<18x18x4xf32> to vector<16x16x4xf32>
    %48 = vector.shape_cast %47 : vector<16x16x4xf32> to vector<256x4xf32>
    %c2_35 = arith.constant 2 : index
    %c0_36 = arith.constant 0 : index
    %c0_37 = arith.constant 0 : index
    %c0_38 = arith.constant 0 : index
    %49 = vector.load %arg2[%c2_35, %c0_36, %c0_37, %c0_38] : memref<3x3x4x64xf32, #tpu.memory_space<vmem>>, vector<1x1x4x64xf32>
    %50 = vector.shape_cast %49 : vector<1x1x4x64xf32> to vector<4x64xf32>
    %cst_39 = arith.constant dense<0.000000e+00> : vector<256x64xf32>
    %51 = tpu.matmul %48, %50, %cst_39 {dimension_numbers = #tpu.dot_dimension_numbers<[1], [0], [0], [1], [0, 0, 1, 1], [], []>} : vector<256x4xf32>, vector<4x64xf32>, vector<256x64xf32> -> vector<256x64xf32>
    %52 = arith.addf %46, %51 : vector<256x64xf32>
    %53 = vector.extract_strided_slice %9 {offsets = [2, 1, 0], sizes = [16, 16, 4], strides = [1, 1, 1]} : vector<18x18x4xf32> to vector<16x16x4xf32>
    %54 = vector.shape_cast %53 : vector<16x16x4xf32> to vector<256x4xf32>
    %c2_40 = arith.constant 2 : index
    %c1_41 = arith.constant 1 : index
    %c0_42 = arith.constant 0 : index
    %c0_43 = arith.constant 0 : index
    %55 = vector.load %arg2[%c2_40, %c1_41, %c0_42, %c0_43] : memref<3x3x4x64xf32, #tpu.memory_space<vmem>>, vector<1x1x4x64xf32>
    %56 = vector.shape_cast %55 : vector<1x1x4x64xf32> to vector<4x64xf32>
    %cst_44 = arith.constant dense<0.000000e+00> : vector<256x64xf32>
    %57 = tpu.matmul %54, %56, %cst_44 {dimension_numbers = #tpu.dot_dimension_numbers<[1], [0], [0], [1], [0, 0, 1, 1], [], []>} : vector<256x4xf32>, vector<4x64xf32>, vector<256x64xf32> -> vector<256x64xf32>
    %58 = arith.addf %52, %57 : vector<256x64xf32>
    %59 = vector.extract_strided_slice %9 {offsets = [2, 2, 0], sizes = [16, 16, 4], strides = [1, 1, 1]} : vector<18x18x4xf32> to vector<16x16x4xf32>
    %60 = vector.shape_cast %59 : vector<16x16x4xf32> to vector<256x4xf32>
    %c2_45 = arith.constant 2 : index
    %c2_46 = arith.constant 2 : index
    %c0_47 = arith.constant 0 : index
    %c0_48 = arith.constant 0 : index
    %61 = vector.load %arg2[%c2_45, %c2_46, %c0_47, %c0_48] : memref<3x3x4x64xf32, #tpu.memory_space<vmem>>, vector<1x1x4x64xf32>
    %62 = vector.shape_cast %61 : vector<1x1x4x64xf32> to vector<4x64xf32>
    %cst_49 = arith.constant dense<0.000000e+00> : vector<256x64xf32>
    %63 = tpu.matmul %60, %62, %cst_49 {dimension_numbers = #tpu.dot_dimension_numbers<[1], [0], [0], [1], [0, 0, 1, 1], [], []>} : vector<256x4xf32>, vector<4x64xf32>, vector<256x64xf32> -> vector<256x64xf32>
    %64 = arith.addf %58, %63 : vector<256x64xf32>
    %c0_50 = arith.constant 0 : index
    %c0_51 = arith.constant 0 : index
    %c0_52 = arith.constant 0 : index
    %65 = vector.load %arg5[%c0_50, %c0_51, %c0_52] : memref<1x256x64xf32, #tpu.memory_space<vmem>>, vector<1x256x64xf32>
    %66 = vector.shape_cast %65 : vector<1x256x64xf32> to vector<256x64xf32>
    %67 = vector.shape_cast %64 : vector<256x64xf32> to vector<1x256x64xf32>
    tpu.vector_store %arg5[%c0_50, %c0_51, %c0_52], %67 {strides = array<i32>} : memref<1x256x64xf32, #tpu.memory_space<vmem>>, vector<1x256x64xf32>,
    return
  }
  func.func @transform_0(%arg0: i32) -> (i32, i32, i32, i32) {
    %c0_i32 = arith.constant 0 : i32
    %c0_i32_0 = arith.constant 0 : i32
    %c0_i32_1 = arith.constant 0 : i32
    %c0_i32_2 = arith.constant 0 : i32
    return %arg0, %c0_i32, %c0_i32_0, %c0_i32_1 : i32, i32, i32, i32
  }
  func.func @transform_1(%arg0: i32) -> (i32, i32, i32, i32) {
    %c0_i32 = arith.constant 0 : i32
    %c0_i32_0 = arith.constant 0 : i32
    %c0_i32_1 = arith.constant 0 : i32
    %c0_i32_2 = arith.constant 0 : i32
    %c0_i32_3 = arith.constant 0 : i32
    return %c0_i32, %c0_i32_0, %c0_i32_1, %c0_i32_2 : i32, i32, i32, i32
  }
  func.func @transform_2(%arg0: i32) -> (i32, i32) {
    %c0_i32 = arith.constant 0 : i32
    %c0_i32_0 = arith.constant 0 : i32
    %c0_i32_1 = arith.constant 0 : i32
    return %c0_i32, %c0_i32_0 : i32, i32
  }
  func.func @transform_3(%arg0: i32) -> (i32, i32) {
    %c0_i32 = arith.constant 0 : i32
    %c0_i32_0 = arith.constant 0 : i32
    %c0_i32_1 = arith.constant 0 : i32
    return %c0_i32, %c0_i32_0 : i32, i32
  }
  func.func @transform_4(%arg0: i32) -> (i32, i32, i32) {
    %c0_i32 = arith.constant 0 : i32
    %c0_i32_0 = arith.constant 0 : i32
    %c0_i32_1 = arith.constant 0 : i32
    return %arg0, %c0_i32, %c0_i32_0 : i32, i32, i32
  }
}

module attributes {stable_mosaic.version = 11 : i64} {
  func.func @kernel(%arg0: i32, %arg1: memref<1x18x18x64xf32, #tpu.memory_space<vmem>>, %arg2: memref<3x3x64x64xf32, #tpu.memory_space<vmem>>, %arg3: memref<1x64xf32, #tpu.memory_space<vmem>>, %arg4: memref<1x64xf32, #tpu.memory_space<vmem>>, %arg5: memref<1x256x64xf32, #tpu.memory_space<vmem>>, %arg6: memref<1x2x64xf32, #tpu.memory_space<vmem>>) attributes {dimension_semantics = [#tpu.dimension_semantics<parallel>], iteration_bounds = array<i64: 2>, scalar_prefetch = 0 : i64, scratch_operands = 0 : i64, tpu.core_type = #tpu.core_type<tc>, window_params = [{transform_indices = @transform_0, window_bounds = array<i64: 1, 18, 18, 64>}, {pipeline_mode = #tpu.pipeline_mode<synchronous>, transform_indices = @transform_1, window_bounds = array<i64: 3, 3, 64, 64>}, {pipeline_mode = #tpu.pipeline_mode<synchronous>, transform_indices = @transform_2, window_bounds = array<i64: 1, 64>}, {pipeline_mode = #tpu.pipeline_mode<synchronous>, transform_indices = @transform_3, window_bounds = array<i64: 1, 64>}, {transform_indices = @transform_4, window_bounds = array<i64: 1, 256, 64>}, {transform_indices = @transform_5, window_bounds = array<i64: 1, 2, 64>}]} {
    %c0 = arith.constant 0 : index
    %c0_0 = arith.constant 0 : index
    %c0_1 = arith.constant 0 : index
    %c0_2 = arith.constant 0 : index
    %0 = vector.load %arg1[%c0, %c0_0, %c0_1, %c0_2] : memref<1x18x18x64xf32, #tpu.memory_space<vmem>>, vector<1x18x18x64xf32>
    %1 = vector.shape_cast %0 : vector<1x18x18x64xf32> to vector<18x18x64xf32>
    %c0_3 = arith.constant 0 : index
    %c0_4 = arith.constant 0 : index
    %2 = vector.load %arg3[%c0_3, %c0_4] : memref<1x64xf32, #tpu.memory_space<vmem>>, vector<1x64xf32>
    %3 = vector.shape_cast %2 : vector<1x64xf32> to vector<1x1x64xf32>
    %4 = vector.broadcast %3 : vector<1x1x64xf32> to vector<18x18x64xf32>
    %5 = arith.mulf %1, %4 : vector<18x18x64xf32>
    %c0_5 = arith.constant 0 : index
    %c0_6 = arith.constant 0 : index
    %6 = vector.load %arg4[%c0_5, %c0_6] : memref<1x64xf32, #tpu.memory_space<vmem>>, vector<1x64xf32>
    %7 = vector.shape_cast %6 : vector<1x64xf32> to vector<1x1x64xf32>
    %8 = vector.broadcast %7 : vector<1x1x64xf32> to vector<18x18x64xf32>
    %9 = arith.addf %5, %8 : vector<18x18x64xf32>
    %cst = arith.constant 0.000000e+00 : f32
    %10 = vector.broadcast %cst : f32 to vector<18x18x64xf32>
    %11 = arith.maximumf %9, %10 : vector<18x18x64xf32>
    %cst_7 = arith.constant 0.000000e+00 : f32
    %12 = vector.broadcast %cst_7 : f32 to vector<256x64xf32>
    %13 = vector.extract_strided_slice %11 {offsets = [0, 0, 0], sizes = [16, 16, 64], strides = [1, 1, 1]} : vector<18x18x64xf32> to vector<16x16x64xf32>
    %14 = vector.shape_cast %13 : vector<16x16x64xf32> to vector<256x64xf32>
    %c0_8 = arith.constant 0 : index
    %c0_9 = arith.constant 0 : index
    %c0_10 = arith.constant 0 : index
    %c0_11 = arith.constant 0 : index
    %15 = vector.load %arg2[%c0_8, %c0_9, %c0_10, %c0_11] : memref<3x3x64x64xf32, #tpu.memory_space<vmem>>, vector<1x1x64x64xf32>
    %16 = vector.shape_cast %15 : vector<1x1x64x64xf32> to vector<64x64xf32>
    %cst_12 = arith.constant dense<0.000000e+00> : vector<256x64xf32>
    %17 = tpu.matmul %14, %16, %cst_12 {dimension_numbers = #tpu.dot_dimension_numbers<[1], [0], [0], [1], [0, 0, 1, 1], [], []>} : vector<256x64xf32>, vector<64x64xf32>, vector<256x64xf32> -> vector<256x64xf32>
    %18 = arith.addf %12, %17 : vector<256x64xf32>
    %19 = vector.extract_strided_slice %11 {offsets = [0, 1, 0], sizes = [16, 16, 64], strides = [1, 1, 1]} : vector<18x18x64xf32> to vector<16x16x64xf32>
    %20 = vector.shape_cast %19 : vector<16x16x64xf32> to vector<256x64xf32>
    %c0_13 = arith.constant 0 : index
    %c1 = arith.constant 1 : index
    %c0_14 = arith.constant 0 : index
    %c0_15 = arith.constant 0 : index
    %21 = vector.load %arg2[%c0_13, %c1, %c0_14, %c0_15] : memref<3x3x64x64xf32, #tpu.memory_space<vmem>>, vector<1x1x64x64xf32>
    %22 = vector.shape_cast %21 : vector<1x1x64x64xf32> to vector<64x64xf32>
    %cst_16 = arith.constant dense<0.000000e+00> : vector<256x64xf32>
    %23 = tpu.matmul %20, %22, %cst_16 {dimension_numbers = #tpu.dot_dimension_numbers<[1], [0], [0], [1], [0, 0, 1, 1], [], []>} : vector<256x64xf32>, vector<64x64xf32>, vector<256x64xf32> -> vector<256x64xf32>
    %24 = arith.addf %18, %23 : vector<256x64xf32>
    %25 = vector.extract_strided_slice %11 {offsets = [0, 2, 0], sizes = [16, 16, 64], strides = [1, 1, 1]} : vector<18x18x64xf32> to vector<16x16x64xf32>
    %26 = vector.shape_cast %25 : vector<16x16x64xf32> to vector<256x64xf32>
    %c0_17 = arith.constant 0 : index
    %c2 = arith.constant 2 : index
    %c0_18 = arith.constant 0 : index
    %c0_19 = arith.constant 0 : index
    %27 = vector.load %arg2[%c0_17, %c2, %c0_18, %c0_19] : memref<3x3x64x64xf32, #tpu.memory_space<vmem>>, vector<1x1x64x64xf32>
    %28 = vector.shape_cast %27 : vector<1x1x64x64xf32> to vector<64x64xf32>
    %cst_20 = arith.constant dense<0.000000e+00> : vector<256x64xf32>
    %29 = tpu.matmul %26, %28, %cst_20 {dimension_numbers = #tpu.dot_dimension_numbers<[1], [0], [0], [1], [0, 0, 1, 1], [], []>} : vector<256x64xf32>, vector<64x64xf32>, vector<256x64xf32> -> vector<256x64xf32>
    %30 = arith.addf %24, %29 : vector<256x64xf32>
    %31 = vector.extract_strided_slice %11 {offsets = [1, 0, 0], sizes = [16, 16, 64], strides = [1, 1, 1]} : vector<18x18x64xf32> to vector<16x16x64xf32>
    %32 = vector.shape_cast %31 : vector<16x16x64xf32> to vector<256x64xf32>
    %c1_21 = arith.constant 1 : index
    %c0_22 = arith.constant 0 : index
    %c0_23 = arith.constant 0 : index
    %c0_24 = arith.constant 0 : index
    %33 = vector.load %arg2[%c1_21, %c0_22, %c0_23, %c0_24] : memref<3x3x64x64xf32, #tpu.memory_space<vmem>>, vector<1x1x64x64xf32>
    %34 = vector.shape_cast %33 : vector<1x1x64x64xf32> to vector<64x64xf32>
    %cst_25 = arith.constant dense<0.000000e+00> : vector<256x64xf32>
    %35 = tpu.matmul %32, %34, %cst_25 {dimension_numbers = #tpu.dot_dimension_numbers<[1], [0], [0], [1], [0, 0, 1, 1], [], []>} : vector<256x64xf32>, vector<64x64xf32>, vector<256x64xf32> -> vector<256x64xf32>
    %36 = arith.addf %30, %35 : vector<256x64xf32>
    %37 = vector.extract_strided_slice %11 {offsets = [1, 1, 0], sizes = [16, 16, 64], strides = [1, 1, 1]} : vector<18x18x64xf32> to vector<16x16x64xf32>
    %38 = vector.shape_cast %37 : vector<16x16x64xf32> to vector<256x64xf32>
    %c1_26 = arith.constant 1 : index
    %c1_27 = arith.constant 1 : index
    %c0_28 = arith.constant 0 : index
    %c0_29 = arith.constant 0 : index
    %39 = vector.load %arg2[%c1_26, %c1_27, %c0_28, %c0_29] : memref<3x3x64x64xf32, #tpu.memory_space<vmem>>, vector<1x1x64x64xf32>
    %40 = vector.shape_cast %39 : vector<1x1x64x64xf32> to vector<64x64xf32>
    %cst_30 = arith.constant dense<0.000000e+00> : vector<256x64xf32>
    %41 = tpu.matmul %38, %40, %cst_30 {dimension_numbers = #tpu.dot_dimension_numbers<[1], [0], [0], [1], [0, 0, 1, 1], [], []>} : vector<256x64xf32>, vector<64x64xf32>, vector<256x64xf32> -> vector<256x64xf32>
    %42 = arith.addf %36, %41 : vector<256x64xf32>
    %43 = vector.extract_strided_slice %11 {offsets = [1, 2, 0], sizes = [16, 16, 64], strides = [1, 1, 1]} : vector<18x18x64xf32> to vector<16x16x64xf32>
    %44 = vector.shape_cast %43 : vector<16x16x64xf32> to vector<256x64xf32>
    %c1_31 = arith.constant 1 : index
    %c2_32 = arith.constant 2 : index
    %c0_33 = arith.constant 0 : index
    %c0_34 = arith.constant 0 : index
    %45 = vector.load %arg2[%c1_31, %c2_32, %c0_33, %c0_34] : memref<3x3x64x64xf32, #tpu.memory_space<vmem>>, vector<1x1x64x64xf32>
    %46 = vector.shape_cast %45 : vector<1x1x64x64xf32> to vector<64x64xf32>
    %cst_35 = arith.constant dense<0.000000e+00> : vector<256x64xf32>
    %47 = tpu.matmul %44, %46, %cst_35 {dimension_numbers = #tpu.dot_dimension_numbers<[1], [0], [0], [1], [0, 0, 1, 1], [], []>} : vector<256x64xf32>, vector<64x64xf32>, vector<256x64xf32> -> vector<256x64xf32>
    %48 = arith.addf %42, %47 : vector<256x64xf32>
    %49 = vector.extract_strided_slice %11 {offsets = [2, 0, 0], sizes = [16, 16, 64], strides = [1, 1, 1]} : vector<18x18x64xf32> to vector<16x16x64xf32>
    %50 = vector.shape_cast %49 : vector<16x16x64xf32> to vector<256x64xf32>
    %c2_36 = arith.constant 2 : index
    %c0_37 = arith.constant 0 : index
    %c0_38 = arith.constant 0 : index
    %c0_39 = arith.constant 0 : index
    %51 = vector.load %arg2[%c2_36, %c0_37, %c0_38, %c0_39] : memref<3x3x64x64xf32, #tpu.memory_space<vmem>>, vector<1x1x64x64xf32>
    %52 = vector.shape_cast %51 : vector<1x1x64x64xf32> to vector<64x64xf32>
    %cst_40 = arith.constant dense<0.000000e+00> : vector<256x64xf32>
    %53 = tpu.matmul %50, %52, %cst_40 {dimension_numbers = #tpu.dot_dimension_numbers<[1], [0], [0], [1], [0, 0, 1, 1], [], []>} : vector<256x64xf32>, vector<64x64xf32>, vector<256x64xf32> -> vector<256x64xf32>
    %54 = arith.addf %48, %53 : vector<256x64xf32>
    %55 = vector.extract_strided_slice %11 {offsets = [2, 1, 0], sizes = [16, 16, 64], strides = [1, 1, 1]} : vector<18x18x64xf32> to vector<16x16x64xf32>
    %56 = vector.shape_cast %55 : vector<16x16x64xf32> to vector<256x64xf32>
    %c2_41 = arith.constant 2 : index
    %c1_42 = arith.constant 1 : index
    %c0_43 = arith.constant 0 : index
    %c0_44 = arith.constant 0 : index
    %57 = vector.load %arg2[%c2_41, %c1_42, %c0_43, %c0_44] : memref<3x3x64x64xf32, #tpu.memory_space<vmem>>, vector<1x1x64x64xf32>
    %58 = vector.shape_cast %57 : vector<1x1x64x64xf32> to vector<64x64xf32>
    %cst_45 = arith.constant dense<0.000000e+00> : vector<256x64xf32>
    %59 = tpu.matmul %56, %58, %cst_45 {dimension_numbers = #tpu.dot_dimension_numbers<[1], [0], [0], [1], [0, 0, 1, 1], [], []>} : vector<256x64xf32>, vector<64x64xf32>, vector<256x64xf32> -> vector<256x64xf32>
    %60 = arith.addf %54, %59 : vector<256x64xf32>
    %61 = vector.extract_strided_slice %11 {offsets = [2, 2, 0], sizes = [16, 16, 64], strides = [1, 1, 1]} : vector<18x18x64xf32> to vector<16x16x64xf32>
    %62 = vector.shape_cast %61 : vector<16x16x64xf32> to vector<256x64xf32>
    %c2_46 = arith.constant 2 : index
    %c2_47 = arith.constant 2 : index
    %c0_48 = arith.constant 0 : index
    %c0_49 = arith.constant 0 : index
    %63 = vector.load %arg2[%c2_46, %c2_47, %c0_48, %c0_49] : memref<3x3x64x64xf32, #tpu.memory_space<vmem>>, vector<1x1x64x64xf32>
    %64 = vector.shape_cast %63 : vector<1x1x64x64xf32> to vector<64x64xf32>
    %cst_50 = arith.constant dense<0.000000e+00> : vector<256x64xf32>
    %65 = tpu.matmul %62, %64, %cst_50 {dimension_numbers = #tpu.dot_dimension_numbers<[1], [0], [0], [1], [0, 0, 1, 1], [], []>} : vector<256x64xf32>, vector<64x64xf32>, vector<256x64xf32> -> vector<256x64xf32>
    %66 = arith.addf %60, %65 : vector<256x64xf32>
    %cst_51 = arith.constant dense<0.000000e+00> : vector<64xf32>
    %67 = vector.multi_reduction <add>, %66, %cst_51 [0] : vector<256x64xf32> to vector<64xf32>
    %68 = vector.shape_cast %67 : vector<64xf32> to vector<1x64xf32>
    %69 = arith.mulf %66, %66 : vector<256x64xf32>
    %cst_52 = arith.constant dense<0.000000e+00> : vector<64xf32>
    %70 = vector.multi_reduction <add>, %69, %cst_52 [0] : vector<256x64xf32> to vector<64xf32>
    %71 = vector.shape_cast %70 : vector<64xf32> to vector<1x64xf32>
    %72 = tpu.concatenate %68, %71 in 0 : vector<1x64xf32>, vector<1x64xf32> -> vector<2x64xf32>
    %c0_53 = arith.constant 0 : index
    %c0_54 = arith.constant 0 : index
    %c0_55 = arith.constant 0 : index
    %73 = vector.load %arg6[%c0_53, %c0_54, %c0_55] : memref<1x2x64xf32, #tpu.memory_space<vmem>>, vector<1x2x64xf32>
    %74 = vector.shape_cast %73 : vector<1x2x64xf32> to vector<2x64xf32>
    %75 = vector.shape_cast %72 : vector<2x64xf32> to vector<1x2x64xf32>
    tpu.vector_store %arg6[%c0_53, %c0_54, %c0_55], %75 {strides = array<i32>} : memref<1x2x64xf32, #tpu.memory_space<vmem>>, vector<1x2x64xf32>,
    %c0_56 = arith.constant 0 : index
    %c0_57 = arith.constant 0 : index
    %c0_58 = arith.constant 0 : index
    %76 = vector.load %arg5[%c0_56, %c0_57, %c0_58] : memref<1x256x64xf32, #tpu.memory_space<vmem>>, vector<1x256x64xf32>
    %77 = vector.shape_cast %76 : vector<1x256x64xf32> to vector<256x64xf32>
    %78 = vector.shape_cast %66 : vector<256x64xf32> to vector<1x256x64xf32>
    tpu.vector_store %arg5[%c0_56, %c0_57, %c0_58], %78 {strides = array<i32>} : memref<1x256x64xf32, #tpu.memory_space<vmem>>, vector<1x256x64xf32>,
    return
  }
  func.func @transform_0(%arg0: i32) -> (i32, i32, i32, i32) {
    %c0_i32 = arith.constant 0 : i32
    %c0_i32_0 = arith.constant 0 : i32
    %c0_i32_1 = arith.constant 0 : i32
    %c0_i32_2 = arith.constant 0 : i32
    return %arg0, %c0_i32, %c0_i32_0, %c0_i32_1 : i32, i32, i32, i32
  }
  func.func @transform_1(%arg0: i32) -> (i32, i32, i32, i32) {
    %c0_i32 = arith.constant 0 : i32
    %c0_i32_0 = arith.constant 0 : i32
    %c0_i32_1 = arith.constant 0 : i32
    %c0_i32_2 = arith.constant 0 : i32
    %c0_i32_3 = arith.constant 0 : i32
    return %c0_i32, %c0_i32_0, %c0_i32_1, %c0_i32_2 : i32, i32, i32, i32
  }
  func.func @transform_2(%arg0: i32) -> (i32, i32) {
    %c0_i32 = arith.constant 0 : i32
    %c0_i32_0 = arith.constant 0 : i32
    %c0_i32_1 = arith.constant 0 : i32
    return %c0_i32, %c0_i32_0 : i32, i32
  }
  func.func @transform_3(%arg0: i32) -> (i32, i32) {
    %c0_i32 = arith.constant 0 : i32
    %c0_i32_0 = arith.constant 0 : i32
    %c0_i32_1 = arith.constant 0 : i32
    return %c0_i32, %c0_i32_0 : i32, i32
  }
  func.func @transform_4(%arg0: i32) -> (i32, i32, i32) {
    %c0_i32 = arith.constant 0 : i32
    %c0_i32_0 = arith.constant 0 : i32
    %c0_i32_1 = arith.constant 0 : i32
    return %arg0, %c0_i32, %c0_i32_0 : i32, i32, i32
  }
  func.func @transform_5(%arg0: i32) -> (i32, i32, i32) {
    %c0_i32 = arith.constant 0 : i32
    %c0_i32_0 = arith.constant 0 : i32
    %c0_i32_1 = arith.constant 0 : i32
    return %arg0, %c0_i32, %c0_i32_0 : i32, i32, i32
  }
}

module attributes {stable_mosaic.version = 11 : i64} {
  func.func @kernel(%arg0: i32, %arg1: memref<1x18x18x64xf32, #tpu.memory_space<vmem>>, %arg2: memref<3x3x64x4xf32, #tpu.memory_space<vmem>>, %arg3: memref<1x64xf32, #tpu.memory_space<vmem>>, %arg4: memref<1x64xf32, #tpu.memory_space<vmem>>, %arg5: memref<1x256x4xf32, #tpu.memory_space<vmem>>, %arg6: memref<1x256x4xf32, #tpu.memory_space<vmem>>) attributes {dimension_semantics = [#tpu.dimension_semantics<parallel>], iteration_bounds = array<i64: 2>, scalar_prefetch = 0 : i64, scratch_operands = 0 : i64, tpu.core_type = #tpu.core_type<tc>, window_params = [{transform_indices = @transform_0, window_bounds = array<i64: 1, 18, 18, 64>}, {pipeline_mode = #tpu.pipeline_mode<synchronous>, transform_indices = @transform_1, window_bounds = array<i64: 3, 3, 64, 4>}, {pipeline_mode = #tpu.pipeline_mode<synchronous>, transform_indices = @transform_2, window_bounds = array<i64: 1, 64>}, {pipeline_mode = #tpu.pipeline_mode<synchronous>, transform_indices = @transform_3, window_bounds = array<i64: 1, 64>}, {transform_indices = @transform_4, window_bounds = array<i64: 1, 256, 4>}, {transform_indices = @transform_5, window_bounds = array<i64: 1, 256, 4>}]} {
    %c0 = arith.constant 0 : index
    %c0_0 = arith.constant 0 : index
    %c0_1 = arith.constant 0 : index
    %c0_2 = arith.constant 0 : index
    %0 = vector.load %arg1[%c0, %c0_0, %c0_1, %c0_2] : memref<1x18x18x64xf32, #tpu.memory_space<vmem>>, vector<1x18x18x64xf32>
    %1 = vector.shape_cast %0 : vector<1x18x18x64xf32> to vector<18x18x64xf32>
    %c0_3 = arith.constant 0 : index
    %c0_4 = arith.constant 0 : index
    %2 = vector.load %arg3[%c0_3, %c0_4] : memref<1x64xf32, #tpu.memory_space<vmem>>, vector<1x64xf32>
    %3 = vector.shape_cast %2 : vector<1x64xf32> to vector<1x1x64xf32>
    %4 = vector.broadcast %3 : vector<1x1x64xf32> to vector<18x18x64xf32>
    %5 = arith.mulf %1, %4 : vector<18x18x64xf32>
    %c0_5 = arith.constant 0 : index
    %c0_6 = arith.constant 0 : index
    %6 = vector.load %arg4[%c0_5, %c0_6] : memref<1x64xf32, #tpu.memory_space<vmem>>, vector<1x64xf32>
    %7 = vector.shape_cast %6 : vector<1x64xf32> to vector<1x1x64xf32>
    %8 = vector.broadcast %7 : vector<1x1x64xf32> to vector<18x18x64xf32>
    %9 = arith.addf %5, %8 : vector<18x18x64xf32>
    %cst = arith.constant 0.000000e+00 : f32
    %10 = vector.broadcast %cst : f32 to vector<18x18x64xf32>
    %11 = arith.maximumf %9, %10 : vector<18x18x64xf32>
    %cst_7 = arith.constant 0.000000e+00 : f32
    %12 = vector.broadcast %cst_7 : f32 to vector<256x4xf32>
    %13 = vector.extract_strided_slice %11 {offsets = [0, 0, 0], sizes = [16, 16, 64], strides = [1, 1, 1]} : vector<18x18x64xf32> to vector<16x16x64xf32>
    %14 = vector.shape_cast %13 : vector<16x16x64xf32> to vector<256x64xf32>
    %c0_8 = arith.constant 0 : index
    %c0_9 = arith.constant 0 : index
    %c0_10 = arith.constant 0 : index
    %c0_11 = arith.constant 0 : index
    %15 = vector.load %arg2[%c0_8, %c0_9, %c0_10, %c0_11] : memref<3x3x64x4xf32, #tpu.memory_space<vmem>>, vector<1x1x64x4xf32>
    %16 = vector.shape_cast %15 : vector<1x1x64x4xf32> to vector<64x4xf32>
    %cst_12 = arith.constant dense<0.000000e+00> : vector<256x4xf32>
    %17 = tpu.matmul %14, %16, %cst_12 {dimension_numbers = #tpu.dot_dimension_numbers<[1], [0], [0], [1], [0, 0, 1, 1], [], []>} : vector<256x64xf32>, vector<64x4xf32>, vector<256x4xf32> -> vector<256x4xf32>
    %18 = arith.addf %12, %17 : vector<256x4xf32>
    %19 = vector.extract_strided_slice %11 {offsets = [0, 1, 0], sizes = [16, 16, 64], strides = [1, 1, 1]} : vector<18x18x64xf32> to vector<16x16x64xf32>
    %20 = vector.shape_cast %19 : vector<16x16x64xf32> to vector<256x64xf32>
    %c0_13 = arith.constant 0 : index
    %c1 = arith.constant 1 : index
    %c0_14 = arith.constant 0 : index
    %c0_15 = arith.constant 0 : index
    %21 = vector.load %arg2[%c0_13, %c1, %c0_14, %c0_15] : memref<3x3x64x4xf32, #tpu.memory_space<vmem>>, vector<1x1x64x4xf32>
    %22 = vector.shape_cast %21 : vector<1x1x64x4xf32> to vector<64x4xf32>
    %cst_16 = arith.constant dense<0.000000e+00> : vector<256x4xf32>
    %23 = tpu.matmul %20, %22, %cst_16 {dimension_numbers = #tpu.dot_dimension_numbers<[1], [0], [0], [1], [0, 0, 1, 1], [], []>} : vector<256x64xf32>, vector<64x4xf32>, vector<256x4xf32> -> vector<256x4xf32>
    %24 = arith.addf %18, %23 : vector<256x4xf32>
    %25 = vector.extract_strided_slice %11 {offsets = [0, 2, 0], sizes = [16, 16, 64], strides = [1, 1, 1]} : vector<18x18x64xf32> to vector<16x16x64xf32>
    %26 = vector.shape_cast %25 : vector<16x16x64xf32> to vector<256x64xf32>
    %c0_17 = arith.constant 0 : index
    %c2 = arith.constant 2 : index
    %c0_18 = arith.constant 0 : index
    %c0_19 = arith.constant 0 : index
    %27 = vector.load %arg2[%c0_17, %c2, %c0_18, %c0_19] : memref<3x3x64x4xf32, #tpu.memory_space<vmem>>, vector<1x1x64x4xf32>
    %28 = vector.shape_cast %27 : vector<1x1x64x4xf32> to vector<64x4xf32>
    %cst_20 = arith.constant dense<0.000000e+00> : vector<256x4xf32>
    %29 = tpu.matmul %26, %28, %cst_20 {dimension_numbers = #tpu.dot_dimension_numbers<[1], [0], [0], [1], [0, 0, 1, 1], [], []>} : vector<256x64xf32>, vector<64x4xf32>, vector<256x4xf32> -> vector<256x4xf32>
    %30 = arith.addf %24, %29 : vector<256x4xf32>
    %31 = vector.extract_strided_slice %11 {offsets = [1, 0, 0], sizes = [16, 16, 64], strides = [1, 1, 1]} : vector<18x18x64xf32> to vector<16x16x64xf32>
    %32 = vector.shape_cast %31 : vector<16x16x64xf32> to vector<256x64xf32>
    %c1_21 = arith.constant 1 : index
    %c0_22 = arith.constant 0 : index
    %c0_23 = arith.constant 0 : index
    %c0_24 = arith.constant 0 : index
    %33 = vector.load %arg2[%c1_21, %c0_22, %c0_23, %c0_24] : memref<3x3x64x4xf32, #tpu.memory_space<vmem>>, vector<1x1x64x4xf32>
    %34 = vector.shape_cast %33 : vector<1x1x64x4xf32> to vector<64x4xf32>
    %cst_25 = arith.constant dense<0.000000e+00> : vector<256x4xf32>
    %35 = tpu.matmul %32, %34, %cst_25 {dimension_numbers = #tpu.dot_dimension_numbers<[1], [0], [0], [1], [0, 0, 1, 1], [], []>} : vector<256x64xf32>, vector<64x4xf32>, vector<256x4xf32> -> vector<256x4xf32>
    %36 = arith.addf %30, %35 : vector<256x4xf32>
    %37 = vector.extract_strided_slice %11 {offsets = [1, 1, 0], sizes = [16, 16, 64], strides = [1, 1, 1]} : vector<18x18x64xf32> to vector<16x16x64xf32>
    %38 = vector.shape_cast %37 : vector<16x16x64xf32> to vector<256x64xf32>
    %c1_26 = arith.constant 1 : index
    %c1_27 = arith.constant 1 : index
    %c0_28 = arith.constant 0 : index
    %c0_29 = arith.constant 0 : index
    %39 = vector.load %arg2[%c1_26, %c1_27, %c0_28, %c0_29] : memref<3x3x64x4xf32, #tpu.memory_space<vmem>>, vector<1x1x64x4xf32>
    %40 = vector.shape_cast %39 : vector<1x1x64x4xf32> to vector<64x4xf32>
    %cst_30 = arith.constant dense<0.000000e+00> : vector<256x4xf32>
    %41 = tpu.matmul %38, %40, %cst_30 {dimension_numbers = #tpu.dot_dimension_numbers<[1], [0], [0], [1], [0, 0, 1, 1], [], []>} : vector<256x64xf32>, vector<64x4xf32>, vector<256x4xf32> -> vector<256x4xf32>
    %42 = arith.addf %36, %41 : vector<256x4xf32>
    %43 = vector.extract_strided_slice %11 {offsets = [1, 2, 0], sizes = [16, 16, 64], strides = [1, 1, 1]} : vector<18x18x64xf32> to vector<16x16x64xf32>
    %44 = vector.shape_cast %43 : vector<16x16x64xf32> to vector<256x64xf32>
    %c1_31 = arith.constant 1 : index
    %c2_32 = arith.constant 2 : index
    %c0_33 = arith.constant 0 : index
    %c0_34 = arith.constant 0 : index
    %45 = vector.load %arg2[%c1_31, %c2_32, %c0_33, %c0_34] : memref<3x3x64x4xf32, #tpu.memory_space<vmem>>, vector<1x1x64x4xf32>
    %46 = vector.shape_cast %45 : vector<1x1x64x4xf32> to vector<64x4xf32>
    %cst_35 = arith.constant dense<0.000000e+00> : vector<256x4xf32>
    %47 = tpu.matmul %44, %46, %cst_35 {dimension_numbers = #tpu.dot_dimension_numbers<[1], [0], [0], [1], [0, 0, 1, 1], [], []>} : vector<256x64xf32>, vector<64x4xf32>, vector<256x4xf32> -> vector<256x4xf32>
    %48 = arith.addf %42, %47 : vector<256x4xf32>
    %49 = vector.extract_strided_slice %11 {offsets = [2, 0, 0], sizes = [16, 16, 64], strides = [1, 1, 1]} : vector<18x18x64xf32> to vector<16x16x64xf32>
    %50 = vector.shape_cast %49 : vector<16x16x64xf32> to vector<256x64xf32>
    %c2_36 = arith.constant 2 : index
    %c0_37 = arith.constant 0 : index
    %c0_38 = arith.constant 0 : index
    %c0_39 = arith.constant 0 : index
    %51 = vector.load %arg2[%c2_36, %c0_37, %c0_38, %c0_39] : memref<3x3x64x4xf32, #tpu.memory_space<vmem>>, vector<1x1x64x4xf32>
    %52 = vector.shape_cast %51 : vector<1x1x64x4xf32> to vector<64x4xf32>
    %cst_40 = arith.constant dense<0.000000e+00> : vector<256x4xf32>
    %53 = tpu.matmul %50, %52, %cst_40 {dimension_numbers = #tpu.dot_dimension_numbers<[1], [0], [0], [1], [0, 0, 1, 1], [], []>} : vector<256x64xf32>, vector<64x4xf32>, vector<256x4xf32> -> vector<256x4xf32>
    %54 = arith.addf %48, %53 : vector<256x4xf32>
    %55 = vector.extract_strided_slice %11 {offsets = [2, 1, 0], sizes = [16, 16, 64], strides = [1, 1, 1]} : vector<18x18x64xf32> to vector<16x16x64xf32>
    %56 = vector.shape_cast %55 : vector<16x16x64xf32> to vector<256x64xf32>
    %c2_41 = arith.constant 2 : index
    %c1_42 = arith.constant 1 : index
    %c0_43 = arith.constant 0 : index
    %c0_44 = arith.constant 0 : index
    %57 = vector.load %arg2[%c2_41, %c1_42, %c0_43, %c0_44] : memref<3x3x64x4xf32, #tpu.memory_space<vmem>>, vector<1x1x64x4xf32>
    %58 = vector.shape_cast %57 : vector<1x1x64x4xf32> to vector<64x4xf32>
    %cst_45 = arith.constant dense<0.000000e+00> : vector<256x4xf32>
    %59 = tpu.matmul %56, %58, %cst_45 {dimension_numbers = #tpu.dot_dimension_numbers<[1], [0], [0], [1], [0, 0, 1, 1], [], []>} : vector<256x64xf32>, vector<64x4xf32>, vector<256x4xf32> -> vector<256x4xf32>
    %60 = arith.addf %54, %59 : vector<256x4xf32>
    %61 = vector.extract_strided_slice %11 {offsets = [2, 2, 0], sizes = [16, 16, 64], strides = [1, 1, 1]} : vector<18x18x64xf32> to vector<16x16x64xf32>
    %62 = vector.shape_cast %61 : vector<16x16x64xf32> to vector<256x64xf32>
    %c2_46 = arith.constant 2 : index
    %c2_47 = arith.constant 2 : index
    %c0_48 = arith.constant 0 : index
    %c0_49 = arith.constant 0 : index
    %63 = vector.load %arg2[%c2_46, %c2_47, %c0_48, %c0_49] : memref<3x3x64x4xf32, #tpu.memory_space<vmem>>, vector<1x1x64x4xf32>
    %64 = vector.shape_cast %63 : vector<1x1x64x4xf32> to vector<64x4xf32>
    %cst_50 = arith.constant dense<0.000000e+00> : vector<256x4xf32>
    %65 = tpu.matmul %62, %64, %cst_50 {dimension_numbers = #tpu.dot_dimension_numbers<[1], [0], [0], [1], [0, 0, 1, 1], [], []>} : vector<256x64xf32>, vector<64x4xf32>, vector<256x4xf32> -> vector<256x4xf32>
    %66 = arith.addf %60, %65 : vector<256x4xf32>
    %c0_51 = arith.constant 0 : index
    %c0_52 = arith.constant 0 : index
    %c0_53 = arith.constant 0 : index
    %67 = vector.load %arg5[%c0_51, %c0_52, %c0_53] : memref<1x256x4xf32, #tpu.memory_space<vmem>>, vector<1x256x4xf32>
    %68 = vector.shape_cast %67 : vector<1x256x4xf32> to vector<256x4xf32>
    %69 = arith.subf %68, %66 : vector<256x4xf32>
    %c0_54 = arith.constant 0 : index
    %c0_55 = arith.constant 0 : index
    %c0_56 = arith.constant 0 : index
    %70 = vector.load %arg6[%c0_54, %c0_55, %c0_56] : memref<1x256x4xf32, #tpu.memory_space<vmem>>, vector<1x256x4xf32>
    %71 = vector.shape_cast %70 : vector<1x256x4xf32> to vector<256x4xf32>
    %72 = vector.shape_cast %69 : vector<256x4xf32> to vector<1x256x4xf32>
    tpu.vector_store %arg6[%c0_54, %c0_55, %c0_56], %72 {strides = array<i32>} : memref<1x256x4xf32, #tpu.memory_space<vmem>>, vector<1x256x4xf32>,
    return
  }
  func.func @transform_0(%arg0: i32) -> (i32, i32, i32, i32) {
    %c0_i32 = arith.constant 0 : i32
    %c0_i32_0 = arith.constant 0 : i32
    %c0_i32_1 = arith.constant 0 : i32
    %c0_i32_2 = arith.constant 0 : i32
    return %arg0, %c0_i32, %c0_i32_0, %c0_i32_1 : i32, i32, i32, i32
  }
  func.func @transform_1(%arg0: i32) -> (i32, i32, i32, i32) {
    %c0_i32 = arith.constant 0 : i32
    %c0_i32_0 = arith.constant 0 : i32
    %c0_i32_1 = arith.constant 0 : i32
    %c0_i32_2 = arith.constant 0 : i32
    %c0_i32_3 = arith.constant 0 : i32
    return %c0_i32, %c0_i32_0, %c0_i32_1, %c0_i32_2 : i32, i32, i32, i32
  }
  func.func @transform_2(%arg0: i32) -> (i32, i32) {
    %c0_i32 = arith.constant 0 : i32
    %c0_i32_0 = arith.constant 0 : i32
    %c0_i32_1 = arith.constant 0 : i32
    return %c0_i32, %c0_i32_0 : i32, i32
  }
  func.func @transform_3(%arg0: i32) -> (i32, i32) {
    %c0_i32 = arith.constant 0 : i32
    %c0_i32_0 = arith.constant 0 : i32
    %c0_i32_1 = arith.constant 0 : i32
    return %c0_i32, %c0_i32_0 : i32, i32
  }
  func.func @transform_4(%arg0: i32) -> (i32, i32, i32) {
    %c0_i32 = arith.constant 0 : i32
    %c0_i32_0 = arith.constant 0 : i32
    %c0_i32_1 = arith.constant 0 : i32
    return %arg0, %c0_i32, %c0_i32_0 : i32, i32, i32
  }
  func.func @transform_5(%arg0: i32) -> (i32, i32, i32) {
    %c0_i32 = arith.constant 0 : i32
    %c0_i32_0 = arith.constant 0 : i32
    %c0_i32_1 = arith.constant 0 : i32
    return %arg0, %c0_i32, %c0_i32_0 : i32, i32, i32
  }
}

</mosaic_0001>

<bundles_post_ra>
// kernel: dncnn_rl_forward.3
= control target key start
LH: loop header
LB: loop body
LE: loop exit
PB: predicated region body
PF: predicated region fallthrough
CT: control target
= control target key end

     0   :  { %s4320_s15 = smov 0   ;;  %s6126_s0 = inlined_call_operand.vmem [shape: f32[2,18,18,4], index: 0, kind: input, shape index: {}]   ;;  %s6127_s1 = inlined_call_operand.vmem [shape: f32[3,3,4,64], index: 1, kind: input, shape index: {}]   ;;  %s6128_s2 = inlined_call_operand.vmem [shape: f32[1,4], index: 2, kind: input, shape index: {}]   ;;  %s6129_s3 = inlined_call_operand.vmem [shape: f32[1,4], index: 3, kind: input, shape index: {}]   ;;  %s6130_s4 = inlined_call_operand.vmem [shape: f32[2,256,64], index: 4, kind: output, shape index: {}]  }
   0x1 LB: > { %s3209_s16 = sadd.s32 4294967295, %s4293_s15   ;;  %p3213_p0 = scmp.ge.s32.totalorder %s4293_s15, 1  ;;  %s4293_s15 = sphi %s4320_s15, %s14_s15  }
   0x2   : > { %p162_p1 = scmp.lt.s32.totalorder %s4293_s15, 3 }
   0x4   : > { %p163_p2 = pnand %p3213_p0, %p162_p1 }
   0x6   : > { %166 = sbr.rel (%p163_p2) target bundleno = 525 (0x20d), region = 36 }
   0xb   : > { %v3219_v0 = vld [vmem:[%s6127_s1 + $0x4] sm:$0xf]  ;;  %vm571_vm0 = vcmask 1043456   ;;  %p188_p3 = scmp.lt.s32.totalorder %s3209_s16, 1  ;;  %v4336_v1 = vld [vmem:[%s6127_s1] sm:$0xf] }
   0xc   : > { %4274 = vmatprep.subr.msk.mxu1 %vm571_vm0, %v3219_v0  ;;  %3824 = vmatprep.subr.msk.mxu0 %vm571_vm0, %v3219_v0  ;;  %v4345_v2 = vld [vmem:[%s6127_s1 + $0x8] sm:$0xf]  ;;  %v4355_v3 = vld [vmem:[%s6128_s2] ss:$0 sm:$0xff]  ;;  %vm423_vm1 = vcmask 1046528   ;;  %vm506_vm2 = vcmask 31744  }
   0xd   : > { %4275 = vmatpush3.msk.msra.mxu1 %vm571_vm0, %v3219_v0  ;;  %3825 = vmatpush3.msk.msra.mxu0 %vm571_vm0, %v3219_v0  ;;  %s6432_s16 = smov (!%p188_p3, %s3209_s16), 1  ;;  %6214 = vst [vmem:[#allocation2_spill] sm:$0xff] %v4355_v3  ;;  %v4365_v4 = vld [vmem:[%s6129_s3] ss:$0 sm:$0xff]  ;;  %v4434_v48 = vld [vmem:[%s6127_s1 + $0x10] sm:$0xf] }
   0xe   : > { %3874 = vmatprep.subr.msk.mxu1 %vm571_vm0, %v4336_v1  ;;  %3924 = vmatprep.subr.msk.mxu0 %vm571_vm0, %v4345_v2  ;;  %s4276_s23 = smul.u32 432, %s6432_s16  ;;  %6215 = vst [vmem:[#allocation3_spill] sm:$0xff] %v4365_v4  ;;  %v4449_v54 = vld [vmem:[%s6127_s1 + $0xc] sm:$0xf]  ;;  %vm1092_vm3 = vcmask 1045504   ;;  %vm3121_vm4 = vcmask 523264  }
  0x10   : > { %s4360_s28 = scalar_lea.vmem %s6126_s0, %s4276_s23  ;;  %s3526_s23 = sshll.u32 %s6432_s16, 8 }
  0x11   : > { %v198_v5 = vld [vmem:[%s4360_s28] sm:$0xff]  ;;  %v199_v6 = vld [vmem:[%s4360_s28 + $0x8] sm:$0xff]  ;;  %v200_v12 = vld [vmem:[%s4360_s28 + $0x10] sm:$0x3]  ;;  %s5971_s26 = scalar_lea.vmem %s6130_s4, %s3526_s23 }
  0x12   : > { %v222_v7 = vld [vmem:[%s4360_s28 + $0xc0] sm:$0xff]  ;;  %v259_v8 = vmul.f32 %v4355_v3, %v198_v5  ;;  %v260_v9 = vmul.f32 %v4355_v3, %v199_v6  ;;  %v223_v10 = vld [vmem:[%s4360_s28 + $0xc8] sm:$0xff]  ;;  %v224_v13 = vld [vmem:[%s4360_s28 + $0xd0] sm:$0x3]  ;;  %v261_v15 = vmul.f32 %v4355_v3, %v200_v12 }
  0x13   : > { %v283_v11 = vmul.f32 %v4355_v3, %v222_v7  ;;  %v284_v14 = vmul.f32 %v4355_v3, %v223_v10  ;;  %v285_v16 = vmul.f32 %v4355_v3, %v224_v13  ;;  %v201_v17 = vld [vmem:[%s4360_s28 + $0x18] sm:$0xff]  ;;  %v202_v18 = vld [vmem:[%s4360_s28 + $0x20] sm:$0xff]  ;;  %v203_v33 = vld [vmem:[%s4360_s28 + $0x28] sm:$0x3] }
  0x14   : > { %v4382_v19 = vadd.f32 %v4365_v4, %v259_v8  ;;  %v4385_v20 = vadd.f32 %v4365_v4, %v260_v9  ;;  %v262_v22 = vmul.f32 %v4355_v3, %v201_v17  ;;  %v4395_v24 = vadd.f32 %v4365_v4, %v261_v15  ;;  %v225_v27 = vld [vmem:[%s4360_s28 + $0xd8] sm:$0xff]  ;;  %v226_v32 = vld [vmem:[%s4360_s28 + $0xe0] sm:$0xff]  ;;  %v227_v37 = vld [vmem:[%s4360_s28 + $0xe8] sm:$0x3] }
  0x15   : > { %v4388_v21 = vadd.f32 %v4365_v4, %v283_v11  ;;  %v4392_v23 = vadd.f32 %v4365_v4, %v284_v14  ;;  %v4398_v25 = vadd.f32 %v4365_v4, %v285_v16  ;;  %v263_v26 = vmul.f32 %v4355_v3, %v202_v18  ;;  %v204_v42 = vld [vmem:[%s4360_s28 + $0x30] sm:$0xff]  ;;  %v205_v43 = vld [vmem:[%s4360_s28 + $0x38] sm:$0xff]  ;;  %v206_v59 = vld [vmem:[%s4360_s28 + $0x40] sm:$0x3] }
  0x16   : > { %v424_v28 = vrot.slane %v4382_v19, 1  ;;  %v425_v29 = vrot.slane %v4385_v20, 1  ;;  %v4406_v31 = vadd.f32 %v4365_v4, %v262_v22  ;;  %v427_v35 = vrot.slane %v4395_v24, 1  ;;  %v228_v53 = vld [vmem:[%s4360_s28 + $0xf0] sm:$0xff]  ;;  %v229_v58 = vld [vmem:[%s4360_s28 + $0xf8] sm:$0xff]  ;;  %v207_v12 = vld [vmem:[%s4360_s28 + $0x48] sm:$0xff] }
  0x17   : > { %v464_v30 = vrot.slane %v4388_v21, 1  ;;  %v465_v34 = vrot.slane %v4392_v23, 1  ;;  %v467_v36 = vrot.slane %v4398_v25, 1  ;;  %v4416_v39 = vadd.f32 %v4365_v4, %v263_v26  ;;  %v230_v11 = vld [vmem:[%s4360_s28 + $0x100] sm:$0x3]  ;;  %v208_v17 = vld [vmem:[%s4360_s28 + $0x50] sm:$0xff] }
  0x18   : > { %v426_v38 = vsel %vm423_vm1, %v424_v28, %v425_v29  ;;  %v429_v40 = vrot.slane %v4406_v31, 1  ;;  %v286_v41 = vmul.f32 %v4355_v3, %v225_v27  ;;  %v428_v45 = vsel %vm423_vm1, %v425_v29, %v427_v35  ;;  %v231_v18 = vld [vmem:[%s4360_s28 + $0x108] sm:$0xff]  ;;  %v232_v29 = vld [vmem:[%s4360_s28 + $0x110] sm:$0xff] }
  0x19   : > { %3826 = vmatprep.mubr.msk.f32.mxu0 %vm506_vm2, %v426_v38  ;;  %v4424_v44 = vsel %vm423_vm1, %v464_v30, %v465_v34  ;;  %v4428_v46 = vsel %vm423_vm1, %v465_v34, %v467_v36  ;;  %v287_v47 = vmul.f32 %v4355_v3, %v226_v32  ;;  %v430_v49 = vrot.slane %v4416_v39, 1  ;;  %v209_v30 = vld [vmem:[%s4360_s28 + $0x58] sm:$0x3]  ;;  %v239_v60 = vld [vmem:[%s4360_s28 + $0x148] sm:$0x3] }
  0x1a   : > { %6216 = vst [vmem:[#allocation4_spill] sm:$0xff] %v4424_v44  ;;  %6217 = vst [vmem:[#allocation5_spill] sm:$0xff] %v4428_v46  ;;  %3850 = vmatprep.mubr.msk.f32.mxu1 %vm506_vm2, %v4424_v44  ;;  %3827 = vmatmul.mubr.msk.f32.vlgmr.msra.gmra.mxu0 %vm506_vm2, %v428_v45  ;;  %v4441_v50 = vadd.f32 %v4365_v4, %v286_v41  ;;  %v264_v51 = vmul.f32 %v4355_v3, %v203_v33 }
  0x1b   : > { %v288_v52 = vmul.f32 %v4355_v3, %v227_v37  ;;  %3851 = vmatmul.mubr.msk.f32.vlgmr.msra.gmra.mxu1 %vm506_vm2, %v4428_v46  ;;  %3925 = vmatpush3.msk.msra.mxu0 %vm571_vm0, %v4345_v2  ;;  %v4456_v55 = vadd.f32 %v4365_v4, %v287_v47  ;;  %v265_v56 = vmul.f32 %v4355_v3, %v204_v42  ;;  %v233_v47 = vld [vmem:[%s4360_s28 + $0x118] sm:$0x3]  ;;  %v242_v46 = vld [vmem:[%s4360_s28 + $0x160] sm:$0x3] }
  0x1c   : > { %v266_v57 = vmul.f32 %v4355_v3, %v205_v43  ;;  %3875 = vmatpush3.msk.msra.mxu1 %vm571_vm0, %v4336_v1  ;;  %v4466_v61 = vsel %vm423_vm1, %v429_v40, %v430_v49  ;;  %v469_v62 = vrot.slane %v4441_v50, 1  ;;  %v4470_v63 = vadd.f32 %v4365_v4, %v264_v51  ;;  %4024 = vmatprep.subr.msk.mxu0 %vm571_vm0, %v4434_v48 }
  0x1d   : > { %6218 = vst [vmem:[#allocation6_spill] sm:$0xff] %v4466_v61  ;;  %v4473_v0 = vadd.f32 %v4365_v4, %v288_v52  ;;  %3829 = vmatprep.mubr.msk.f32.mxu0 %vm506_vm2, %v4466_v61  ;;  %v470_v1 = vrot.slane %v4456_v55, 1  ;;  %v4481_v2 = vadd.f32 %v4365_v4, %v265_v56  ;;  %v289_v6 = vmul.f32 %v4355_v3, %v228_v53 }
  0x1e   : > { %v4484_v5 = vadd.f32 %v4365_v4, %v266_v57  ;;  %3974 = vmatprep.subr.msk.mxu1 %vm571_vm0, %v4449_v54  ;;  %v432_v7 = vrot.slane %v4470_v63, 1  ;;  %v290_v9 = vmul.f32 %v4355_v3, %v229_v58  ;;  %v267_v10 = vmul.f32 %v4355_v3, %v206_v59  ;;  %v211_v57 = vld [vmem:[%s4360_s28 + $0x68] sm:$0xff] }
  0x1f   : > { %v472_v8 = vrot.slane %v4473_v0, 1  ;;  %v4496_v13 = vsel %vm423_vm1, %v469_v62, %v470_v1  ;;  %v434_v14 = vrot.slane %v4481_v2, 1  ;;  %v4501_v16 = vadd.f32 %v4365_v4, %v289_v6  ;;  %v234_v6 = vld [vmem:[%s4360_s28 + $0x120] sm:$0xff] }
  0x20   : > { %6219 = vst [vmem:[#allocation7_spill] sm:$0xff] %v4496_v13  ;;  %v435_v15 = vrot.slane %v4484_v5, 1  ;;  %3853 = vmatprep.mubr.msk.f32.mxu1 %vm506_vm2, %v4496_v13  ;;  %v4508_v22 = vsel %vm423_vm1, %v430_v49, %v432_v7  ;;  %v4514_v27 = vadd.f32 %v4365_v4, %v290_v9  ;;  %v4517_v28 = vadd.f32 %v4365_v4, %v267_v10  ;;  %v210_v49 = vld [vmem:[%s4360_s28 + $0x60] sm:$0xff] }
  0x21   : > { %6220 = vst [vmem:[#allocation8_spill] sm:$0xff] %v4508_v22  ;;  %v4511_v26 = vsel %vm423_vm1, %v470_v1, %v472_v8  ;;  %3830 = vmatmul.mubr.msk.f32.gmra.mxu0 %vm506_vm2, %v4508_v22  ;;  %v474_v33 = vrot.slane %v4501_v16, 1  ;;  %v291_v34 = vmul.f32 %v4355_v3, %v230_v11  ;;  %v268_v35 = vmul.f32 %v4355_v3, %v207_v12  ;;  %v235_v11 = vld [vmem:[%s4360_s28 + $0x128] sm:$0xff]  ;;  %v218_v13 = vld [vmem:[%s4360_s28 + $0xa0] sm:$0x3] }
  0x22   : > { %6221 = vst [vmem:[#allocation9_spill] sm:$0xff] %v4511_v26  ;;  %3854 = vmatmul.mubr.msk.f32.gmra.mxu1 %vm506_vm2, %v4511_v26  ;;  %v4526_v32 = vsel %vm423_vm1, %v434_v14, %v435_v15  ;;  %v475_v36 = vrot.slane %v4514_v27, 1  ;;  %v437_v37 = vrot.slane %v4517_v28, 1  ;;  %v269_v38 = vmul.f32 %v4355_v3, %v208_v17  ;;  %v240_v26 = vld [vmem:[%s4360_s28 + $0x150] sm:$0xff] }
  0x23   : > { %6222 = vst [vmem:[#allocation10_spill] sm:$0xff] %v4526_v32  ;;  %3832 = vmatprep.mubr.msk.f32.mxu0 %vm506_vm2, %v4526_v32  ;;  %v292_v40 = vmul.f32 %v4355_v3, %v231_v18  ;;  %v4538_v41 = vadd.f32 %v4365_v4, %v291_v34  ;;  %v4541_v42 = vadd.f32 %v4365_v4, %v268_v35  ;;  %v212_v18 = vld [vmem:[%s4360_s28 + $0x70] sm:$0x3]  ;;  %v221_v32 = vld [vmem:[%s4360_s28 + $0xb8] sm:$0x3] }
  0x24   : > { %v293_v43 = vmul.f32 %v4355_v3, %v232_v29  ;;  %v270_v45 = vmul.f32 %v4355_v3, %v209_v30  ;;  %v4548_v51 = vsel %vm423_vm1, %v474_v33, %v475_v36  ;;  %v4551_v52 = vsel %vm423_vm1, %v435_v15, %v437_v37  ;;  %v236_v35 = vld [vmem:[%s4360_s28 + $0x130] sm:$0x3] }
  0x25   : > { %6223 = vst [vmem:[#allocation11_spill] sm:$0xff] %v4548_v51  ;;  %6224 = vst [vmem:[#allocation12_spill] sm:$0xff] %v4551_v52  ;;  %v4554_v53 = vadd.f32 %v4365_v4, %v269_v38  ;;  %v4557_v56 = vadd.f32 %v4365_v4, %v292_v40  ;;  %3856 = vmatprep.mubr.msk.f32.mxu1 %vm506_vm2, %v4548_v51  ;;  %3833 = vmatmul.mubr.msk.f32.gmra.mxu0 %vm506_vm2, %v4551_v52  ;;  %v477_v58 = vrot.slane %v4538_v41, 1  ;;  %v217_v51 = vld [vmem:[%s4360_s28 + $0x98] sm:$0xff] }
  0x26   : > { %v439_v59 = vrot.slane %v4541_v42, 1  ;;  %v4567_v62 = vadd.f32 %v4365_v4, %v293_v43  ;;  %v4570_v1 = vadd.f32 %v4365_v4, %v270_v45  ;;  %v294_v9 = vmul.f32 %v4355_v3, %v233_v47  ;;  %v214_v45 = vld [vmem:[%s4360_s28 + $0x80] sm:$0xff] }
  0x27   : > { %v440_v7 = vrot.slane %v4554_v53, 1  ;;  %v479_v8 = vrot.slane %v4557_v56, 1  ;;  %v271_v10 = vmul.f32 %v4355_v3, %v210_v49  ;;  %v4579_v12 = vsel %vm423_vm1, %v475_v36, %v477_v58  ;;  %v213_v36 = vld [vmem:[%s4360_s28 + $0x78] sm:$0xff] }
  0x28   : > { %6225 = vst [vmem:[#allocation13_spill] sm:$0xff] %v4579_v12  ;;  %v480_v14 = vrot.slane %v4567_v62, 1  ;;  %v442_v15 = vrot.slane %v4570_v1, 1  ;;  %v272_v17 = vmul.f32 %v4355_v3, %v211_v57  ;;  %3857 = vmatmul.mubr.msk.f32.gmra.mxu1 %vm506_vm2, %v4579_v12  ;;  %v4591_v30 = vadd.f32 %v4365_v4, %v294_v9  ;;  %v237_v9 = vld [vmem:[%s4360_s28 + $0x138] sm:$0xff] }
  0x29   : > { %v4588_v29 = vsel %vm423_vm1, %v439_v59, %v440_v7  ;;  %v4594_v33 = vadd.f32 %v4365_v4, %v271_v10  ;;  %v295_v34 = vmul.f32 %v4355_v3, %v234_v6  ;;  %v296_v43 = vmul.f32 %v4355_v3, %v235_v11  ;;  %v238_v10 = vld [vmem:[%s4360_s28 + $0x140] sm:$0xff] }
  0x2a   : > { %6226 = vst [vmem:[#allocation14_spill] sm:$0xff] %v4588_v29  ;;  %3835 = vmatprep.mubr.msk.f32.mxu0 %vm506_vm2, %v4588_v29  ;;  %v4602_v37 = vsel %vm423_vm1, %v479_v8, %v480_v14  ;;  %v4605_v38 = vsel %vm423_vm1, %v440_v7, %v442_v15  ;;  %v4608_v40 = vadd.f32 %v4365_v4, %v272_v17  ;;  %v482_v47 = vrot.slane %v4591_v30, 1 }
  0x2b   : > { %6227 = vst [vmem:[#allocation15_spill] sm:$0xff] %v4602_v37  ;;  %6228 = vst [vmem:[#allocation16_spill] sm:$0xff] %v4605_v38  ;;  %3859 = vmatprep.mubr.msk.f32.mxu1 %vm506_vm2, %v4602_v37  ;;  %3836 = vmatmul.mubr.msk.f32.gmra.mxu0 %vm506_vm2, %v4605_v38  ;;  %v444_v49 = vrot.slane %v4594_v33, 1  ;;  %v4619_v57 = vadd.f32 %v4365_v4, %v295_v34  ;;  %v273_v58 = vmul.f32 %v4355_v3, %v212_v18  ;;  %v215_v34 = vld [vmem:[%s4360_s28 + $0x88] sm:$0x3]  ;;  %v244_v38 = vld [vmem:[%s4360_s28 + $0x170] sm:$0xff] }
  0x2c   : > { %v445_v59 = vrot.slane %v4608_v40, 1  ;;  %v4624_v6 = vadd.f32 %v4365_v4, %v296_v43  ;;  %v297_v7 = vmul.f32 %v4355_v3, %v236_v35  ;;  %v274_v8 = vmul.f32 %v4355_v3, %v213_v36 }
  0x2d   : > { %v4631_v11 = vsel %vm423_vm1, %v480_v14, %v482_v47  ;;  %v484_v15 = vrot.slane %v4619_v57, 1  ;;  %v4635_v17 = vadd.f32 %v4365_v4, %v273_v58  ;;  %v275_v18 = vmul.f32 %v4355_v3, %v214_v45 }
  0x2e   : > { %6229 = vst [vmem:[#allocation17_spill] sm:$0xff] %v4631_v11  ;;  %3860 = vmatmul.mubr.msk.f32.gmra.mxu1 %vm506_vm2, %v4631_v11  ;;  %v4642_v35 = vsel %vm423_vm1, %v444_v49, %v445_v59  ;;  %v485_v36 = vrot.slane %v4624_v6, 1  ;;  %v4646_v14 = vadd.f32 %v4365_v4, %v297_v7  ;;  %v4649_v43 = vadd.f32 %v4365_v4, %v274_v8  ;;  %v216_v11 = vld [vmem:[%s4360_s28 + $0x90] sm:$0xff] }
  0x2f   : > { %6230 = vst [vmem:[#allocation18_spill] sm:$0xff] %v4642_v35  ;;  %3838 = vmatprep.mubr.msk.f32.mxu0 %vm506_vm2, %v4642_v35  ;;  %v447_v45 = vrot.slane %v4635_v17, 1  ;;  %v4655_v47 = vadd.f32 %v4365_v4, %v275_v18  ;;  %v298_v49 = vmul.f32 %v4355_v3, %v237_v9  ;;  %v299_v58 = vmul.f32 %v4355_v3, %v238_v10  ;;  %v220_v35 = vld [vmem:[%s4360_s28 + $0xb0] sm:$0xff] }
  0x30   : > { %v4662_v7 = vsel %vm423_vm1, %v484_v15, %v485_v36  ;;  %v487_v8 = vrot.slane %v4646_v14, 1  ;;  %v449_v37 = vrot.slane %v4649_v43, 1  ;;  %v276_v12 = vmul.f32 %v4355_v3, %v215_v34 }
  0x31   : > { %6231 = vst [vmem:[#allocation19_spill] sm:$0xff] %v4662_v7  ;;  %3862 = vmatprep.mubr.msk.f32.mxu1 %vm506_vm2, %v4662_v7  ;;  %v4671_v9 = vsel %vm423_vm1, %v445_v59, %v447_v45  ;;  %v450_v10 = vrot.slane %v4655_v47, 1  ;;  %v4675_v15 = vadd.f32 %v4365_v4, %v298_v49  ;;  %v4678_v18 = vadd.f32 %v4365_v4, %v299_v58  ;;  %v241_v49 = vld [vmem:[%s4360_s28 + $0x158] sm:$0xff] }
  0x32   : > { %6232 = vst [vmem:[#allocation20_spill] sm:$0xff] %v4671_v9  ;;  %3839 = vmatmul.mubr.msk.f32.gmra.mxu0 %vm506_vm2, %v4671_v9  ;;  %v4684_v34 = vsel %vm423_vm1, %v485_v36, %v487_v8  ;;  %v4687_v7 = vadd.f32 %v4365_v4, %v276_v12  ;;  %v300_v59 = vmul.f32 %v4355_v3, %v239_v60 }
  0x33   : > { %6233 = vst [vmem:[#allocation21_spill] sm:$0xff] %v4684_v34  ;;  %v277_v45 = vmul.f32 %v4355_v3, %v216_v11  ;;  %3863 = vmatmul.mubr.msk.f32.gmra.mxu1 %vm506_vm2, %v4684_v34  ;;  %v4696_v58 = vsel %vm423_vm1, %v449_v37, %v450_v10  ;;  %v489_v36 = vrot.slane %v4675_v15, 1  ;;  %v490_v8 = vrot.slane %v4678_v18, 1 }
  0x34   : > { %6234 = vst [vmem:[#allocation22_spill] sm:$0xff] %v4696_v58  ;;  %v278_v12 = vmul.f32 %v4355_v3, %v217_v51  ;;  %3841 = vmatprep.mubr.msk.f32.mxu0 %vm506_vm2, %v4696_v58  ;;  %v452_v60 = vrot.slane %v4687_v7, 1  ;;  %v4705_v11 = vadd.f32 %v4365_v4, %v300_v59  ;;  %v301_v37 = vmul.f32 %v4355_v3, %v240_v26  ;;  %v219_v59 = vld [vmem:[%s4360_s28 + $0xa8] sm:$0xff] }
  0x35   : > { %v4708_v34 = vadd.f32 %v4365_v4, %v277_v45  ;;  %v4713_v44 = vsel %vm423_vm1, %v489_v36, %v490_v8  ;;  %v302_v51 = vmul.f32 %v4355_v3, %v241_v49  ;;  %v279_v58 = vmul.f32 %v4355_v3, %v218_v13 }
  0x36   : > { %6235 = vst [vmem:[#allocation23_spill] sm:$0xff] %v4713_v44  ;;  %v4716_v9 = vadd.f32 %v4365_v4, %v278_v12  ;;  %3865 = vmatprep.mubr.msk.f32.mxu1 %vm506_vm2, %v4713_v44  ;;  %v4725_v26 = vsel %vm423_vm1, %v450_v10, %v452_v60  ;;  %v492_v45 = vrot.slane %v4705_v11, 1  ;;  %v4730_v12 = vadd.f32 %v4365_v4, %v301_v37  ;;  %v243_v60 = vld [vmem:[%s4360_s28 + $0x168] sm:$0xff] }
  0x37   : > { %6236 = vst [vmem:[#allocation24_spill] sm:$0xff] %v4725_v26  ;;  %v454_v36 = vrot.slane %v4708_v34, 1  ;;  %3842 = vmatmul.mubr.msk.f32.gmra.mxu0 %vm506_vm2, %v4725_v26  ;;  %v4736_v49 = vadd.f32 %v4365_v4, %v302_v51  ;;  %v4739_v44 = vadd.f32 %v4365_v4, %v279_v58  ;;  %v303_v10 = vmul.f32 %v4355_v3, %v242_v46 }
  0x38   : > { %v455_v13 = vrot.slane %v4716_v9, 1  ;;  %v4745_v29 = vsel %vm423_vm1, %v490_v8, %v492_v45  ;;  %v494_v37 = vrot.slane %v4730_v12, 1  ;;  %v280_v26 = vmul.f32 %v4355_v3, %v219_v59 }
  0x39   : > { %6237 = vst [vmem:[#allocation25_spill] sm:$0xff] %v4745_v29  ;;  %v281_v52 = vmul.f32 %v4355_v3, %v220_v35  ;;  %3866 = vmatmul.mubr.msk.f32.gmra.mxu1 %vm506_vm2, %v4745_v29  ;;  %v495_v46 = vrot.slane %v4736_v49, 1  ;;  %v457_v51 = vrot.slane %v4739_v44, 1  ;;  %v4759_v8 = vadd.f32 %v4365_v4, %v303_v10  ;;  %v245_v29 = vld [vmem:[%s4360_s28 + $0x178] sm:$0x3] }
  0x3a   : > { %v4754_v58 = vsel %vm423_vm1, %v454_v36, %v455_v13  ;;  %v4764_v59 = vadd.f32 %v4365_v4, %v280_v26  ;;  %v304_v45 = vmul.f32 %v4355_v3, %v243_v60  ;;  %v305_v36 = vmul.f32 %v4355_v3, %v244_v38 }
  0x3b   : > { %6238 = vst [vmem:[#allocation26_spill] sm:$0xff] %v4754_v58  ;;  %3844 = vmatprep.mubr.msk.f32.mxu0 %vm506_vm2, %v4754_v58  ;;  %v4767_v35 = vadd.f32 %v4365_v4, %v281_v52  ;;  %v4773_v22 = vsel %vm423_vm1, %v494_v37, %v495_v46  ;;  %v4776_v10 = vsel %vm423_vm1, %v455_v13, %v457_v51  ;;  %v497_v61 = vrot.slane %v4759_v8, 1 }
  0x3c   : > { %6239 = vst [vmem:[#allocation27_spill] sm:$0xff] %v4773_v22  ;;  %6240 = vst [vmem:[#allocation28_spill] sm:$0xff] %v4776_v10  ;;  %v282_v58 = vmul.f32 %v4355_v3, %v221_v32  ;;  %3868 = vmatprep.mubr.msk.f32.mxu1 %vm506_vm2, %v4773_v22  ;;  %3845 = vmatmul.mubr.msk.f32.gmra.mxu0 %vm506_vm2, %v4776_v10  ;;  %v459_v52 = vrot.slane %v4764_v59, 1  ;;  %v4787_v26 = vadd.f32 %v4365_v4, %v304_v45 }
  0x3d   : > { %v460_v38 = vrot.slane %v4767_v35, 1  ;;  %v4790_v13 = vadd.f32 %v4365_v4, %v305_v36  ;;  %v4793_v60 = vsel %vm423_vm1, %v495_v46, %v497_v61  ;;  %v306_v37 = vmul.f32 %v4355_v3, %v245_v29 }
  0x3e   : > { %6241 = vst [vmem:[#allocation29_spill] sm:$0xff] %v4793_v60  ;;  %v4796_v32 = vadd.f32 %v4365_v4, %v282_v58  ;;  %v1094_v51 = vrot.slane %v4385_v20, 2  ;;  %3869 = vmatmul.mubr.msk.f32.gmra.mxu1 %vm506_vm2, %v4793_v60  ;;  %v499_v45 = vrot.slane %v4787_v26, 1  ;;  %v1096_v61 = vrot.slane %v4395_v24, 2 }
  0x3f   : > { %v4803_v22 = vsel %vm423_vm1, %v459_v52, %v460_v38  ;;  %v500_v36 = vrot.slane %v4790_v13, 1  ;;  %v4812_v29 = vadd.f32 %v4365_v4, %v306_v37  ;;  %v6244_v52 = vrot.slane %v4382_v19, 2 }
  0x40   : > { %6242 = vst [vmem:[#allocation30_spill] sm:$0xff] %v4803_v22  ;;  %3847 = vmatprep.mubr.msk.f32.mxu0 %vm506_vm2, %v4803_v22  ;;  %v462_v58 = vrot.slane %v4796_v32, 1  ;;  %v1098_v3 = vrot.slane %v4406_v31, 2  ;;  %v1099_v10 = vrot.slane %v4416_v39, 2  ;;  %v1101_v4 = vrot.slane %v4470_v63, 2 }
  0x41   : > { %v4815_v46 = vsel %vm423_vm1, %v499_v45, %v500_v36  ;;  %v1095_v60 = vsel %vm1092_vm3, %v6244_v52, %v1094_v51  ;;  %v502_v37 = vrot.slane %v4812_v29, 1  ;;  %v1097_v52 = vsel %vm1092_vm3, %v1094_v51, %v1096_v61 }
  0x42   : > { %6243 = vst [vmem:[#allocation31_spill] sm:$0xff] %v4815_v46  ;;  %3871 = vmatprep.mubr.msk.f32.mxu1 %vm506_vm2, %v4815_v46  ;;  %v4825_v24 = vsel %vm423_vm1, %v460_v38, %v462_v58  ;;  %v4839_v38 = vsel %vm1092_vm3, %v1098_v3, %v1099_v10  ;;  %v1103_v58 = vrot.slane %v4481_v2, 2  ;;  %v1104_v46 = vrot.slane %v4484_v5, 2 }
  0x43   : > { %6245 = vst [vmem:[#allocation32_spill] sm:$0xff] %v4825_v24  ;;  %3848 = vmatmul.mubr.msk.f32.gmra.mxu0 %vm506_vm2, %v4825_v24  ;;  %v4831_v45 = vsel %vm423_vm1, %v500_v36, %v502_v37  ;;  %v4856_v3 = vsel %vm1092_vm3, %v1099_v10, %v1101_v4  ;;  %v1106_v63 = vrot.slane %v4517_v28, 2  ;;  %v1109_v36 = vrot.slane %v4554_v53, 2 }
  0x44   : > { %6246 = vst [vmem:[#allocation33_spill] sm:$0xff] %v4831_v45  ;;  %3926 = vmatprep.mubr.msk.f32.mxu0 %vm506_vm2, %v1095_v60  ;;  %3872 = vmatmul.mubr.msk.f32.gmra.mxu1 %vm506_vm2, %v4831_v45  ;;  %v4848_v60 = vld [vmem:[%s6127_s1 + $0x18] sm:$0xf]  ;;  %v4867_v51 = vsel %vm1092_vm3, %v1103_v58, %v1104_v46  ;;  %v1113_v28 = vrot.slane %v4594_v33, 2  ;;  %v1114_v10 = vrot.slane %v4608_v40, 2  ;;  %v1116_v61 = vrot.slane %v4635_v17, 2 }
  0x45   : > { %3876 = vmatprep.mubr.msk.f32.mxu1 %vm506_vm2, %v4382_v19  ;;  %v4862_v19 = vld [vmem:[%s6127_s1 + $0x14] sm:$0xf]  ;;  %v4884_v4 = vsel %vm1092_vm3, %v1104_v46, %v1106_v63  ;;  %v1118_v37 = vrot.slane %v4649_v43, 2  ;;  %v1121_v58 = vrot.slane %v4687_v7, 2 }
  0x46   : > { %v4907_v46 = vsel %vm1092_vm3, %v1113_v28, %v1114_v10  ;;  %v4918_v17 = vsel %vm1092_vm3, %v1114_v10, %v1116_v61  ;;  %v1128_v10 = vrot.slane %v4764_v59, 2  ;;  %v1129_v61 = vrot.slane %v4767_v35, 2 }
  0x47   : > { %3927 = vmatmul.mubr.msk.f32.vlgmr.msra.gmra.mxu0 %vm506_vm2, %v1097_v52  ;;  %v1119_v52 = vrot.slane %v4655_v47, 2 }
  0x48   : > { %4025 = vmatpush3.msk.msra.mxu0 %vm571_vm0, %v4434_v48  ;;  %3929 = vmatprep.mubr.msk.f32.mxu0 %vm506_vm2, %v4839_v38  ;;  %v1108_v48 = vrot.slane %v4541_v42, 2 }
  0x49   : > { %3877 = vmatmul.mubr.msk.f32.vlgmr.msra.gmra.mxu1 %vm506_vm2, %v4385_v20  ;;  %4124 = vmatprep.subr.msk.mxu0 %vm571_vm0, %v4848_v60  ;;  %v1111_v20 = vrot.slane %v4570_v1, 2  ;;  %v4924_v63 = vsel %vm1092_vm3, %v1118_v37, %v1119_v52  ;;  %v4935_v7 = vsel %vm1092_vm3, %v1119_v52, %v1121_v58  ;;  %v1131_v37 = vrot.slane %v4796_v32, 2 }
  0x4a   : > { %3975 = vmatpush3.msk.msra.mxu1 %vm571_vm0, %v4449_v54  ;;  %3879 = vmatprep.mubr.msk.f32.mxu1 %vm506_vm2, %v4406_v31  ;;  %v4890_v54 = vsel %vm1092_vm3, %v1108_v48, %v1109_v36  ;;  %v1123_v48 = vrot.slane %v4708_v34, 2  ;;  %v4958_v52 = vsel %vm1092_vm3, %v1128_v10, %v1129_v61  ;;  %v1133_v58 = vrot.slane %v4388_v21, 2 }
  0x4b   : > { %3930 = vmatmul.mubr.msk.f32.gmra.mxu0 %vm506_vm2, %v4856_v3  ;;  %4074 = vmatprep.subr.msk.mxu1 %vm571_vm0, %v4862_v19  ;;  %v4901_v1 = vsel %vm1092_vm3, %v1109_v36, %v1111_v20  ;;  %v1124_v36 = vrot.slane %v4716_v9, 2  ;;  %v1126_v20 = vrot.slane %v4739_v44, 2  ;;  %6248 = vst [vmem:[#allocation35_spill] sm:$0xff] %v4958_v52  ;;  %v4969_v32 = vsel %vm1092_vm3, %v1129_v61, %v1131_v37 }
  0x4c   : > { %3932 = vmatprep.mubr.msk.f32.mxu0 %vm506_vm2, %v4867_v51  ;;  %v1138_v10 = vrot.slane %v4441_v50, 2  ;;  %v1141_v61 = vrot.slane %v4473_v0, 2 }
  0x4d   : > { %3880 = vmatmul.mubr.msk.f32.gmra.mxu1 %vm506_vm2, %v4416_v39  ;;  %v4941_v28 = vsel %vm1092_vm3, %v1123_v48, %v1124_v36  ;;  %v4952_v44 = vsel %vm1092_vm3, %v1124_v36, %v1126_v20  ;;  %v1134_v48 = vrot.slane %v4392_v23, 2  ;;  %v1136_v36 = vrot.slane %v4398_v25, 2 }
  0x4e   : > { %3882 = vmatprep.mubr.msk.f32.mxu1 %vm506_vm2, %v4481_v2  ;;  %6247 = vst [vmem:[#allocation34_spill] sm:$0xff] %v4941_v28 }
  0x4f   : > { %3933 = vmatmul.mubr.msk.f32.gmra.mxu0 %vm506_vm2, %v4884_v4  ;;  %v4975_v20 = vsel %vm1092_vm3, %v1133_v58, %v1134_v48  ;;  %v4986_v25 = vsel %vm1092_vm3, %v1134_v48, %v1136_v36  ;;  %v1143_v58 = vrot.slane %v4501_v16, 2  ;;  %v1146_v48 = vrot.slane %v4538_v41, 2 }
  0x50   : > { %3935 = vmatprep.mubr.msk.f32.mxu0 %vm506_vm2, %v4890_v54  ;;  %6249 = vst [vmem:[#allocation36_spill] sm:$0xff] %v4975_v20 }
  0x51   : > { %3883 = vmatmul.mubr.msk.f32.gmra.mxu1 %vm506_vm2, %v4484_v5 }
  0x52   : > { %3885 = vmatprep.mubr.msk.f32.mxu1 %vm506_vm2, %v4541_v42 }
  0x53   : > { %3936 = vmatmul.mubr.msk.f32.gmra.mxu0 %vm506_vm2, %v4901_v1 }
  0x54   : > { %3938 = vmatprep.mubr.msk.f32.mxu0 %vm506_vm2, %v4907_v46 }
  0x55   : > { %3886 = vmatmul.mubr.msk.f32.gmra.mxu1 %vm506_vm2, %v4554_v53 }
  0x56   : > { %3888 = vmatprep.mubr.msk.f32.mxu1 %vm506_vm2, %v4594_v33 }
  0x57   : > { %3939 = vmatmul.mubr.msk.f32.gmra.mxu0 %vm506_vm2, %v4918_v17 }
  0x58   : > { %3941 = vmatprep.mubr.msk.f32.mxu0 %vm506_vm2, %v4924_v63 }
  0x59   : > { %3889 = vmatmul.mubr.msk.f32.gmra.mxu1 %vm506_vm2, %v4608_v40 }
  0x5a   : > { %3891 = vmatprep.mubr.msk.f32.mxu1 %vm506_vm2, %v4649_v43 }
  0x5b   : > { %3942 = vmatmul.mubr.msk.f32.gmra.mxu0 %vm506_vm2, %v4935_v7 }
  0x5c   : > { %3944 = vmatprep.mubr.msk.f32.mxu0 %vm506_vm2, %v4941_v28  ;;  %v1139_v28 = vrot.slane %v4456_v55, 2 }
  0x5d   : > { %3892 = vmatmul.mubr.msk.f32.gmra.mxu1 %vm506_vm2, %v4655_v47 }
  0x5e   : > { %3894 = vmatprep.mubr.msk.f32.mxu1 %vm506_vm2, %v4708_v34  ;;  %v4992_v37 = vsel %vm1092_vm3, %v1138_v10, %v1139_v28  ;;  %v5003_v0 = vsel %vm1092_vm3, %v1139_v28, %v1141_v61  ;;  %v1148_v10 = vrot.slane %v4557_v56, 2  ;;  %v1151_v28 = vrot.slane %v4591_v30, 2 }
  0x5f   : > { %3945 = vmatmul.mubr.msk.f32.gmra.mxu0 %vm506_vm2, %v4952_v44  ;;  %6250 = vst [vmem:[#allocation37_spill] sm:$0xff] %v4992_v37 }
  0x60   : > { %3947 = vmatprep.mubr.msk.f32.mxu0 %vm506_vm2, %v4958_v52  ;;  %v1144_v52 = vrot.slane %v4514_v27, 2 }
  0x61   : > { %3895 = vmatmul.mubr.msk.f32.gmra.mxu1 %vm506_vm2, %v4716_v9 }
  0x62   : > { %3897 = vmatprep.mubr.msk.f32.mxu1 %vm506_vm2, %v4764_v59  ;;  %v5009_v36 = vsel %vm1092_vm3, %v1143_v58, %v1144_v52  ;;  %v5020_v41 = vsel %vm1092_vm3, %v1144_v52, %v1146_v48  ;;  %v1153_v58 = vrot.slane %v4619_v57, 2  ;;  %v1156_v52 = vrot.slane %v4646_v14, 2 }
  0x63   : > { %3948 = vmatmul.mubr.msk.f32.gmra.mxu0 %vm506_vm2, %v4969_v32  ;;  %6251 = vst [vmem:[#allocation38_spill] sm:$0xff] %v5009_v36 }
  0x64   : > { %3950 = vmatprep.mubr.msk.f32.mxu0 %vm506_vm2, %v4975_v20  ;;  %v1149_v20 = vrot.slane %v4567_v62, 2 }
  0x65   : > { %3898 = vmatmul.mubr.msk.f32.gmra.mxu1 %vm506_vm2, %v4767_v35 }
  0x66   : > { %3900 = vmatprep.mubr.msk.f32.mxu1 %vm506_vm2, %v4388_v21  ;;  %v5026_v61 = vsel %vm1092_vm3, %v1148_v10, %v1149_v20  ;;  %v5037_v30 = vsel %vm1092_vm3, %v1149_v20, %v1151_v28  ;;  %v1158_v10 = vrot.slane %v4675_v15, 2  ;;  %v1161_v20 = vrot.slane %v4705_v11, 2 }
  0x67   : > { %3951 = vmatmul.mubr.msk.f32.gmra.mxu0 %vm506_vm2, %v4986_v25  ;;  %6252 = vst [vmem:[#allocation39_spill] sm:$0xff] %v5026_v61 }
  0x68   : > { %3953 = vmatprep.mubr.msk.f32.mxu0 %vm506_vm2, %v4992_v37  ;;  %v1154_v37 = vrot.slane %v4624_v6, 2 }
  0x69   : > { %3901 = vmatmul.mubr.msk.f32.gmra.mxu1 %vm506_vm2, %v4392_v23 }
  0x6a   : > { %3903 = vmatprep.mubr.msk.f32.mxu1 %vm506_vm2, %v4441_v50  ;;  %v5043_v48 = vsel %vm1092_vm3, %v1153_v58, %v1154_v37  ;;  %v5054_v14 = vsel %vm1092_vm3, %v1154_v37, %v1156_v52  ;;  %v1163_v58 = vrot.slane %v4730_v12, 2  ;;  %v1166_v37 = vrot.slane %v4759_v8, 2 }
  0x6b   : > { %3954 = vmatmul.mubr.msk.f32.gmra.mxu0 %vm506_vm2, %v5003_v0  ;;  %6253 = vst [vmem:[#allocation40_spill] sm:$0xff] %v5043_v48 }
  0x6c   : > { %3956 = vmatprep.mubr.msk.f32.mxu0 %vm506_vm2, %v5009_v36  ;;  %v1159_v36 = vrot.slane %v4678_v18, 2 }
  0x6d   : > { %3904 = vmatmul.mubr.msk.f32.gmra.mxu1 %vm506_vm2, %v4456_v55 }
  0x6e   : > { %3906 = vmatprep.mubr.msk.f32.mxu1 %vm506_vm2, %v4501_v16  ;;  %v5060_v28 = vsel %vm1092_vm3, %v1158_v10, %v1159_v36  ;;  %v5071_v11 = vsel %vm1092_vm3, %v1159_v36, %v1161_v20  ;;  %v1168_v10 = vrot.slane %v4787_v26, 2  ;;  %v1171_v36 = vrot.slane %v4812_v29, 2  ;;  %v6255_v29 = vld [vmem:[#allocation6_spill] sm:$0xff] }
  0x6f   : > { %3957 = vmatmul.mubr.msk.f32.gmra.mxu0 %vm506_vm2, %v5020_v41 }
  0x70   : > { %3959 = vmatprep.mubr.msk.f32.mxu0 %vm506_vm2, %v5026_v61  ;;  %v1164_v61 = vrot.slane %v4736_v49, 2 }
  0x71   : > { %3907 = vmatmul.mubr.msk.f32.gmra.mxu1 %vm506_vm2, %v4514_v27 }
  0x72   : > { %3909 = vmatprep.mubr.msk.f32.mxu1 %vm506_vm2, %v4557_v56  ;;  %v5077_v52 = vsel %vm1092_vm3, %v1163_v58, %v1164_v61  ;;  %v5088_v8 = vsel %vm1092_vm3, %v1164_v61, %v1166_v37  ;;  %v6256_v58 = vld [vmem:[#allocation8_spill] sm:$0xff]  ;;  %v6257_v37 = vld [vmem:[#allocation10_spill] sm:$0xff] }
  0x73   : > { %3960 = vmatmul.mubr.msk.f32.gmra.mxu0 %vm506_vm2, %v5037_v30 }
  0x74   : > { %3962 = vmatprep.mubr.msk.f32.mxu0 %vm506_vm2, %v5043_v48  ;;  %v1169_v48 = vrot.slane %v4790_v13, 2 }
  0x75   : > { %3910 = vmatmul.mubr.msk.f32.gmra.mxu1 %vm506_vm2, %v4567_v62 }
  0x76   : > { %3912 = vmatprep.mubr.msk.f32.mxu1 %vm506_vm2, %v4619_v57  ;;  %v5094_v20 = vsel %vm1092_vm3, %v1168_v10, %v1169_v48  ;;  %v5103_v61 = vsel %vm1092_vm3, %v1169_v48, %v1171_v36  ;;  %v5120_v48 = vld [vmem:[%s6127_s1 + $0x20] sm:$0xf]  ;;  %v5131_v10 = vld [vmem:[%s6127_s1 + $0x1c] sm:$0xf]  ;;  %v6262_v36 = vld [vmem:[#allocation20_spill] sm:$0xff] }
  0x77   : > { %3963 = vmatmul.mubr.msk.f32.gmra.mxu0 %vm506_vm2, %v5054_v14  ;;  %6254 = vst [vmem:[#allocation41_spill] sm:$0xff] %v5103_v61 }
  0x78   : > { %3965 = vmatprep.mubr.msk.f32.mxu0 %vm506_vm2, %v5060_v28 }
  0x79   : > { %3913 = vmatmul.mubr.msk.f32.gmra.mxu1 %vm506_vm2, %v4624_v6 }
  0x7a   : > { %3915 = vmatprep.mubr.msk.f32.mxu1 %vm506_vm2, %v4675_v15 }
  0x7b   : > { %3966 = vmatmul.mubr.msk.f32.gmra.mxu0 %vm506_vm2, %v5071_v11 }
  0x7c   : > { %3968 = vmatprep.mubr.msk.f32.mxu0 %vm506_vm2, %v5077_v52 }
  0x7d   : > { %3916 = vmatmul.mubr.msk.f32.gmra.mxu1 %vm506_vm2, %v4678_v18 }
  0x7e   : > { %3918 = vmatprep.mubr.msk.f32.mxu1 %vm506_vm2, %v4730_v12 }
  0x7f   : > { %3969 = vmatmul.mubr.msk.f32.gmra.mxu0 %vm506_vm2, %v5088_v8 }
  0x80   : > { %3971 = vmatprep.mubr.msk.f32.mxu0 %vm506_vm2, %v5094_v20 }
  0x81   : > { %3919 = vmatmul.mubr.msk.f32.gmra.mxu1 %vm506_vm2, %v4736_v49 }
  0x82   : > { %3921 = vmatprep.mubr.msk.f32.mxu1 %vm506_vm2, %v4787_v26 }
  0x83   : > { %3972 = vmatmul.mubr.msk.f32.gmra.mxu0 %vm506_vm2, %v5103_v61 }
  0x84   : > { %4026 = vmatprep.mubr.msk.f32.mxu0 %vm506_vm2, %v6255_v29  ;;  %v6263_v29 = vld [vmem:[#allocation22_spill] sm:$0xff] }
  0x85   : > { %3922 = vmatmul.mubr.msk.f32.gmra.mxu1 %vm506_vm2, %v4790_v13 }
  0x86   : > { %3976 = vmatprep.mubr.msk.f32.mxu1 %vm506_vm2, %v4406_v31  ;;  %v6258_v31 = vld [vmem:[#allocation12_spill] sm:$0xff] }
  0x87   : > { %4027 = vmatmul.mubr.msk.f32.vlgmr.msra.gmra.mxu0 %vm506_vm2, %v6256_v58  ;;  %v6264_v58 = vld [vmem:[#allocation24_spill] sm:$0xff] }
  0x88   : > { %4125 = vmatpush3.msk.msra.mxu0 %vm571_vm0, %v4848_v60  ;;  %4029 = vmatprep.mubr.msk.f32.mxu0 %vm506_vm2, %v6257_v37  ;;  %v6259_v60 = vld [vmem:[#allocation14_spill] sm:$0xff]  ;;  %v6278_v37 = vld [vmem:[#allocation23_spill] sm:$0xff] }
  0x89   : > { %3977 = vmatmul.mubr.msk.f32.vlgmr.msra.gmra.mxu1 %vm506_vm2, %v4416_v39  ;;  %4224 = vmatprep.subr.msk.mxu0 %vm571_vm0, %v5120_v48  ;;  %v6260_v39 = vld [vmem:[#allocation16_spill] sm:$0xff] }
  0x8a   : > { %4075 = vmatpush3.msk.msra.mxu1 %vm571_vm0, %v4862_v19  ;;  %3979 = vmatprep.mubr.msk.f32.mxu1 %vm506_vm2, %v4481_v2  ;;  %v6261_v19 = vld [vmem:[#allocation18_spill] sm:$0xff] }
  0x8b   : > { %4030 = vmatmul.mubr.msk.f32.gmra.mxu0 %vm506_vm2, %v6258_v31  ;;  %4174 = vmatprep.subr.msk.mxu1 %vm571_vm0, %v5131_v10  ;;  %v6277_v31 = vld [vmem:[#allocation21_spill] sm:$0xff] }
  0x8c   : > { %4032 = vmatprep.mubr.msk.f32.mxu0 %vm506_vm2, %v6259_v60  ;;  %v248_v60 = vld [vmem:[%s4360_s28 + $0x190] sm:$0x3] }
  0x8d   : > { %3980 = vmatmul.mubr.msk.f32.gmra.mxu1 %vm506_vm2, %v4484_v5 }
  0x8e   : > { %3982 = vmatprep.mubr.msk.f32.mxu1 %vm506_vm2, %v4541_v42 }
  0x8f   : > { %4033 = vmatmul.mubr.msk.f32.gmra.mxu0 %vm506_vm2, %v6260_v39 }
  0x90   : > { %4035 = vmatprep.mubr.msk.f32.mxu0 %vm506_vm2, %v6261_v19  ;;  %v6265_v19 = vld [vmem:[#allocation26_spill] sm:$0xff] }
  0x91   : > { %3983 = vmatmul.mubr.msk.f32.gmra.mxu1 %vm506_vm2, %v4554_v53 }
  0x92   : > { %3985 = vmatprep.mubr.msk.f32.mxu1 %vm506_vm2, %v4594_v33 }
  0x93   : > { %4036 = vmatmul.mubr.msk.f32.gmra.mxu0 %vm506_vm2, %v6262_v36  ;;  %v6266_v36 = vld [vmem:[#allocation28_spill] sm:$0xff] }
  0x94   : > { %4038 = vmatprep.mubr.msk.f32.mxu0 %vm506_vm2, %v6263_v29  ;;  %v6275_v29 = vld [vmem:[#allocation19_spill] sm:$0xff] }
  0x95   : > { %3986 = vmatmul.mubr.msk.f32.gmra.mxu1 %vm506_vm2, %v4608_v40 }
  0x96   : > { %3988 = vmatprep.mubr.msk.f32.mxu1 %vm506_vm2, %v4649_v43 }
  0x97   : > { %4039 = vmatmul.mubr.msk.f32.gmra.mxu0 %vm506_vm2, %v6264_v58  ;;  %v6274_v58 = vld [vmem:[#allocation17_spill] sm:$0xff] }
  0x98   : > { %4041 = vmatprep.mubr.msk.f32.mxu0 %vm506_vm2, %v6265_v19  ;;  %v6267_v19 = vld [vmem:[#allocation4_spill] sm:$0xff] }
  0x99   : > { %3989 = vmatmul.mubr.msk.f32.gmra.mxu1 %vm506_vm2, %v4655_v47 }
  0x9a   : > { %3991 = vmatprep.mubr.msk.f32.mxu1 %vm506_vm2, %v4708_v34 }
  0x9b   : > { %4042 = vmatmul.mubr.msk.f32.gmra.mxu0 %vm506_vm2, %v6266_v36  ;;  %v6269_v36 = vld [vmem:[#allocation7_spill] sm:$0xff] }
  0x9c   : > { %4044 = vmatprep.mubr.msk.f32.mxu0 %vm506_vm2, %v4803_v22  ;;  %v6268_v22 = vld [vmem:[#allocation5_spill] sm:$0xff] }
  0x9d   : > { %3992 = vmatmul.mubr.msk.f32.gmra.mxu1 %vm506_vm2, %v4716_v9 }
  0x9e   : > { %3994 = vmatprep.mubr.msk.f32.mxu1 %vm506_vm2, %v4764_v59 }
  0x9f   : > { %4045 = vmatmul.mubr.msk.f32.gmra.mxu0 %vm506_vm2, %v4825_v24  ;;  %v6271_v24 = vld [vmem:[#allocation11_spill] sm:$0xff] }
  0xa0   : > { %4047 = vmatprep.mubr.msk.f32.mxu0 %vm506_vm2, %v6267_v19  ;;  %v6270_v19 = vld [vmem:[#allocation9_spill] sm:$0xff] }
  0xa1   : > { %3995 = vmatmul.mubr.msk.f32.gmra.mxu1 %vm506_vm2, %v4767_v35 }
  0xa2   : > { %3997 = vmatprep.mubr.msk.f32.mxu1 %vm506_vm2, %v4388_v21 }
  0xa3   : > { %4048 = vmatmul.mubr.msk.f32.gmra.mxu0 %vm506_vm2, %v6268_v22  ;;  %v6273_v22 = vld [vmem:[#allocation15_spill] sm:$0xff] }
  0xa4   : > { %4050 = vmatprep.mubr.msk.f32.mxu0 %vm506_vm2, %v6269_v36  ;;  %v6272_v36 = vld [vmem:[#allocation13_spill] sm:$0xff] }
  0xa5   : > { %3998 = vmatmul.mubr.msk.f32.gmra.mxu1 %vm506_vm2, %v4392_v23 }
  0xa6   : > { %4000 = vmatprep.mubr.msk.f32.mxu1 %vm506_vm2, %v4441_v50 }
  0xa7   : > { %4051 = vmatmul.mubr.msk.f32.gmra.mxu0 %vm506_vm2, %v6270_v19  ;;  %v246_v19 = vld [vmem:[%s4360_s28 + $0x180] sm:$0xff] }
  0xa8   : > { %4053 = vmatprep.mubr.msk.f32.mxu0 %vm506_vm2, %v6271_v24  ;;  %v247_v24 = vld [vmem:[%s4360_s28 + $0x188] sm:$0xff] }
  0xa9   : > { %4001 = vmatmul.mubr.msk.f32.gmra.mxu1 %vm506_vm2, %v4456_v55 }
  0xaa   : > { %4003 = vmatprep.mubr.msk.f32.mxu1 %vm506_vm2, %v4501_v16 }
  0xab   : > { %4054 = vmatmul.mubr.msk.f32.gmra.mxu0 %vm506_vm2, %v6272_v36  ;;  %v6276_v36 = vld [vmem:[#allocation2_spill] sm:$0xff] }
  0xac   : > { %4056 = vmatprep.mubr.msk.f32.mxu0 %vm506_vm2, %v6273_v22  ;;  %v307_v39 = vmul.f32 %v6276_v36, %v246_v19  ;;  %v308_v22 = vmul.f32 %v6276_v36, %v247_v24  ;;  %v6280_v19 = vld [vmem:[#allocation25_spill] sm:$0xff] }
  0xad   : > { %4004 = vmatmul.mubr.msk.f32.gmra.mxu1 %vm506_vm2, %v4514_v27 }
  0xae   : > { %4006 = vmatprep.mubr.msk.f32.mxu1 %vm506_vm2, %v4557_v56 }
  0xaf   : > { %4057 = vmatmul.mubr.msk.f32.gmra.mxu0 %vm506_vm2, %v6274_v58  ;;  %v309_v58 = vmul.f32 %v6276_v36, %v248_v60  ;;  %v6282_v36 = vld [vmem:[#allocation29_spill] sm:$0xff] }
  0xb0   : > { %4059 = vmatprep.mubr.msk.f32.mxu0 %vm506_vm2, %v6275_v29  ;;  %v6279_v29 = vld [vmem:[#allocation3_spill] sm:$0xff] }
  0xb1   : > { %4007 = vmatmul.mubr.msk.f32.gmra.mxu1 %vm506_vm2, %v4567_v62  ;;  %v5236_v61 = vadd.f32 %v6279_v29, %v307_v39  ;;  %v5239_v24 = vadd.f32 %v6279_v29, %v308_v22  ;;  %v5248_v60 = vadd.f32 %v6279_v29, %v309_v58 }
  0xb2   : > { %4009 = vmatprep.mubr.msk.f32.mxu1 %vm506_vm2, %v4619_v57 }
  0xb3   : > { %4060 = vmatmul.mubr.msk.f32.gmra.mxu0 %vm506_vm2, %v6277_v31  ;;  %v6281_v31 = vld [vmem:[#allocation27_spill] sm:$0xff]  ;;  %v1768_v39 = vrot.slane %v5236_v61, 1  ;;  %v1769_v22 = vrot.slane %v5239_v24, 1 }
  0xb4   : > { %4062 = vmatprep.mubr.msk.f32.mxu0 %vm506_vm2, %v6278_v37 }
  0xb5   : > { %4010 = vmatmul.mubr.msk.f32.gmra.mxu1 %vm506_vm2, %v4624_v6  ;;  %v5264_v29 = vsel %vm423_vm1, %v1768_v39, %v1769_v22 }
  0xb6   : > { %4012 = vmatprep.mubr.msk.f32.mxu1 %vm506_vm2, %v4675_v15  ;;  %6284 = vst [vmem:[#allocation6_spill] sm:$0xff] %v5264_v29 }
  0xb7   : > { %4063 = vmatmul.mubr.msk.f32.gmra.mxu0 %vm506_vm2, %v6280_v19  ;;  %v6283_v19 = vld [vmem:[#allocation31_spill] sm:$0xff] }
  0xb8   : > { %4065 = vmatprep.mubr.msk.f32.mxu0 %vm506_vm2, %v6281_v31  ;;  %v1771_v31 = vrot.slane %v5248_v60, 1 }
  0xb9   : > { %4013 = vmatmul.mubr.msk.f32.gmra.mxu1 %vm506_vm2, %v4678_v18 }
  0xba   : > { %4015 = vmatprep.mubr.msk.f32.mxu1 %vm506_vm2, %v4730_v12  ;;  %v5273_v58 = vsel %vm423_vm1, %v1769_v22, %v1771_v31  ;;  %v250_v22 = vld [vmem:[%s4360_s28 + $0x1a0] sm:$0xff] }
  0xbb   : > { %4066 = vmatmul.mubr.msk.f32.gmra.mxu0 %vm506_vm2, %v6282_v36  ;;  %6285 = vst [vmem:[#allocation8_spill] sm:$0xff] %v5273_v58 }
  0xbc   : > { %4068 = vmatprep.mubr.msk.f32.mxu0 %vm506_vm2, %v6283_v19 }
  0xbd   : > { %4016 = vmatmul.mubr.msk.f32.gmra.mxu1 %vm506_vm2, %v4736_v49 }
  0xbe   : > { %4018 = vmatprep.mubr.msk.f32.mxu1 %vm506_vm2, %v4787_v26 }
  0xbf   : > { %4069 = vmatmul.mubr.msk.f32.gmra.mxu0 %vm506_vm2, %v4831_v45 }
  0xc0   : > { %4071 = vmatprep.mubr.msk.f32.mxu0 %vm506_vm2, %v5264_v29  ;;  %v2040_v29 = vrot.slane %v5239_v24, 2 }
  0xc1   : > { %4019 = vmatmul.mubr.msk.f32.gmra.mxu1 %vm506_vm2, %v4790_v13 }
  0xc2   : > { %4021 = vmatprep.mubr.msk.f32.mxu1 %vm506_vm2, %v5236_v61 }
  0xc3   : > { %4072 = vmatmul.mubr.msk.f32.gmra.mxu0 %vm506_vm2, %v5273_v58 }
  0xc4   : > { %4126 = vmatprep.mubr.msk.f32.mxu0 %vm506_vm2, %v4481_v2  ;;  %v6286_v2 = vld [vmem:[#allocation34_spill] sm:$0xff] }
  0xc5   : > { %4022 = vmatmul.mubr.msk.f32.gmra.mxu1 %vm506_vm2, %v5239_v24 }
  0xc6   : > { %4076 = vmatprep.mubr.msk.f32.mxu1 %vm506_vm2, %v4839_v38 }
  0xc7   : > { %4127 = vmatmul.mubr.msk.f32.vlgmr.msra.gmra.mxu0 %vm506_vm2, %v4484_v5 }
  0xc8   : > { %4225 = vmatpush3.msk.msra.mxu0 %vm571_vm0, %v5120_v48  ;;  %4129 = vmatprep.mubr.msk.f32.mxu0 %vm506_vm2, %v4541_v42 }
  0xc9   : > { %4077 = vmatmul.mubr.msk.f32.vlgmr.msra.gmra.mxu1 %vm506_vm2, %v4856_v3  ;;  %v6292_v3 = vld [vmem:[#allocation40_spill] sm:$0xff] }
  0xca   : > { %4175 = vmatpush3.msk.msra.mxu1 %vm571_vm0, %v5131_v10  ;;  %4079 = vmatprep.mubr.msk.f32.mxu1 %vm506_vm2, %v4867_v51  ;;  %v249_v10 = vld [vmem:[%s4360_s28 + $0x198] sm:$0xff] }
  0xcb   : > { %4130 = vmatmul.mubr.msk.f32.gmra.mxu0 %vm506_vm2, %v4554_v53  ;;  %v6287_v53 = vld [vmem:[#allocation35_spill] sm:$0xff] }
  0xcc   : > { %4132 = vmatprep.mubr.msk.f32.mxu0 %vm506_vm2, %v4594_v33 }
  0xcd   : > { %4080 = vmatmul.mubr.msk.f32.gmra.mxu1 %vm506_vm2, %v4884_v4 }
  0xce   : > { %4082 = vmatprep.mubr.msk.f32.mxu1 %vm506_vm2, %v4890_v54 }
  0xcf   : > { %4133 = vmatmul.mubr.msk.f32.gmra.mxu0 %vm506_vm2, %v4608_v40 }
  0xd0   : > { %4135 = vmatprep.mubr.msk.f32.mxu0 %vm506_vm2, %v4649_v43 }
  0xd1   : > { %4083 = vmatmul.mubr.msk.f32.gmra.mxu1 %vm506_vm2, %v4901_v1 }
  0xd2   : > { %4085 = vmatprep.mubr.msk.f32.mxu1 %vm506_vm2, %v4907_v46 }
  0xd3   : > { %4136 = vmatmul.mubr.msk.f32.gmra.mxu0 %vm506_vm2, %v4655_v47 }
  0xd4   : > { %4138 = vmatprep.mubr.msk.f32.mxu0 %vm506_vm2, %v4708_v34  ;;  %v6290_v34 = vld [vmem:[#allocation38_spill] sm:$0xff] }
  0xd5   : > { %4086 = vmatmul.mubr.msk.f32.gmra.mxu1 %vm506_vm2, %v4918_v17 }
  0xd6   : > { %4088 = vmatprep.mubr.msk.f32.mxu1 %vm506_vm2, %v4924_v63 }
  0xd7   : > { %4139 = vmatmul.mubr.msk.f32.gmra.mxu0 %vm506_vm2, %v4716_v9 }
  0xd8   : > { %4141 = vmatprep.mubr.msk.f32.mxu0 %vm506_vm2, %v4764_v59 }
  0xd9   : > { %4089 = vmatmul.mubr.msk.f32.gmra.mxu1 %vm506_vm2, %v4935_v7 }
  0xda   : > { %4091 = vmatprep.mubr.msk.f32.mxu1 %vm506_vm2, %v6286_v2  ;;  %v5335_v5 = vpop.f32.mrf.mxu0 }
  0xdb   : > { %4142 = vmatmul.mubr.msk.f32.gmra.mxu0 %vm506_vm2, %v4767_v35  ;;  %v5339_v42 = vpop.f32.mrf.mxu1 }
  0xdc   : > { %4144 = vmatprep.mubr.msk.f32.mxu0 %vm506_vm2, %v4388_v21  ;;  %v5345_v33 = vpop.f32.mrf.mxu0  ;;  %v6288_v21 = vld [vmem:[#allocation36_spill] sm:$0xff] }
  0xdd   : > { %4092 = vmatmul.mubr.msk.f32.gmra.mxu1 %vm506_vm2, %v4952_v44  ;;  %v5347_v40 = vpop.f32.mrf.mxu1 }
  0xde   : > { %4094 = vmatprep.mubr.msk.f32.mxu1 %vm506_vm2, %v6287_v53 }
  0xdf   : > { %4145 = vmatmul.mubr.msk.f32.gmra.mxu0 %vm506_vm2, %v4392_v23 }
  0xe0   : > { %4147 = vmatprep.mubr.msk.f32.mxu0 %vm506_vm2, %v4441_v50  ;;  %v6289_v50 = vld [vmem:[#allocation37_spill] sm:$0xff] }
  0xe1   : > { %4095 = vmatmul.mubr.msk.f32.gmra.mxu1 %vm506_vm2, %v4969_v32  ;;  %v5357_v43 = vpop.f32.mrf.mxu0 }
  0xe2   : > { %4097 = vmatprep.mubr.msk.f32.mxu1 %vm506_vm2, %v6288_v21  ;;  %v5359_v47 = vpop.f32.mrf.mxu1 }
  0xe3   : > { %4148 = vmatmul.mubr.msk.f32.gmra.mxu0 %vm506_vm2, %v4456_v55  ;;  %v5365_v23 = vpop.f32.mrf.mxu0 }
  0xe4   : > { %4150 = vmatprep.mubr.msk.f32.mxu0 %vm506_vm2, %v4501_v16  ;;  %v5369_v9 = vpop.f32.mrf.mxu1 }
  0xe5   : > { %4098 = vmatmul.mubr.msk.f32.gmra.mxu1 %vm506_vm2, %v4986_v25  ;;  %v5373_v55 = vpop.f32.mrf.mxu0 }
  0xe6   : > { %4100 = vmatprep.mubr.msk.f32.mxu1 %vm506_vm2, %v6289_v50 }
  0xe7   : > { %4151 = vmatmul.mubr.msk.f32.gmra.mxu0 %vm506_vm2, %v4514_v27  ;;  %v5379_v16 = vpop.f32.mrf.mxu0 }
  0xe8   : > { %4153 = vmatprep.mubr.msk.f32.mxu0 %vm506_vm2, %v4557_v56  ;;  %v5383_v59 = vpop.f32.mrf.mxu1  ;;  %v6291_v56 = vld [vmem:[#allocation39_spill] sm:$0xff] }
  0xe9   : > { %4101 = vmatmul.mubr.msk.f32.gmra.mxu1 %vm506_vm2, %v5003_v0 }
  0xea   : > { %4103 = vmatprep.mubr.msk.f32.mxu1 %vm506_vm2, %v6290_v34  ;;  %v5389_v27 = vpop.f32.mrf.mxu1 }
  0xeb   : > { %4154 = vmatmul.mubr.msk.f32.gmra.mxu0 %vm506_vm2, %v4567_v62  ;;  %v5391_v35 = vpop.f32.mrf.mxu0 }
  0xec   : > { %4156 = vmatprep.mubr.msk.f32.mxu0 %vm506_vm2, %v4619_v57 }
  0xed   : > { %4104 = vmatmul.mubr.msk.f32.gmra.mxu1 %vm506_vm2, %v5020_v41  ;;  %v5401_v62 = vpop.f32.mrf.mxu0 }
  0xee   : > { %4106 = vmatprep.mubr.msk.f32.mxu1 %vm506_vm2, %v6291_v56  ;;  %v5399_v38 = vpop.f32.mrf.mxu1 }
  0xef   : > { %4157 = vmatmul.mubr.msk.f32.gmra.mxu0 %vm506_vm2, %v4624_v6 }
  0xf0   : > { %4159 = vmatprep.mubr.msk.f32.mxu0 %vm506_vm2, %v4675_v15  ;;  %v5407_v57 = vpop.f32.mrf.mxu1 }
  0xf1   : > { %4107 = vmatmul.mubr.msk.f32.gmra.mxu1 %vm506_vm2, %v5037_v30 }
  0xf2   : > { %4109 = vmatprep.mubr.msk.f32.mxu1 %vm506_vm2, %v6292_v3  ;;  %v5413_v6 = vpop.f32.mrf.mxu0 }
  0xf3   : > { %4160 = vmatmul.mubr.msk.f32.gmra.mxu0 %vm506_vm2, %v4678_v18  ;;  %v5417_v48 = vpop.f32.mrf.mxu1 }
  0xf4   : > { %4162 = vmatprep.mubr.msk.f32.mxu0 %vm506_vm2, %v4730_v12  ;;  %6293 = vst [vmem:[#allocation2_spill] sm:$0xff] %v5417_v48  ;;  %v5421_v15 = vpop.f32.mrf.mxu0  ;;  %v5437_v12 = vld [vmem:[%s6128_s2] ss:$0 sm:$0xff]  ;;  %v6301_v48 = vld [vmem:[#allocation41_spill] sm:$0xff] }
  0xf5   : > { %4110 = vmatmul.mubr.msk.f32.gmra.mxu1 %vm506_vm2, %v5054_v14  ;;  %v5426_v31 = vpop.f32.mrf.mxu1  ;;  %v310_v39 = vmul.f32 %v5437_v12, %v249_v10  ;;  %v311_v10 = vmul.f32 %v5437_v12, %v250_v22  ;;  %v2042_v22 = vrot.slane %v5248_v60, 2 }
  0xf6   : > { %4112 = vmatprep.mubr.msk.f32.mxu1 %vm506_vm2, %v5060_v28  ;;  %6294 = vst [vmem:[#allocation23_spill] sm:$0xff] %v5426_v31 }
  0xf7   : > { %4163 = vmatmul.mubr.msk.f32.gmra.mxu0 %vm506_vm2, %v4736_v49  ;;  %v5432_v18 = vpop.f32.mrf.mxu0 }
  0xf8   : > { %4165 = vmatprep.mubr.msk.f32.mxu0 %vm506_vm2, %v4787_v26  ;;  %v2039_v26 = vrot.slane %v5236_v61, 2 }
  0xf9   : > { %4113 = vmatmul.mubr.msk.f32.gmra.mxu1 %vm506_vm2, %v5071_v11  ;;  %v5445_v49 = vpop.f32.mrf.mxu1  ;;  %v5447_v58 = vpop.f32.mrf.mxu0 }
  0xfa   : > { %4115 = vmatprep.mubr.msk.f32.mxu1 %vm506_vm2, %v5077_v52  ;;  %6295 = vst [vmem:[#allocation3_spill] sm:$0xff] %v5445_v49  ;;  %v5461_v49 = vld [vmem:[%s6129_s3] ss:$0 sm:$0xff] }
  0xfb   : > { %4166 = vmatmul.mubr.msk.f32.gmra.mxu0 %vm506_vm2, %v4790_v13  ;;  %v5454_v45 = vpop.f32.mrf.mxu1  ;;  %v5464_v31 = vadd.f32 %v5461_v49, %v310_v39  ;;  %v5480_v39 = vsel %vm1092_vm3, %v2039_v26, %v2040_v29  ;;  %v5483_v19 = vadd.f32 %v5461_v49, %v311_v10 }
  0xfc   : > { %6296 = vst [vmem:[#allocation29_spill] sm:$0xff] %v5454_v45  ;;  %4168 = vmatprep.mubr.msk.f32.mxu0 %vm506_vm2, %v5236_v61  ;;  %v5468_v13 = vpop.f32.mrf.mxu0  ;;  %6299 = vst [vmem:[#allocation36_spill] sm:$0xff] %v5480_v39 }
  0xfd   : > { %6297 = vst [vmem:[#allocation34_spill] sm:$0xff] %v5464_v31  ;;  %4116 = vmatmul.mubr.msk.f32.gmra.mxu1 %vm506_vm2, %v5088_v8  ;;  %6300 = vst [vmem:[#allocation37_spill] sm:$0xff] %v5483_v19 }
  0xfe   : > { %4118 = vmatprep.mubr.msk.f32.mxu1 %vm506_vm2, %v5094_v20  ;;  %v5473_v45 = vpop.f32.mrf.mxu1  ;;  %v5477_v61 = vpop.f32.mrf.mxu0 }
  0xff   : > { %6298 = vst [vmem:[#allocation35_spill] sm:$0xff] %v5473_v45  ;;  %4169 = vmatmul.mubr.msk.f32.gmra.mxu0 %vm506_vm2, %v5239_v24  ;;  %v5494_v24 = vsel %vm1092_vm3, %v2040_v29, %v2042_v22 }
 0x100   : > { %4171 = vmatprep.mubr.msk.f32.mxu0 %vm506_vm2, %v5464_v31  ;;  %v5489_v60 = vpop.f32.mrf.mxu1  ;;  %6303 = vst [vmem:[#allocation39_spill] sm:$0xff] %v5494_v24  ;;  %v6310_v31 = vld [vmem:[#allocation18_spill] sm:$0xff] }
 0x101   : > { %4119 = vmatmul.mubr.msk.f32.gmra.mxu1 %vm506_vm2, %v6301_v48  ;;  %6302 = vst [vmem:[#allocation38_spill] sm:$0xff] %v5489_v60  ;;  %v6305_v60 = vld [vmem:[#allocation10_spill] sm:$0xff] }
 0x102   : > { %4121 = vmatprep.mubr.msk.f32.mxu1 %vm506_vm2, %v5480_v39  ;;  %v6307_v39 = vld [vmem:[#allocation12_spill] sm:$0xff]  ;;  %v6308_v48 = vld [vmem:[#allocation14_spill] sm:$0xff] }
 0x103   : > { %v5496_v45 = vpop.f32.mrf.mxu0  ;;  %4172 = vmatmul.mubr.msk.f32.gmra.mxu0 %vm506_vm2, %v5483_v19 }
 0x104   : > { %4226 = vmatprep.mubr.msk.f32.mxu0 %vm506_vm2, %v4867_v51  ;;  %v5502_v26 = vpop.f32.mrf.mxu1 }
 0x105   : > { %6304 = vst [vmem:[#allocation40_spill] sm:$0xff] %v5502_v26  ;;  %4122 = vmatmul.mubr.msk.f32.gmra.mxu1 %vm506_vm2, %v5494_v24  ;;  %v5506_v10 = vpop.f32.mrf.mxu0 }
 0x106   : > { %4176 = vmatprep.mubr.msk.f32.mxu1 %vm506_vm2, %v6305_v60  ;;  %v5510_v29 = vpop.f32.mrf.mxu1 }
 0x107   : > { %6306 = vst [vmem:[#allocation10_spill] sm:$0xff] %v5510_v29  ;;  %v3928_v22 = vpop.f32.mrf.mxu0  ;;  %4227 = vmatmul.mubr.msk.f32.vlgmr.msra.gmra.mxu0 %vm506_vm2, %v4884_v4 }
 0x108   : > { %4229 = vmatprep.mubr.msk.f32.mxu0 %vm506_vm2, %v4890_v54 }
 0x109   : > { %v3878_v51 = vpop.f32.mrf.mxu1  ;;  %4177 = vmatmul.mubr.msk.f32.vlgmr.msra.gmra.mxu1 %vm506_vm2, %v6307_v39  ;;  %v1308_v26 = vpop.f32.mrf.mxu0  ;;  %v6309_v39 = vld [vmem:[#allocation16_spill] sm:$0xff] }
 0x10a   : > { %v939_v24 = vadd.f32 %v3878_v51, %v5335_v5  ;;  %4179 = vmatprep.mubr.msk.f32.mxu1 %vm506_vm2, %v6308_v48 }
 0x10b   : > { %v933_v60 = vpop.f32.mrf.mxu1  ;;  %v3931_v19 = vpop.f32.mrf.mxu0  ;;  %4230 = vmatmul.mubr.msk.f32.gmra.mxu0 %vm506_vm2, %v4901_v1 }
 0x10c   : > { %v5523_v29 = vadd.f32 %v3928_v22, %v939_v24  ;;  %v934_v4 = vadd.f32 %v933_v60, %v5345_v33  ;;  %4232 = vmatprep.mubr.msk.f32.mxu0 %vm506_vm2, %v4907_v46 }
 0x10d   : > { %v3881_v54 = vpop.f32.mrf.mxu1  ;;  %4180 = vmatmul.mubr.msk.f32.gmra.mxu1 %vm506_vm2, %v6309_v39  ;;  %v1318_v5 = vpop.f32.mrf.mxu0  ;;  %v6313_v39 = vld [vmem:[#allocation24_spill] sm:$0xff] }
 0x10e   : > { %v5530_v51 = vadd.f32 %v1308_v26, %v934_v4  ;;  %v949_v48 = vadd.f32 %v3881_v54, %v5357_v43  ;;  %4182 = vmatprep.mubr.msk.f32.mxu1 %vm506_vm2, %v6310_v31  ;;  %v6311_v26 = vld [vmem:[#allocation20_spill] sm:$0xff]  ;;  %v6312_v4 = vld [vmem:[#allocation22_spill] sm:$0xff] }
 0x10f   : > { %v943_v1 = vpop.f32.mrf.mxu1  ;;  %v3934_v24 = vpop.f32.mrf.mxu0  ;;  %4233 = vmatmul.mubr.msk.f32.gmra.mxu0 %vm506_vm2, %v4918_v17 }
 0x110   : > { %v5537_v33 = vadd.f32 %v3931_v19, %v949_v48  ;;  %v944_v46 = vadd.f32 %v943_v1, %v5365_v23  ;;  %4235 = vmatprep.mubr.msk.f32.mxu0 %vm506_vm2, %v4924_v63  ;;  %v6314_v1 = vld [vmem:[#allocation26_spill] sm:$0xff] }
 0x111   : > { %v3884_v22 = vpop.f32.mrf.mxu1  ;;  %4183 = vmatmul.mubr.msk.f32.gmra.mxu1 %vm506_vm2, %v6311_v26  ;;  %v1328_v43 = vpop.f32.mrf.mxu0 }
 0x112   : > { %v5544_v60 = vadd.f32 %v1318_v5, %v944_v46  ;;  %v959_v31 = vadd.f32 %v3884_v22, %v5373_v55  ;;  %4185 = vmatprep.mubr.msk.f32.mxu1 %vm506_vm2, %v6312_v4  ;;  %v6315_v22 = vld [vmem:[#allocation28_spill] sm:$0xff] }
 0x113   : > { %v953_v17 = vpop.f32.mrf.mxu1  ;;  %v3937_v19 = vpop.f32.mrf.mxu0  ;;  %4236 = vmatmul.mubr.msk.f32.gmra.mxu0 %vm506_vm2, %v4935_v7 }
 0x114   : > { %v5551_v23 = vadd.f32 %v3934_v24, %v959_v31  ;;  %v954_v63 = vadd.f32 %v953_v17, %v5379_v16  ;;  %4238 = vmatprep.mubr.msk.f32.mxu0 %vm506_vm2, %v6286_v2  ;;  %v6316_v31 = vld [vmem:[#allocation30_spill] sm:$0xff] }
 0x115   : > { %v3887_v54 = vpop.f32.mrf.mxu1  ;;  %4186 = vmatmul.mubr.msk.f32.gmra.mxu1 %vm506_vm2, %v6313_v39  ;;  %v1338_v55 = vpop.f32.mrf.mxu0  ;;  %v6318_v39 = vld [vmem:[#allocation4_spill] sm:$0xff] }
 0x116   : > { %v5558_v5 = vadd.f32 %v1328_v43, %v954_v63  ;;  %v969_v48 = vadd.f32 %v3887_v54, %v5391_v35  ;;  %4188 = vmatprep.mubr.msk.f32.mxu1 %vm506_vm2, %v6314_v1  ;;  %v6319_v1 = vld [vmem:[#allocation5_spill] sm:$0xff] }
 0x117   : > { %v963_v7 = vpop.f32.mrf.mxu1  ;;  %v3940_v24 = vpop.f32.mrf.mxu0  ;;  %4239 = vmatmul.mubr.msk.f32.gmra.mxu0 %vm506_vm2, %v4952_v44 }
 0x118   : > { %v5565_v16 = vadd.f32 %v3937_v19, %v969_v48  ;;  %v964_v2 = vadd.f32 %v963_v7, %v5401_v62  ;;  %4241 = vmatprep.mubr.msk.f32.mxu0 %vm506_vm2, %v6287_v53  ;;  %v6317_v19 = vld [vmem:[#allocation32_spill] sm:$0xff] }
 0x119   : > { %v3890_v46 = vpop.f32.mrf.mxu1  ;;  %4189 = vmatmul.mubr.msk.f32.gmra.mxu1 %vm506_vm2, %v6315_v22  ;;  %v1348_v35 = vpop.f32.mrf.mxu0 }
 0x11a   : > { %v5572_v26 = vadd.f32 %v1338_v55, %v964_v2  ;;  %v979_v43 = vadd.f32 %v3890_v46, %v5413_v6  ;;  %4191 = vmatprep.mubr.msk.f32.mxu1 %vm506_vm2, %v6316_v31  ;;  %v6320_v2 = vld [vmem:[#allocation7_spill] sm:$0xff] }
 0x11b   : > { %v973_v44 = vpop.f32.mrf.mxu1  ;;  %v3943_v4 = vpop.f32.mrf.mxu0  ;;  %4242 = vmatmul.mubr.msk.f32.gmra.mxu0 %vm506_vm2, %v4969_v32 }
 0x11c   : > { %v5579_v62 = vadd.f32 %v3940_v24, %v979_v43  ;;  %v974_v53 = vadd.f32 %v973_v44, %v5421_v15  ;;  %4244 = vmatprep.mubr.msk.f32.mxu0 %vm506_vm2, %v6288_v21  ;;  %v6322_v44 = vld [vmem:[#allocation11_spill] sm:$0xff] }
 0x11d   : > { %v3893_v17 = vpop.f32.mrf.mxu1  ;;  %4192 = vmatmul.mubr.msk.f32.gmra.mxu1 %vm506_vm2, %v6317_v19  ;;  %v1358_v6 = vpop.f32.mrf.mxu0 }
 0x11e   : > { %v5586_v63 = vadd.f32 %v1348_v35, %v974_v53  ;;  %v989_v54 = vadd.f32 %v3893_v17, %v5432_v18  ;;  %4194 = vmatprep.mubr.msk.f32.mxu1 %vm506_vm2, %v6318_v39  ;;  %v6321_v35 = vld [vmem:[#allocation9_spill] sm:$0xff] }
 0x11f   : > { %v983_v32 = vpop.f32.mrf.mxu1  ;;  %v3946_v55 = vpop.f32.mrf.mxu0  ;;  %4245 = vmatmul.mubr.msk.f32.gmra.mxu0 %vm506_vm2, %v4986_v25  ;;  %v6323_v17 = vld [vmem:[#allocation13_spill] sm:$0xff] }
 0x120   : > { %v5593_v15 = vadd.f32 %v3943_v4, %v989_v54  ;;  %v984_v21 = vadd.f32 %v983_v32, %v5447_v58  ;;  %4247 = vmatprep.mubr.msk.f32.mxu0 %vm506_vm2, %v6289_v50  ;;  %v6324_v54 = vld [vmem:[#allocation15_spill] sm:$0xff] }
 0x121   : > { %v3896_v48 = vpop.f32.mrf.mxu1  ;;  %4195 = vmatmul.mubr.msk.f32.gmra.mxu1 %vm506_vm2, %v6319_v1  ;;  %v1368_v18 = vpop.f32.mrf.mxu0  ;;  %v6326_v1 = vld [vmem:[#allocation19_spill] sm:$0xff] }
 0x122   : > { %v5600_v7 = vadd.f32 %v1358_v6, %v984_v21  ;;  %v999_v24 = vadd.f32 %v3896_v48, %v5468_v13  ;;  %4197 = vmatprep.mubr.msk.f32.mxu1 %vm506_vm2, %v6320_v2  ;;  %v6327_v2 = vld [vmem:[#allocation21_spill] sm:$0xff] }
 0x123   : > { %v993_v25 = vpop.f32.mrf.mxu1  ;;  %v3949_v46 = vpop.f32.mrf.mxu0  ;;  %4248 = vmatmul.mubr.msk.f32.gmra.mxu0 %vm506_vm2, %v5003_v0 }
 0x124   : > { %v5607_v58 = vadd.f32 %v3946_v55, %v999_v24  ;;  %v994_v50 = vadd.f32 %v993_v25, %v5477_v61  ;;  %4250 = vmatprep.mubr.msk.f32.mxu0 %vm506_vm2, %v6290_v34  ;;  %v6325_v55 = vld [vmem:[#allocation17_spill] sm:$0xff]  ;;  %v251_v25 = vld [vmem:[%s4360_s28 + $0x1a8] sm:$0x3] }
 0x125   : > { %v3899_v22 = vpop.f32.mrf.mxu1  ;;  %4198 = vmatmul.mubr.msk.f32.gmra.mxu1 %vm506_vm2, %v6321_v35  ;;  %v1378_v13 = vpop.f32.mrf.mxu0  ;;  %v312_v35 = vmul.f32 %v5437_v12, %v251_v25 }
 0x126   : > { %v5614_v43 = vadd.f32 %v1368_v18, %v994_v50  ;;  %v1009_v31 = vadd.f32 %v3899_v22, %v5496_v45  ;;  %4200 = vmatprep.mubr.msk.f32.mxu1 %vm506_vm2, %v6322_v44 }
 0x127   : > { %v1003_v0 = vpop.f32.mrf.mxu1  ;;  %v3952_v4 = vpop.f32.mrf.mxu0  ;;  %4251 = vmatmul.mubr.msk.f32.gmra.mxu0 %vm506_vm2, %v5020_v41  ;;  %v373_v12 = vadd.f32 %v5461_v49, %v312_v35  ;;  %v6340_v35 = vld [vmem:[#allocation39_spill] sm:$0xff] }
 0x128   : > { %v5621_v61 = vadd.f32 %v3949_v46, %v1009_v31  ;;  %v1004_v34 = vadd.f32 %v1003_v0, %v5506_v10  ;;  %4253 = vmatprep.mubr.msk.f32.mxu0 %vm506_vm2, %v6291_v56  ;;  %v6328_v31 = vld [vmem:[#allocation25_spill] sm:$0xff]  ;;  %v6329_v0 = vld [vmem:[#allocation27_spill] sm:$0xff] }
 0x129   : > { %v3902_v53 = vpop.f32.mrf.mxu1  ;;  %4201 = vmatmul.mubr.msk.f32.gmra.mxu1 %vm506_vm2, %v6323_v17  ;;  %v1388_v45 = vpop.f32.mrf.mxu0 }
 0x12a   : > { %v5628_v19 = vadd.f32 %v1378_v13, %v1004_v34  ;;  %v1019_v6 = vadd.f32 %v3902_v53, %v5339_v42  ;;  %4203 = vmatprep.mubr.msk.f32.mxu1 %vm506_vm2, %v6324_v54  ;;  %v6330_v53 = vld [vmem:[#allocation34_spill] sm:$0xff] }
 0x12b   : > { %v1013_v41 = vpop.f32.mrf.mxu1  ;;  %v3955_v39 = vpop.f32.mrf.mxu0  ;;  %4254 = vmatmul.mubr.msk.f32.gmra.mxu0 %vm506_vm2, %v5037_v30  ;;  %v2850_v17 = vrot.slane %v6330_v53, 2  ;;  %v2579_v49 = vrot.slane %v6330_v53, 1 }
 0x12c   : > { %v5635_v10 = vadd.f32 %v3952_v4, %v1019_v6  ;;  %v1014_v56 = vadd.f32 %v1013_v41, %v5347_v40  ;;  %4256 = vmatprep.mubr.msk.f32.mxu0 %vm506_vm2, %v6292_v3 }
 0x12d   : > { %v3905_v32 = vpop.f32.mrf.mxu1  ;;  %4204 = vmatmul.mubr.msk.f32.gmra.mxu1 %vm506_vm2, %v6325_v55  ;;  %v1398_v42 = vpop.f32.mrf.mxu0  ;;  %v6335_v55 = vld [vmem:[#allocation23_spill] sm:$0xff] }
 0x12e   : > { %v5642_v21 = vadd.f32 %v1388_v45, %v1014_v56  ;;  %v1029_v48 = vadd.f32 %v3905_v32, %v5359_v47  ;;  %4206 = vmatprep.mubr.msk.f32.mxu1 %vm506_vm2, %v6326_v1  ;;  %v6331_v45 = vld [vmem:[#allocation37_spill] sm:$0xff]  ;;  %v2853_v1 = vrot.slane %v373_v12, 2 }
 0x12f   : > { %v1023_v30 = vpop.f32.mrf.mxu1  ;;  %v3958_v18 = vpop.f32.mrf.mxu0  ;;  %4257 = vmatmul.mubr.msk.f32.gmra.mxu0 %vm506_vm2, %v5054_v14  ;;  %v2851_v6 = vrot.slane %v6331_v45, 2  ;;  %v6334_v56 = vld [vmem:[#allocation41_spill] sm:$0xff] }
 0x130   : > { %v5649_v40 = vadd.f32 %v3955_v39, %v1029_v48  ;;  %v1024_v3 = vadd.f32 %v1023_v30, %v5369_v9  ;;  %4259 = vmatprep.mubr.msk.f32.mxu0 %vm506_vm2, %v5060_v28  ;;  %v6333_v39 = vld [vmem:[#allocation31_spill] sm:$0xff]  ;;  %v6336_v48 = vld [vmem:[#allocation36_spill] sm:$0xff] }
 0x131   : > { %v3908_v24 = vpop.f32.mrf.mxu1  ;;  %4207 = vmatmul.mubr.msk.f32.gmra.mxu1 %vm506_vm2, %v6327_v2  ;;  %v1408_v47 = vpop.f32.mrf.mxu0 }
 0x132   : > { %v5657_v46 = vadd.f32 %v1398_v42, %v1024_v3  ;;  %v1039_v50 = vadd.f32 %v3908_v24, %v5383_v59  ;;  %4209 = vmatprep.mubr.msk.f32.mxu1 %vm506_vm2, %v6278_v37  ;;  %v2852_v24 = vsel %vm1092_vm3, %v2850_v17, %v2851_v6 }
 0x133   : > { %v1033_v14 = vpop.f32.mrf.mxu1  ;;  %v3961_v22 = vpop.f32.mrf.mxu0  ;;  %4260 = vmatmul.mubr.msk.f32.gmra.mxu0 %vm506_vm2, %v5071_v11 }
 0x134   : > { %v5664_v9 = vadd.f32 %v3958_v18, %v1039_v50  ;;  %v1034_v28 = vadd.f32 %v1033_v14, %v5389_v27  ;;  %4262 = vmatprep.mubr.msk.f32.mxu0 %vm506_vm2, %v5077_v52  ;;  %v6337_v18 = vld [vmem:[#allocation33_spill] sm:$0xff]  ;;  %v6339_v50 = vld [vmem:[#allocation6_spill] sm:$0xff]  ;;  %v2582_v14 = vrot.slane %v373_v12, 1 }
 0x135   : > { %v3911_v13 = vpop.f32.mrf.mxu1  ;;  %4210 = vmatmul.mubr.msk.f32.gmra.mxu1 %vm506_vm2, %v6328_v31  ;;  %v1418_v59 = vpop.f32.mrf.mxu0 }
 0x136   : > { %v5672_v37 = vadd.f32 %v1408_v47, %v1034_v28  ;;  %v1049_v44 = vadd.f32 %v3911_v13, %v5399_v38  ;;  %4212 = vmatprep.mubr.msk.f32.mxu1 %vm506_vm2, %v6329_v0  ;;  %v6338_v47 = vld [vmem:[#allocation3_spill] sm:$0xff]  ;;  %v2854_v0 = vsel %vm1092_vm3, %v2851_v6, %v2853_v1  ;;  %v6344_v6 = vld [vmem:[#allocation38_spill] sm:$0xff] }
 0x137   : > { %v1043_v11 = vpop.f32.mrf.mxu1  ;;  %v3964_v4 = vpop.f32.mrf.mxu0  ;;  %4263 = vmatmul.mubr.msk.f32.gmra.mxu0 %vm506_vm2, %v5088_v8  ;;  %v6332_v8 = vld [vmem:[#allocation2_spill] sm:$0xff] }
 0x138   : > { %v5679_v52 = vadd.f32 %v3961_v22, %v1049_v44  ;;  %v1044_v27 = vadd.f32 %v1043_v11, %v5407_v57  ;;  %4265 = vmatprep.mubr.msk.f32.mxu0 %vm506_vm2, %v5094_v20 }
 0x139   : > { %v3914_v34 = vpop.f32.mrf.mxu1  ;;  %4213 = vmatmul.mubr.msk.f32.gmra.mxu1 %vm506_vm2, %v6282_v36  ;;  %v1428_v38 = vpop.f32.mrf.mxu0  ;;  %v2580_v36 = vrot.slane %v6331_v45, 1 }
 0x13a   : > { %v5689_v54 = vadd.f32 %v1418_v59, %v1044_v27  ;;  %v1059_v41 = vadd.f32 %v3914_v34, %v6332_v8  ;;  %4215 = vmatprep.mubr.msk.f32.mxu1 %vm506_vm2, %v6333_v39  ;;  %v6341_v59 = vld [vmem:[#allocation29_spill] sm:$0xff]  ;;  %v6343_v34 = vld [vmem:[#allocation35_spill] sm:$0xff] }
 0x13b   : > { %v1053_v57 = vpop.f32.mrf.mxu1  ;;  %v3967_v20 = vpop.f32.mrf.mxu0  ;;  %4266 = vmatmul.mubr.msk.f32.gmra.mxu0 %vm506_vm2, %v6334_v56  ;;  %v2581_v13 = vsel %vm423_vm1, %v2579_v49, %v2580_v36  ;;  %v2583_v53 = vsel %vm423_vm1, %v2580_v36, %v2582_v14  ;;  %v6345_v56 = vld [vmem:[#allocation40_spill] sm:$0xff]  ;;  %v6346_v36 = vld [vmem:[#allocation10_spill] sm:$0xff] }
 0x13c   : > { %v5698_v32 = vadd.f32 %v3964_v4, %v1059_v41  ;;  %v1054_v42 = vadd.f32 %v1053_v57, %v6335_v55  ;;  %4268 = vmatprep.mubr.msk.f32.mxu0 %vm506_vm2, %v6336_v48  ;;  %v6342_v4 = vld [vmem:[#allocation8_spill] sm:$0xff] }
 0x13d   : > { %v3917_v30 = vpop.f32.mrf.mxu1  ;;  %4216 = vmatmul.mubr.msk.f32.gmra.mxu1 %vm506_vm2, %v6337_v18  ;;  %v1438_v3 = vpop.f32.mrf.mxu0 }
 0x13e   : > { %v5706_v2 = vadd.f32 %v1428_v38, %v1054_v42  ;;  %v1069_v25 = vadd.f32 %v3917_v30, %v6338_v47  ;;  %4218 = vmatprep.mubr.msk.f32.mxu1 %vm506_vm2, %v6339_v50 }
 0x13f   : > { %v1063_v22 = vpop.f32.mrf.mxu1  ;;  %v3970_v28 = vpop.f32.mrf.mxu0  ;;  %4269 = vmatmul.mubr.msk.f32.gmra.mxu0 %vm506_vm2, %v6340_v35 }
 0x140   : > { %v5714_v31 = vadd.f32 %v3967_v20, %v1069_v25  ;;  %v1064_v44 = vadd.f32 %v1063_v22, %v6341_v59  ;;  %4271 = vmatprep.mubr.msk.f32.mxu0 %vm506_vm2, %v2852_v24 }
 0x141   : > { %v3920_v11 = vpop.f32.mrf.mxu1  ;;  %4219 = vmatmul.mubr.msk.f32.gmra.mxu1 %vm506_vm2, %v6342_v4  ;;  %v1448_v27 = vpop.f32.mrf.mxu0 }
 0x142   : > { %v5721_v12 = vadd.f32 %v1438_v3, %v1064_v44  ;;  %v1079_v38 = vadd.f32 %v3920_v11, %v6343_v34  ;;  %4221 = vmatprep.mubr.msk.f32.mxu1 %vm506_vm2, %v2581_v13 }
 0x143   : > { %v1073_v17 = vpop.f32.mrf.mxu1  ;;  %v3973_v45 = vpop.f32.mrf.mxu0  ;;  %4272 = vmatmul.mubr.msk.f32.gmra.mxu0 %vm506_vm2, %v2854_v0 }
 0x144   : > { %v5727_v8 = vadd.f32 %v3970_v28, %v1079_v38  ;;  %v1074_v41 = vadd.f32 %v1073_v17, %v6344_v6 }
 0x145   : > { %v3923_v39 = vpop.f32.mrf.mxu1  ;;  %4222 = vmatmul.mubr.msk.f32.gmra.mxu1 %vm506_vm2, %v2583_v53  ;;  %v1458_v57 = vpop.f32.mrf.mxu0 }
 0x146   : > { %v5731_v20 = vadd.f32 %v1448_v27, %v1074_v41  ;;  %v1089_v49 = vadd.f32 %v3923_v39, %v6345_v56 }
 0x147   : > { %v1083_v55 = vpop.f32.mrf.mxu1  ;;  %v4028_v42 = vpop.f32.mrf.mxu0 }
 0x148   : > { %v5734_v48 = vadd.f32 %v3973_v45, %v1089_v49  ;;  %v1084_v1 = vadd.f32 %v1083_v55, %v6346_v36 }
 0x149   : > { %v3978_v30 = vpop.f32.mrf.mxu1  ;;  %v1848_v18 = vpop.f32.mrf.mxu0 }
 0x14a   : > { %v5737_v3 = vadd.f32 %v1458_v57, %v1084_v1  ;;  %v1736_v24 = vadd.f32 %v3978_v30, %v5523_v29 }
 0x14b   : > { %v1576_v47 = vpop.f32.mrf.mxu1  ;;  %v4031_v25 = vpop.f32.mrf.mxu0 }
 0x14c   : > { %v5740_v50 = vadd.f32 %v4028_v42, %v1736_v24  ;;  %v1735_v14 = vadd.f32 %v1576_v47, %v5530_v51 }
 0x14d   : > { %v3981_v22 = vpop.f32.mrf.mxu1  ;;  %v1858_v28 = vpop.f32.mrf.mxu0 }
 0x14e   : > { %v5743_v35 = vadd.f32 %v1848_v18, %v1735_v14  ;;  %v1738_v13 = vadd.f32 %v3981_v22, %v5537_v33 }
 0x14f   : > { %v1586_v59 = vpop.f32.mrf.mxu1  ;;  %v4034_v44 = vpop.f32.mrf.mxu0 }
 0x150   : > { %v5746_v0 = vadd.f32 %v4031_v25, %v1738_v13  ;;  %v1737_v11 = vadd.f32 %v1586_v59, %v5544_v60 }
 0x151   : > { %v3984_v4 = vpop.f32.mrf.mxu1  ;;  %v1868_v29 = vpop.f32.mrf.mxu0 }
 0x152   : > { %v5749_v27 = vadd.f32 %v1858_v28, %v1737_v11  ;;  %v1740_v34 = vadd.f32 %v3984_v4, %v5551_v23 }
 0x153   : > { %v1596_v38 = vpop.f32.mrf.mxu1  ;;  %v4037_v51 = vpop.f32.mrf.mxu0 }
 0x154   : > { %v5752_v53 = vadd.f32 %v4034_v44, %v1740_v34  ;;  %v1739_v17 = vadd.f32 %v1596_v38, %v5558_v5 }
 0x155   : > { %v3987_v45 = vpop.f32.mrf.mxu1  ;;  %v1878_v33 = vpop.f32.mrf.mxu0 }
 0x156   : > { %v5755_v6 = vadd.f32 %v1868_v29, %v1739_v17  ;;  %v1742_v41 = vadd.f32 %v3987_v45, %v5565_v16 }
 0x157   : > { %v1606_v39 = vpop.f32.mrf.mxu1  ;;  %v4040_v60 = vpop.f32.mrf.mxu0 }
 0x158   : > { %v5758_v57 = vadd.f32 %v4037_v51, %v1742_v41  ;;  %v1741_v56 = vadd.f32 %v1606_v39, %v5572_v26 }
 0x159   : > { %v3990_v49 = vpop.f32.mrf.mxu1  ;;  %v1888_v23 = vpop.f32.mrf.mxu0 }
 0x15a   : > { %v5761_v55 = vadd.f32 %v1878_v33, %v1741_v56  ;;  %v1744_v42 = vadd.f32 %v3990_v49, %v5579_v62 }
 0x15b   : > { %v1616_v36 = vpop.f32.mrf.mxu1  ;;  %v4043_v5 = vpop.f32.mrf.mxu0 }
 0x15c   : > { %v5764_v1 = vadd.f32 %v4040_v60, %v1744_v42  ;;  %v1743_v30 = vadd.f32 %v1616_v36, %v5586_v63 }
 0x15d   : > { %v3993_v18 = vpop.f32.mrf.mxu1  ;;  %v1898_v16 = vpop.f32.mrf.mxu0 }
 0x15e   : > { %v5767_v24 = vadd.f32 %v1888_v23, %v1743_v30  ;;  %v1746_v47 = vadd.f32 %v3993_v18, %v5593_v15 }
 0x15f   : > { %v1626_v25 = vpop.f32.mrf.mxu1  ;;  %v4046_v26 = vpop.f32.mrf.mxu0 }
 0x160   : > { %v5770_v14 = vadd.f32 %v4043_v5, %v1746_v47  ;;  %v1745_v22 = vadd.f32 %v1626_v25, %v5600_v7 }
 0x161   : > { %v3996_v28 = vpop.f32.mrf.mxu1  ;;  %v1908_v62 = vpop.f32.mrf.mxu0 }
 0x162   : > { %v5773_v13 = vadd.f32 %v1898_v16, %v1745_v22  ;;  %v1748_v59 = vadd.f32 %v3996_v28, %v5607_v58 }
 0x163   : > { %v1636_v44 = vpop.f32.mrf.mxu1  ;;  %v4049_v63 = vpop.f32.mrf.mxu0 }
 0x164   : > { %v5776_v11 = vadd.f32 %v4046_v26, %v1748_v59  ;;  %v1747_v4 = vadd.f32 %v1636_v44, %v5614_v43 }
 0x165   : > { %v3999_v29 = vpop.f32.mrf.mxu1  ;;  %v1918_v15 = vpop.f32.mrf.mxu0 }
 0x166   : > { %v5779_v34 = vadd.f32 %v1908_v62, %v1747_v4  ;;  %v1750_v38 = vadd.f32 %v3999_v29, %v5621_v61 }
 0x167   : > { %v1646_v51 = vpop.f32.mrf.mxu1  ;;  %v4052_v7 = vpop.f32.mrf.mxu0 }
 0x168   : > { %v5782_v17 = vadd.f32 %v4049_v63, %v1750_v38  ;;  %v1749_v45 = vadd.f32 %v1646_v51, %v5628_v19 }
 0x169   : > { %v4002_v33 = vpop.f32.mrf.mxu1  ;;  %v1928_v58 = vpop.f32.mrf.mxu0 }
 0x16a   : > { %v5785_v41 = vadd.f32 %v1918_v15, %v1749_v45  ;;  %v1752_v39 = vadd.f32 %v4002_v33, %v5635_v10 }
 0x16b   : > { %v1656_v60 = vpop.f32.mrf.mxu1  ;;  %v4055_v43 = vpop.f32.mrf.mxu0 }
 0x16c   : > { %v5788_v56 = vadd.f32 %v4052_v7, %v1752_v39  ;;  %v1751_v49 = vadd.f32 %v1656_v60, %v5642_v21 }
 0x16d   : > { %v4005_v23 = vpop.f32.mrf.mxu1  ;;  %v1938_v61 = vpop.f32.mrf.mxu0 }
 0x16e   : > { %v5791_v42 = vadd.f32 %v1928_v58, %v1751_v49  ;;  %v1754_v36 = vadd.f32 %v4005_v23, %v5649_v40 }
 0x16f   : > { %v1666_v5 = vpop.f32.mrf.mxu1  ;;  %v4058_v19 = vpop.f32.mrf.mxu0 }
 0x170   : > { %v5794_v30 = vadd.f32 %v4055_v43, %v1754_v36  ;;  %v1753_v18 = vadd.f32 %v1666_v5, %v5657_v46 }
 0x171   : > { %v4008_v16 = vpop.f32.mrf.mxu1  ;;  %v1948_v10 = vpop.f32.mrf.mxu0 }
 0x172   : > { %6347 = vst [vmem:[#allocation12_spill] sm:$0xff] %v5794_v30  ;;  %v5797_v47 = vadd.f32 %v1938_v61, %v1753_v18  ;;  %v1756_v25 = vadd.f32 %v4008_v16, %v5664_v9 }
 0x173   : > { %v1676_v26 = vpop.f32.mrf.mxu1  ;;  %v4061_v21 = vpop.f32.mrf.mxu0 }
 0x174   : > { %6348 = vst [vmem:[#allocation14_spill] sm:$0xff] %v5797_v47  ;;  %v5800_v22 = vadd.f32 %v4058_v19, %v1756_v25  ;;  %v1755_v28 = vadd.f32 %v1676_v26, %v5672_v37 }
 0x175   : > { %v4011_v62 = vpop.f32.mrf.mxu1  ;;  %v1958_v40 = vpop.f32.mrf.mxu0 }
 0x176   : > { %6349 = vst [vmem:[#allocation16_spill] sm:$0xff] %v5800_v22  ;;  %v5803_v59 = vadd.f32 %v1948_v10, %v1755_v28  ;;  %v1758_v44 = vadd.f32 %v4011_v62, %v5679_v52 }
 0x177   : > { %v1686_v63 = vpop.f32.mrf.mxu1  ;;  %v4064_v46 = vpop.f32.mrf.mxu0 }
 0x178   : > { %6350 = vst [vmem:[#allocation18_spill] sm:$0xff] %v5803_v59  ;;  %v5806_v4 = vadd.f32 %v4061_v21, %v1758_v44  ;;  %v1757_v29 = vadd.f32 %v1686_v63, %v5689_v54 }
 0x179   : > { %v4014_v15 = vpop.f32.mrf.mxu1  ;;  %v1968_v9 = vpop.f32.mrf.mxu0 }
 0x17a   : > { %6351 = vst [vmem:[#allocation20_spill] sm:$0xff] %v5806_v4  ;;  %v5809_v38 = vadd.f32 %v1958_v40, %v1757_v29  ;;  %v1760_v51 = vadd.f32 %v4014_v15, %v5698_v32 }
 0x17b   : > { %v1696_v7 = vpop.f32.mrf.mxu1  ;;  %v4067_v37 = vpop.f32.mrf.mxu0 }
 0x17c   : > { %6352 = vst [vmem:[#allocation22_spill] sm:$0xff] %v5809_v38  ;;  %v5812_v45 = vadd.f32 %v4064_v46, %v1760_v51  ;;  %v1759_v33 = vadd.f32 %v1696_v7, %v5706_v2 }
 0x17d   : > { %v4017_v58 = vpop.f32.mrf.mxu1  ;;  %v1978_v52 = vpop.f32.mrf.mxu0 }
 0x17e   : > { %6353 = vst [vmem:[#allocation24_spill] sm:$0xff] %v5812_v45  ;;  %v5815_v39 = vadd.f32 %v1968_v9, %v1759_v33  ;;  %v1762_v60 = vadd.f32 %v4017_v58, %v5714_v31 }
 0x17f   : > { %v1706_v43 = vpop.f32.mrf.mxu1  ;;  %v4070_v54 = vpop.f32.mrf.mxu0 }
 0x180   : > { %6354 = vst [vmem:[#allocation26_spill] sm:$0xff] %v5815_v39  ;;  %v5818_v49 = vadd.f32 %v4067_v37, %v1762_v60  ;;  %v1761_v23 = vadd.f32 %v1706_v43, %v5721_v12 }
 0x181   : > { %v4020_v61 = vpop.f32.mrf.mxu1  ;;  %v1988_v32 = vpop.f32.mrf.mxu0 }
 0x182   : > { %6355 = vst [vmem:[#allocation28_spill] sm:$0xff] %v5818_v49  ;;  %v5821_v36 = vadd.f32 %v1978_v52, %v1761_v23  ;;  %v1764_v5 = vadd.f32 %v4020_v61, %v5727_v8 }
 0x183   : > { %v1716_v19 = vpop.f32.mrf.mxu1  ;;  %v4073_v2 = vpop.f32.mrf.mxu0 }
 0x184   : > { %6356 = vst [vmem:[#allocation30_spill] sm:$0xff] %v5821_v36  ;;  %v5824_v18 = vadd.f32 %v4070_v54, %v1764_v5  ;;  %v1763_v16 = vadd.f32 %v1716_v19, %v5731_v20 }
 0x185   : > { %v4023_v10 = vpop.f32.mrf.mxu1  ;;  %v1998_v31 = vpop.f32.mrf.mxu0 }
 0x186   : > { %6357 = vst [vmem:[#allocation32_spill] sm:$0xff] %v5824_v18  ;;  %v5827_v25 = vadd.f32 %v1988_v32, %v1763_v16  ;;  %v1766_v26 = vadd.f32 %v4023_v10, %v5734_v48 }
 0x187   : > { %v1726_v21 = vpop.f32.mrf.mxu1  ;;  %v5830_v12 = vpop.f32.mrf.mxu0 }
 0x188   : > { %6358 = vst [vmem:[#allocation4_spill] sm:$0xff] %v5827_v25  ;;  %v5832_v28 = vadd.f32 %v4073_v2, %v1766_v26  ;;  %v1765_v62 = vadd.f32 %v1726_v21, %v5737_v3 }
 0x189   : > { %v4078_v8 = vpop.f32.mrf.mxu1  ;;  %v5835_v40 = vpop.f32.mrf.mxu0 }
 0x18a   : > { %6359 = vst [vmem:[#allocation5_spill] sm:$0xff] %v5832_v28  ;;  %v5837_v44 = vadd.f32 %v1998_v31, %v1765_v62 }
 0x18b   : > { %v2119_v63 = vpop.f32.mrf.mxu1  ;;  %v5839_v20 = vpop.f32.mrf.mxu0 }
 0x18c   : > { %6360 = vst [vmem:[#allocation7_spill] sm:$0xff] %v5837_v44 }
 0x18d   : > { %v5841_v46 = vpop.f32.mrf.mxu1  ;;  %v5843_v29 = vpop.f32.mrf.mxu0 }
 0x18f   : > { %v5845_v48 = vpop.f32.mrf.mxu1  ;;  %v5847_v15 = vpop.f32.mrf.mxu0 }
 0x191   : > { %v5849_v9 = vpop.f32.mrf.mxu1  ;;  %v5851_v51 = vpop.f32.mrf.mxu0 }
 0x193   : > { %v5853_v3 = vpop.f32.mrf.mxu1  ;;  %v5855_v7 = vpop.f32.mrf.mxu0 }
 0x195   : > { %v5857_v37 = vpop.f32.mrf.mxu1  ;;  %v5859_v33 = vpop.f32.mrf.mxu0 }
 0x197   : > { %v5861_v58 = vpop.f32.mrf.mxu1  ;;  %v5863_v52 = vpop.f32.mrf.mxu0 }
 0x199   : > { %v5865_v60 = vpop.f32.mrf.mxu1  ;;  %v5867_v43 = vpop.f32.mrf.mxu0 }
 0x19b   : > { %v5869_v54 = vpop.f32.mrf.mxu1  ;;  %v5871_v23 = vpop.f32.mrf.mxu0 }
 0x19d   : > { %v5873_v61 = vpop.f32.mrf.mxu1  ;;  %v5875_v32 = vpop.f32.mrf.mxu0 }
 0x19f   : > { %v5877_v5 = vpop.f32.mrf.mxu1  ;;  %v5879_v19 = vpop.f32.mrf.mxu0 }
 0x1a1   : > { %v5881_v2 = vpop.f32.mrf.mxu1  ;;  %v5883_v16 = vpop.f32.mrf.mxu0 }
 0x1a3   : > { %v5885_v10 = vpop.f32.mrf.mxu1  ;;  %v5887_v31 = vpop.f32.mrf.mxu0 }
 0x1a5   : > { %v5889_v26 = vpop.f32.mrf.mxu1  ;;  %v5891_v21 = vpop.f32.mrf.mxu0 }
 0x1a7   : > { %v5893_v62 = vpop.f32.mrf.mxu1  ;;  %v5895_v44 = vpop.f32.mrf.mxu0 }
 0x1a9   : > { %v5897_v28 = vpop.f32.mrf.mxu1  ;;  %v5899_v25 = vpop.f32.mrf.mxu0 }
 0x1aa   : > { %6361 = vst [vmem:[#allocation9_spill] sm:$0xff] %v5899_v25 }
 0x1ab   : > { %v5901_v18 = vpop.f32.mrf.mxu1  ;;  %v5903_v36 = vpop.f32.mrf.mxu0 }
 0x1ac   : > { %6362 = vst [vmem:[#allocation11_spill] sm:$0xff] %v5903_v36 }
 0x1ad   : > { %v5905_v49 = vpop.f32.mrf.mxu1  ;;  %v5907_v39 = vpop.f32.mrf.mxu0 }
 0x1ae   : > { %6363 = vst [vmem:[#allocation13_spill] sm:$0xff] %v5905_v49  ;;  %6364 = vst [vmem:[#allocation15_spill] sm:$0xff] %v5907_v39 }
 0x1af   : > { %v5909_v45 = vpop.f32.mrf.mxu1  ;;  %v5911_v38 = vpop.f32.mrf.mxu0 }
 0x1b0   : > { %6365 = vst [vmem:[#allocation17_spill] sm:$0xff] %v5909_v45  ;;  %6366 = vst [vmem:[#allocation19_spill] sm:$0xff] %v5911_v38 }
 0x1b1   : > { %v5913_v4 = vpop.f32.mrf.mxu1  ;;  %v5915_v59 = vpop.f32.mrf.mxu0 }
 0x1b2   : > { %6367 = vst [vmem:[#allocation21_spill] sm:$0xff] %v5913_v4  ;;  %6368 = vst [vmem:[#allocation25_spill] sm:$0xff] %v5915_v59 }
 0x1b3   : > { %v5917_v22 = vpop.f32.mrf.mxu1  ;;  %v5919_v47 = vpop.f32.mrf.mxu0 }
 0x1b4   : > { %6369 = vst [vmem:[#allocation27_spill] sm:$0xff] %v5917_v22  ;;  %6370 = vst [vmem:[#allocation34_spill] sm:$0xff] %v5919_v47 }
 0x1b5   : > { %v5921_v25 = vpop.f32.mrf.mxu1  ;;  %v5923_v30 = vpop.f32.mrf.mxu0 }
 0x1b6   : > { %6371 = vst [vmem:[#allocation37_spill] sm:$0xff] %v5921_v25  ;;  %6372 = vst [vmem:[#allocation2_spill] sm:$0xff] %v5923_v30 }
 0x1b7   : > { %v5925_v36 = vpop.f32.mrf.mxu1  ;;  %v5927_v49 = vpop.f32.mrf.mxu0 }
 0x1b8   : > { %6373 = vst [vmem:[#allocation31_spill] sm:$0xff] %v5925_v36  ;;  %6374 = vst [vmem:[#allocation41_spill] sm:$0xff] %v5927_v49 }
 0x1b9   : > { %v5929_v39 = vpop.f32.mrf.mxu1  ;;  %v5931_v45 = vpop.f32.mrf.mxu0 }
 0x1ba   : > { %6375 = vst [vmem:[#allocation23_spill] sm:$0xff] %v5929_v39  ;;  %6376 = vst [vmem:[#allocation36_spill] sm:$0xff] %v5931_v45 }
 0x1bb   : > { %v5933_v38 = vpop.f32.mrf.mxu1  ;;  %v5935_v4 = vpop.f32.mrf.mxu0 }
 0x1bc   : > { %6377 = vst [vmem:[#allocation33_spill] sm:$0xff] %v5933_v38  ;;  %6378 = vst [vmem:[#allocation3_spill] sm:$0xff] %v5935_v4  ;;  %v2279_v38 = vadd.f32 %v4078_v8, %v5740_v50  ;;  %v2280_v50 = vadd.f32 %v5845_v48, %v5749_v27 }
 0x1bd   : > { %v5937_v59 = vpop.f32.mrf.mxu1  ;;  %v5939_v47 = vpop.f32.mrf.mxu0 }
 0x1be   : > { %6379 = vst [vmem:[#allocation6_spill] sm:$0xff] %v5937_v59  ;;  %6380 = vst [vmem:[#allocation39_spill] sm:$0xff] %v5939_v47  ;;  %v2278_v47 = vadd.f32 %v2119_v63, %v5743_v35 }
 0x1bf   : > { %v5941_v25 = vpop.f32.mrf.mxu1  ;;  %v5943_v30 = vpop.f32.mrf.mxu0 }
 0x1c0   : > { %6381 = vst [vmem:[#allocation29_spill] sm:$0xff] %v5941_v25  ;;  %6382 = vst [vmem:[#allocation8_spill] sm:$0xff] %v5943_v30  ;;  %v2547_v30 = vadd.f32 %v5830_v12, %v2279_v38  ;;  %v2283_v12 = vadd.f32 %v5849_v9, %v5752_v53  ;;  %v2285_v53 = vadd.f32 %v5857_v37, %v5758_v57 }
 0x1c1   : > { %v5945_v36 = vpop.f32.mrf.mxu1  ;;  %v5947_v49 = vpop.f32.mrf.mxu0 }
 0x1c2   : > { %6383 = vst [vmem:[#allocation35_spill] sm:$0xff] %v5945_v36  ;;  %6384 = vst [vmem:[#allocation38_spill] sm:$0xff] %v5947_v49  ;;  %v2281_v49 = vadd.f32 %v5841_v46, %v5746_v0  ;;  %v2553_v57 = vadd.f32 %v5855_v7, %v2285_v53 }
 0x1c3   : > { %v5949_v39 = vpop.f32.mrf.mxu1  ;;  %v5951_v45 = vpop.f32.mrf.mxu0 }
 0x1c4   : > { %6385 = vst [vmem:[#allocation40_spill] sm:$0xff] %v5949_v39  ;;  %6386 = vst [vmem:[#allocation10_spill] sm:$0xff] %v5951_v45  ;;  %v2546_v45 = vadd.f32 %v5835_v40, %v2278_v47  ;;  %v2549_v0 = vadd.f32 %v5839_v20, %v2281_v49  ;;  %v2551_v49 = vadd.f32 %v5847_v15, %v2283_v12 }
 0x1c5   : > { %v5954_v4 = vpop.f32.mrf.mxu1  ;;  %v5956_v59 = vpop.f32.mrf.mxu0 }
 0x1c6   : > { %6387 = vst [vmem:[#allocation42_spill] sm:$0xff] %v5956_v59 }
 0x1c7   : > { %v5959_v22 = vpop.f32.mrf.mxu1  ;;  %v4228_v25 = vpop.f32.mrf.mxu0 }
 0x1c8   : > { %6388 = vst [vmem:[#allocation43_spill] sm:$0xff] %v5959_v22 }
 0x1c9   : > { %v4178_v39 = vpop.f32.mrf.mxu1  ;;  %v2930_v36 = vpop.f32.mrf.mxu0 }
 0x1ca   : > { %v2819_v8 = vadd.f32 %v4178_v39, %v2547_v30  ;;  %v2548_v30 = vadd.f32 %v5843_v29, %v2280_v50  ;;  %v2282_v39 = vadd.f32 %v5853_v3, %v5755_v6 }
 0x1cb   : > { %v2659_v35 = vpop.f32.mrf.mxu1  ;;  %v4231_v38 = vpop.f32.mrf.mxu0 }
 0x1cc   : > { %v3090_v47 = vadd.f32 %v4228_v25, %v2819_v8  ;;  %v2818_v40 = vadd.f32 %v2659_v35, %v2546_v45  ;;  %v2550_v6 = vadd.f32 %v5851_v51, %v2282_v39 }
 0x1cd   : > { %v4181_v63 = vpop.f32.mrf.mxu1  ;;  %v2940_v27 = vpop.f32.mrf.mxu0 }
 0x1ce   : > { %3123 = vst.msk [vmem:[%s5971_s26 + $0x8] sm:$0xff] %vm3121_vm4, %v3090_v47  ;;  %v3089_v46 = vadd.f32 %v2930_v36, %v2818_v40  ;;  %v2821_v48 = vadd.f32 %v4181_v63, %v2549_v0  ;;  %v2284_v36 = vadd.f32 %v5861_v58, %v5761_v55  ;;  %v2286_v58 = vadd.f32 %v5869_v54, %v5767_v24 }
 0x1cf   : > { %v2669_v59 = vpop.f32.mrf.mxu1  ;;  %v4234_v22 = vpop.f32.mrf.mxu0  ;;  %v2288_v54 = vadd.f32 %v5877_v5, %v5773_v13  ;;  %v2290_v5 = vadd.f32 %v5885_v10, %v5779_v34  ;;  %v2292_v10 = vadd.f32 %v5893_v62, %v5785_v41  ;;  %v2294_v62 = vadd.f32 %v5901_v18, %v5791_v42  ;;  %v6392_v18 = vld [vmem:[#allocation14_spill] sm:$0xff] }
 0x1d0   : > { %3122 = vst.msk [vmem:[%s5971_s26] sm:$0xff] %vm3121_vm4, %v3089_v46  ;;  %v3092_v45 = vadd.f32 %v4231_v38, %v2821_v48  ;;  %v2820_v25 = vadd.f32 %v2669_v59, %v2548_v30  ;;  %v2287_v59 = vadd.f32 %v5865_v60, %v5764_v1  ;;  %v2552_v55 = vadd.f32 %v5859_v33, %v2284_v36 }
 0x1d1   : > { %v4184_v20 = vpop.f32.mrf.mxu1  ;;  %v2950_v29 = vpop.f32.mrf.mxu0  ;;  %v2554_v24 = vadd.f32 %v5867_v43, %v2286_v58  ;;  %v2556_v13 = vadd.f32 %v5875_v32, %v2288_v54  ;;  %v2558_v34 = vadd.f32 %v5883_v16, %v2290_v5  ;;  %v2560_v41 = vadd.f32 %v5891_v21, %v2292_v10  ;;  %v6404_v10 = vld [vmem:[#allocation22_spill] sm:$0xff] }
 0x1d2   : > { %3125 = vst.msk [vmem:[%s5971_s26 + $0x18] sm:$0xff] %vm3121_vm4, %v3092_v45  ;;  %v3091_v9 = vadd.f32 %v2940_v27, %v2820_v25  ;;  %v2823_v15 = vadd.f32 %v4184_v20, %v2551_v49  ;;  %v2555_v1 = vadd.f32 %v5863_v52, %v2287_v59 }
 0x1d3   : > { %v2679_v3 = vpop.f32.mrf.mxu1  ;;  %v4237_v50 = vpop.f32.mrf.mxu0 }
 0x1d4   : > { %3124 = vst.msk [vmem:[%s5971_s26 + $0x10] sm:$0xff] %vm3121_vm4, %v3091_v9  ;;  %v3094_v37 = vadd.f32 %v4234_v22, %v2823_v15  ;;  %v2822_v51 = vadd.f32 %v2679_v3, %v2550_v6  ;;  %v2289_v22 = vadd.f32 %v5873_v61, %v5770_v14  ;;  %v2291_v61 = vadd.f32 %v5881_v2, %v5776_v11 }
 0x1d5   : > { %v4187_v8 = vpop.f32.mrf.mxu1  ;;  %v2960_v35 = vpop.f32.mrf.mxu0  ;;  %v2293_v2 = vadd.f32 %v5889_v26, %v5782_v17  ;;  %v2295_v26 = vadd.f32 %v5897_v28, %v5788_v56  ;;  %v6389_v28 = vld [vmem:[#allocation12_spill] sm:$0xff] }
 0x1d6   : > { %3127 = vst.msk [vmem:[%s5971_s26 + $0x28] sm:$0xff] %vm3121_vm4, %v3094_v37  ;;  %v3093_v38 = vadd.f32 %v2950_v29, %v2822_v51  ;;  %v2825_v7 = vadd.f32 %v4187_v8, %v2553_v57  ;;  %v2557_v14 = vadd.f32 %v5871_v23, %v2289_v22  ;;  %v2559_v11 = vadd.f32 %v5879_v19, %v2291_v61  ;;  %v6390_v51 = vld [vmem:[#allocation13_spill] sm:$0xff]  ;;  %v6398_v61 = vld [vmem:[#allocation18_spill] sm:$0xff] }
 0x1d7   : > { %v2689_v0 = vpop.f32.mrf.mxu1  ;;  %v4240_v12 = vpop.f32.mrf.mxu0  ;;  %v2561_v17 = vadd.f32 %v5887_v31, %v2293_v2  ;;  %v2563_v56 = vadd.f32 %v5895_v44, %v2295_v26  ;;  %v2297_v8 = vadd.f32 %v6390_v51, %v6389_v28  ;;  %v6410_v28 = vld [vmem:[#allocation26_spill] sm:$0xff]  ;;  %v6411_v51 = vld [vmem:[#allocation33_spill] sm:$0xff] }
 0x1d8   : > { %3126 = vst.msk [vmem:[%s5971_s26 + $0x20] sm:$0xff] %vm3121_vm4, %v3093_v38  ;;  %v3096_v60 = vadd.f32 %v4237_v50, %v2825_v7  ;;  %v2824_v33 = vadd.f32 %v2689_v0, %v2552_v55  ;;  %v6391_v38 = vld [vmem:[#allocation9_spill] sm:$0xff] }
 0x1d9   : > { %v4190_v47 = vpop.f32.mrf.mxu1  ;;  %v2970_v40 = vpop.f32.mrf.mxu0  ;;  %v2562_v42 = vadd.f32 %v6391_v38, %v2294_v62  ;;  %v6393_v7 = vld [vmem:[#allocation17_spill] sm:$0xff] }
 0x1da   : > { %3129 = vst.msk [vmem:[%s5971_s26 + $0x38] sm:$0xff] %vm3121_vm4, %v3096_v60  ;;  %v3095_v63 = vadd.f32 %v2960_v35, %v2824_v33  ;;  %v2827_v52 = vadd.f32 %v4190_v47, %v2555_v1  ;;  %v2296_v0 = vadd.f32 %v6393_v7, %v6392_v18  ;;  %v6394_v60 = vld [vmem:[#allocation11_spill] sm:$0xff]  ;;  %v6395_v47 = vld [vmem:[#allocation16_spill] sm:$0xff]  ;;  %v6412_v38 = vld [vmem:[#allocation41_spill] sm:$0xff] }
 0x1db   : > { %v2699_v27 = vpop.f32.mrf.mxu1  ;;  %v4243_v30 = vpop.f32.mrf.mxu0  ;;  %v2565_v33 = vadd.f32 %v6394_v60, %v2297_v8  ;;  %v2302_v8 = vadd.f32 %v6411_v51, %v6410_v28  ;;  %v6413_v18 = vld [vmem:[#allocation28_spill] sm:$0xff]  ;;  %v6414_v7 = vld [vmem:[#allocation6_spill] sm:$0xff] }
 0x1dc   : > { %3128 = vst.msk [vmem:[%s5971_s26 + $0x30] sm:$0xff] %vm3121_vm4, %v3095_v63  ;;  %v3098_v39 = vadd.f32 %v4240_v12, %v2827_v52  ;;  %v2826_v43 = vadd.f32 %v2699_v27, %v2554_v24  ;;  %v6415_v60 = vld [vmem:[#allocation36_spill] sm:$0xff]  ;;  %v6430_v51 = vld [vmem:[#allocation42_spill] sm:$0xff] }
 0x1dd   : > { %v4193_v46 = vpop.f32.mrf.mxu1  ;;  %v2980_v48 = vpop.f32.mrf.mxu0 }
 0x1de   : > { %3131 = vst.msk [vmem:[%s5971_s26 + $0x48] sm:$0xff] %vm3121_vm4, %v3098_v39  ;;  %v3097_v49 = vadd.f32 %v2970_v40, %v2826_v43  ;;  %v2829_v23 = vadd.f32 %v4193_v46, %v2557_v14  ;;  %v6396_v40 = vld [vmem:[#allocation21_spill] sm:$0xff]  ;;  %v6399_v39 = vld [vmem:[#allocation27_spill] sm:$0xff] }
 0x1df   : > { %v2709_v53 = vpop.f32.mrf.mxu1  ;;  %v4246_v45 = vpop.f32.mrf.mxu0  ;;  %v2299_v24 = vadd.f32 %v6396_v40, %v6395_v47  ;;  %v2298_v43 = vadd.f32 %v6399_v39, %v6398_v61  ;;  %v6416_v47 = vld [vmem:[#allocation30_spill] sm:$0xff]  ;;  %v6417_v40 = vld [vmem:[#allocation29_spill] sm:$0xff]  ;;  %v6419_v61 = vld [vmem:[#allocation32_spill] sm:$0xff] }
 0x1e0   : > { %3130 = vst.msk [vmem:[%s5971_s26 + $0x40] sm:$0xff] %vm3121_vm4, %v3097_v49  ;;  %v3100_v25 = vadd.f32 %v4243_v30, %v2829_v23  ;;  %v2828_v32 = vadd.f32 %v2709_v53, %v2556_v13  ;;  %v6397_v30 = vld [vmem:[#allocation15_spill] sm:$0xff]  ;;  %v6401_v53 = vld [vmem:[#allocation20_spill] sm:$0xff] }
 0x1e1   : > { %v4196_v20 = vpop.f32.mrf.mxu1  ;;  %v2990_v29 = vpop.f32.mrf.mxu0  ;;  %v2564_v14 = vadd.f32 %v6397_v30, %v2296_v0  ;;  %v6400_v49 = vld [vmem:[#allocation19_spill] sm:$0xff]  ;;  %v2305_v0 = vadd.f32 %v6414_v7, %v6413_v18 }
 0x1e2   : > { %3133 = vst.msk [vmem:[%s5971_s26 + $0x58] sm:$0xff] %vm3121_vm4, %v3100_v25  ;;  %v3099_v6 = vadd.f32 %v2980_v48, %v2828_v32  ;;  %v2831_v19 = vadd.f32 %v4196_v20, %v2559_v11  ;;  %v2567_v23 = vadd.f32 %v6400_v49, %v2299_v24  ;;  %v2304_v24 = vadd.f32 %v6417_v40, %v6416_v47  ;;  %v6418_v30 = vld [vmem:[#allocation3_spill] sm:$0xff] }
 0x1e3   : > { %v2719_v36 = vpop.f32.mrf.mxu1  ;;  %v4249_v9 = vpop.f32.mrf.mxu0  ;;  %v6420_v39 = vld [vmem:[#allocation35_spill] sm:$0xff] }
 0x1e4   : > { %3132 = vst.msk [vmem:[%s5971_s26 + $0x50] sm:$0xff] %vm3121_vm4, %v3099_v6  ;;  %v3102_v15 = vadd.f32 %v4246_v45, %v2831_v19  ;;  %v2830_v16 = vadd.f32 %v2719_v36, %v2558_v34  ;;  %v6402_v45 = vld [vmem:[#allocation37_spill] sm:$0xff]  ;;  %v6405_v6 = vld [vmem:[#allocation31_spill] sm:$0xff] }
 0x1e5   : > { %v4199_v3 = vpop.f32.mrf.mxu1  ;;  %v3000_v50 = vpop.f32.mrf.mxu0  ;;  %v2301_v11 = vadd.f32 %v6402_v45, %v6401_v53  ;;  %v2300_v19 = vadd.f32 %v6405_v6, %v6404_v10  ;;  %v6421_v49 = vld [vmem:[#allocation39_spill] sm:$0xff]  ;;  %v6422_v53 = vld [vmem:[#allocation4_spill] sm:$0xff]  ;;  %v6425_v10 = vld [vmem:[#allocation5_spill] sm:$0xff] }
 0x1e6   : > { %3135 = vst.msk [vmem:[%s5971_s26 + $0x68] sm:$0xff] %vm3121_vm4, %v3102_v15  ;;  %v3101_v57 = vadd.f32 %v2990_v29, %v2830_v16  ;;  %v2833_v31 = vadd.f32 %v4199_v3, %v2561_v17  ;;  %v6403_v29 = vld [vmem:[#allocation25_spill] sm:$0xff]  ;;  %v6406_v15 = vld [vmem:[#allocation34_spill] sm:$0xff]  ;;  %v6407_v3 = vld [vmem:[#allocation24_spill] sm:$0xff]  ;;  %v2309_v6 = vadd.f32 %v5954_v4, %v6425_v10 }
 0x1e7   : > { %v2729_v59 = vpop.f32.mrf.mxu1  ;;  %v4252_v37 = vpop.f32.mrf.mxu0  ;;  %v2566_v34 = vadd.f32 %v6403_v29, %v2298_v43  ;;  %v2569_v16 = vadd.f32 %v6406_v15, %v2301_v11  ;;  %v2307_v43 = vadd.f32 %v6420_v39, %v6419_v61  ;;  %v6423_v45 = vld [vmem:[#allocation40_spill] sm:$0xff] }
 0x1e8   : > { %3134 = vst.msk [vmem:[%s5971_s26 + $0x60] sm:$0xff] %vm3121_vm4, %v3101_v57  ;;  %v3104_v35 = vadd.f32 %v4249_v9, %v2833_v31  ;;  %v2832_v21 = vadd.f32 %v2729_v59, %v2560_v41  ;;  %v2306_v11 = vadd.f32 %v6423_v45, %v6422_v53  ;;  %v6424_v29 = vld [vmem:[#allocation8_spill] sm:$0xff] }
 0x1e9   : > { %v4202_v55 = vpop.f32.mrf.mxu1  ;;  %v3010_v58 = vpop.f32.mrf.mxu0 }
 0x1ea   : > { %3137 = vst.msk [vmem:[%s5971_s26 + $0x78] sm:$0xff] %vm3121_vm4, %v3104_v35  ;;  %v3103_v12 = vadd.f32 %v3000_v50, %v2832_v21  ;;  %v2835_v44 = vadd.f32 %v4202_v55, %v2563_v56  ;;  %v6408_v50 = vld [vmem:[#allocation23_spill] sm:$0xff] }
 0x1eb   : > { %v2739_v1 = vpop.f32.mrf.mxu1  ;;  %v4255_v22 = vpop.f32.mrf.mxu0  ;;  %v2303_v41 = vadd.f32 %v6408_v50, %v6407_v3  ;;  %v6428_v3 = vld [vmem:[#allocation43_spill] sm:$0xff] }
 0x1ec   : > { %3136 = vst.msk [vmem:[%s5971_s26 + $0x70] sm:$0xff] %vm3121_vm4, %v3103_v12  ;;  %v3106_v54 = vadd.f32 %v4252_v37, %v2835_v44  ;;  %v2834_v63 = vadd.f32 %v2739_v1, %v2562_v42  ;;  %v6409_v37 = vld [vmem:[#allocation2_spill] sm:$0xff] }
 0x1ed   : > { %v4205_v52 = vpop.f32.mrf.mxu1  ;;  %v3020_v27 = vpop.f32.mrf.mxu0  ;;  %v2568_v56 = vadd.f32 %v6409_v37, %v2300_v19  ;;  %v2571_v42 = vadd.f32 %v6412_v38, %v2303_v41 }
 0x1ee   : > { %3139 = vst.msk [vmem:[%s5971_s26 + $0x88] sm:$0xff] %vm3121_vm4, %v3106_v54  ;;  %v3105_v46 = vadd.f32 %v3010_v58, %v2834_v63  ;;  %v2837_v48 = vadd.f32 %v4205_v52, %v2565_v33  ;;  %v2570_v33 = vadd.f32 %v6415_v60, %v2302_v8 }
 0x1ef   : > { %v2749_v13 = vpop.f32.mrf.mxu1  ;;  %v4258_v5 = vpop.f32.mrf.mxu0 }
 0x1f0   : > { %3138 = vst.msk [vmem:[%s5971_s26 + $0x80] sm:$0xff] %vm3121_vm4, %v3105_v46  ;;  %v3108_v2 = vadd.f32 %v4255_v22, %v2837_v48  ;;  %v2836_v25 = vadd.f32 %v2749_v13, %v2564_v14  ;;  %v2573_v14 = vadd.f32 %v6418_v30, %v2305_v0 }
 0x1f1   : > { %v4208_v32 = vpop.f32.mrf.mxu1  ;;  %v3030_v20 = vpop.f32.mrf.mxu0 }
 0x1f2   : > { %3141 = vst.msk [vmem:[%s5971_s26 + $0x98] sm:$0xff] %vm3121_vm4, %v3108_v2  ;;  %v3107_v36 = vadd.f32 %v3020_v27, %v2836_v25  ;;  %v2839_v9 = vadd.f32 %v4208_v32, %v2567_v23  ;;  %v2572_v23 = vadd.f32 %v6421_v49, %v2304_v24 }
 0x1f3   : > { %v2759_v17 = vpop.f32.mrf.mxu1  ;;  %v4261_v26 = vpop.f32.mrf.mxu0 }
 0x1f4   : > { %3140 = vst.msk [vmem:[%s5971_s26 + $0x90] sm:$0xff] %vm3121_vm4, %v3107_v36  ;;  %v3110_v62 = vadd.f32 %v4258_v5, %v2839_v9  ;;  %v2838_v57 = vadd.f32 %v2759_v17, %v2566_v34  ;;  %v2575_v34 = vadd.f32 %v6424_v29, %v2307_v43 }
 0x1f5   : > { %v4211_v31 = vpop.f32.mrf.mxu1  ;;  %v3040_v59 = vpop.f32.mrf.mxu0 }
 0x1f6   : > { %3143 = vst.msk [vmem:[%s5971_s26 + $0xa8] sm:$0xff] %vm3121_vm4, %v3110_v62  ;;  %v3109_v35 = vadd.f32 %v3030_v20, %v2838_v57  ;;  %v2841_v21 = vadd.f32 %v4211_v31, %v2569_v16  ;;  %v6427_v16 = vld [vmem:[#allocation7_spill] sm:$0xff]  ;;  %v6429_v31 = vld [vmem:[#allocation10_spill] sm:$0xff] }
 0x1f7   : > { %v2769_v55 = vpop.f32.mrf.mxu1  ;;  %v4264_v58 = vpop.f32.mrf.mxu0  ;;  %v2308_v50 = vadd.f32 %v6428_v3, %v6427_v16  ;;  %v2577_v4 = vadd.f32 %v6429_v31, %v2309_v6 }
 0x1f8   : > { %3142 = vst.msk [vmem:[%s5971_s26 + $0xa0] sm:$0xff] %vm3121_vm4, %v3109_v35  ;;  %v3112_v12 = vadd.f32 %v4261_v26, %v2841_v21  ;;  %v2840_v44 = vadd.f32 %v2769_v55, %v2568_v56  ;;  %v6426_v26 = vld [vmem:[#allocation38_spill] sm:$0xff] }
 0x1f9   : > { %v4214_v1 = vpop.f32.mrf.mxu1  ;;  %v3050_v22 = vpop.f32.mrf.mxu0  ;;  %v2574_v15 = vadd.f32 %v6426_v26, %v2306_v11  ;;  %v2576_v8 = vadd.f32 %v6430_v51, %v2308_v50 }
 0x1fa   : > { %3145 = vst.msk [vmem:[%s5971_s26 + $0xb8] sm:$0xff] %vm3121_vm4, %v3112_v12  ;;  %v3111_v54 = vadd.f32 %v3040_v59, %v2840_v44  ;;  %v2843_v63 = vadd.f32 %v4214_v1, %v2571_v42 }
 0x1fb   : > { %v2779_v52 = vpop.f32.mrf.mxu1  ;;  %v4267_v27 = vpop.f32.mrf.mxu0 }
 0x1fc   : > { %3144 = vst.msk [vmem:[%s5971_s26 + $0xb0] sm:$0xff] %vm3121_vm4, %v3111_v54  ;;  %v3114_v46 = vadd.f32 %v4264_v58, %v2843_v63  ;;  %v2842_v48 = vadd.f32 %v2779_v52, %v2570_v33 }
 0x1fd   : > { %v4217_v13 = vpop.f32.mrf.mxu1  ;;  %v3060_v5 = vpop.f32.mrf.mxu0 }
 0x1fe   : > { %3147 = vst.msk [vmem:[%s5971_s26 + $0xc8] sm:$0xff] %vm3121_vm4, %v3114_v46  ;;  %v3113_v2 = vadd.f32 %v3050_v22, %v2842_v48  ;;  %v2845_v25 = vadd.f32 %v4217_v13, %v2573_v14 }
 0x1ff   : > { %v2789_v32 = vpop.f32.mrf.mxu1  ;;  %v4270_v20 = vpop.f32.mrf.mxu0 }
 0x200   : > { %3146 = vst.msk [vmem:[%s5971_s26 + $0xc0] sm:$0xff] %vm3121_vm4, %v3113_v2  ;;  %v3116_v19 = vadd.f32 %v4267_v27, %v2845_v25  ;;  %v2844_v36 = vadd.f32 %v2789_v32, %v2572_v23 }
 0x201   : > { %v4220_v9 = vpop.f32.mrf.mxu1  ;;  %v3070_v17 = vpop.f32.mrf.mxu0 }
 0x202   : > { %3149 = vst.msk [vmem:[%s5971_s26 + $0xd8] sm:$0xff] %vm3121_vm4, %v3116_v19  ;;  %v3115_v41 = vadd.f32 %v3060_v5, %v2844_v36  ;;  %v2847_v62 = vadd.f32 %v4220_v9, %v2575_v34 }
 0x203   : > { %v2799_v57 = vpop.f32.mrf.mxu1  ;;  %v4273_v28 = vpop.f32.mrf.mxu0 }
 0x204   : > { %3148 = vst.msk [vmem:[%s5971_s26 + $0xd0] sm:$0xff] %vm3121_vm4, %v3115_v41  ;;  %v3118_v59 = vadd.f32 %v4270_v20, %v2847_v62  ;;  %v2846_v37 = vadd.f32 %v2799_v57, %v2574_v15 }
 0x205   : > { %v4223_v56 = vpop.f32.mrf.mxu1  ;;  %v3080_v42 = vpop.f32.mrf.mxu0 }
 0x206   : > { %3151 = vst.msk [vmem:[%s5971_s26 + $0xe8] sm:$0xff] %vm3121_vm4, %v3118_v59  ;;  %v3117_v35 = vadd.f32 %v3070_v17, %v2846_v37  ;;  %v2849_v21 = vadd.f32 %v4223_v56, %v2577_v4 }
 0x207   : > { %v2809_v55 = vpop.f32.mrf.mxu1 }
 0x208   : > { %3150 = vst.msk [vmem:[%s5971_s26 + $0xe0] sm:$0xff] %vm3121_vm4, %v3117_v35  ;;  %v3120_v58 = vadd.f32 %v4273_v28, %v2849_v21  ;;  %v2848_v38 = vadd.f32 %v2809_v55, %v2576_v8 }
 0x20a   : > { %3153 = vst.msk [vmem:[%s5971_s26 + $0xf8] sm:$0xff] %vm3121_vm4, %v3120_v58  ;;  %v3119_v18 = vadd.f32 %v3080_v42, %v2848_v38 }
 0x20c   : > { %3152 = vst.msk [vmem:[%s5971_s26 + $0xf0] sm:$0xff] %vm3121_vm4, %v3119_v18 }
 0x20d PF: > { %s14_s15 = sadd.s32 1, %s4293_s15  }
 0x20e   : > { %p11_p4 = scmp.ge.s32.totalorder %s14_s15, 4  }
 0x210   :  { %13 = sbr.rel (!%p11_p4) target bundleno = 1 (0x1), region = 74 }

// kernel: dncnn_rl_forward.4
= control target key start
LH: loop header
LB: loop body
LE: loop exit
PB: predicated region body
PF: predicated region fallthrough
CT: control target
= control target key end

     0   :  { %s4907_s18 = smov 0   ;;  %s7010_s0 = inlined_call_operand.vmem [shape: f32[2,18,18,64], index: 0, kind: input, shape index: {}]   ;;  %s7011_s1 = inlined_call_operand.vmem [shape: f32[3,3,64,64], index: 1, kind: input, shape index: {}]   ;;  %s7012_s2 = inlined_call_operand.vmem [shape: f32[1,64], index: 2, kind: input, shape index: {}]   ;;  %s7013_s3 = inlined_call_operand.vmem [shape: f32[1,64], index: 3, kind: input, shape index: {}]   ;;  %s7014_s4 = inlined_call_operand.vmem [shape: f32[2,256,64], index: 4, kind: output, shape index: {0}]   ;;  %s7015_s5 = inlined_call_operand.vmem [shape: f32[2,2,64], index: 5, kind: output, shape index: {1}]  }
   0x1 LB: > { %s3540_s19 = sadd.s32 4294967295, %s4875_s18   ;;  %p3544_p0 = scmp.ge.s32.totalorder %s4875_s18, 1  ;;  %s4875_s18 = sphi %s4907_s18, %s16_s18  }
   0x2   : > { %p190_p1 = scmp.lt.s32.totalorder %s4875_s18, 3 }
   0x4   : > { %p191_p2 = pnand %p3544_p0, %p190_p1 }
   0x6   : > { %194 = sbr.rel (%p191_p2) target bundleno = 558 (0x22e), region = 36 }
   0xb   : > { %v3558_v0 = vld [vmem:[%s7011_s1 + $0x78] sm:$0xff]  ;;  %v3557_v1 = vld [vmem:[%s7011_s1 + $0x70] sm:$0xff]  ;;  %p222_p3 = scmp.lt.s32.totalorder %s3540_s19, 1  ;;  %v3556_v2 = vld [vmem:[%s7011_s1 + $0x68] sm:$0xff]  ;;  %vm522_vm0 = vcmask 1046528   ;;  %vm612_vm1 = vcmask 523264  }
   0xc   : > { %4842 = vmatprep.subr.mxu1 %v3558_v0  ;;  %4266 = vmatprep.subr.mxu0 %v3558_v0  ;;  %v3555_v3 = vld [vmem:[%s7011_s1 + $0x60] sm:$0xff]  ;;  %v3554_v5 = vld [vmem:[%s7011_s1 + $0x58] sm:$0xff]  ;;  %v3553_v6 = vld [vmem:[%s7011_s1 + $0x50] sm:$0xff]  ;;  %vm1191_vm2 = vcmask 1045504   ;;  %vm3418_vm3 = vcmask 1040384   ;;  %vm3420_vm4 = vcmask 517120  }
   0xd   : > { %4850 = vmatpush3.msra.mxu1 %v3558_v0  ;;  %4267 = vmatpush3.msra.mxu0 %v3558_v0  ;;  %s7344_s19 = smov (!%p222_p3, %s3540_s19), 1  ;;  %v4933_v4 = vld [vmem:[%s7012_s2] ss:$0 sm:$0xff]  ;;  %v3552_v21 = vld [vmem:[%s7011_s1 + $0x48] sm:$0xff]  ;;  %v473_v42 = vld [vmem:[%s7011_s1 + $0x38] sm:$0xff] }
   0xe   : > { %4843 = vmatprep.subr.mxu1 %v3557_v1  ;;  %4268 = vmatprep.subr.mxu0 %v3557_v1  ;;  %s4858_s28 = smul.u32 432, %s7344_s19  ;;  %v4949_v7 = vld [vmem:[%s7013_s3] ss:$0 sm:$0xff]  ;;  %v3630_v47 = vld [vmem:[%s7011_s1 + $0xb8] sm:$0xff]  ;;  %v472_v0 = vld [vmem:[%s7011_s1 + $0x30] sm:$0xff]  ;;  %s3548_s24 = sshll.u32 %s7344_s19, 1 }
   0xf   : > { %4851 = vmatpush3.msra.mxu1 %v3557_v1  ;;  %4269 = vmatpush3.msra.mxu0 %v3557_v1  ;;  %v3551_v29 = vld [vmem:[%s7011_s1 + $0x40] sm:$0xff]  ;;  %v3629_v1 = vld [vmem:[%s7011_s1 + $0xb0] sm:$0xff]  ;;  %s235_s27 = scalar_lea.vmem %s7015_s5, %s3548_s24 }
  0x10   : > { %4844 = vmatprep.subr.mxu1 %v3556_v2  ;;  %4270 = vmatprep.subr.mxu0 %v3556_v2  ;;  %s4944_s12 = scalar_lea.vmem %s7010_s0, %s4858_s28 }
  0x11   : > { %4852 = vmatpush3.msra.mxu1 %v3556_v2  ;;  %4271 = vmatpush3.msra.mxu0 %v3556_v2  ;;  %v236_v8 = vld [vmem:[%s4944_s12] sm:$0xff]  ;;  %v237_v9 = vld [vmem:[%s4944_s12 + $0x8] sm:$0xff]  ;;  %v238_v15 = vld [vmem:[%s4944_s12 + $0x10] sm:$0x3] }
  0x12   : > { %4845 = vmatprep.subr.mxu1 %v3555_v3  ;;  %4272 = vmatprep.subr.mxu0 %v3555_v3  ;;  %v260_v10 = vld [vmem:[%s4944_s12 + $0xc0] sm:$0xff]  ;;  %v297_v11 = vmul.f32 %v4933_v4, %v236_v8  ;;  %v298_v12 = vmul.f32 %v4933_v4, %v237_v9  ;;  %v261_v13 = vld [vmem:[%s4944_s12 + $0xc8] sm:$0xff]  ;;  %v262_v16 = vld [vmem:[%s4944_s12 + $0xd0] sm:$0x3]  ;;  %v299_v18 = vmul.f32 %v4933_v4, %v238_v15 }
  0x13   : > { %4853 = vmatpush3.msra.mxu1 %v3555_v3  ;;  %4273 = vmatpush3.msra.mxu0 %v3555_v3  ;;  %v321_v14 = vmul.f32 %v4933_v4, %v260_v10  ;;  %v322_v17 = vmul.f32 %v4933_v4, %v261_v13  ;;  %v323_v19 = vmul.f32 %v4933_v4, %v262_v16  ;;  %v239_v20 = vld [vmem:[%s4944_s12 + $0x18] sm:$0xff]  ;;  %v240_v25 = vld [vmem:[%s4944_s12 + $0x20] sm:$0xff]  ;;  %v241_v53 = vld [vmem:[%s4944_s12 + $0x28] sm:$0x3] }
  0x14   : > { %4846 = vmatprep.subr.mxu1 %v3554_v5  ;;  %4274 = vmatprep.subr.mxu0 %v3554_v5  ;;  %v358_v22 = vadd.f32 %v4949_v7, %v297_v11  ;;  %v359_v23 = vadd.f32 %v4949_v7, %v298_v12  ;;  %v4973_v27 = vadd.f32 %v4949_v7, %v299_v18  ;;  %v263_v38 = vld [vmem:[%s4944_s12 + $0xd8] sm:$0xff]  ;;  %v264_v48 = vld [vmem:[%s4944_s12 + $0xe0] sm:$0xff]  ;;  %v265_v54 = vld [vmem:[%s4944_s12 + $0xe8] sm:$0x3] }
  0x15   : > { %4854 = vmatpush3.msra.mxu1 %v3554_v5  ;;  %4275 = vmatpush3.msra.mxu0 %v3554_v5  ;;  %v382_v24 = vadd.f32 %v4949_v7, %v321_v14  ;;  %v383_v26 = vadd.f32 %v4949_v7, %v322_v17  ;;  %v4976_v28 = vadd.f32 %v4949_v7, %v323_v19  ;;  %v242_v55 = vld [vmem:[%s4944_s12 + $0x30] sm:$0xff]  ;;  %v243_v59 = vld [vmem:[%s4944_s12 + $0x38] sm:$0xff]  ;;  %v471_v12 = vld [vmem:[%s7011_s1 + $0x28] sm:$0xff] }
  0x16   : > { %4847 = vmatprep.subr.mxu1 %v3553_v6  ;;  %4276 = vmatprep.subr.mxu0 %v3553_v6  ;;  %v4981_v30 = vmax.f32 %v358_v22, 0.0  ;;  %v4983_v31 = vmax.f32 %v359_v23, 0.0  ;;  %v300_v33 = vmul.f32 %v4933_v4, %v239_v20  ;;  %v7023_v35 = vmax.f32 %v4973_v27, 0.0  ;;  %v266_v11 = vld [vmem:[%s4944_s12 + $0xf0] sm:$0xff]  ;;  %v267_v16 = vld [vmem:[%s4944_s12 + $0xf8] sm:$0xff]  ;;  %v3628_v18 = vld [vmem:[%s7011_s1 + $0xa8] sm:$0xff] }
  0x17   : > { %4855 = vmatpush3.msra.mxu1 %v3553_v6  ;;  %4277 = vmatpush3.msra.mxu0 %v3553_v6  ;;  %v4985_v32 = vmax.f32 %v382_v24, 0.0  ;;  %v4988_v34 = vmax.f32 %v383_v26, 0.0  ;;  %v7018_v36 = vmax.f32 %v4976_v28, 0.0  ;;  %v301_v37 = vmul.f32 %v4933_v4, %v240_v25  ;;  %v244_v17 = vld [vmem:[%s4944_s12 + $0x40] sm:$0x3] }
  0x18   : > { %4848 = vmatprep.subr.mxu1 %v3552_v21  ;;  %4278 = vmatprep.subr.mxu0 %v3552_v21  ;;  %v523_v39 = vrot.slane %v4981_v30, 1  ;;  %v524_v40 = vrot.slane %v4983_v31, 1  ;;  %v361_v43 = vadd.f32 %v4949_v7, %v300_v33  ;;  %v526_v45 = vrot.slane %v7023_v35, 1  ;;  %v470_v24 = vld [vmem:[%s7011_s1 + $0x20] sm:$0xff]  ;;  %v277_v35 = vld [vmem:[%s4944_s12 + $0x148] sm:$0x3] }
  0x19   : > { %4856 = vmatpush3.msra.mxu1 %v3552_v21  ;;  %4279 = vmatpush3.msra.mxu0 %v3552_v21  ;;  %v563_v41 = vrot.slane %v4985_v32, 1  ;;  %v564_v44 = vrot.slane %v4988_v34, 1  ;;  %v566_v46 = vrot.slane %v7018_v36, 1  ;;  %v362_v50 = vadd.f32 %v4949_v7, %v301_v37  ;;  %v3627_v37 = vld [vmem:[%s7011_s1 + $0xa0] sm:$0xff] }
  0x1a   : > { %4849 = vmatprep.subr.mxu1 %v3551_v29  ;;  %4280 = vmatprep.subr.mxu0 %v3551_v29  ;;  %v525_v49 = vsel %vm522_vm0, %v523_v39, %v524_v40  ;;  %v5012_v51 = vmax.f32 %v361_v43, 0.0  ;;  %v324_v52 = vmul.f32 %v4933_v4, %v263_v38  ;;  %v527_v57 = vsel %vm522_vm0, %v524_v40, %v526_v45  ;;  %v252_v36 = vld [vmem:[%s4944_s12 + $0x80] sm:$0xff] }
  0x1b   : > { %4857 = vmatpush3.msra.mxu1 %v3551_v29  ;;  %4281 = vmatpush3.msra.mxu0 %v3551_v29  ;;  %v5020_v56 = vsel %vm522_vm0, %v563_v41, %v564_v44  ;;  %v5024_v58 = vsel %vm522_vm0, %v564_v44, %v566_v46  ;;  %v5030_v60 = vmax.f32 %v362_v50, 0.0  ;;  %v325_v62 = vmul.f32 %v4933_v4, %v264_v48 }
  0x1c   : > { %4282 = vmatprep.mubr.msk.f32.mxu0 %vm612_vm1, %v525_v49  ;;  %7113 = vst [vmem:[#allocation2_spill] sm:$0xff] %v5020_v56  ;;  %4330 = vmatprep.subr.mxu1 %v473_v42  ;;  %7114 = vst [vmem:[#allocation3_spill] sm:$0xff] %v5024_v58  ;;  %v528_v61 = vrot.slane %v5012_v51, 1  ;;  %v385_v63 = vadd.f32 %v4949_v7, %v324_v52  ;;  %v302_v2 = vmul.f32 %v4933_v4, %v241_v53  ;;  %v246_v53 = vld [vmem:[%s4944_s12 + $0x50] sm:$0xff] }
  0x1d   : > { %4306 = vmatprep.mubr.msk.f32.mxu1 %vm612_vm1, %v5020_v56  ;;  %4283 = vmatmul.mubr.msk.f32.vlgmr.msra.gmra.mxu0 %vm612_vm1, %v527_v57  ;;  %v326_v3 = vmul.f32 %v4933_v4, %v265_v54  ;;  %v303_v5 = vmul.f32 %v4933_v4, %v242_v55  ;;  %v529_v6 = vrot.slane %v5030_v60, 1  ;;  %v386_v8 = vadd.f32 %v4949_v7, %v325_v62  ;;  %v269_v54 = vld [vmem:[%s4944_s12 + $0x108] sm:$0xff]  ;;  %v469_v55 = vld [vmem:[%s7011_s1 + $0x18] sm:$0xff] }
  0x1e   : > { %4307 = vmatmul.mubr.msk.f32.vlgmr.msra.gmra.mxu1 %vm612_vm1, %v5024_v58  ;;  %4394 = vmatprep.subr.mxu0 %v3630_v47  ;;  %v5048_v9 = vmax.f32 %v385_v63, 0.0  ;;  %v304_v10 = vmul.f32 %v4933_v4, %v243_v59  ;;  %v5056_v13 = vadd.f32 %v4949_v7, %v302_v2  ;;  %v327_v33 = vmul.f32 %v4933_v4, %v266_v11  ;;  %v270_v63 = vld [vmem:[%s4944_s12 + $0x110] sm:$0xff] }
  0x1f   : > { %4331 = vmatpush3.msra.mxu1 %v473_v42  ;;  %4395 = vmatpush3.msra.mxu0 %v3630_v47  ;;  %v5059_v14 = vadd.f32 %v4949_v7, %v326_v3  ;;  %v364_v15 = vadd.f32 %v4949_v7, %v303_v5  ;;  %v5069_v20 = vsel %vm522_vm0, %v528_v61, %v529_v6  ;;  %v5071_v21 = vmax.f32 %v386_v8, 0.0  ;;  %v268_v42 = vld [vmem:[%s4944_s12 + $0x100] sm:$0x3]  ;;  %v245_v47 = vld [vmem:[%s4944_s12 + $0x48] sm:$0xff]  ;;  %v468_v8 = vld [vmem:[%s7011_s1 + $0x10] sm:$0xff] }
  0x20   : > { %4332 = vmatprep.subr.mxu1 %v472_v0  ;;  %4396 = vmatprep.subr.mxu0 %v3629_v1  ;;  %7115 = vst [vmem:[#allocation4_spill] sm:$0xff] %v5069_v20  ;;  %v568_v22 = vrot.slane %v5048_v9, 1  ;;  %v365_v23 = vadd.f32 %v4949_v7, %v304_v10  ;;  %v7022_v25 = vmax.f32 %v5056_v13, 0.0  ;;  %v328_v40 = vmul.f32 %v4933_v4, %v267_v16  ;;  %v3625_v16 = vld [vmem:[%s7011_s1 + $0x90] sm:$0xff] }
  0x21   : > { %4333 = vmatpush3.msra.mxu1 %v472_v0  ;;  %4397 = vmatpush3.msra.mxu0 %v3629_v1  ;;  %v7017_v26 = vmax.f32 %v5059_v14, 0.0  ;;  %v5082_v29 = vmax.f32 %v364_v15, 0.0  ;;  %v569_v38 = vrot.slane %v5071_v21, 1  ;;  %v305_v41 = vmul.f32 %v4933_v4, %v244_v17  ;;  %v3626_v0 = vld [vmem:[%s7011_s1 + $0x98] sm:$0xff] }
  0x22   : > { %4285 = vmatprep.mubr.msk.f32.mxu0 %vm612_vm1, %v5069_v20  ;;  %4334 = vmatprep.subr.mxu1 %v471_v12  ;;  %v5089_v39 = vmax.f32 %v365_v23, 0.0  ;;  %v531_v43 = vrot.slane %v7022_v25, 1  ;;  %v388_v46 = vadd.f32 %v4949_v7, %v327_v33  ;;  %v389_v50 = vadd.f32 %v4949_v7, %v328_v40  ;;  %v271_v40 = vld [vmem:[%s4944_s12 + $0x118] sm:$0x3] }
  0x23   : > { %4335 = vmatpush3.msra.mxu1 %v471_v12  ;;  %4398 = vmatprep.subr.mxu0 %v3628_v18  ;;  %v571_v44 = vrot.slane %v7017_v26, 1  ;;  %v533_v45 = vrot.slane %v5082_v29, 1  ;;  %v5102_v48 = vsel %vm522_vm0, %v568_v22, %v569_v38  ;;  %v5107_v52 = vadd.f32 %v4949_v7, %v305_v41  ;;  %v248_v41 = vld [vmem:[%s4944_s12 + $0x60] sm:$0xff]  ;;  %v283_v20 = vld [vmem:[%s4944_s12 + $0x178] sm:$0x3] }
  0x24   : > { %4399 = vmatpush3.msra.mxu0 %v3628_v18  ;;  %4336 = vmatprep.subr.mxu1 %v470_v24  ;;  %7116 = vst [vmem:[#allocation5_spill] sm:$0xff] %v5102_v48  ;;  %v534_v49 = vrot.slane %v5089_v39, 1  ;;  %v5117_v57 = vsel %vm522_vm0, %v529_v6, %v531_v43  ;;  %v5122_v61 = vmax.f32 %v388_v46, 0.0  ;;  %v329_v62 = vmul.f32 %v4933_v4, %v268_v42  ;;  %v247_v6 = vld [vmem:[%s4944_s12 + $0x58] sm:$0x3]  ;;  %v467_v42 = vld [vmem:[%s7011_s1 + $0x8] sm:$0xff] }
  0x25   : > { %4337 = vmatpush3.msra.mxu1 %v470_v24  ;;  %4400 = vmatprep.subr.mxu0 %v3627_v37  ;;  %7117 = vst [vmem:[#allocation6_spill] sm:$0xff] %v5117_v57  ;;  %v5120_v59 = vsel %vm522_vm0, %v569_v38, %v571_v44  ;;  %v5136_v2 = vmax.f32 %v389_v50, 0.0  ;;  %v7020_v3 = vmax.f32 %v5107_v52, 0.0  ;;  %v306_v5 = vmul.f32 %v4933_v4, %v245_v47  ;;  %v3624_v47 = vld [vmem:[%s7011_s1 + $0x88] sm:$0xff] }
  0x26   : > { %4309 = vmatprep.mubr.msk.f32.mxu1 %vm612_vm1, %v5102_v48  ;;  %7118 = vst [vmem:[#allocation7_spill] sm:$0xff] %v5120_v59  ;;  %4401 = vmatpush3.msra.mxu0 %v3627_v37  ;;  %v5134_v1 = vsel %vm522_vm0, %v533_v45, %v534_v49  ;;  %v573_v10 = vrot.slane %v5122_v61, 1  ;;  %v5148_v11 = vadd.f32 %v4949_v7, %v329_v62  ;;  %v272_v62 = vld [vmem:[%s4944_s12 + $0x120] sm:$0xff] }
  0x27   : > { %4286 = vmatmul.mubr.msk.f32.gmra.mxu0 %vm612_vm1, %v5117_v57  ;;  %4310 = vmatmul.mubr.msk.f32.gmra.mxu1 %vm612_vm1, %v5120_v59  ;;  %7119 = vst [vmem:[#allocation8_spill] sm:$0xff] %v5134_v1  ;;  %v307_v12 = vmul.f32 %v4933_v4, %v246_v53  ;;  %v330_v15 = vmul.f32 %v4933_v4, %v269_v54  ;;  %v574_v17 = vrot.slane %v5136_v2, 1  ;;  %v536_v18 = vrot.slane %v7020_v3, 1  ;;  %v275_v3 = vld [vmem:[%s4944_s12 + $0x138] sm:$0xff]  ;;  %v256_v48 = vld [vmem:[%s4944_s12 + $0xa0] sm:$0x3] }
  0x28   : > { %4288 = vmatprep.mubr.msk.f32.mxu0 %vm612_vm1, %v5134_v1  ;;  %4338 = vmatprep.subr.mxu1 %v469_v55  ;;  %v367_v22 = vadd.f32 %v4949_v7, %v306_v5  ;;  %v331_v23 = vmul.f32 %v4933_v4, %v270_v63  ;;  %v7016_v24 = vmax.f32 %v5148_v11, 0.0  ;;  %v308_v38 = vmul.f32 %v4933_v4, %v247_v6  ;;  %v255_v59 = vld [vmem:[%s4944_s12 + $0x98] sm:$0xff] }
  0x29   : > { %4339 = vmatpush3.msra.mxu1 %v469_v55  ;;  %4402 = vmatprep.subr.mxu0 %v3626_v0  ;;  %v368_v33 = vadd.f32 %v4949_v7, %v307_v12  ;;  %v391_v37 = vadd.f32 %v4949_v7, %v330_v15  ;;  %v5170_v43 = vsel %vm522_vm0, %v573_v10, %v574_v17  ;;  %v249_v55 = vld [vmem:[%s4944_s12 + $0x68] sm:$0xff]  ;;  %v466_v10 = vld [vmem:[%s7011_s1] sm:$0xff] }
  0x2a   : > { %4403 = vmatpush3.msra.mxu0 %v3626_v0  ;;  %4340 = vmatprep.subr.mxu1 %v468_v8  ;;  %7120 = vst [vmem:[#allocation9_spill] sm:$0xff] %v5170_v43  ;;  %v5173_v44 = vsel %vm522_vm0, %v534_v49, %v536_v18  ;;  %v5175_v45 = vmax.f32 %v367_v22, 0.0  ;;  %v392_v46 = vadd.f32 %v4949_v7, %v331_v23  ;;  %v576_v49 = vrot.slane %v7016_v24, 1  ;;  %v3623_v12 = vld [vmem:[%s7011_s1 + $0x80] sm:$0xff] }
  0x2b   : > { %7121 = vst [vmem:[#allocation10_spill] sm:$0xff] %v5173_v44  ;;  %4341 = vmatpush3.msra.mxu1 %v468_v8  ;;  %4404 = vmatprep.subr.mxu0 %v3625_v16  ;;  %v5187_v50 = vmax.f32 %v368_v33, 0.0  ;;  %v5189_v53 = vmax.f32 %v391_v37, 0.0  ;;  %v5192_v54 = vadd.f32 %v4949_v7, %v308_v38  ;;  %v332_v5 = vmul.f32 %v4933_v4, %v271_v40  ;;  %v273_v8 = vld [vmem:[%s4944_s12 + $0x128] sm:$0xff]  ;;  %v250_v38 = vld [vmem:[%s4944_s12 + $0x70] sm:$0x3] }
  0x2c   : > { %4312 = vmatprep.mubr.msk.f32.mxu1 %vm612_vm1, %v5170_v43  ;;  %4289 = vmatmul.mubr.msk.f32.gmra.mxu0 %vm612_vm1, %v5173_v44  ;;  %v538_v63 = vrot.slane %v5175_v45, 1  ;;  %v5197_v0 = vmax.f32 %v392_v46, 0.0  ;;  %v309_v6 = vmul.f32 %v4933_v4, %v248_v41  ;;  %v5209_v15 = vsel %vm522_vm0, %v574_v17, %v576_v49  ;;  %v274_v49 = vld [vmem:[%s4944_s12 + $0x130] sm:$0x3] }
  0x2d   : > { %4405 = vmatpush3.msra.mxu0 %v3625_v16  ;;  %4342 = vmatprep.subr.mxu1 %v467_v42  ;;  %7122 = vst [vmem:[#allocation11_spill] sm:$0xff] %v5209_v15  ;;  %v539_v18 = vrot.slane %v5187_v50, 1  ;;  %v578_v22 = vrot.slane %v5189_v53, 1  ;;  %v7019_v23 = vmax.f32 %v5192_v54, 0.0  ;;  %v5218_v33 = vadd.f32 %v4949_v7, %v332_v5  ;;  %v254_v43 = vld [vmem:[%s4944_s12 + $0x90] sm:$0xff] }
  0x2e   : > { %4343 = vmatpush3.msra.mxu1 %v467_v42  ;;  %4406 = vmatprep.subr.mxu0 %v3624_v47  ;;  %v579_v16 = vrot.slane %v5197_v0, 1  ;;  %v310_v17 = vmul.f32 %v4933_v4, %v249_v55  ;;  %v370_v37 = vadd.f32 %v4949_v7, %v309_v6  ;;  %v333_v42 = vmul.f32 %v4933_v4, %v272_v62  ;;  %v5234_v55 = vld [vmem:[%s7011_s1 + $0xf8] sm:$0xff] }
  0x2f   : > { %4313 = vmatmul.mubr.msk.f32.gmra.mxu1 %vm612_vm1, %v5209_v15  ;;  %4407 = vmatpush3.msra.mxu0 %v3624_v47  ;;  %v5224_v40 = vsel %vm522_vm0, %v538_v63, %v539_v18  ;;  %v541_v41 = vrot.slane %v7019_v23, 1  ;;  %v334_v46 = vmul.f32 %v4933_v4, %v273_v8  ;;  %v7021_v63 = vmax.f32 %v5218_v33, 0.0  ;;  %v251_v6 = vld [vmem:[%s4944_s12 + $0x78] sm:$0xff] }
  0x30   : > { %7123 = vst [vmem:[#allocation12_spill] sm:$0xff] %v5224_v40  ;;  %4344 = vmatprep.subr.mxu1 %v466_v10  ;;  %4408 = vmatprep.subr.mxu0 %v3623_v12  ;;  %v5239_v47 = vsel %vm522_vm0, %v578_v22, %v579_v16  ;;  %v371_v62 = vadd.f32 %v4949_v7, %v310_v17  ;;  %v5243_v5 = vmax.f32 %v370_v37, 0.0  ;;  %v5258_v17 = vld [vmem:[%s7011_s1 + $0x138] sm:$0xff] }
  0x31   : > { %4291 = vmatprep.mubr.msk.f32.mxu0 %vm612_vm1, %v5224_v40  ;;  %7124 = vst [vmem:[#allocation13_spill] sm:$0xff] %v5239_v47  ;;  %4345 = vmatpush3.msra.mxu1 %v466_v10  ;;  %v5249_v8 = vsel %vm522_vm0, %v539_v18, %v541_v41  ;;  %v394_v24 = vadd.f32 %v4949_v7, %v333_v42  ;;  %v581_v10 = vrot.slane %v7021_v63, 1 }
  0x32   : > { %4315 = vmatprep.mubr.msk.f32.mxu1 %vm612_vm1, %v5239_v47  ;;  %7125 = vst [vmem:[#allocation14_spill] sm:$0xff] %v5249_v8  ;;  %v395_v22 = vadd.f32 %v4949_v7, %v334_v46  ;;  %v311_v26 = vmul.f32 %v4933_v4, %v250_v38  ;;  %4292 = vmatmul.mubr.msk.f32.gmra.mxu0 %vm612_vm1, %v5249_v8  ;;  %v5264_v18 = vmax.f32 %v371_v62, 0.0  ;;  %v543_v37 = vrot.slane %v5243_v5, 1 }
  0x33   : > { %v335_v41 = vmul.f32 %v4933_v4, %v274_v49  ;;  %4458 = vmatprep.subr.mxu1 %v5234_v55  ;;  %v5269_v38 = vmax.f32 %v394_v24, 0.0  ;;  %v312_v23 = vmul.f32 %v4933_v4, %v251_v6  ;;  %4409 = vmatpush3.msra.mxu0 %v3623_v12  ;;  %v5279_v62 = vsel %vm522_vm0, %v579_v16, %v581_v10  ;;  %v253_v10 = vld [vmem:[%s4944_s12 + $0x88] sm:$0x3] }
  0x34   : > { %v5271_v42 = vmax.f32 %v395_v22, 0.0  ;;  %v5274_v46 = vadd.f32 %v4949_v7, %v311_v26  ;;  %7126 = vst [vmem:[#allocation15_spill] sm:$0xff] %v5279_v62  ;;  %v544_v49 = vrot.slane %v5264_v18, 1  ;;  %v313_v24 = vmul.f32 %v4933_v4, %v252_v36  ;;  %v276_v22 = vld [vmem:[%s4944_s12 + $0x140] sm:$0xff]  ;;  %4522 = vmatprep.subr.mxu0 %v5258_v17  ;;  %4316 = vmatmul.mubr.msk.f32.gmra.mxu1 %vm612_vm1, %v5279_v62 }
  0x35   : > { %v5283_v63 = vadd.f32 %v4949_v7, %v335_v41  ;;  %v583_v26 = vrot.slane %v5269_v38, 1  ;;  %v373_v6 = vadd.f32 %v4949_v7, %v312_v23  ;;  %v336_v19 = vmul.f32 %v4933_v4, %v275_v3 }
  0x36   : > { %v584_v12 = vrot.slane %v5271_v42, 1  ;;  %v5296_v41 = vsel %vm522_vm0, %v543_v37, %v544_v49  ;;  %v374_v25 = vadd.f32 %v4949_v7, %v313_v24  ;;  %v7129_v23 = vmax.f32 %v5274_v46, 0.0 }
  0x37   : > { %7127 = vst [vmem:[#allocation16_spill] sm:$0xff] %v5296_v41  ;;  %v7036_v36 = vmax.f32 %v5283_v63, 0.0  ;;  %4294 = vmatprep.mubr.msk.f32.mxu0 %vm612_vm1, %v5296_v41  ;;  %v5309_v37 = vmax.f32 %v373_v6, 0.0  ;;  %v337_v47 = vmul.f32 %v4933_v4, %v276_v22  ;;  %v397_v15 = vadd.f32 %v4949_v7, %v336_v19 }
  0x38   : > { %v5305_v16 = vsel %vm522_vm0, %v583_v26, %v584_v12  ;;  %v546_v62 = vrot.slane %v7129_v23, 1  ;;  %v5316_v24 = vmax.f32 %v374_v25, 0.0  ;;  %v314_v26 = vmul.f32 %v4933_v4, %v253_v10 }
  0x39   : > { %7128 = vst [vmem:[#allocation17_spill] sm:$0xff] %v5305_v16  ;;  %4318 = vmatprep.mubr.msk.f32.mxu1 %vm612_vm1, %v5305_v16  ;;  %v586_v3 = vrot.slane %v7036_v36, 1  ;;  %v548_v22 = vrot.slane %v5309_v37, 1  ;;  %v398_v23 = vadd.f32 %v4949_v7, %v337_v47  ;;  %v338_v16 = vmul.f32 %v4933_v4, %v277_v35  ;;  %v278_v36 = vld [vmem:[%s4944_s12 + $0x150] sm:$0xff] }
  0x3a   : > { %v5323_v6 = vsel %vm522_vm0, %v544_v49, %v546_v62  ;;  %v549_v25 = vrot.slane %v5316_v24, 1  ;;  %v5335_v10 = vmax.f32 %v397_v15, 0.0  ;;  %v5338_v62 = vadd.f32 %v4949_v7, %v314_v26 }
  0x3b   : > { %7130 = vst [vmem:[#allocation18_spill] sm:$0xff] %v5323_v6  ;;  %4295 = vmatmul.mubr.msk.f32.gmra.mxu0 %vm612_vm1, %v5323_v6  ;;  %v5332_v19 = vsel %vm522_vm0, %v584_v12, %v586_v3  ;;  %v5342_v47 = vmax.f32 %v398_v23, 0.0  ;;  %v5345_v35 = vadd.f32 %v4949_v7, %v338_v16  ;;  %v315_v49 = vmul.f32 %v4933_v4, %v254_v43  ;;  %v279_v3 = vld [vmem:[%s4944_s12 + $0x158] sm:$0xff] }
  0x3c   : > { %7131 = vst [vmem:[#allocation19_spill] sm:$0xff] %v5332_v19  ;;  %4319 = vmatmul.mubr.msk.f32.gmra.mxu1 %vm612_vm1, %v5332_v19  ;;  %v316_v12 = vmul.f32 %v4933_v4, %v255_v59  ;;  %v5352_v15 = vsel %vm522_vm0, %v548_v22, %v549_v25  ;;  %v588_v26 = vrot.slane %v5335_v10, 1  ;;  %v7053_v58 = vmax.f32 %v5338_v62, 0.0 }
  0x3d   : > { %7132 = vst [vmem:[#allocation20_spill] sm:$0xff] %v5352_v15  ;;  %v339_v23 = vmul.f32 %v4933_v4, %v278_v36  ;;  %4297 = vmatprep.mubr.msk.f32.mxu0 %vm612_vm1, %v5352_v15  ;;  %v589_v43 = vrot.slane %v5342_v47, 1  ;;  %v7054_v59 = vmax.f32 %v5345_v35, 0.0  ;;  %v376_v16 = vadd.f32 %v4949_v7, %v315_v49  ;;  %v280_v15 = vld [vmem:[%s4944_s12 + $0x160] sm:$0x3] }
  0x3e   : > { %v377_v19 = vadd.f32 %v4949_v7, %v316_v12  ;;  %v551_v22 = vrot.slane %v7053_v58, 1  ;;  %v340_v56 = vmul.f32 %v4933_v4, %v279_v3  ;;  %v317_v6 = vmul.f32 %v4933_v4, %v256_v48  ;;  %v257_v58 = vld [vmem:[%s4944_s12 + $0xa8] sm:$0xff] }
  0x3f   : > { %v400_v36 = vadd.f32 %v4949_v7, %v339_v23  ;;  %v5370_v41 = vsel %vm522_vm0, %v588_v26, %v589_v43  ;;  %v591_v49 = vrot.slane %v7054_v59, 1  ;;  %v5374_v12 = vmax.f32 %v376_v16, 0.0  ;;  %v258_v59 = vld [vmem:[%s4944_s12 + $0xb0] sm:$0xff]  ;;  %v281_v16 = vld [vmem:[%s4944_s12 + $0x168] sm:$0xff] }
  0x40   : > { %7133 = vst [vmem:[#allocation21_spill] sm:$0xff] %v5370_v41  ;;  %v5376_v8 = vmax.f32 %v377_v19, 0.0  ;;  %4321 = vmatprep.mubr.msk.f32.mxu1 %vm612_vm1, %v5370_v41  ;;  %v5382_v3 = vsel %vm522_vm0, %v549_v25, %v551_v22  ;;  %v401_v48 = vadd.f32 %v4949_v7, %v340_v56  ;;  %v5388_v26 = vadd.f32 %v4949_v7, %v317_v6  ;;  %v282_v22 = vld [vmem:[%s4944_s12 + $0x170] sm:$0xff] }
  0x41   : > { %7134 = vst [vmem:[#allocation22_spill] sm:$0xff] %v5382_v3  ;;  %v5385_v23 = vmax.f32 %v400_v36, 0.0  ;;  %4298 = vmatmul.mubr.msk.f32.gmra.mxu0 %vm612_vm1, %v5382_v3  ;;  %v5395_v19 = vsel %vm522_vm0, %v589_v43, %v591_v49  ;;  %v553_v41 = vrot.slane %v5374_v12, 1  ;;  %v341_v56 = vmul.f32 %v4933_v4, %v280_v15  ;;  %v259_v49 = vld [vmem:[%s4944_s12 + $0xb8] sm:$0x3] }
  0x42   : > { %7135 = vst [vmem:[#allocation23_spill] sm:$0xff] %v5395_v19  ;;  %v554_v25 = vrot.slane %v5376_v8, 1  ;;  %4322 = vmatmul.mubr.msk.f32.gmra.mxu1 %vm612_vm1, %v5395_v19  ;;  %v5403_v6 = vmax.f32 %v401_v48, 0.0  ;;  %v7073_v3 = vmax.f32 %v5388_v26, 0.0  ;;  %v318_v43 = vmul.f32 %v4933_v4, %v257_v58 }
  0x43   : > { %v593_v36 = vrot.slane %v5385_v23, 1  ;;  %v5413_v15 = vadd.f32 %v4949_v7, %v341_v56  ;;  %v319_v44 = vmul.f32 %v4933_v4, %v258_v59  ;;  %v342_v19 = vmul.f32 %v4933_v4, %v281_v16 }
  0x44   : > { %7136 = vst [vmem:[#allocation24_spill] sm:$0xff] %v5403_v6  ;;  %v5410_v40 = vsel %vm522_vm0, %v553_v41, %v554_v25  ;;  %v594_v48 = vrot.slane %v5403_v6, 1  ;;  %v556_v1 = vrot.slane %v7073_v3, 1  ;;  %v379_v58 = vadd.f32 %v4949_v7, %v318_v43 }
  0x45   : > { %7137 = vst [vmem:[#allocation25_spill] sm:$0xff] %v5410_v40  ;;  %4300 = vmatprep.mubr.msk.f32.mxu0 %vm612_vm1, %v5410_v40  ;;  %v343_v41 = vmul.f32 %v4933_v4, %v282_v22  ;;  %v7074_v57 = vmax.f32 %v5413_v15, 0.0  ;;  %v380_v56 = vadd.f32 %v4949_v7, %v319_v44  ;;  %v403_v59 = vadd.f32 %v4949_v7, %v342_v19 }
  0x46   : > { %v320_v16 = vmul.f32 %v4933_v4, %v259_v49  ;;  %v5430_v40 = vsel %vm522_vm0, %v593_v36, %v594_v48  ;;  %v5433_v6 = vsel %vm522_vm0, %v554_v25, %v556_v1  ;;  %v5435_v3 = vmax.f32 %v379_v58, 0.0 }
  0x47   : > { %7138 = vst [vmem:[#allocation26_spill] sm:$0xff] %v5430_v40  ;;  %7139 = vst [vmem:[#allocation27_spill] sm:$0xff] %v5433_v6  ;;  %v404_v43 = vadd.f32 %v4949_v7, %v343_v41  ;;  %4324 = vmatprep.mubr.msk.f32.mxu1 %vm612_vm1, %v5430_v40  ;;  %4301 = vmatmul.mubr.msk.f32.gmra.mxu0 %vm612_vm1, %v5433_v6  ;;  %v596_v44 = vrot.slane %v7074_v57, 1  ;;  %v5444_v19 = vmax.f32 %v380_v56, 0.0  ;;  %v5446_v22 = vmax.f32 %v403_v59, 0.0 }
  0x48   : > { %v5449_v1 = vadd.f32 %v4949_v7, %v320_v16  ;;  %v558_v25 = vrot.slane %v5435_v3, 1  ;;  %v344_v49 = vmul.f32 %v4933_v4, %v283_v20  ;;  %v1193_v58 = vrot.slane %v4983_v31, 2 }
  0x49   : > { %v5452_v36 = vmax.f32 %v404_v43, 0.0  ;;  %v5457_v41 = vsel %vm522_vm0, %v594_v48, %v596_v44  ;;  %v559_v57 = vrot.slane %v5444_v19, 1  ;;  %v598_v56 = vrot.slane %v5446_v22, 1 }
  0x4a   : > { %7140 = vst [vmem:[#allocation28_spill] sm:$0xff] %v5457_v41  ;;  %v7079_v59 = vmax.f32 %v5449_v1, 0.0  ;;  %4325 = vmatmul.mubr.msk.f32.gmra.mxu1 %vm612_vm1, %v5457_v41  ;;  %v5466_v43 = vadd.f32 %v4949_v7, %v344_v49  ;;  %v7141_v4 = vmax.f32 %v4973_v27, 0.0  ;;  %v1197_v40 = vrot.slane %v5012_v51, 2 }
  0x4b   : > { %v599_v16 = vrot.slane %v5452_v36, 1  ;;  %v5471_v48 = vsel %vm522_vm0, %v558_v25, %v559_v57  ;;  %v7144_v49 = vrot.slane %v4981_v30, 2  ;;  %v1198_v25 = vrot.slane %v5030_v60, 2 }
  0x4c   : > { %v1195_v20 = vrot.slane %v7141_v4, 2  ;;  %7142 = vst [vmem:[#allocation29_spill] sm:$0xff] %v5471_v48  ;;  %v561_v44 = vrot.slane %v7079_v59, 1  ;;  %4303 = vmatprep.mubr.msk.f32.mxu0 %vm612_vm1, %v5471_v48  ;;  %v7084_v7 = vmax.f32 %v5466_v43, 0.0 }
  0x4d   : > { %v5479_v41 = vsel %vm522_vm0, %v598_v56, %v599_v16  ;;  %v1194_v27 = vsel %vm1191_vm2, %v7144_v49, %v1193_v58  ;;  %v5501_v48 = vsel %vm1191_vm2, %v1197_v40, %v1198_v25  ;;  %v3669_v40 = vld [vmem:[%s7011_s1 + $0xf0] sm:$0xff] }
  0x4e   : > { %7143 = vst [vmem:[#allocation30_spill] sm:$0xff] %v5479_v41  ;;  %4327 = vmatprep.mubr.msk.f32.mxu1 %vm612_vm1, %v5479_v41  ;;  %v5489_v4 = vsel %vm522_vm0, %v559_v57, %v561_v44  ;;  %v601_v56 = vrot.slane %v7084_v7, 1  ;;  %v1196_v59 = vsel %vm1191_vm2, %v1193_v58, %v1195_v20  ;;  %v7147_v41 = vmax.f32 %v5056_v13, 0.0  ;;  %v3709_v58 = vld [vmem:[%s7011_s1 + $0x130] sm:$0xff] }
  0x4f   : > { %7145 = vst [vmem:[#allocation31_spill] sm:$0xff] %v5489_v4  ;;  %4304 = vmatmul.mubr.msk.f32.gmra.mxu0 %vm612_vm1, %v5489_v4  ;;  %v1202_v44 = vrot.slane %v5082_v29, 2  ;;  %v1203_v7 = vrot.slane %v5089_v39, 2 }
  0x50   : > { %4410 = vmatprep.mubr.msk.f32.mxu0 %vm612_vm1, %v1194_v27  ;;  %v5498_v49 = vsel %vm522_vm0, %v599_v16, %v601_v56  ;;  %v1200_v57 = vrot.slane %v7147_v41, 2  ;;  %v7148_v41 = vmax.f32 %v5107_v52, 0.0  ;;  %v3668_v52 = vld [vmem:[%s7011_s1 + $0xe8] sm:$0xff]  ;;  %v1212_v56 = vrot.slane %v5243_v5, 2 }
  0x51   : > { %7146 = vst [vmem:[#allocation32_spill] sm:$0xff] %v5498_v49  ;;  %4328 = vmatmul.mubr.msk.f32.gmra.mxu1 %vm612_vm1, %v5498_v49  ;;  %v3708_v27 = vld [vmem:[%s7011_s1 + $0x128] sm:$0xff] }
  0x52   : > { %4346 = vmatprep.mubr.msk.f32.mxu1 %vm612_vm1, %v4981_v30  ;;  %v5519_v13 = vsel %vm1191_vm2, %v1198_v25, %v1200_v57  ;;  %v1205_v16 = vrot.slane %v7148_v41, 2  ;;  %v5529_v30 = vsel %vm1191_vm2, %v1202_v44, %v1203_v7  ;;  %v1213_v57 = vrot.slane %v5264_v18, 2 }
  0x53   : > { %4411 = vmatmul.mubr.msk.f32.vlgmr.msra.gmra.mxu0 %vm612_vm1, %v1196_v59  ;;  %v1208_v59 = vrot.slane %v5187_v50, 2  ;;  %v7150_v44 = vmax.f32 %v5274_v46, 0.0  ;;  %v3666_v46 = vld [vmem:[%s7011_s1 + $0xd8] sm:$0xff] }
  0x54   : > { %4523 = vmatpush3.msra.mxu0 %v5258_v17  ;;  %4413 = vmatprep.mubr.msk.f32.mxu0 %vm612_vm1, %v5501_v48  ;;  %v1207_v17 = vrot.slane %v5175_v45, 2  ;;  %v5578_v41 = vsel %vm1191_vm2, %v1212_v56, %v1213_v57  ;;  %v1222_v56 = vrot.slane %v5374_v12, 2 }
  0x55   : > { %4524 = vmatprep.subr.mxu0 %v3709_v58  ;;  %4347 = vmatmul.mubr.msk.f32.vlgmr.msra.gmra.mxu1 %vm612_vm1, %v4983_v31  ;;  %v5544_v31 = vsel %vm1191_vm2, %v1203_v7, %v1205_v16  ;;  %v1217_v16 = vrot.slane %v5309_v37, 2 }
  0x56   : > { %4525 = vmatpush3.msra.mxu0 %v3709_v58  ;;  %4459 = vmatpush3.msra.mxu1 %v5234_v55  ;;  %v7149_v55 = vmax.f32 %v5192_v54, 0.0  ;;  %v5554_v25 = vsel %vm1191_vm2, %v1207_v17, %v1208_v59  ;;  %v3667_v54 = vld [vmem:[%s7011_s1 + $0xe0] sm:$0xff]  ;;  %v1215_v58 = vrot.slane %v7150_v44, 2  ;;  %v1218_v17 = vrot.slane %v5316_v24, 2 }
  0x57   : > { %4349 = vmatprep.mubr.msk.f32.mxu1 %vm612_vm1, %v5012_v51  ;;  %4414 = vmatmul.mubr.msk.f32.gmra.mxu0 %vm612_vm1, %v5519_v13  ;;  %v7152_v44 = vmax.f32 %v5388_v26, 0.0  ;;  %v3664_v26 = vld [vmem:[%s7011_s1 + $0xc8] sm:$0xff] }
  0x58   : > { %4460 = vmatprep.subr.mxu1 %v3669_v40  ;;  %4416 = vmatprep.mubr.msk.f32.mxu0 %vm612_vm1, %v5529_v30  ;;  %v1210_v20 = vrot.slane %v7149_v55, 2 }
  0x59   : > { %4461 = vmatpush3.msra.mxu1 %v3669_v40  ;;  %4526 = vmatprep.subr.mxu0 %v3708_v27  ;;  %v3707_v40 = vld [vmem:[%s7011_s1 + $0x120] sm:$0xff] }
  0x5a   : > { %4350 = vmatmul.mubr.msk.f32.gmra.mxu1 %vm612_vm1, %v5030_v60  ;;  %4462 = vmatprep.subr.mxu1 %v3668_v52  ;;  %v5568_v7 = vsel %vm1191_vm2, %v1208_v59, %v1210_v20  ;;  %v5592_v59 = vsel %vm1191_vm2, %v1213_v57, %v1215_v58  ;;  %v3706_v20 = vld [vmem:[%s7011_s1 + $0x118] sm:$0xff]  ;;  %v1225_v58 = vrot.slane %v7152_v44, 2  ;;  %v1232_v44 = vrot.slane %v4985_v32, 2 }
  0x5b   : > { %4352 = vmatprep.mubr.msk.f32.mxu1 %vm612_vm1, %v5082_v29  ;;  %4463 = vmatpush3.msra.mxu1 %v3668_v52  ;;  %v7151_v52 = vmax.f32 %v5338_v62, 0.0  ;;  %v3665_v62 = vld [vmem:[%s7011_s1 + $0xd0] sm:$0xff] }
  0x5c   : > { %4417 = vmatmul.mubr.msk.f32.gmra.mxu0 %vm612_vm1, %v5544_v31  ;;  %4464 = vmatprep.subr.mxu1 %v3667_v54 }
  0x5d   : > { %4419 = vmatprep.mubr.msk.f32.mxu0 %vm612_vm1, %v5554_v25  ;;  %4527 = vmatpush3.msra.mxu0 %v3708_v27  ;;  %v1220_v55 = vrot.slane %v7151_v52, 2  ;;  %v5602_v27 = vsel %vm1191_vm2, %v1217_v16, %v1218_v17  ;;  %v1228_v52 = vrot.slane %v5444_v19, 2 }
  0x5e   : > { %4353 = vmatmul.mubr.msk.f32.gmra.mxu1 %vm612_vm1, %v5089_v39  ;;  %4528 = vmatprep.subr.mxu0 %v3707_v40 }
  0x5f   : > { %4355 = vmatprep.mubr.msk.f32.mxu1 %vm612_vm1, %v5175_v45  ;;  %4465 = vmatpush3.msra.mxu1 %v3667_v54  ;;  %v1223_v54 = vrot.slane %v5376_v8, 2  ;;  %v5616_v57 = vsel %vm1191_vm2, %v1218_v17, %v1220_v55  ;;  %v7154_v55 = vmax.f32 %v5449_v1, 0.0  ;;  %v3663_v1 = vld [vmem:[%s7011_s1 + $0xc0] sm:$0xff] }
  0x60   : > { %4420 = vmatmul.mubr.msk.f32.gmra.mxu0 %vm612_vm1, %v5568_v7  ;;  %4466 = vmatprep.subr.mxu1 %v3666_v46 }
  0x61   : > { %4422 = vmatprep.mubr.msk.f32.mxu0 %vm612_vm1, %v5578_v41  ;;  %4529 = vmatpush3.msra.mxu0 %v3707_v40  ;;  %v3705_v40 = vld [vmem:[%s7011_s1 + $0x110] sm:$0xff]  ;;  %v5626_v16 = vsel %vm1191_vm2, %v1222_v56, %v1223_v54  ;;  %v5640_v17 = vsel %vm1191_vm2, %v1223_v54, %v1225_v58  ;;  %v3704_v56 = vld [vmem:[%s7011_s1 + $0x108] sm:$0xff]  ;;  %v7157_v58 = vmax.f32 %v4976_v28, 0.0  ;;  %v5683_v28 = vld [vmem:[%s7011_s1 + $0x178] sm:$0xff] }
  0x62   : > { %4356 = vmatmul.mubr.msk.f32.gmra.mxu1 %vm612_vm1, %v5187_v50  ;;  %4530 = vmatprep.subr.mxu0 %v3706_v20  ;;  %7153 = vst [vmem:[#allocation33_spill] sm:$0xff] %v5626_v16 }
  0x63   : > { %4358 = vmatprep.mubr.msk.f32.mxu1 %vm612_vm1, %v5243_v5  ;;  %4467 = vmatpush3.msra.mxu1 %v3666_v46  ;;  %v1227_v46 = vrot.slane %v5435_v3, 2 }
  0x64   : > { %4423 = vmatmul.mubr.msk.f32.gmra.mxu0 %vm612_vm1, %v5592_v59  ;;  %4468 = vmatprep.subr.mxu1 %v3665_v62 }
  0x65   : > { %4425 = vmatprep.mubr.msk.f32.mxu0 %vm612_vm1, %v5602_v27  ;;  %4531 = vmatpush3.msra.mxu0 %v3706_v20  ;;  %v1230_v20 = vrot.slane %v7154_v55, 2  ;;  %v1237_v55 = vrot.slane %v5048_v9, 2 }
  0x66   : > { %4359 = vmatmul.mubr.msk.f32.gmra.mxu1 %vm612_vm1, %v5264_v18  ;;  %4532 = vmatprep.subr.mxu0 %v3705_v40 }
  0x67   : > { %4361 = vmatprep.mubr.msk.f32.mxu1 %vm612_vm1, %v5309_v37  ;;  %4469 = vmatpush3.msra.mxu1 %v3665_v62  ;;  %v5650_v62 = vsel %vm1191_vm2, %v1227_v46, %v1228_v52  ;;  %v5664_v54 = vsel %vm1191_vm2, %v1228_v52, %v1230_v20  ;;  %v3703_v46 = vld [vmem:[%s7011_s1 + $0x100] sm:$0xff]  ;;  %v5690_v52 = vld [vmem:[%s7011_s1 + $0x1b8] sm:$0xff] }
  0x68   : > { %4426 = vmatmul.mubr.msk.f32.gmra.mxu0 %vm612_vm1, %v5616_v57  ;;  %7155 = vst [vmem:[#allocation34_spill] sm:$0xff] %v5650_v62  ;;  %4470 = vmatprep.subr.mxu1 %v3664_v26  ;;  %7156 = vst [vmem:[#allocation35_spill] sm:$0xff] %v5664_v54 }
  0x69   : > { %4428 = vmatprep.mubr.msk.f32.mxu0 %vm612_vm1, %v5626_v16  ;;  %4533 = vmatpush3.msra.mxu0 %v3705_v40  ;;  %v1233_v16 = vrot.slane %v4988_v34, 2  ;;  %v1235_v40 = vrot.slane %v7157_v58, 2  ;;  %v1242_v58 = vrot.slane %v5122_v61, 2 }
  0x6a   : > { %4362 = vmatmul.mubr.msk.f32.gmra.mxu1 %vm612_vm1, %v5316_v24  ;;  %4534 = vmatprep.subr.mxu0 %v3704_v56 }
  0x6b   : > { %4364 = vmatprep.mubr.msk.f32.mxu1 %vm612_vm1, %v5374_v12  ;;  %4471 = vmatpush3.msra.mxu1 %v3664_v26  ;;  %v5674_v26 = vsel %vm1191_vm2, %v1232_v44, %v1233_v16  ;;  %v5695_v20 = vsel %vm1191_vm2, %v1233_v16, %v1235_v40  ;;  %v7160_v16 = vmax.f32 %v5148_v11, 0.0 }
  0x6c   : > { %4429 = vmatmul.mubr.msk.f32.gmra.mxu0 %vm612_vm1, %v5640_v17  ;;  %4472 = vmatprep.subr.mxu1 %v3663_v1 }
  0x6d   : > { %4431 = vmatprep.mubr.msk.f32.mxu0 %vm612_vm1, %v5650_v62  ;;  %4535 = vmatpush3.msra.mxu0 %v3704_v56  ;;  %v1238_v62 = vrot.slane %v5071_v21, 2  ;;  %v7158_v56 = vmax.f32 %v5059_v14, 0.0  ;;  %v1245_v40 = vrot.slane %v7160_v16, 2  ;;  %v1252_v16 = vrot.slane %v5269_v38, 2 }
  0x6e   : > { %4365 = vmatmul.mubr.msk.f32.gmra.mxu1 %vm612_vm1, %v5376_v8  ;;  %4536 = vmatprep.subr.mxu0 %v3703_v46 }
  0x6f   : > { %4367 = vmatprep.mubr.msk.f32.mxu1 %vm612_vm1, %v5435_v3  ;;  %4473 = vmatpush3.msra.mxu1 %v3663_v1  ;;  %v1240_v44 = vrot.slane %v7158_v56, 2  ;;  %v5702_v1 = vsel %vm1191_vm2, %v1237_v55, %v1238_v62  ;;  %v1247_v55 = vrot.slane %v5189_v53, 2  ;;  %v1248_v56 = vrot.slane %v5197_v0, 2 }
  0x70   : > { %4432 = vmatmul.mubr.msk.f32.gmra.mxu0 %vm612_vm1, %v5664_v54  ;;  %7159 = vst [vmem:[#allocation36_spill] sm:$0xff] %v5702_v1  ;;  %v1243_v54 = vrot.slane %v5136_v2, 2  ;;  %4586 = vmatprep.subr.mxu1 %v5683_v28 }
  0x71   : > { %4434 = vmatprep.mubr.msk.f32.mxu0 %vm612_vm1, %v5674_v26  ;;  %4537 = vmatpush3.msra.mxu0 %v3703_v46  ;;  %v5715_v14 = vsel %vm1191_vm2, %v1238_v62, %v1240_v44  ;;  %v7163_v62 = vmax.f32 %v5218_v33, 0.0 }
  0x72   : > { %4368 = vmatmul.mubr.msk.f32.gmra.mxu1 %vm612_vm1, %v5444_v19  ;;  %4650 = vmatprep.subr.mxu0 %v5690_v52  ;;  %v5722_v46 = vsel %vm1191_vm2, %v1242_v58, %v1243_v54  ;;  %v5733_v11 = vsel %vm1191_vm2, %v1243_v54, %v1245_v40  ;;  %v5740_v58 = vsel %vm1191_vm2, %v1247_v55, %v1248_v56  ;;  %v7165_v54 = vmax.f32 %v5283_v63, 0.0 }
  0x73   : > { %4370 = vmatprep.mubr.msk.f32.mxu1 %vm612_vm1, %v4985_v32  ;;  %7161 = vst [vmem:[#allocation37_spill] sm:$0xff] %v5722_v46  ;;  %7162 = vst [vmem:[#allocation38_spill] sm:$0xff] %v5733_v11  ;;  %v1250_v44 = vrot.slane %v7163_v62, 2  ;;  %v1257_v62 = vrot.slane %v5335_v10, 2 }
  0x74   : > { %4435 = vmatmul.mubr.msk.f32.gmra.mxu0 %vm612_vm1, %v5695_v20  ;;  %7164 = vst [vmem:[#allocation39_spill] sm:$0xff] %v5740_v58  ;;  %v1255_v40 = vrot.slane %v7165_v54, 2  ;;  %v1262_v54 = vrot.slane %v5385_v23, 2 }
  0x75   : > { %4437 = vmatprep.mubr.msk.f32.mxu0 %vm612_vm1, %v5702_v1  ;;  %v1253_v1 = vrot.slane %v5271_v42, 2  ;;  %v5751_v33 = vsel %vm1191_vm2, %v1248_v56, %v1250_v44  ;;  %v7167_v56 = vmax.f32 %v5345_v35, 0.0 }
  0x76   : > { %4371 = vmatmul.mubr.msk.f32.gmra.mxu1 %vm612_vm1, %v4988_v34 }
  0x77   : > { %4373 = vmatprep.mubr.msk.f32.mxu1 %vm612_vm1, %v5048_v9  ;;  %v5758_v55 = vsel %vm1191_vm2, %v1252_v16, %v1253_v1  ;;  %v5769_v63 = vsel %vm1191_vm2, %v1253_v1, %v1255_v40  ;;  %v1260_v44 = vrot.slane %v7167_v56, 2  ;;  %v7169_v1 = vmax.f32 %v5413_v15, 0.0 }
  0x78   : > { %4438 = vmatmul.mubr.msk.f32.gmra.mxu0 %vm612_vm1, %v5715_v14  ;;  %7166 = vst [vmem:[#allocation40_spill] sm:$0xff] %v5758_v55  ;;  %v1267_v56 = vrot.slane %v5446_v22, 2 }
  0x79   : > { %4440 = vmatprep.mubr.msk.f32.mxu0 %vm612_vm1, %v5722_v46  ;;  %v1258_v46 = vrot.slane %v5342_v47, 2  ;;  %v1265_v40 = vrot.slane %v7169_v1, 2  ;;  %v7173_v1 = vld [vmem:[#allocation6_spill] sm:$0xff] }
  0x7a   : > { %4374 = vmatmul.mubr.msk.f32.gmra.mxu1 %vm612_vm1, %v5071_v21 }
  0x7b   : > { %4376 = vmatprep.mubr.msk.f32.mxu1 %vm612_vm1, %v5122_v61  ;;  %v5776_v16 = vsel %vm1191_vm2, %v1257_v62, %v1258_v46  ;;  %v5787_v35 = vsel %vm1191_vm2, %v1258_v46, %v1260_v44  ;;  %v7170_v46 = vmax.f32 %v5466_v43, 0.0  ;;  %v7172_v43 = vld [vmem:[#allocation4_spill] sm:$0xff] }
  0x7c   : > { %4441 = vmatmul.mubr.msk.f32.gmra.mxu0 %vm612_vm1, %v5733_v11 }
  0x7d   : > { %4443 = vmatprep.mubr.msk.f32.mxu0 %vm612_vm1, %v5740_v58  ;;  %v7168_v58 = vld [vmem:[#allocation24_spill] sm:$0xff]  ;;  %v1270_v44 = vrot.slane %v7170_v46, 2 }
  0x7e   : > { %4377 = vmatmul.mubr.msk.f32.gmra.mxu1 %vm612_vm1, %v5136_v2  ;;  %v1263_v11 = vrot.slane %v7168_v58, 2  ;;  %v7176_v46 = vld [vmem:[#allocation12_spill] sm:$0xff] }
  0x7f   : > { %4379 = vmatprep.mubr.msk.f32.mxu1 %vm612_vm1, %v5189_v53 }
  0x80   : > { %4444 = vmatmul.mubr.msk.f32.gmra.mxu0 %vm612_vm1, %v5751_v33  ;;  %v5794_v62 = vsel %vm1191_vm2, %v1262_v54, %v1263_v11  ;;  %v5805_v15 = vsel %vm1191_vm2, %v1263_v11, %v1265_v40  ;;  %v7174_v40 = vld [vmem:[#allocation8_spill] sm:$0xff] }
  0x81   : > { %4446 = vmatprep.mubr.msk.f32.mxu0 %vm612_vm1, %v5758_v55  ;;  %v1268_v55 = vrot.slane %v5452_v36, 2 }
  0x82   : > { %4380 = vmatmul.mubr.msk.f32.gmra.mxu1 %vm612_vm1, %v5197_v0 }
  0x83   : > { %4382 = vmatprep.mubr.msk.f32.mxu1 %vm612_vm1, %v5269_v38  ;;  %v5812_v54 = vsel %vm1191_vm2, %v1267_v56, %v1268_v55  ;;  %v5821_v11 = vsel %vm1191_vm2, %v1268_v55, %v1270_v44  ;;  %v3789_v55 = vld [vmem:[%s7011_s1 + $0x1b0] sm:$0xff]  ;;  %v3747_v44 = vld [vmem:[%s7011_s1 + $0x160] sm:$0xff] }
  0x84   : > { %4447 = vmatmul.mubr.msk.f32.gmra.mxu0 %vm612_vm1, %v5769_v63  ;;  %7171 = vst [vmem:[#allocation24_spill] sm:$0xff] %v5821_v11  ;;  %v3749_v56 = vld [vmem:[%s7011_s1 + $0x170] sm:$0xff] }
  0x85   : > { %4449 = vmatprep.mubr.msk.f32.mxu0 %vm612_vm1, %v5776_v16 }
  0x86   : > { %4383 = vmatmul.mubr.msk.f32.gmra.mxu1 %vm612_vm1, %v5271_v42 }
  0x87   : > { %4385 = vmatprep.mubr.msk.f32.mxu1 %vm612_vm1, %v5335_v10 }
  0x88   : > { %4450 = vmatmul.mubr.msk.f32.gmra.mxu0 %vm612_vm1, %v5787_v35 }
  0x89   : > { %4452 = vmatprep.mubr.msk.f32.mxu0 %vm612_vm1, %v5794_v62 }
  0x8a   : > { %4386 = vmatmul.mubr.msk.f32.gmra.mxu1 %vm612_vm1, %v5342_v47 }
  0x8b   : > { %4388 = vmatprep.mubr.msk.f32.mxu1 %vm612_vm1, %v5385_v23 }
  0x8c   : > { %4453 = vmatmul.mubr.msk.f32.gmra.mxu0 %vm612_vm1, %v5805_v15 }
  0x8d   : > { %4455 = vmatprep.mubr.msk.f32.mxu0 %vm612_vm1, %v5812_v54 }
  0x8e   : > { %4389 = vmatmul.mubr.msk.f32.gmra.mxu1 %vm612_vm1, %v7168_v58 }
  0x8f   : > { %4391 = vmatprep.mubr.msk.f32.mxu1 %vm612_vm1, %v5446_v22 }
  0x90   : > { %4456 = vmatmul.mubr.msk.f32.gmra.mxu0 %vm612_vm1, %v5821_v11  ;;  %v7198_v11 = vld [vmem:[#allocation30_spill] sm:$0xff] }
  0x91   : > { %4538 = vmatprep.mubr.msk.f32.mxu0 %vm612_vm1, %v7172_v43  ;;  %v7178_v43 = vld [vmem:[#allocation16_spill] sm:$0xff] }
  0x92   : > { %4392 = vmatmul.mubr.msk.f32.gmra.mxu1 %vm612_vm1, %v5452_v36 }
  0x93   : > { %4474 = vmatprep.mubr.msk.f32.mxu1 %vm612_vm1, %v5012_v51  ;;  %v7175_v51 = vld [vmem:[#allocation10_spill] sm:$0xff] }
  0x94   : > { %4539 = vmatmul.mubr.msk.f32.vlgmr.msra.gmra.mxu0 %vm612_vm1, %v7173_v1  ;;  %v7179_v1 = vld [vmem:[#allocation18_spill] sm:$0xff] }
  0x95   : > { %4651 = vmatpush3.msra.mxu0 %v5690_v52  ;;  %4541 = vmatprep.mubr.msk.f32.mxu0 %vm612_vm1, %v7174_v40  ;;  %v3748_v52 = vld [vmem:[%s7011_s1 + $0x168] sm:$0xff] }
  0x96   : > { %4475 = vmatmul.mubr.msk.f32.vlgmr.msra.gmra.mxu1 %vm612_vm1, %v5030_v60  ;;  %4652 = vmatprep.subr.mxu0 %v3789_v55  ;;  %v3788_v60 = vld [vmem:[%s7011_s1 + $0x1a8] sm:$0xff] }
  0x97   : > { %4587 = vmatpush3.msra.mxu1 %v5683_v28  ;;  %4477 = vmatprep.mubr.msk.f32.mxu1 %vm612_vm1, %v5082_v29  ;;  %v7177_v28 = vld [vmem:[#allocation14_spill] sm:$0xff] }
  0x98   : > { %4542 = vmatmul.mubr.msk.f32.gmra.mxu0 %vm612_vm1, %v7175_v51  ;;  %4588 = vmatprep.subr.mxu1 %v3749_v56 }
  0x99   : > { %4544 = vmatprep.mubr.msk.f32.mxu0 %vm612_vm1, %v7176_v46  ;;  %4589 = vmatpush3.msra.mxu1 %v3749_v56  ;;  %v3746_v56 = vld [vmem:[%s7011_s1 + $0x158] sm:$0xff] }
  0x9a   : > { %4478 = vmatmul.mubr.msk.f32.gmra.mxu1 %vm612_vm1, %v5089_v39  ;;  %4653 = vmatpush3.msra.mxu0 %v3789_v55  ;;  %v3787_v55 = vld [vmem:[%s7011_s1 + $0x1a0] sm:$0xff] }
  0x9b   : > { %4480 = vmatprep.mubr.msk.f32.mxu1 %vm612_vm1, %v5175_v45  ;;  %4590 = vmatprep.subr.mxu1 %v3748_v52 }
  0x9c   : > { %4545 = vmatmul.mubr.msk.f32.gmra.mxu0 %vm612_vm1, %v7177_v28  ;;  %4591 = vmatpush3.msra.mxu1 %v3748_v52  ;;  %v7180_v52 = vld [vmem:[#allocation20_spill] sm:$0xff] }
  0x9d   : > { %4547 = vmatprep.mubr.msk.f32.mxu0 %vm612_vm1, %v7178_v43  ;;  %4654 = vmatprep.subr.mxu0 %v3788_v60  ;;  %v286_v28 = vld [vmem:[%s4944_s12 + $0x190] sm:$0x3] }
  0x9e   : > { %4481 = vmatmul.mubr.msk.f32.gmra.mxu1 %vm612_vm1, %v5187_v50  ;;  %4655 = vmatpush3.msra.mxu0 %v3788_v60  ;;  %v3786_v60 = vld [vmem:[%s7011_s1 + $0x198] sm:$0xff] }
  0x9f   : > { %4483 = vmatprep.mubr.msk.f32.mxu1 %vm612_vm1, %v5243_v5  ;;  %4592 = vmatprep.subr.mxu1 %v3747_v44 }
  0xa0   : > { %4548 = vmatmul.mubr.msk.f32.gmra.mxu0 %vm612_vm1, %v7179_v1  ;;  %4593 = vmatpush3.msra.mxu1 %v3747_v44  ;;  %v7181_v44 = vld [vmem:[#allocation22_spill] sm:$0xff]  ;;  %v7182_v1 = vld [vmem:[#allocation25_spill] sm:$0xff] }
  0xa1   : > { %4550 = vmatprep.mubr.msk.f32.mxu0 %vm612_vm1, %v7180_v52  ;;  %4656 = vmatprep.subr.mxu0 %v3787_v55  ;;  %v3745_v52 = vld [vmem:[%s7011_s1 + $0x150] sm:$0xff] }
  0xa2   : > { %4484 = vmatmul.mubr.msk.f32.gmra.mxu1 %vm612_vm1, %v5264_v18  ;;  %4657 = vmatpush3.msra.mxu0 %v3787_v55  ;;  %v3785_v55 = vld [vmem:[%s7011_s1 + $0x190] sm:$0xff] }
  0xa3   : > { %4486 = vmatprep.mubr.msk.f32.mxu1 %vm612_vm1, %v5309_v37  ;;  %4594 = vmatprep.subr.mxu1 %v3746_v56 }
  0xa4   : > { %4551 = vmatmul.mubr.msk.f32.gmra.mxu0 %vm612_vm1, %v7181_v44  ;;  %4595 = vmatpush3.msra.mxu1 %v3746_v56  ;;  %v3744_v56 = vld [vmem:[%s7011_s1 + $0x148] sm:$0xff]  ;;  %v7190_v44 = vld [vmem:[#allocation13_spill] sm:$0xff] }
  0xa5   : > { %4553 = vmatprep.mubr.msk.f32.mxu0 %vm612_vm1, %v7182_v1  ;;  %4658 = vmatprep.subr.mxu0 %v3786_v60  ;;  %v7183_v1 = vld [vmem:[#allocation29_spill] sm:$0xff] }
  0xa6   : > { %4487 = vmatmul.mubr.msk.f32.gmra.mxu1 %vm612_vm1, %v5316_v24  ;;  %4659 = vmatpush3.msra.mxu0 %v3786_v60  ;;  %v3784_v60 = vld [vmem:[%s7011_s1 + $0x188] sm:$0xff] }
  0xa7   : > { %4489 = vmatprep.mubr.msk.f32.mxu1 %vm612_vm1, %v5374_v12  ;;  %4596 = vmatprep.subr.mxu1 %v3745_v52 }
  0xa8   : > { %4554 = vmatmul.mubr.msk.f32.gmra.mxu0 %vm612_vm1, %v5433_v6  ;;  %4597 = vmatpush3.msra.mxu1 %v3745_v52  ;;  %v3743_v52 = vld [vmem:[%s7011_s1 + $0x140] sm:$0xff]  ;;  %v7189_v6 = vld [vmem:[#allocation11_spill] sm:$0xff] }
  0xa9   : > { %4556 = vmatprep.mubr.msk.f32.mxu0 %vm612_vm1, %v7183_v1  ;;  %4660 = vmatprep.subr.mxu0 %v3785_v55  ;;  %v7184_v1 = vld [vmem:[#allocation2_spill] sm:$0xff] }
  0xaa   : > { %4490 = vmatmul.mubr.msk.f32.gmra.mxu1 %vm612_vm1, %v5376_v8  ;;  %4661 = vmatpush3.msra.mxu0 %v3785_v55  ;;  %v3783_v55 = vld [vmem:[%s7011_s1 + $0x180] sm:$0xff] }
  0xab   : > { %4492 = vmatprep.mubr.msk.f32.mxu1 %vm612_vm1, %v5435_v3  ;;  %4598 = vmatprep.subr.mxu1 %v3744_v56 }
  0xac   : > { %4557 = vmatmul.mubr.msk.f32.gmra.mxu0 %vm612_vm1, %v5489_v4  ;;  %4599 = vmatpush3.msra.mxu1 %v3744_v56  ;;  %v7185_v56 = vld [vmem:[#allocation3_spill] sm:$0xff]  ;;  %v3870_v4 = vld [vmem:[%s7011_s1 + $0x238] sm:$0xff] }
  0xad   : > { %4559 = vmatprep.mubr.msk.f32.mxu0 %vm612_vm1, %v7184_v1  ;;  %4662 = vmatprep.subr.mxu0 %v3784_v60  ;;  %v5940_v1 = vld [vmem:[%s7011_s1 + $0x1f8] sm:$0xff] }
  0xae   : > { %4493 = vmatmul.mubr.msk.f32.gmra.mxu1 %vm612_vm1, %v5444_v19  ;;  %4663 = vmatpush3.msra.mxu0 %v3784_v60  ;;  %v7186_v60 = vld [vmem:[#allocation5_spill] sm:$0xff] }
  0xaf   : > { %4495 = vmatprep.mubr.msk.f32.mxu1 %vm612_vm1, %v4985_v32  ;;  %4600 = vmatprep.subr.mxu1 %v3743_v52 }
  0xb0   : > { %4560 = vmatmul.mubr.msk.f32.gmra.mxu0 %vm612_vm1, %v7185_v56  ;;  %4601 = vmatpush3.msra.mxu1 %v3743_v52  ;;  %v7187_v52 = vld [vmem:[#allocation7_spill] sm:$0xff] }
  0xb1   : > { %4562 = vmatprep.mubr.msk.f32.mxu0 %vm612_vm1, %v7186_v60  ;;  %4664 = vmatprep.subr.mxu0 %v3783_v55  ;;  %v7188_v60 = vld [vmem:[#allocation9_spill] sm:$0xff]  ;;  %v285_v56 = vld [vmem:[%s4944_s12 + $0x188] sm:$0xff] }
  0xb2   : > { %4496 = vmatmul.mubr.msk.f32.gmra.mxu1 %vm612_vm1, %v4988_v34  ;;  %4665 = vmatpush3.msra.mxu0 %v3783_v55  ;;  %v284_v55 = vld [vmem:[%s4944_s12 + $0x180] sm:$0xff] }
  0xb3   : > { %4498 = vmatprep.mubr.msk.f32.mxu1 %vm612_vm1, %v5048_v9  ;;  %4714 = vmatprep.subr.mxu1 %v5940_v1 }
  0xb4   : > { %4563 = vmatmul.mubr.msk.f32.gmra.mxu0 %vm612_vm1, %v7187_v52  ;;  %4778 = vmatprep.subr.mxu0 %v3870_v4 }
  0xb5   : > { %4565 = vmatprep.mubr.msk.f32.mxu0 %vm612_vm1, %v7188_v60  ;;  %v5971_v60 = vld [vmem:[%s7012_s2] ss:$0 sm:$0xff] }
  0xb6   : > { %4499 = vmatmul.mubr.msk.f32.gmra.mxu1 %vm612_vm1, %v5071_v21  ;;  %v345_v52 = vmul.f32 %v5971_v60, %v284_v55  ;;  %v346_v43 = vmul.f32 %v5971_v60, %v285_v56  ;;  %v347_v46 = vmul.f32 %v5971_v60, %v286_v28  ;;  %v5988_v55 = vld [vmem:[%s7013_s3] ss:$0 sm:$0xff] }
  0xb7   : > { %4501 = vmatprep.mubr.msk.f32.mxu1 %vm612_vm1, %v5122_v61 }
  0xb8   : > { %4566 = vmatmul.mubr.msk.f32.gmra.mxu0 %vm612_vm1, %v7189_v6  ;;  %v7191_v6 = vld [vmem:[#allocation15_spill] sm:$0xff]  ;;  %v406_v56 = vadd.f32 %v5988_v55, %v345_v52  ;;  %v407_v51 = vadd.f32 %v5988_v55, %v346_v43  ;;  %v5999_v28 = vadd.f32 %v5988_v55, %v347_v46 }
  0xb9   : > { %4568 = vmatprep.mubr.msk.f32.mxu0 %vm612_vm1, %v7190_v44  ;;  %v7192_v44 = vld [vmem:[#allocation17_spill] sm:$0xff]  ;;  %v7195_v43 = vld [vmem:[#allocation23_spill] sm:$0xff] }
  0xba   : > { %4502 = vmatmul.mubr.msk.f32.gmra.mxu1 %vm612_vm1, %v5136_v2  ;;  %v6003_v40 = vmax.f32 %v406_v56, 0.0  ;;  %v6005_v52 = vmax.f32 %v407_v51, 0.0  ;;  %v7197_v51 = vld [vmem:[#allocation28_spill] sm:$0xff] }
  0xbb   : > { %4504 = vmatprep.mubr.msk.f32.mxu1 %vm612_vm1, %v5189_v53 }
  0xbc   : > { %4569 = vmatmul.mubr.msk.f32.gmra.mxu0 %vm612_vm1, %v7191_v6  ;;  %v7193_v6 = vld [vmem:[#allocation19_spill] sm:$0xff]  ;;  %v1875_v46 = vrot.slane %v6003_v40, 1  ;;  %v1876_v56 = vrot.slane %v6005_v52, 1 }
  0xbd   : > { %4571 = vmatprep.mubr.msk.f32.mxu0 %vm612_vm1, %v7192_v44  ;;  %v7194_v44 = vld [vmem:[#allocation21_spill] sm:$0xff] }
  0xbe   : > { %4505 = vmatmul.mubr.msk.f32.gmra.mxu1 %vm612_vm1, %v5197_v0 }
  0xbf   : > { %4507 = vmatprep.mubr.msk.f32.mxu1 %vm612_vm1, %v5269_v38 }
  0xc0   : > { %4572 = vmatmul.mubr.msk.f32.gmra.mxu0 %vm612_vm1, %v7193_v6  ;;  %v7196_v6 = vld [vmem:[#allocation26_spill] sm:$0xff] }
  0xc1   : > { %4574 = vmatprep.mubr.msk.f32.mxu0 %vm612_vm1, %v7194_v44  ;;  %v7105_v44 = vmax.f32 %v5999_v28, 0.0 }
  0xc2   : > { %4508 = vmatmul.mubr.msk.f32.gmra.mxu1 %vm612_vm1, %v5271_v42 }
  0xc3   : > { %4510 = vmatprep.mubr.msk.f32.mxu1 %vm612_vm1, %v5335_v10 }
  0xc4   : > { %4575 = vmatmul.mubr.msk.f32.gmra.mxu0 %vm612_vm1, %v7195_v43  ;;  %v6029_v43 = vsel %vm522_vm0, %v1875_v46, %v1876_v56  ;;  %v7201_v46 = vld [vmem:[#allocation33_spill] sm:$0xff] }
  0xc5   : > { %4577 = vmatprep.mubr.msk.f32.mxu0 %vm612_vm1, %v7196_v6  ;;  %v1878_v6 = vrot.slane %v7105_v44, 1  ;;  %7199 = vst [vmem:[#allocation4_spill] sm:$0xff] %v6029_v43 }
  0xc6   : > { %4511 = vmatmul.mubr.msk.f32.gmra.mxu1 %vm612_vm1, %v5342_v47 }
  0xc7   : > { %4513 = vmatprep.mubr.msk.f32.mxu1 %vm612_vm1, %v5385_v23 }
  0xc8   : > { %4578 = vmatmul.mubr.msk.f32.gmra.mxu0 %vm612_vm1, %v7197_v51 }
  0xc9   : > { %4580 = vmatprep.mubr.msk.f32.mxu0 %vm612_vm1, %v7198_v11  ;;  %v6038_v11 = vsel %vm522_vm0, %v1876_v56, %v1878_v6  ;;  %v3869_v6 = vld [vmem:[%s7011_s1 + $0x230] sm:$0xff] }
  0xca   : > { %4514 = vmatmul.mubr.msk.f32.gmra.mxu1 %vm612_vm1, %v7168_v58  ;;  %7200 = vst [vmem:[#allocation6_spill] sm:$0xff] %v6038_v11 }
  0xcb   : > { %4516 = vmatprep.mubr.msk.f32.mxu1 %vm612_vm1, %v5446_v22 }
  0xcc   : > { %4581 = vmatmul.mubr.msk.f32.gmra.mxu0 %vm612_vm1, %v5498_v49 }
  0xcd   : > { %4583 = vmatprep.mubr.msk.f32.mxu0 %vm612_vm1, %v6029_v43 }
  0xce   : > { %4517 = vmatmul.mubr.msk.f32.gmra.mxu1 %vm612_vm1, %v5452_v36 }
  0xcf   : > { %4519 = vmatprep.mubr.msk.f32.mxu1 %vm612_vm1, %v6003_v40 }
  0xd0   : > { %4584 = vmatmul.mubr.msk.f32.gmra.mxu0 %vm612_vm1, %v6038_v11 }
  0xd1   : > { %4666 = vmatprep.mubr.msk.f32.mxu0 %vm612_vm1, %v5082_v29  ;;  %v3829_v29 = vld [vmem:[%s7011_s1 + $0x1f0] sm:$0xff] }
  0xd2   : > { %4520 = vmatmul.mubr.msk.f32.gmra.mxu1 %vm612_vm1, %v6005_v52 }
  0xd3   : > { %4602 = vmatprep.mubr.msk.f32.mxu1 %vm612_vm1, %v5501_v48 }
  0xd4   : > { %4667 = vmatmul.mubr.msk.f32.vlgmr.msra.gmra.mxu0 %vm612_vm1, %v5089_v39  ;;  %v3828_v39 = vld [vmem:[%s7011_s1 + $0x1e8] sm:$0xff] }
  0xd5   : > { %4779 = vmatpush3.msra.mxu0 %v3870_v4  ;;  %4669 = vmatprep.mubr.msk.f32.mxu0 %vm612_vm1, %v5175_v45  ;;  %v3868_v45 = vld [vmem:[%s7011_s1 + $0x228] sm:$0xff]  ;;  %v3866_v4 = vld [vmem:[%s7011_s1 + $0x218] sm:$0xff] }
  0xd6   : > { %4603 = vmatmul.mubr.msk.f32.vlgmr.msra.gmra.mxu1 %vm612_vm1, %v5519_v13  ;;  %4780 = vmatprep.subr.mxu0 %v3869_v6 }
  0xd7   : > { %4715 = vmatpush3.msra.mxu1 %v5940_v1  ;;  %4605 = vmatprep.mubr.msk.f32.mxu1 %vm612_vm1, %v5529_v30  ;;  %v3865_v1 = vld [vmem:[%s7011_s1 + $0x210] sm:$0xff] }
  0xd8   : > { %4670 = vmatmul.mubr.msk.f32.gmra.mxu0 %vm612_vm1, %v5187_v50  ;;  %4716 = vmatprep.subr.mxu1 %v3829_v29  ;;  %v3827_v50 = vld [vmem:[%s7011_s1 + $0x1e0] sm:$0xff] }
  0xd9   : > { %4672 = vmatprep.mubr.msk.f32.mxu0 %vm612_vm1, %v5243_v5  ;;  %4717 = vmatpush3.msra.mxu1 %v3829_v29  ;;  %v3867_v5 = vld [vmem:[%s7011_s1 + $0x220] sm:$0xff]  ;;  %v3864_v29 = vld [vmem:[%s7011_s1 + $0x208] sm:$0xff] }
  0xda   : > { %4606 = vmatmul.mubr.msk.f32.gmra.mxu1 %vm612_vm1, %v5544_v31  ;;  %4781 = vmatpush3.msra.mxu0 %v3869_v6 }
  0xdb   : > { %4608 = vmatprep.mubr.msk.f32.mxu1 %vm612_vm1, %v5554_v25  ;;  %4718 = vmatprep.subr.mxu1 %v3828_v39 }
  0xdc   : > { %4673 = vmatmul.mubr.msk.f32.gmra.mxu0 %vm612_vm1, %v5264_v18  ;;  %4719 = vmatpush3.msra.mxu1 %v3828_v39 }
  0xdd   : > { %4675 = vmatprep.mubr.msk.f32.mxu0 %vm612_vm1, %v5309_v37  ;;  %4782 = vmatprep.subr.mxu0 %v3868_v45  ;;  %v6095_v18 = vpop.f32.mrf.mxu0  ;;  %v3826_v37 = vld [vmem:[%s7011_s1 + $0x1d8] sm:$0xff] }
  0xde   : > { %4609 = vmatmul.mubr.msk.f32.gmra.mxu1 %vm612_vm1, %v5568_v7  ;;  %4783 = vmatpush3.msra.mxu0 %v3868_v45  ;;  %v6097_v48 = vpop.f32.mrf.mxu1  ;;  %v3823_v45 = vld [vmem:[%s7011_s1 + $0x1c0] sm:$0xff] }
  0xdf   : > { %4611 = vmatprep.mubr.msk.f32.mxu1 %vm612_vm1, %v5578_v41  ;;  %4720 = vmatprep.subr.mxu1 %v3827_v50 }
  0xe0   : > { %4676 = vmatmul.mubr.msk.f32.gmra.mxu0 %vm612_vm1, %v5316_v24  ;;  %4721 = vmatpush3.msra.mxu1 %v3827_v50  ;;  %v6113_v24 = vpop.f32.mrf.mxu0  ;;  %v6115_v13 = vpop.f32.mrf.mxu1  ;;  %v7203_v50 = vld [vmem:[#allocation35_spill] sm:$0xff] }
  0xe1   : > { %4678 = vmatprep.mubr.msk.f32.mxu0 %vm612_vm1, %v5374_v12  ;;  %4784 = vmatprep.subr.mxu0 %v3867_v5  ;;  %v3825_v12 = vld [vmem:[%s7011_s1 + $0x1d0] sm:$0xff] }
  0xe2   : > { %4612 = vmatmul.mubr.msk.f32.gmra.mxu1 %vm612_vm1, %v5592_v59  ;;  %4785 = vmatpush3.msra.mxu0 %v3867_v5  ;;  %v3863_v5 = vld [vmem:[%s7011_s1 + $0x200] sm:$0xff] }
  0xe3   : > { %4614 = vmatprep.mubr.msk.f32.mxu1 %vm612_vm1, %v5602_v27  ;;  %4722 = vmatprep.subr.mxu1 %v3826_v37 }
  0xe4   : > { %4679 = vmatmul.mubr.msk.f32.gmra.mxu0 %vm612_vm1, %v5376_v8  ;;  %4723 = vmatpush3.msra.mxu1 %v3826_v37 }
  0xe5   : > { %4681 = vmatprep.mubr.msk.f32.mxu0 %vm612_vm1, %v5435_v3  ;;  %4786 = vmatprep.subr.mxu0 %v3866_v4  ;;  %v3824_v3 = vld [vmem:[%s7011_s1 + $0x1c8] sm:$0xff] }
  0xe6   : > { %4615 = vmatmul.mubr.msk.f32.gmra.mxu1 %vm612_vm1, %v5616_v57  ;;  %4787 = vmatpush3.msra.mxu0 %v3866_v4  ;;  %v7204_v4 = vld [vmem:[#allocation36_spill] sm:$0xff] }
  0xe7   : > { %4617 = vmatprep.mubr.msk.f32.mxu1 %vm612_vm1, %v7201_v46  ;;  %v6131_v8 = vpop.f32.mrf.mxu0  ;;  %v6133_v56 = vpop.f32.mrf.mxu1  ;;  %4724 = vmatprep.subr.mxu1 %v3825_v12 }
  0xe8   : > { %4682 = vmatmul.mubr.msk.f32.gmra.mxu0 %vm612_vm1, %v5444_v19  ;;  %4725 = vmatpush3.msra.mxu1 %v3825_v12  ;;  %v7202_v19 = vld [vmem:[#allocation34_spill] sm:$0xff] }
  0xe9   : > { %4684 = vmatprep.mubr.msk.f32.mxu0 %vm612_vm1, %v4985_v32  ;;  %v6142_v6 = vpop.f32.mrf.mxu0  ;;  %4788 = vmatprep.subr.mxu0 %v3865_v1  ;;  %v6151_v39 = vpop.f32.mrf.mxu1 }
  0xea   : > { %4618 = vmatmul.mubr.msk.f32.gmra.mxu1 %vm612_vm1, %v5640_v17  ;;  %4789 = vmatpush3.msra.mxu0 %v3865_v1 }
  0xeb   : > { %4620 = vmatprep.mubr.msk.f32.mxu1 %vm612_vm1, %v7202_v19  ;;  %4726 = vmatprep.subr.mxu1 %v3824_v3 }
  0xec   : > { %4685 = vmatmul.mubr.msk.f32.gmra.mxu0 %vm612_vm1, %v4988_v34  ;;  %v6155_v32 = vpop.f32.mrf.mxu0  ;;  %4727 = vmatpush3.msra.mxu1 %v3824_v3 }
  0xed   : > { %4687 = vmatprep.mubr.msk.f32.mxu0 %vm612_vm1, %v5048_v9  ;;  %4790 = vmatprep.subr.mxu0 %v3864_v29 }
  0xee   : > { %4621 = vmatmul.mubr.msk.f32.gmra.mxu1 %vm612_vm1, %v7203_v50  ;;  %4791 = vmatpush3.msra.mxu0 %v3864_v29  ;;  %v6171_v37 = vpop.f32.mrf.mxu0 }
  0xef   : > { %4623 = vmatprep.mubr.msk.f32.mxu1 %vm612_vm1, %v5674_v26  ;;  %v6169_v34 = vpop.f32.mrf.mxu1  ;;  %4728 = vmatprep.subr.mxu1 %v3823_v45 }
  0xf0   : > { %4688 = vmatmul.mubr.msk.f32.gmra.mxu0 %vm612_vm1, %v5071_v21  ;;  %4729 = vmatpush3.msra.mxu1 %v3823_v45 }
  0xf1   : > { %4690 = vmatprep.mubr.msk.f32.mxu0 %vm612_vm1, %v5122_v61  ;;  %4792 = vmatprep.subr.mxu0 %v3863_v5  ;;  %v6179_v9 = vpop.f32.mrf.mxu1  ;;  %v7205_v61 = vld [vmem:[#allocation37_spill] sm:$0xff] }
  0xf2   : > { %4624 = vmatmul.mubr.msk.f32.gmra.mxu1 %vm612_vm1, %v5695_v20  ;;  %4793 = vmatpush3.msra.mxu0 %v3863_v5  ;;  %v6183_v12 = vpop.f32.mrf.mxu0  ;;  %v7209_v5 = vld [vmem:[#allocation40_spill] sm:$0xff] }
  0xf3   : > { %4626 = vmatprep.mubr.msk.f32.mxu1 %vm612_vm1, %v7204_v4 }
  0xf4   : > { %4691 = vmatmul.mubr.msk.f32.gmra.mxu0 %vm612_vm1, %v5136_v2  ;;  %v6191_v21 = vpop.f32.mrf.mxu1  ;;  %v6195_v1 = vpop.f32.mrf.mxu0  ;;  %v7206_v2 = vld [vmem:[#allocation38_spill] sm:$0xff] }
  0xf5   : > { %4693 = vmatprep.mubr.msk.f32.mxu0 %vm612_vm1, %v5189_v53  ;;  %v7207_v53 = vld [vmem:[#allocation39_spill] sm:$0xff] }
  0xf6   : > { %4627 = vmatmul.mubr.msk.f32.gmra.mxu1 %vm612_vm1, %v5715_v14  ;;  %v6199_v3 = vpop.f32.mrf.mxu1 }
  0xf7   : > { %4629 = vmatprep.mubr.msk.f32.mxu1 %vm612_vm1, %v7205_v61 }
  0xf8   : > { %4694 = vmatmul.mubr.msk.f32.gmra.mxu0 %vm612_vm1, %v5197_v0 }
  0xf9   : > { %4696 = vmatprep.mubr.msk.f32.mxu0 %vm612_vm1, %v5269_v38  ;;  %v287_v38 = vld [vmem:[%s4944_s12 + $0x198] sm:$0xff] }
  0xfa   : > { %4630 = vmatmul.mubr.msk.f32.gmra.mxu1 %vm612_vm1, %v7206_v2 }
  0xfb   : > { %4632 = vmatprep.mubr.msk.f32.mxu1 %vm612_vm1, %v7207_v53  ;;  %v6207_v29 = vpop.f32.mrf.mxu0 }
  0xfc   : > { %4697 = vmatmul.mubr.msk.f32.gmra.mxu0 %vm612_vm1, %v5271_v42  ;;  %v6211_v45 = vpop.f32.mrf.mxu1  ;;  %v348_v42 = vmul.f32 %v5971_v60, %v287_v38 }
  0xfd   : > { %7208 = vst [vmem:[#allocation28_spill] sm:$0xff] %v6211_v45  ;;  %4699 = vmatprep.mubr.msk.f32.mxu0 %vm612_vm1, %v5335_v10  ;;  %v6217_v0 = vpop.f32.mrf.mxu0  ;;  %v288_v10 = vld [vmem:[%s4944_s12 + $0x1a0] sm:$0xff] }
  0xfe   : > { %4633 = vmatmul.mubr.msk.f32.gmra.mxu1 %vm612_vm1, %v5751_v33  ;;  %v6222_v44 = vpop.f32.mrf.mxu1  ;;  %v409_v38 = vadd.f32 %v5988_v55, %v348_v42 }
  0xff   : > { %4635 = vmatprep.mubr.msk.f32.mxu1 %vm612_vm1, %v7209_v5  ;;  %7210 = vst [vmem:[#allocation33_spill] sm:$0xff] %v6222_v44  ;;  %v7214_v44 = vmax.f32 %v5999_v28, 0.0 }
 0x100   : > { %4700 = vmatmul.mubr.msk.f32.gmra.mxu0 %vm612_vm1, %v5342_v47  ;;  %v6261_v42 = vmax.f32 %v409_v38, 0.0  ;;  %v7217_v38 = vld [vmem:[#allocation24_spill] sm:$0xff] }
 0x101   : > { %4702 = vmatprep.mubr.msk.f32.mxu0 %vm612_vm1, %v5385_v23  ;;  %v6232_v11 = vpop.f32.mrf.mxu0  ;;  %v349_v23 = vmul.f32 %v5971_v60, %v288_v10  ;;  %v2150_v10 = vrot.slane %v6003_v40, 2  ;;  %v2153_v45 = vrot.slane %v7214_v44, 2 }
 0x102   : > { %4636 = vmatmul.mubr.msk.f32.gmra.mxu1 %vm612_vm1, %v5769_v63  ;;  %v6236_v43 = vpop.f32.mrf.mxu1 }
 0x103   : > { %4638 = vmatprep.mubr.msk.f32.mxu1 %vm612_vm1, %v5776_v16  ;;  %7211 = vst [vmem:[#allocation34_spill] sm:$0xff] %v6236_v43  ;;  %v6240_v47 = vpop.f32.mrf.mxu0  ;;  %v2151_v43 = vrot.slane %v6005_v52, 2 }
 0x104   : > { %4703 = vmatmul.mubr.msk.f32.gmra.mxu0 %vm612_vm1, %v7168_v58  ;;  %v6250_v49 = vpop.f32.mrf.mxu1 }
 0x105   : > { %4705 = vmatprep.mubr.msk.f32.mxu0 %vm612_vm1, %v5446_v22  ;;  %7212 = vst [vmem:[#allocation35_spill] sm:$0xff] %v6250_v49  ;;  %v410_v22 = vadd.f32 %v5988_v55, %v349_v23  ;;  %v6291_v28 = vsel %vm1191_vm2, %v2151_v43, %v2153_v45 }
 0x106   : > { %4639 = vmatmul.mubr.msk.f32.gmra.mxu1 %vm612_vm1, %v5787_v35  ;;  %7219 = vst [vmem:[#allocation40_spill] sm:$0xff] %v6291_v28 }
 0x107   : > { %4641 = vmatprep.mubr.msk.f32.mxu1 %vm612_vm1, %v5794_v62  ;;  %v6254_v58 = vpop.f32.mrf.mxu0  ;;  %v6278_v23 = vmax.f32 %v410_v22, 0.0  ;;  %v7221_v22 = vld [vmem:[#allocation8_spill] sm:$0xff] }
 0x108   : > { %4706 = vmatmul.mubr.msk.f32.gmra.mxu0 %vm612_vm1, %v5452_v36 }
 0x109   : > { %4708 = vmatprep.mubr.msk.f32.mxu0 %vm612_vm1, %v6003_v40  ;;  %v6269_v49 = vpop.f32.mrf.mxu0  ;;  %v6276_v40 = vsel %vm1191_vm2, %v2150_v10, %v2151_v43  ;;  %7216 = vst [vmem:[#allocation38_spill] sm:$0xff] %v6278_v23 }
 0x10a   : > { %4642 = vmatmul.mubr.msk.f32.gmra.mxu1 %vm612_vm1, %v5805_v15  ;;  %v6267_v36 = vpop.f32.mrf.mxu1  ;;  %7215 = vst [vmem:[#allocation37_spill] sm:$0xff] %v6276_v40 }
 0x10b   : > { %4644 = vmatprep.mubr.msk.f32.mxu1 %vm612_vm1, %v5812_v54  ;;  %7213 = vst [vmem:[#allocation36_spill] sm:$0xff] %v6267_v36 }
 0x10c   : > { %4709 = vmatmul.mubr.msk.f32.gmra.mxu0 %vm612_vm1, %v6005_v52  ;;  %v6284_v36 = vpop.f32.mrf.mxu1 }
 0x10d   : > { %4711 = vmatprep.mubr.msk.f32.mxu0 %vm612_vm1, %v6261_v42  ;;  %7218 = vst [vmem:[#allocation39_spill] sm:$0xff] %v6284_v36 }
 0x10e   : > { %4645 = vmatmul.mubr.msk.f32.gmra.mxu1 %vm612_vm1, %v7217_v38 }
 0x10f   : > { %4647 = vmatprep.mubr.msk.f32.mxu1 %vm612_vm1, %v6276_v40  ;;  %v6288_v44 = vpop.f32.mrf.mxu0 }
 0x110   : > { %4712 = vmatmul.mubr.msk.f32.gmra.mxu0 %vm612_vm1, %v6278_v23  ;;  %v7225_v23 = vld [vmem:[#allocation14_spill] sm:$0xff] }
 0x111   : > { %v6295_v52 = vpop.f32.mrf.mxu0  ;;  %4794 = vmatprep.mubr.msk.f32.mxu0 %vm612_vm1, %v5529_v30  ;;  %v6299_v10 = vpop.f32.mrf.mxu1  ;;  %v7223_v30 = vld [vmem:[#allocation10_spill] sm:$0xff] }
 0x112   : > { %7220 = vst [vmem:[#allocation41_spill] sm:$0xff] %v6299_v10  ;;  %4648 = vmatmul.mubr.msk.f32.gmra.mxu1 %vm612_vm1, %v6291_v28  ;;  %v7224_v28 = vld [vmem:[#allocation12_spill] sm:$0xff] }
 0x113   : > { %4730 = vmatprep.mubr.msk.f32.mxu1 %vm612_vm1, %v7221_v22  ;;  %v4412_v36 = vpop.f32.mrf.mxu0  ;;  %v6305_v40 = vpop.f32.mrf.mxu1 }
 0x114   : > { %7222 = vst [vmem:[#allocation8_spill] sm:$0xff] %v6305_v40  ;;  %4795 = vmatmul.mubr.msk.f32.vlgmr.msra.gmra.mxu0 %vm612_vm1, %v5544_v31 }
 0x115   : > { %v1411_v43 = vpop.f32.mrf.mxu0  ;;  %4797 = vmatprep.mubr.msk.f32.mxu0 %vm612_vm1, %v5554_v25  ;;  %v4348_v45 = vpop.f32.mrf.mxu1 }
 0x116   : > { %4731 = vmatmul.mubr.msk.f32.vlgmr.msra.gmra.mxu1 %vm612_vm1, %v7223_v30  ;;  %v1038_v10 = vadd.f32 %v4348_v45, %v6095_v18  ;;  %v7226_v30 = vld [vmem:[#allocation16_spill] sm:$0xff] }
 0x117   : > { %4733 = vmatprep.mubr.msk.f32.mxu1 %vm612_vm1, %v7224_v28  ;;  %v1032_v22 = vpop.f32.mrf.mxu1  ;;  %v4415_v38 = vpop.f32.mrf.mxu0 }
 0x118   : > { %4798 = vmatmul.mubr.msk.f32.gmra.mxu0 %vm612_vm1, %v5568_v7  ;;  %v6318_v40 = vadd.f32 %v4412_v36, %v1038_v10  ;;  %v1033_v31 = vadd.f32 %v1032_v22, %v6113_v24  ;;  %v7227_v10 = vld [vmem:[#allocation18_spill] sm:$0xff] }
 0x119   : > { %4800 = vmatprep.mubr.msk.f32.mxu0 %vm612_vm1, %v5578_v41  ;;  %v1421_v18 = vpop.f32.mrf.mxu0 }
 0x11a   : > { %v4351_v25 = vpop.f32.mrf.mxu1  ;;  %4734 = vmatmul.mubr.msk.f32.gmra.mxu1 %vm612_vm1, %v7225_v23  ;;  %v6325_v45 = vadd.f32 %v1411_v43, %v1033_v31  ;;  %v7228_v31 = vld [vmem:[#allocation20_spill] sm:$0xff] }
 0x11b   : > { %v1048_v28 = vadd.f32 %v4351_v25, %v6131_v8  ;;  %4736 = vmatprep.mubr.msk.f32.mxu1 %vm612_vm1, %v7226_v30 }
 0x11c   : > { %v1042_v7 = vpop.f32.mrf.mxu1  ;;  %v4418_v36 = vpop.f32.mrf.mxu0  ;;  %4801 = vmatmul.mubr.msk.f32.gmra.mxu0 %vm612_vm1, %v5592_v59 }
 0x11d   : > { %v6332_v24 = vadd.f32 %v4415_v38, %v1048_v28  ;;  %v1043_v41 = vadd.f32 %v1042_v7, %v6142_v6  ;;  %4803 = vmatprep.mubr.msk.f32.mxu0 %vm612_vm1, %v5602_v27  ;;  %v7230_v7 = vld [vmem:[#allocation25_spill] sm:$0xff] }
 0x11e   : > { %v4354_v23 = vpop.f32.mrf.mxu1  ;;  %4737 = vmatmul.mubr.msk.f32.gmra.mxu1 %vm612_vm1, %v7227_v10  ;;  %v1431_v8 = vpop.f32.mrf.mxu0 }
 0x11f   : > { %v6339_v43 = vadd.f32 %v1421_v18, %v1043_v41  ;;  %v1058_v22 = vadd.f32 %v4354_v23, %v6155_v32  ;;  %4739 = vmatprep.mubr.msk.f32.mxu1 %vm612_vm1, %v7228_v31  ;;  %v7229_v18 = vld [vmem:[#allocation22_spill] sm:$0xff]  ;;  %v7231_v23 = vld [vmem:[#allocation27_spill] sm:$0xff] }
 0x120   : > { %v1052_v59 = vpop.f32.mrf.mxu1  ;;  %v4421_v38 = vpop.f32.mrf.mxu0  ;;  %4804 = vmatmul.mubr.msk.f32.gmra.mxu0 %vm612_vm1, %v5616_v57 }
 0x121   : > { %v6346_v6 = vadd.f32 %v4418_v36, %v1058_v22  ;;  %v1053_v27 = vadd.f32 %v1052_v59, %v6171_v37  ;;  %4806 = vmatprep.mubr.msk.f32.mxu0 %vm612_vm1, %v7201_v46  ;;  %v7232_v22 = vld [vmem:[#allocation29_spill] sm:$0xff] }
 0x122   : > { %v4357_v25 = vpop.f32.mrf.mxu1  ;;  %4740 = vmatmul.mubr.msk.f32.gmra.mxu1 %vm612_vm1, %v7229_v18  ;;  %v1441_v32 = vpop.f32.mrf.mxu0  ;;  %v7234_v18 = vld [vmem:[#allocation2_spill] sm:$0xff] }
 0x123   : > { %v6353_v28 = vadd.f32 %v1431_v8, %v1053_v27  ;;  %v1068_v30 = vadd.f32 %v4357_v25, %v6183_v12  ;;  %4742 = vmatprep.mubr.msk.f32.mxu1 %vm612_vm1, %v7230_v7  ;;  %v7235_v7 = vld [vmem:[#allocation3_spill] sm:$0xff] }
 0x124   : > { %v1062_v57 = vpop.f32.mrf.mxu1  ;;  %v4424_v36 = vpop.f32.mrf.mxu0  ;;  %4807 = vmatmul.mubr.msk.f32.gmra.mxu0 %vm612_vm1, %v5640_v17 }
 0x125   : > { %v6360_v37 = vadd.f32 %v4421_v38, %v1068_v30  ;;  %v1063_v46 = vadd.f32 %v1062_v57, %v6195_v1  ;;  %4809 = vmatprep.mubr.msk.f32.mxu0 %vm612_vm1, %v7202_v19  ;;  %v7233_v38 = vld [vmem:[#allocation31_spill] sm:$0xff] }
 0x126   : > { %v4360_v41 = vpop.f32.mrf.mxu1  ;;  %4743 = vmatmul.mubr.msk.f32.gmra.mxu1 %vm612_vm1, %v7231_v23  ;;  %v1451_v12 = vpop.f32.mrf.mxu0 }
 0x127   : > { %v6367_v10 = vadd.f32 %v1441_v32, %v1063_v46  ;;  %v1078_v8 = vadd.f32 %v4360_v41, %v6207_v29  ;;  %4745 = vmatprep.mubr.msk.f32.mxu1 %vm612_vm1, %v7232_v22  ;;  %v7236_v46 = vld [vmem:[#allocation5_spill] sm:$0xff] }
 0x128   : > { %v1072_v17 = vpop.f32.mrf.mxu1  ;;  %v4427_v31 = vpop.f32.mrf.mxu0  ;;  %4810 = vmatmul.mubr.msk.f32.gmra.mxu0 %vm612_vm1, %v7203_v50 }
 0x129   : > { %v6374_v1 = vadd.f32 %v4424_v36, %v1078_v8  ;;  %v1073_v19 = vadd.f32 %v1072_v17, %v6217_v0  ;;  %4812 = vmatprep.mubr.msk.f32.mxu0 %vm612_vm1, %v5674_v26  ;;  %v7238_v17 = vld [vmem:[#allocation9_spill] sm:$0xff] }
 0x12a   : > { %v4363_v59 = vpop.f32.mrf.mxu1  ;;  %4746 = vmatmul.mubr.msk.f32.gmra.mxu1 %vm612_vm1, %v7233_v38  ;;  %v1461_v29 = vpop.f32.mrf.mxu0 }
 0x12b   : > { %v6381_v27 = vadd.f32 %v1451_v12, %v1073_v19  ;;  %v1088_v25 = vadd.f32 %v4363_v59, %v6232_v11  ;;  %4748 = vmatprep.mubr.msk.f32.mxu1 %vm612_vm1, %v7234_v18  ;;  %v7237_v12 = vld [vmem:[#allocation7_spill] sm:$0xff] }
 0x12c   : > { %v1082_v50 = vpop.f32.mrf.mxu1  ;;  %v4430_v32 = vpop.f32.mrf.mxu0  ;;  %4813 = vmatmul.mubr.msk.f32.gmra.mxu0 %vm612_vm1, %v5695_v20  ;;  %v7239_v59 = vld [vmem:[#allocation11_spill] sm:$0xff] }
 0x12d   : > { %v6388_v0 = vadd.f32 %v4427_v31, %v1088_v25  ;;  %v1083_v26 = vadd.f32 %v1082_v50, %v6240_v47  ;;  %4815 = vmatprep.mubr.msk.f32.mxu0 %vm612_vm1, %v7204_v4  ;;  %v7240_v25 = vld [vmem:[#allocation13_spill] sm:$0xff] }
 0x12e   : > { %v4366_v30 = vpop.f32.mrf.mxu1  ;;  %4749 = vmatmul.mubr.msk.f32.gmra.mxu1 %vm612_vm1, %v7235_v7  ;;  %v1471_v11 = vpop.f32.mrf.mxu0 }
 0x12f   : > { %v6395_v57 = vadd.f32 %v1461_v29, %v1083_v26  ;;  %v1098_v36 = vadd.f32 %v4366_v30, %v6254_v58  ;;  %4751 = vmatprep.mubr.msk.f32.mxu1 %vm612_vm1, %v7236_v46  ;;  %v289_v26 = vld [vmem:[%s4944_s12 + $0x1a8] sm:$0x3]  ;;  %s3905_s12 = sshll.u32 %s7344_s19, 8 }
 0x130   : > { %v1092_v20 = vpop.f32.mrf.mxu1  ;;  %v4433_v41 = vpop.f32.mrf.mxu0  ;;  %4816 = vmatmul.mubr.msk.f32.gmra.mxu0 %vm612_vm1, %v5715_v14  ;;  %v350_v46 = vmul.f32 %v5971_v60, %v289_v26  ;;  %v7251_v26 = vld [vmem:[#allocation33_spill] sm:$0xff]  ;;  %s6755_s23 = scalar_lea.vmem %s7014_s4, %s3905_s12 }
 0x131   : > { %v6402_v47 = vadd.f32 %v4430_v32, %v1098_v36  ;;  %v1093_v4 = vadd.f32 %v1092_v20, %v6269_v49  ;;  %4818 = vmatprep.mubr.msk.f32.mxu0 %vm612_vm1, %v7205_v61  ;;  %v7241_v32 = vld [vmem:[#allocation15_spill] sm:$0xff] }
 0x132   : > { %v4369_v23 = vpop.f32.mrf.mxu1  ;;  %4752 = vmatmul.mubr.msk.f32.gmra.mxu1 %vm612_vm1, %v7237_v12  ;;  %v1481_v58 = vpop.f32.mrf.mxu0  ;;  %v7244_v12 = vld [vmem:[#allocation21_spill] sm:$0xff] }
 0x133   : > { %v6409_v8 = vadd.f32 %v1471_v11, %v1093_v4  ;;  %v1108_v22 = vadd.f32 %v4369_v23, %v6288_v44  ;;  %4754 = vmatprep.mubr.msk.f32.mxu1 %vm612_vm1, %v7238_v17  ;;  %v7242_v11 = vld [vmem:[#allocation17_spill] sm:$0xff]  ;;  %v7245_v17 = vld [vmem:[#allocation23_spill] sm:$0xff] }
 0x134   : > { %v1102_v14 = vpop.f32.mrf.mxu1  ;;  %v4436_v31 = vpop.f32.mrf.mxu0  ;;  %4819 = vmatmul.mubr.msk.f32.gmra.mxu0 %vm612_vm1, %v7206_v2 }
 0x135   : > { %v6416_v49 = vadd.f32 %v4433_v41, %v1108_v22  ;;  %v1103_v61 = vadd.f32 %v1102_v14, %v6295_v52  ;;  %4821 = vmatprep.mubr.msk.f32.mxu0 %vm612_vm1, %v7207_v53  ;;  %v7243_v41 = vld [vmem:[#allocation19_spill] sm:$0xff] }
 0x136   : > { %v4372_v19 = vpop.f32.mrf.mxu1  ;;  %4755 = vmatmul.mubr.msk.f32.gmra.mxu1 %vm612_vm1, %v7239_v59  ;;  %v1491_v44 = vpop.f32.mrf.mxu0 }
 0x137   : > { %v6423_v38 = vadd.f32 %v1481_v58, %v1103_v61  ;;  %v1118_v29 = vadd.f32 %v4372_v19, %v6097_v48  ;;  %4757 = vmatprep.mubr.msk.f32.mxu1 %vm612_vm1, %v7240_v25  ;;  %v7246_v61 = vld [vmem:[#allocation26_spill] sm:$0xff] }
 0x138   : > { %v1112_v2 = vpop.f32.mrf.mxu1  ;;  %v4439_v18 = vpop.f32.mrf.mxu0  ;;  %4822 = vmatmul.mubr.msk.f32.gmra.mxu0 %vm612_vm1, %v5751_v33 }
 0x139   : > { %v6430_v52 = vadd.f32 %v4436_v31, %v1118_v29  ;;  %v1113_v53 = vadd.f32 %v1112_v2, %v6115_v13  ;;  %4824 = vmatprep.mubr.msk.f32.mxu0 %vm612_vm1, %v7209_v5  ;;  %v7247_v29 = vld [vmem:[#allocation38_spill] sm:$0xff] }
 0x13a   : > { %v4375_v50 = vpop.f32.mrf.mxu1  ;;  %4758 = vmatmul.mubr.msk.f32.gmra.mxu1 %vm612_vm1, %v7241_v32  ;;  %v1501_v48 = vpop.f32.mrf.mxu0  ;;  %v2974_v25 = vrot.slane %v7247_v29, 2  ;;  %v2698_v32 = vrot.slane %v6261_v42, 1 }
 0x13b   : > { %v6438_v30 = vadd.f32 %v1491_v44, %v1113_v53  ;;  %v1128_v7 = vadd.f32 %v4375_v50, %v6133_v56  ;;  %4760 = vmatprep.mubr.msk.f32.mxu1 %vm612_vm1, %v7242_v11  ;;  %v2973_v44 = vrot.slane %v6261_v42, 2  ;;  %v7249_v53 = vld [vmem:[#allocation30_spill] sm:$0xff]  ;;  %v7252_v11 = vld [vmem:[#allocation37_spill] sm:$0xff] }
 0x13c   : > { %v1122_v33 = vpop.f32.mrf.mxu1  ;;  %v4442_v36 = vpop.f32.mrf.mxu0  ;;  %4825 = vmatmul.mubr.msk.f32.gmra.mxu0 %vm612_vm1, %v5769_v63  ;;  %v7254_v42 = vld [vmem:[#allocation34_spill] sm:$0xff] }
 0x13d   : > { %v6445_v13 = vadd.f32 %v4439_v18, %v1128_v7  ;;  %v1123_v5 = vadd.f32 %v1122_v33, %v6151_v39  ;;  %4827 = vmatprep.mubr.msk.f32.mxu0 %vm612_vm1, %v5776_v16  ;;  %v411_v39 = vadd.f32 %v5988_v55, %v350_v46 }
 0x13e   : > { %v4378_v20 = vpop.f32.mrf.mxu1  ;;  %4761 = vmatmul.mubr.msk.f32.gmra.mxu1 %vm612_vm1, %v7243_v41  ;;  %v1511_v56 = vpop.f32.mrf.mxu0 }
 0x13f   : > { %v6453_v4 = vadd.f32 %v1501_v48, %v1123_v5  ;;  %v1138_v23 = vadd.f32 %v4378_v20, %v6169_v34  ;;  %4763 = vmatprep.mubr.msk.f32.mxu1 %vm612_vm1, %v7244_v12  ;;  %v7253_v5 = vld [vmem:[#allocation32_spill] sm:$0xff]  ;;  %v2975_v20 = vsel %vm1191_vm2, %v2973_v44, %v2974_v25 }
 0x140   : > { %v1132_v63 = vpop.f32.mrf.mxu1  ;;  %v4445_v58 = vpop.f32.mrf.mxu0  ;;  %4828 = vmatmul.mubr.msk.f32.gmra.mxu0 %vm612_vm1, %v5787_v35 }
 0x141   : > { %v6460_v16 = vadd.f32 %v4442_v36, %v1138_v23  ;;  %v1133_v60 = vadd.f32 %v1132_v63, %v6179_v9  ;;  %4830 = vmatprep.mubr.msk.f32.mxu0 %vm612_vm1, %v5794_v62  ;;  %v465_v9 = vmax.f32 %v411_v39, 0.0  ;;  %v7255_v23 = vld [vmem:[#allocation4_spill] sm:$0xff] }
 0x142   : > { %v4381_v22 = vpop.f32.mrf.mxu1  ;;  %4764 = vmatmul.mubr.msk.f32.gmra.mxu1 %vm612_vm1, %v7245_v17  ;;  %v1521_v34 = vpop.f32.mrf.mxu0  ;;  %v7257_v17 = vld [vmem:[#allocation35_spill] sm:$0xff] }
 0x143   : > { %v6468_v14 = vadd.f32 %v1511_v56, %v1133_v60  ;;  %v1148_v31 = vadd.f32 %v4381_v22, %v6191_v21  ;;  %4766 = vmatprep.mubr.msk.f32.mxu1 %vm612_vm1, %v7246_v61  ;;  %v2976_v33 = vrot.slane %v465_v9, 2  ;;  %v2701_v12 = vrot.slane %v465_v9, 1  ;;  %v7256_v60 = vld [vmem:[#allocation40_spill] sm:$0xff] }
 0x144   : > { %v1142_v35 = vpop.f32.mrf.mxu1  ;;  %v4448_v19 = vpop.f32.mrf.mxu0  ;;  %4831 = vmatmul.mubr.msk.f32.gmra.mxu0 %vm612_vm1, %v5805_v15  ;;  %v7248_v15 = vld [vmem:[#allocation28_spill] sm:$0xff] }
 0x145   : > { %v6475_v62 = vadd.f32 %v4445_v58, %v1148_v31  ;;  %v1143_v55 = vadd.f32 %v1142_v35, %v6199_v3  ;;  %4833 = vmatprep.mubr.msk.f32.mxu0 %vm612_vm1, %v5812_v54  ;;  %v7250_v54 = vld [vmem:[#allocation24_spill] sm:$0xff]  ;;  %v2977_v31 = vsel %vm1191_vm2, %v2974_v25, %v2976_v33  ;;  %v7258_v35 = vld [vmem:[#allocation6_spill] sm:$0xff]  ;;  %v7260_v25 = vld [vmem:[#allocation39_spill] sm:$0xff] }
 0x146   : > { %v4384_v59 = vpop.f32.mrf.mxu1  ;;  %4767 = vmatmul.mubr.msk.f32.gmra.mxu1 %vm612_vm1, %v7197_v51  ;;  %v1531_v21 = vpop.f32.mrf.mxu0  ;;  %v2699_v51 = vrot.slane %v7247_v29, 1  ;;  %v7259_v9 = vld [vmem:[#allocation36_spill] sm:$0xff] }
 0x147   : > { %v6484_v2 = vadd.f32 %v1521_v34, %v1143_v55  ;;  %v1158_v18 = vadd.f32 %v4384_v59, %v7248_v15  ;;  %4769 = vmatprep.mubr.msk.f32.mxu1 %vm612_vm1, %v7249_v53 }
 0x148   : > { %v1152_v3 = vpop.f32.mrf.mxu1  ;;  %v4451_v50 = vpop.f32.mrf.mxu0  ;;  %4834 = vmatmul.mubr.msk.f32.gmra.mxu0 %vm612_vm1, %v7250_v54  ;;  %v2700_v39 = vsel %vm522_vm0, %v2698_v32, %v2699_v51  ;;  %v7261_v54 = vld [vmem:[#allocation41_spill] sm:$0xff] }
 0x149   : > { %v6493_v48 = vadd.f32 %v4448_v19, %v1158_v18  ;;  %v1153_v7 = vadd.f32 %v1152_v3, %v7251_v26  ;;  %4836 = vmatprep.mubr.msk.f32.mxu0 %vm612_vm1, %v7252_v11 }
 0x14a   : > { %v4387_v36 = vpop.f32.mrf.mxu1  ;;  %4770 = vmatmul.mubr.msk.f32.gmra.mxu1 %vm612_vm1, %v7253_v5  ;;  %v1541_v46 = vpop.f32.mrf.mxu0 }
 0x14b   : > { %v6501_v41 = vadd.f32 %v1531_v21, %v1153_v7  ;;  %v1168_v56 = vadd.f32 %v4387_v36, %v7254_v42  ;;  %4772 = vmatprep.mubr.msk.f32.mxu1 %vm612_vm1, %v7255_v23  ;;  %v2702_v21 = vsel %vm522_vm0, %v2699_v51, %v2701_v12  ;;  %v7262_v51 = vld [vmem:[#allocation8_spill] sm:$0xff] }
 0x14c   : > { %v1162_v63 = vpop.f32.mrf.mxu1  ;;  %v4454_v58 = vpop.f32.mrf.mxu0  ;;  %4837 = vmatmul.mubr.msk.f32.gmra.mxu0 %vm612_vm1, %v7256_v60 }
 0x14d   : > { %v6509_v22 = vadd.f32 %v4451_v50, %v1168_v56  ;;  %v1163_v34 = vadd.f32 %v1162_v63, %v7257_v17  ;;  %4839 = vmatprep.mubr.msk.f32.mxu0 %vm612_vm1, %v2975_v20 }
 0x14e   : > { %v4390_v61 = vpop.f32.mrf.mxu1  ;;  %4773 = vmatmul.mubr.msk.f32.gmra.mxu1 %vm612_vm1, %v7258_v35  ;;  %v1551_v19 = vpop.f32.mrf.mxu0 }
 0x14f   : > { %v6516_v55 = vadd.f32 %v1541_v46, %v1163_v34  ;;  %v1178_v59 = vadd.f32 %v4390_v61, %v7259_v9  ;;  %4775 = vmatprep.mubr.msk.f32.mxu1 %vm612_vm1, %v2700_v39 }
 0x150   : > { %v1172_v44 = vpop.f32.mrf.mxu1  ;;  %v4457_v29 = vpop.f32.mrf.mxu0  ;;  %4840 = vmatmul.mubr.msk.f32.gmra.mxu0 %vm612_vm1, %v2977_v31 }
 0x151   : > { %v6522_v15 = vadd.f32 %v4454_v58, %v1178_v59  ;;  %v1173_v18 = vadd.f32 %v1172_v44, %v7260_v25 }
 0x152   : > { %v4393_v53 = vpop.f32.mrf.mxu1  ;;  %4776 = vmatmul.mubr.msk.f32.gmra.mxu1 %vm612_vm1, %v2702_v21  ;;  %v1561_v3 = vpop.f32.mrf.mxu0 }
 0x153   : > { %v6526_v50 = vadd.f32 %v1551_v19, %v1173_v18  ;;  %v1188_v32 = vadd.f32 %v4393_v53, %v7261_v54 }
 0x154   : > { %v1182_v26 = vpop.f32.mrf.mxu1  ;;  %v4540_v7 = vpop.f32.mrf.mxu0 }
 0x155   : > { %v6529_v11 = vadd.f32 %v4457_v29, %v1188_v32  ;;  %v1183_v33 = vadd.f32 %v1182_v26, %v7262_v51 }
 0x156   : > { %v4476_v36 = vpop.f32.mrf.mxu1  ;;  %v1959_v5 = vpop.f32.mrf.mxu0 }
 0x157   : > { %v6532_v46 = vadd.f32 %v1561_v3, %v1183_v33  ;;  %v1843_v20 = vadd.f32 %v4476_v36, %v6318_v40 }
 0x158   : > { %v1683_v42 = vpop.f32.mrf.mxu1  ;;  %v4543_v56 = vpop.f32.mrf.mxu0 }
 0x159   : > { %v6535_v23 = vadd.f32 %v4540_v7, %v1843_v20  ;;  %v1842_v12 = vadd.f32 %v1683_v42, %v6325_v45 }
 0x15a   : > { %v4479_v63 = vpop.f32.mrf.mxu1  ;;  %v1969_v58 = vpop.f32.mrf.mxu0 }
 0x15b   : > { %v6538_v60 = vadd.f32 %v1959_v5, %v1842_v12  ;;  %v1845_v39 = vadd.f32 %v4479_v63, %v6332_v24 }
 0x15c   : > { %v1693_v17 = vpop.f32.mrf.mxu1  ;;  %v4546_v34 = vpop.f32.mrf.mxu0 }
 0x15d   : > { %v6541_v31 = vadd.f32 %v4543_v56, %v1845_v39  ;;  %v1844_v61 = vadd.f32 %v1693_v17, %v6339_v43 }
 0x15e   : > { %v4482_v35 = vpop.f32.mrf.mxu1  ;;  %v1979_v40 = vpop.f32.mrf.mxu0 }
 0x15f   : > { %v6544_v19 = vadd.f32 %v1969_v58, %v1844_v61  ;;  %v1847_v9 = vadd.f32 %v4482_v35, %v6346_v6 }
 0x160   : > { %v1703_v59 = vpop.f32.mrf.mxu1  ;;  %v4549_v45 = vpop.f32.mrf.mxu0 }
 0x161   : > { %v6547_v21 = vadd.f32 %v4546_v34, %v1847_v9  ;;  %v1846_v44 = vadd.f32 %v1703_v59, %v6353_v28 }
 0x162   : > { %v4485_v29 = vpop.f32.mrf.mxu1  ;;  %v1989_v24 = vpop.f32.mrf.mxu0 }
 0x163   : > { %v6550_v25 = vadd.f32 %v1979_v40, %v1846_v44  ;;  %v1849_v18 = vadd.f32 %v4485_v29, %v6360_v37 }
 0x164   : > { %v1713_v53 = vpop.f32.mrf.mxu1  ;;  %v4552_v43 = vpop.f32.mrf.mxu0 }
 0x165   : > { %v6553_v3 = vadd.f32 %v4549_v45, %v1849_v18  ;;  %v1848_v54 = vadd.f32 %v1713_v53, %v6367_v10 }
 0x166   : > { %v4488_v32 = vpop.f32.mrf.mxu1  ;;  %v1999_v6 = vpop.f32.mrf.mxu0 }
 0x167   : > { %v6556_v26 = vadd.f32 %v1989_v24, %v1848_v54  ;;  %v1851_v7 = vadd.f32 %v4488_v32, %v6374_v1 }
 0x168   : > { %v1723_v51 = vpop.f32.mrf.mxu1  ;;  %v4555_v28 = vpop.f32.mrf.mxu0 }
 0x169   : > { %v6559_v33 = vadd.f32 %v4552_v43, %v1851_v7  ;;  %v1850_v36 = vadd.f32 %v1723_v51, %v6381_v27 }
 0x16a   : > { %v4491_v5 = vpop.f32.mrf.mxu1  ;;  %v2009_v37 = vpop.f32.mrf.mxu0 }
 0x16b   : > { %v6562_v20 = vadd.f32 %v1999_v6, %v1850_v36  ;;  %v1853_v42 = vadd.f32 %v4491_v5, %v6388_v0 }
 0x16c   : > { %v1733_v56 = vpop.f32.mrf.mxu1  ;;  %v4558_v10 = vpop.f32.mrf.mxu0 }
 0x16d   : > { %v6565_v12 = vadd.f32 %v4555_v28, %v1853_v42  ;;  %v1852_v63 = vadd.f32 %v1733_v56, %v6395_v57 }
 0x16e   : > { %v4494_v58 = vpop.f32.mrf.mxu1  ;;  %v2019_v1 = vpop.f32.mrf.mxu0 }
 0x16f   : > { %v6568_v39 = vadd.f32 %v2009_v37, %v1852_v63  ;;  %v1855_v17 = vadd.f32 %v4494_v58, %v6402_v47 }
 0x170   : > { %v1743_v34 = vpop.f32.mrf.mxu1  ;;  %v4561_v27 = vpop.f32.mrf.mxu0 }
 0x171   : > { %v6571_v61 = vadd.f32 %v4558_v10, %v1855_v17  ;;  %v1854_v35 = vadd.f32 %v1743_v34, %v6409_v8 }
 0x172   : > { %v4497_v40 = vpop.f32.mrf.mxu1  ;;  %v2029_v0 = vpop.f32.mrf.mxu0 }
 0x173   : > { %v6574_v9 = vadd.f32 %v2019_v1, %v1854_v35  ;;  %v1857_v59 = vadd.f32 %v4497_v40, %v6416_v49 }
 0x174   : > { %v1753_v45 = vpop.f32.mrf.mxu1  ;;  %v4564_v57 = vpop.f32.mrf.mxu0 }
 0x175   : > { %v6577_v44 = vadd.f32 %v4561_v27, %v1857_v59  ;;  %v1856_v29 = vadd.f32 %v1753_v45, %v6423_v38 }
 0x176   : > { %v4500_v24 = vpop.f32.mrf.mxu1  ;;  %v2039_v47 = vpop.f32.mrf.mxu0 }
 0x177   : > { %v6580_v18 = vadd.f32 %v2029_v0, %v1856_v29  ;;  %v1859_v53 = vadd.f32 %v4500_v24, %v6430_v52 }
 0x178   : > { %v1763_v43 = vpop.f32.mrf.mxu1  ;;  %v4567_v8 = vpop.f32.mrf.mxu0 }
 0x179   : > { %v6583_v54 = vadd.f32 %v4564_v57, %v1859_v53  ;;  %v1858_v32 = vadd.f32 %v1763_v43, %v6438_v30 }
 0x17a   : > { %v4503_v6 = vpop.f32.mrf.mxu1  ;;  %v2049_v49 = vpop.f32.mrf.mxu0 }
 0x17b   : > { %v6586_v7 = vadd.f32 %v2039_v47, %v1858_v32  ;;  %v1861_v51 = vadd.f32 %v4503_v6, %v6445_v13 }
 0x17c   : > { %v1773_v28 = vpop.f32.mrf.mxu1  ;;  %v4570_v38 = vpop.f32.mrf.mxu0 }
 0x17d   : > { %v6589_v36 = vadd.f32 %v4567_v8, %v1861_v51  ;;  %v1860_v5 = vadd.f32 %v1773_v28, %v6453_v4 }
 0x17e   : > { %v4506_v37 = vpop.f32.mrf.mxu1  ;;  %v2059_v52 = vpop.f32.mrf.mxu0 }
 0x17f   : > { %v6592_v42 = vadd.f32 %v2049_v49, %v1860_v5  ;;  %v1863_v56 = vadd.f32 %v4506_v37, %v6460_v16 }
 0x180   : > { %v1783_v10 = vpop.f32.mrf.mxu1  ;;  %v4573_v30 = vpop.f32.mrf.mxu0 }
 0x181   : > { %v6595_v63 = vadd.f32 %v4570_v38, %v1863_v56  ;;  %v1862_v58 = vadd.f32 %v1783_v10, %v6468_v14 }
 0x182   : > { %v4509_v1 = vpop.f32.mrf.mxu1  ;;  %v2069_v13 = vpop.f32.mrf.mxu0 }
 0x183   : > { %7263 = vst [vmem:[#allocation10_spill] sm:$0xff] %v6595_v63  ;;  %v6598_v17 = vadd.f32 %v2059_v52, %v1862_v58  ;;  %v1865_v34 = vadd.f32 %v4509_v1, %v6475_v62 }
 0x184   : > { %v1793_v27 = vpop.f32.mrf.mxu1  ;;  %v4576_v4 = vpop.f32.mrf.mxu0 }
 0x185   : > { %7264 = vst [vmem:[#allocation12_spill] sm:$0xff] %v6598_v17  ;;  %v6601_v35 = vadd.f32 %v4573_v30, %v1865_v34  ;;  %v1864_v40 = vadd.f32 %v1793_v27, %v6484_v2 }
 0x186   : > { %v4512_v0 = vpop.f32.mrf.mxu1  ;;  %v2079_v16 = vpop.f32.mrf.mxu0 }
 0x187   : > { %7265 = vst [vmem:[#allocation14_spill] sm:$0xff] %v6601_v35  ;;  %v6604_v59 = vadd.f32 %v2069_v13, %v1864_v40  ;;  %v1867_v45 = vadd.f32 %v4512_v0, %v6493_v48 }
 0x188   : > { %v1803_v57 = vpop.f32.mrf.mxu1  ;;  %v4579_v14 = vpop.f32.mrf.mxu0 }
 0x189   : > { %7266 = vst [vmem:[#allocation16_spill] sm:$0xff] %v6604_v59  ;;  %v6607_v29 = vadd.f32 %v4576_v4, %v1867_v45  ;;  %v1866_v24 = vadd.f32 %v1803_v57, %v6501_v41 }
 0x18a   : > { %v4515_v47 = vpop.f32.mrf.mxu1  ;;  %v2089_v62 = vpop.f32.mrf.mxu0 }
 0x18b   : > { %7267 = vst [vmem:[#allocation18_spill] sm:$0xff] %v6607_v29  ;;  %v6610_v53 = vadd.f32 %v2079_v16, %v1866_v24  ;;  %v1869_v43 = vadd.f32 %v4515_v47, %v6509_v22 }
 0x18c   : > { %v1813_v8 = vpop.f32.mrf.mxu1  ;;  %v4582_v2 = vpop.f32.mrf.mxu0 }
 0x18d   : > { %7268 = vst [vmem:[#allocation20_spill] sm:$0xff] %v6610_v53  ;;  %v6613_v32 = vadd.f32 %v4579_v14, %v1869_v43  ;;  %v1868_v6 = vadd.f32 %v1813_v8, %v6516_v55 }
 0x18e   : > { %v4518_v49 = vpop.f32.mrf.mxu1  ;;  %v2099_v48 = vpop.f32.mrf.mxu0 }
 0x18f   : > { %7269 = vst [vmem:[#allocation22_spill] sm:$0xff] %v6613_v32  ;;  %v6616_v51 = vadd.f32 %v2089_v62, %v1868_v6  ;;  %v1871_v28 = vadd.f32 %v4518_v49, %v6522_v15 }
 0x190   : > { %v1823_v38 = vpop.f32.mrf.mxu1  ;;  %v4585_v41 = vpop.f32.mrf.mxu0 }
 0x191   : > { %7270 = vst [vmem:[#allocation25_spill] sm:$0xff] %v6616_v51  ;;  %v6619_v5 = vadd.f32 %v4582_v2, %v1871_v28  ;;  %v1870_v37 = vadd.f32 %v1823_v38, %v6526_v50 }
 0x192   : > { %v4521_v52 = vpop.f32.mrf.mxu1  ;;  %v2109_v22 = vpop.f32.mrf.mxu0 }
 0x193   : > { %7271 = vst [vmem:[#allocation27_spill] sm:$0xff] %v6619_v5  ;;  %v6622_v56 = vadd.f32 %v2099_v48, %v1870_v37  ;;  %v1873_v10 = vadd.f32 %v4521_v52, %v6529_v11 }
 0x194   : > { %v1833_v30 = vpop.f32.mrf.mxu1  ;;  %v6625_v55 = vpop.f32.mrf.mxu0 }
 0x195   : > { %7272 = vst [vmem:[#allocation29_spill] sm:$0xff] %v6622_v56  ;;  %v6627_v58 = vadd.f32 %v4585_v41, %v1873_v10  ;;  %v1872_v1 = vadd.f32 %v1833_v30, %v6532_v46 }
 0x196   : > { %v4604_v15 = vpop.f32.mrf.mxu1  ;;  %v6630_v13 = vpop.f32.mrf.mxu0 }
 0x197   : > { %7273 = vst [vmem:[#allocation31_spill] sm:$0xff] %v6627_v58  ;;  %v6632_v34 = vadd.f32 %v2109_v22, %v1872_v1 }
 0x198   : > { %v2234_v27 = vpop.f32.mrf.mxu1  ;;  %v6634_v50 = vpop.f32.mrf.mxu0 }
 0x199   : > { %7274 = vst [vmem:[#allocation2_spill] sm:$0xff] %v6632_v34 }
 0x19a   : > { %v4607_v4 = vpop.f32.mrf.mxu1  ;;  %v6636_v40 = vpop.f32.mrf.mxu0 }
 0x19c   : > { %v2244_v0 = vpop.f32.mrf.mxu1  ;;  %v6638_v11 = vpop.f32.mrf.mxu0 }
 0x19e   : > { %v4610_v16 = vpop.f32.mrf.mxu1  ;;  %v6640_v45 = vpop.f32.mrf.mxu0 }
 0x1a0   : > { %v2254_v57 = vpop.f32.mrf.mxu1  ;;  %v6642_v14 = vpop.f32.mrf.mxu0 }
 0x1a2   : > { %v4613_v46 = vpop.f32.mrf.mxu1  ;;  %v6644_v24 = vpop.f32.mrf.mxu0 }
 0x1a4   : > { %v2264_v47 = vpop.f32.mrf.mxu1  ;;  %v6646_v62 = vpop.f32.mrf.mxu0 }
 0x1a6   : > { %v4616_v43 = vpop.f32.mrf.mxu1  ;;  %v6648_v8 = vpop.f32.mrf.mxu0 }
 0x1a8   : > { %v2274_v2 = vpop.f32.mrf.mxu1  ;;  %v6650_v6 = vpop.f32.mrf.mxu0 }
 0x1aa   : > { %v4619_v49 = vpop.f32.mrf.mxu1  ;;  %v6652_v48 = vpop.f32.mrf.mxu0 }
 0x1ac   : > { %v2284_v28 = vpop.f32.mrf.mxu1  ;;  %v6654_v38 = vpop.f32.mrf.mxu0 }
 0x1ae   : > { %v4622_v41 = vpop.f32.mrf.mxu1  ;;  %v6656_v37 = vpop.f32.mrf.mxu0 }
 0x1af   : > { %7275 = vst [vmem:[#allocation3_spill] sm:$0xff] %v6656_v37 }
 0x1b0   : > { %v6658_v52 = vpop.f32.mrf.mxu1  ;;  %v6660_v22 = vpop.f32.mrf.mxu0 }
 0x1b1   : > { %7276 = vst [vmem:[#allocation5_spill] sm:$0xff] %v6660_v22 }
 0x1b2   : > { %v6662_v10 = vpop.f32.mrf.mxu1  ;;  %v6664_v30 = vpop.f32.mrf.mxu0 }
 0x1b3   : > { %7277 = vst [vmem:[#allocation7_spill] sm:$0xff] %v6664_v30 }
 0x1b4   : > { %v6666_v1 = vpop.f32.mrf.mxu1  ;;  %v6668_v34 = vpop.f32.mrf.mxu0 }
 0x1b5   : > { %7278 = vst [vmem:[#allocation9_spill] sm:$0xff] %v6668_v34 }
 0x1b6   : > { %v6670_v58 = vpop.f32.mrf.mxu1  ;;  %v6672_v56 = vpop.f32.mrf.mxu0 }
 0x1b7   : > { %7279 = vst [vmem:[#allocation11_spill] sm:$0xff] %v6672_v56 }
 0x1b8   : > { %v6674_v5 = vpop.f32.mrf.mxu1  ;;  %v6676_v51 = vpop.f32.mrf.mxu0 }
 0x1b9   : > { %7280 = vst [vmem:[#allocation13_spill] sm:$0xff] %v6676_v51 }
 0x1ba   : > { %v6678_v32 = vpop.f32.mrf.mxu1  ;;  %v6680_v53 = vpop.f32.mrf.mxu0 }
 0x1bb   : > { %7281 = vst [vmem:[#allocation15_spill] sm:$0xff] %v6680_v53 }
 0x1bc   : > { %v6682_v29 = vpop.f32.mrf.mxu1  ;;  %v6684_v59 = vpop.f32.mrf.mxu0 }
 0x1bd   : > { %7282 = vst [vmem:[#allocation17_spill] sm:$0xff] %v6684_v59 }
 0x1be   : > { %v6686_v35 = vpop.f32.mrf.mxu1  ;;  %v6688_v17 = vpop.f32.mrf.mxu0 }
 0x1bf   : > { %7283 = vst [vmem:[#allocation19_spill] sm:$0xff] %v6686_v35  ;;  %7284 = vst [vmem:[#allocation21_spill] sm:$0xff] %v6688_v17 }
 0x1c0   : > { %v6690_v63 = vpop.f32.mrf.mxu1  ;;  %v6692_v34 = vpop.f32.mrf.mxu0 }
 0x1c1   : > { %7285 = vst [vmem:[#allocation23_spill] sm:$0xff] %v6690_v63  ;;  %7286 = vst [vmem:[#allocation26_spill] sm:$0xff] %v6692_v34 }
 0x1c2   : > { %v6694_v56 = vpop.f32.mrf.mxu1  ;;  %v6696_v30 = vpop.f32.mrf.mxu0 }
 0x1c3   : > { %7287 = vst [vmem:[#allocation38_spill] sm:$0xff] %v6694_v56  ;;  %7288 = vst [vmem:[#allocation28_spill] sm:$0xff] %v6696_v30 }
 0x1c4   : > { %v6698_v51 = vpop.f32.mrf.mxu1  ;;  %v6700_v22 = vpop.f32.mrf.mxu0 }
 0x1c5   : > { %7289 = vst [vmem:[#allocation30_spill] sm:$0xff] %v6698_v51  ;;  %7290 = vst [vmem:[#allocation24_spill] sm:$0xff] %v6700_v22 }
 0x1c6   : > { %v6702_v53 = vpop.f32.mrf.mxu1  ;;  %v6704_v37 = vpop.f32.mrf.mxu0 }
 0x1c7   : > { %7291 = vst [vmem:[#allocation33_spill] sm:$0xff] %v6702_v53  ;;  %7292 = vst [vmem:[#allocation37_spill] sm:$0xff] %v6704_v37 }
 0x1c8   : > { %v6706_v59 = vpop.f32.mrf.mxu1  ;;  %v6708_v35 = vpop.f32.mrf.mxu0 }
 0x1c9   : > { %7293 = vst [vmem:[#allocation32_spill] sm:$0xff] %v6706_v59  ;;  %7294 = vst [vmem:[#allocation34_spill] sm:$0xff] %v6708_v35  ;;  %v2394_v59 = vadd.f32 %v4604_v15, %v6535_v23  ;;  %v2400_v23 = vadd.f32 %v4613_v46, %v6553_v3  ;;  %v2399_v15 = vadd.f32 %v2264_v47, %v6556_v26 }
 0x1ca   : > { %v6710_v17 = vpop.f32.mrf.mxu1  ;;  %v6712_v63 = vpop.f32.mrf.mxu0  ;;  %v2405_v46 = vadd.f32 %v6658_v52, %v6574_v9  ;;  %v2407_v47 = vadd.f32 %v6666_v1, %v6580_v18  ;;  %v2412_v18 = vadd.f32 %v6678_v32, %v6589_v36 }
 0x1cb   : > { %7295 = vst [vmem:[#allocation4_spill] sm:$0xff] %v6710_v17  ;;  %7296 = vst [vmem:[#allocation40_spill] sm:$0xff] %v6712_v63  ;;  %v2393_v63 = vadd.f32 %v2234_v27, %v6538_v60  ;;  %v2402_v60 = vadd.f32 %v4616_v43, %v6559_v33 }
 0x1cc   : > { %v6714_v34 = vpop.f32.mrf.mxu1  ;;  %v6716_v56 = vpop.f32.mrf.mxu0 }
 0x1cd   : > { %7297 = vst [vmem:[#allocation35_spill] sm:$0xff] %v6714_v34  ;;  %7298 = vst [vmem:[#allocation6_spill] sm:$0xff] %v6716_v56  ;;  %v2396_v34 = vadd.f32 %v4607_v4, %v6541_v31  ;;  %v2395_v56 = vadd.f32 %v2244_v0, %v6544_v19  ;;  %v2401_v31 = vadd.f32 %v2274_v2, %v6562_v20 }
 0x1ce   : > { %v6718_v30 = vpop.f32.mrf.mxu1  ;;  %v6720_v51 = vpop.f32.mrf.mxu0  ;;  %v2404_v19 = vadd.f32 %v4619_v49, %v6565_v12  ;;  %v2665_v4 = vadd.f32 %v6630_v13, %v2393_v63  ;;  %v2406_v0 = vadd.f32 %v4622_v41, %v6571_v61  ;;  %v6759_v61 = vadd.f32 %v6644_v24, %v2399_v15 }
 0x1cf   : > { %7299 = vst [vmem:[#allocation36_spill] sm:$0xff] %v6718_v30  ;;  %7300 = vst [vmem:[#allocation39_spill] sm:$0xff] %v6720_v51  ;;  %v2398_v30 = vadd.f32 %v4610_v16, %v6547_v21  ;;  %v2397_v51 = vadd.f32 %v2254_v57, %v6550_v25  ;;  %v2403_v21 = vadd.f32 %v2284_v28, %v6568_v39 }
 0x1d0   : > { %v6722_v22 = vpop.f32.mrf.mxu1  ;;  %v6724_v37 = vpop.f32.mrf.mxu0  ;;  %v2668_v3 = vadd.f32 %v6634_v50, %v2396_v34  ;;  %v2667_v26 = vadd.f32 %v6636_v40, %v2395_v56  ;;  %v2672_v39 = vadd.f32 %v6642_v14, %v2400_v23  ;;  %v6762_v56 = vadd.f32 %v6646_v62, %v2402_v60 }
 0x1d1   : > { %7301 = vst [vmem:[#allocation41_spill] sm:$0xff] %v6722_v22  ;;  %7302 = vst [vmem:[#allocation8_spill] sm:$0xff] %v6724_v37  ;;  %v2666_v37 = vadd.f32 %v6625_v55, %v2394_v59  ;;  %v2670_v55 = vadd.f32 %v6638_v11, %v2398_v30  ;;  %v2669_v33 = vadd.f32 %v6640_v45, %v2397_v51 }
 0x1d2   : > { %v6727_v35 = vpop.f32.mrf.mxu1  ;;  %v6729_v17 = vpop.f32.mrf.mxu0  ;;  %v6765_v51 = vadd.f32 %v6648_v8, %v2401_v31  ;;  %v6768_v34 = vadd.f32 %v6650_v6, %v2404_v19  ;;  %v6771_v50 = vadd.f32 %v6652_v48, %v2403_v21  ;;  %v6774_v16 = vadd.f32 %v6654_v38, %v2406_v0  ;;  %v7306_v31 = vld [vmem:[#allocation9_spill] sm:$0xff]  ;;  %v7307_v21 = vld [vmem:[#allocation11_spill] sm:$0xff] }
 0x1d3   : > { %v2408_v24 = vadd.f32 %v6662_v10, %v6577_v44  ;;  %v2410_v62 = vadd.f32 %v6670_v58, %v6583_v54  ;;  %v2409_v44 = vadd.f32 %v6674_v5, %v6586_v7  ;;  %v2411_v38 = vadd.f32 %v6682_v29, %v6592_v42  ;;  %v7304_v5 = vld [vmem:[#allocation5_spill] sm:$0xff]  ;;  %v7305_v42 = vld [vmem:[#allocation7_spill] sm:$0xff] }
 0x1d4   : > { %v6736_v53 = vpop.f32.mrf.mxu1  ;;  %v4796_v22 = vpop.f32.mrf.mxu0  ;;  %v6807_v29 = vadd.f32 %v7305_v42, %v2407_v47 }
 0x1d5   : > { %v6804_v36 = vadd.f32 %v7304_v5, %v2408_v24  ;;  %v6810_v19 = vadd.f32 %v7306_v31, %v2410_v62 }
 0x1d6   : > { %v4732_v27 = vpop.f32.mrf.mxu1  ;;  %v3057_v25 = vpop.f32.mrf.mxu0 }
 0x1d7   : > { %v2942_v59 = vadd.f32 %v4732_v27, %v2666_v37  ;;  %v6813_v27 = vadd.f32 %v7307_v21, %v2409_v44  ;;  %v7315_v21 = vld [vmem:[#allocation21_spill] sm:$0xff] }
 0x1d8   : > { %v2782_v20 = vpop.f32.mrf.mxu1  ;;  %v4799_v12 = vpop.f32.mrf.mxu0 }
 0x1d9   : > { %v3217_v63 = vadd.f32 %v4796_v22, %v2942_v59  ;;  %v2941_v13 = vadd.f32 %v2782_v20, %v2665_v4  ;;  %v7303_v22 = vld [vmem:[#allocation3_spill] sm:$0xff] }
 0x1da   : > { %v4735_v40 = vpop.f32.mrf.mxu1  ;;  %v3067_v11 = vpop.f32.mrf.mxu0  ;;  %v6801_v7 = vadd.f32 %v7303_v22, %v2405_v46 }
 0x1db   : > { %v3318_v45 = vmul.f32 %v3217_v63, %v3217_v63  ;;  %3423 = vst.msk [vmem:[%s6755_s23 + $0x8] sm:$0xff] %vm612_vm1, %v3217_v63  ;;  %v3216_v57 = vadd.f32 %v3057_v25, %v2941_v13  ;;  %v2944_v14 = vadd.f32 %v4735_v40, %v2668_v3  ;;  %v3249_v2 = vsel %vm612_vm1, %v3217_v63, 0.0  ;;  %v7308_v3 = vld [vmem:[#allocation13_spill] sm:$0xff]  ;;  %v7310_v63 = vld [vmem:[#allocation10_spill] sm:$0xff]  ;;  %v7311_v13 = vld [vmem:[#allocation19_spill] sm:$0xff] }
 0x1dc   : > { %v2792_v43 = vpop.f32.mrf.mxu1  ;;  %v4802_v8 = vpop.f32.mrf.mxu0  ;;  %v2414_v40 = vadd.f32 %v7311_v13, %v7310_v63 }
 0x1dd   : > { %v3248_v6 = vsel %vm612_vm1, %v3216_v57, 0.0  ;;  %v3317_v49 = vmul.f32 %v3216_v57, %v3216_v57  ;;  %3422 = vst.msk [vmem:[%s6755_s23] sm:$0xff] %vm612_vm1, %v3216_v57  ;;  %v3219_v9 = vadd.f32 %v4799_v12, %v2944_v14  ;;  %v2943_v28 = vadd.f32 %v2792_v43, %v2667_v26 }
 0x1de   : > { %v3250_v48 = vadd.f32 %v3249_v2, %v3248_v6  ;;  %v4738_v54 = vpop.f32.mrf.mxu1  ;;  %v3077_v58 = vpop.f32.mrf.mxu0  ;;  %v3350_v41 = vsel %vm612_vm1, %v3318_v45, 0.0  ;;  %v6819_v26 = vadd.f32 %v7308_v3, %v2412_v18  ;;  %v7312_v18 = vld [vmem:[#allocation12_spill] sm:$0xff] }
 0x1df   : > { %v3349_v37 = vsel %vm612_vm1, %v3317_v49, 0.0  ;;  %3425 = vst.msk [vmem:[%s6755_s23 + $0x18] sm:$0xff] %vm612_vm1, %v3219_v9  ;;  %v2946_v52 = vadd.f32 %v4738_v54, %v2670_v55  ;;  %v3218_v10 = vadd.f32 %v3067_v11, %v2943_v28  ;;  %v3320_v23 = vmul.f32 %v3219_v9, %v3219_v9  ;;  %v7309_v55 = vld [vmem:[#allocation15_spill] sm:$0xff] }
 0x1e0   : > { %v3351_v32 = vadd.f32 %v3350_v41, %v3349_v37  ;;  %v2802_v30 = vpop.f32.mrf.mxu1  ;;  %v4805_v1 = vpop.f32.mrf.mxu0  ;;  %v6822_v20 = vadd.f32 %v7309_v55, %v2411_v38  ;;  %v3253_v11 = vsel %vm612_vm1, %v3219_v9, 0.0 }
 0x1e1   : > { %v3221_v15 = vadd.f32 %v4802_v8, %v2946_v52  ;;  %v2945_v60 = vadd.f32 %v2802_v30, %v2669_v33  ;;  %v3251_v25 = vsel %vm612_vm1, %v3218_v10, 0.0  ;;  %v3319_v4 = vmul.f32 %v3218_v10, %v3218_v10  ;;  %3424 = vst.msk [vmem:[%s6755_s23 + $0x10] sm:$0xff] %vm612_vm1, %v3218_v10 }
 0x1e2   : > { %v4741_v0 = vpop.f32.mrf.mxu1  ;;  %v3087_v59 = vpop.f32.mrf.mxu0  ;;  %v3252_v33 = vadd.f32 %v3251_v25, %v3250_v48  ;;  %v3354_v24 = vsel %vm612_vm1, %v3320_v23, 0.0 }
 0x1e3   : > { %3427 = vst.msk [vmem:[%s6755_s23 + $0x28] sm:$0xff] %vm612_vm1, %v3221_v15  ;;  %v3220_v12 = vadd.f32 %v3077_v58, %v2945_v60  ;;  %v3352_v45 = vsel %vm612_vm1, %v3319_v4, 0.0  ;;  %v2948_v57 = vadd.f32 %v4741_v0, %v2672_v39  ;;  %v3322_v8 = vmul.f32 %v3221_v15, %v3221_v15  ;;  %v7313_v39 = vld [vmem:[#allocation23_spill] sm:$0xff]  ;;  %v7316_v4 = vld [vmem:[#allocation14_spill] sm:$0xff] }
 0x1e4   : > { %v2812_v14 = vpop.f32.mrf.mxu1  ;;  %v4808_v46 = vpop.f32.mrf.mxu0  ;;  %v3353_v47 = vadd.f32 %v3352_v45, %v3351_v32  ;;  %v3254_v62 = vadd.f32 %v3253_v11, %v3252_v33  ;;  %v2413_v48 = vadd.f32 %v7313_v39, %v7312_v18  ;;  %v3257_v38 = vsel %vm612_vm1, %v3221_v15, 0.0  ;;  %v7317_v0 = vld [vmem:[#allocation38_spill] sm:$0xff]  ;;  %v7321_v39 = vld [vmem:[#allocation33_spill] sm:$0xff] }
 0x1e5   : > { %v3255_v43 = vsel %vm612_vm1, %v3220_v12, 0.0  ;;  %3426 = vst.msk [vmem:[%s6755_s23 + $0x20] sm:$0xff] %vm612_vm1, %v3220_v12  ;;  %v3321_v2 = vmul.f32 %v3220_v12, %v3220_v12  ;;  %v3223_v6 = vadd.f32 %v4805_v1, %v2948_v57  ;;  %v2947_v49 = vadd.f32 %v2812_v14, %v6759_v61  ;;  %v7314_v1 = vld [vmem:[#allocation17_spill] sm:$0xff] }
 0x1e6   : > { %v4744_v9 = vpop.f32.mrf.mxu1  ;;  %v3097_v44 = vpop.f32.mrf.mxu0  ;;  %v3256_v28 = vadd.f32 %v3255_v43, %v3254_v62  ;;  %v3355_v54 = vadd.f32 %v3354_v24, %v3353_v47  ;;  %v6844_v42 = vadd.f32 %v7314_v1, %v2414_v40  ;;  %v6851_v25 = vadd.f32 %v7315_v21, %v2413_v48 }
 0x1e7   : > { %v2950_v58 = vadd.f32 %v4744_v9, %v6762_v56  ;;  %v3356_v41 = vsel %vm612_vm1, %v3321_v2, 0.0  ;;  %v3324_v37 = vmul.f32 %v3223_v6, %v3223_v6  ;;  %3429 = vst.msk [vmem:[%s6755_s23 + $0x38] sm:$0xff] %vm612_vm1, %v3223_v6  ;;  %v3222_v52 = vadd.f32 %v3087_v59, %v2947_v49  ;;  %v7318_v9 = vld [vmem:[#allocation16_spill] sm:$0xff] }
 0x1e8   : > { %v2822_v22 = vpop.f32.mrf.mxu1  ;;  %v4811_v61 = vpop.f32.mrf.mxu0  ;;  %v3357_v5 = vadd.f32 %v3356_v41, %v3355_v54  ;;  %v3258_v32 = vadd.f32 %v3257_v38, %v3256_v28  ;;  %v3358_v56 = vsel %vm612_vm1, %v3322_v8, 0.0  ;;  %v2416_v59 = vadd.f32 %v7317_v0, %v7316_v4 }
 0x1e9   : > { %v3225_v10 = vadd.f32 %v4808_v46, %v2950_v58  ;;  %v2949_v30 = vadd.f32 %v2822_v22, %v6765_v51  ;;  %v3259_v23 = vsel %vm612_vm1, %v3222_v52, 0.0  ;;  %v3323_v15 = vmul.f32 %v3222_v52, %v3222_v52  ;;  %3428 = vst.msk [vmem:[%s6755_s23 + $0x30] sm:$0xff] %vm612_vm1, %v3222_v52 }
 0x1ea   : > { %v4747_v60 = vpop.f32.mrf.mxu1  ;;  %v3107_v31 = vpop.f32.mrf.mxu0  ;;  %v3260_v3 = vadd.f32 %v3259_v23, %v3258_v32  ;;  %v3359_v51 = vadd.f32 %v3358_v56, %v3357_v5  ;;  %v3261_v55 = vsel %vm612_vm1, %v3223_v6, 0.0  ;;  %v3362_v11 = vsel %vm612_vm1, %v3324_v37, 0.0 }
 0x1eb   : > { %3431 = vst.msk [vmem:[%s6755_s23 + $0x48] sm:$0xff] %vm612_vm1, %v3225_v10  ;;  %v3360_v33 = vsel %vm612_vm1, %v3323_v15, 0.0  ;;  %v3224_v12 = vadd.f32 %v3097_v44, %v2949_v30  ;;  %v2952_v63 = vadd.f32 %v4747_v60, %v6768_v34  ;;  %v3326_v46 = vmul.f32 %v3225_v10, %v3225_v10  ;;  %v7319_v44 = vld [vmem:[#allocation30_spill] sm:$0xff] }
 0x1ec   : > { %v2832_v13 = vpop.f32.mrf.mxu1  ;;  %v4814_v40 = vpop.f32.mrf.mxu0  ;;  %v3361_v45 = vadd.f32 %v3360_v33, %v3359_v51  ;;  %v3262_v57 = vadd.f32 %v3261_v55, %v3260_v3  ;;  %v2415_v18 = vadd.f32 %v7319_v44, %v7318_v9  ;;  %v3265_v28 = vsel %vm612_vm1, %v3225_v10, 0.0  ;;  %v7322_v60 = vld [vmem:[#allocation26_spill] sm:$0xff] }
 0x1ed   : > { %v2951_v14 = vadd.f32 %v2832_v13, %v6771_v50  ;;  %v3263_v24 = vsel %vm612_vm1, %v3224_v12, 0.0  ;;  %v3325_v47 = vmul.f32 %v3224_v12, %v3224_v12  ;;  %3430 = vst.msk [vmem:[%s6755_s23 + $0x40] sm:$0xff] %vm612_vm1, %v3224_v12  ;;  %v3227_v62 = vadd.f32 %v4811_v61, %v2952_v63  ;;  %v7320_v50 = vld [vmem:[#allocation18_spill] sm:$0xff]  ;;  %v7323_v63 = vld [vmem:[#allocation28_spill] sm:$0xff] }
 0x1ee   : > { %v4750_v43 = vpop.f32.mrf.mxu1  ;;  %v3117_v8 = vpop.f32.mrf.mxu0  ;;  %v3264_v34 = vadd.f32 %v3263_v24, %v3262_v57  ;;  %v3363_v2 = vadd.f32 %v3362_v11, %v3361_v45  ;;  %v2418_v48 = vadd.f32 %v7321_v39, %v7320_v50  ;;  %v3366_v22 = vsel %vm612_vm1, %v3326_v46, 0.0  ;;  %v7324_v57 = vld [vmem:[#allocation24_spill] sm:$0xff] }
 0x1ef   : > { %v3226_v6 = vadd.f32 %v3107_v31, %v2951_v14  ;;  %v2954_v49 = vadd.f32 %v4750_v43, %v6774_v16  ;;  %v3364_v54 = vsel %vm612_vm1, %v3325_v47, 0.0  ;;  %3433 = vst.msk [vmem:[%s6755_s23 + $0x58] sm:$0xff] %vm612_vm1, %v3227_v62  ;;  %v3328_v61 = vmul.f32 %v3227_v62, %v3227_v62  ;;  %v7325_v46 = vld [vmem:[#allocation20_spill] sm:$0xff] }
 0x1f0   : > { %v2842_v58 = vpop.f32.mrf.mxu1  ;;  %v4817_v38 = vpop.f32.mrf.mxu0  ;;  %v3365_v41 = vadd.f32 %v3364_v54, %v3363_v2  ;;  %v3266_v37 = vadd.f32 %v3265_v28, %v3264_v34  ;;  %v6882_v31 = vadd.f32 %v7322_v60, %v2416_v59  ;;  %v3269_v21 = vsel %vm612_vm1, %v3227_v62, 0.0  ;;  %v7326_v24 = vld [vmem:[#allocation32_spill] sm:$0xff] }
 0x1f1   : > { %v3267_v52 = vsel %vm612_vm1, %v3226_v6, 0.0  ;;  %v3327_v16 = vmul.f32 %v3226_v6, %v3226_v6  ;;  %3432 = vst.msk [vmem:[%s6755_s23 + $0x50] sm:$0xff] %vm612_vm1, %v3226_v6  ;;  %v3229_v5 = vadd.f32 %v4814_v40, %v2954_v49  ;;  %v2953_v32 = vadd.f32 %v2842_v58, %v6801_v7 }
 0x1f2   : > { %v4753_v10 = vpop.f32.mrf.mxu1  ;;  %v3127_v30 = vpop.f32.mrf.mxu0  ;;  %v3268_v1 = vadd.f32 %v3267_v52, %v3266_v37  ;;  %v3367_v56 = vadd.f32 %v3366_v22, %v3365_v41  ;;  %v3370_v59 = vsel %vm612_vm1, %v3328_v61, 0.0  ;;  %v6896_v14 = vadd.f32 %v7324_v57, %v2418_v48  ;;  %v7328_v22 = vld [vmem:[#allocation4_spill] sm:$0xff] }
 0x1f3   : > { %v3368_v23 = vsel %vm612_vm1, %v3327_v16, 0.0  ;;  %v2956_v15 = vadd.f32 %v4753_v10, %v6804_v36  ;;  %v3330_v4 = vmul.f32 %v3229_v5, %v3229_v5  ;;  %3435 = vst.msk [vmem:[%s6755_s23 + $0x68] sm:$0xff] %vm612_vm1, %v3229_v5  ;;  %v3228_v0 = vadd.f32 %v3117_v8, %v2953_v32  ;;  %v7327_v16 = vld [vmem:[#allocation22_spill] sm:$0xff] }
 0x1f4   : > { %v2852_v3 = vpop.f32.mrf.mxu1  ;;  %v4820_v7 = vpop.f32.mrf.mxu0  ;;  %v3369_v51 = vadd.f32 %v3368_v23, %v3367_v56  ;;  %v3270_v55 = vadd.f32 %v3269_v21, %v3268_v1  ;;  %v6889_v36 = vadd.f32 %v7323_v63, %v2415_v18  ;;  %v2417_v47 = vadd.f32 %v7326_v24, %v7325_v46 }
 0x1f5   : > { %v3231_v33 = vadd.f32 %v4817_v38, %v2956_v15  ;;  %v2955_v12 = vadd.f32 %v2852_v3, %v6807_v29  ;;  %v3271_v13 = vsel %vm612_vm1, %v3228_v0, 0.0  ;;  %v3329_v40 = vmul.f32 %v3228_v0, %v3228_v0  ;;  %3434 = vst.msk [vmem:[%s6755_s23 + $0x60] sm:$0xff] %vm612_vm1, %v3228_v0 }
 0x1f6   : > { %v4756_v11 = vpop.f32.mrf.mxu1  ;;  %v3137_v45 = vpop.f32.mrf.mxu0  ;;  %v3272_v62 = vadd.f32 %v3271_v13, %v3270_v55  ;;  %v3371_v29 = vadd.f32 %v3370_v59, %v3369_v51  ;;  %v3273_v43 = vsel %vm612_vm1, %v3229_v5, 0.0  ;;  %v3374_v9 = vsel %vm612_vm1, %v3330_v4, 0.0  ;;  %v7330_v5 = vld [vmem:[#allocation35_spill] sm:$0xff]  ;;  %v7331_v59 = vld [vmem:[#allocation37_spill] sm:$0xff] }
 0x1f7   : > { %3437 = vst.msk [vmem:[%s6755_s23 + $0x78] sm:$0xff] %vm612_vm1, %v3231_v33  ;;  %v3372_v8 = vsel %vm612_vm1, %v3329_v40, 0.0  ;;  %v3230_v34 = vadd.f32 %v3127_v30, %v2955_v12  ;;  %v2958_v2 = vadd.f32 %v4756_v11, %v6810_v19  ;;  %v3332_v39 = vmul.f32 %v3231_v33, %v3231_v33 }
 0x1f8   : > { %v2862_v6 = vpop.f32.mrf.mxu1  ;;  %v4823_v49 = vpop.f32.mrf.mxu0  ;;  %v3373_v44 = vadd.f32 %v3372_v8, %v3371_v29  ;;  %v3274_v18 = vadd.f32 %v3273_v43, %v3272_v62  ;;  %v2420_v61 = vadd.f32 %v7328_v22, %v7327_v16  ;;  %v3277_v10 = vsel %vm612_vm1, %v3231_v33, 0.0  ;;  %v7332_v43 = vld [vmem:[#allocation34_spill] sm:$0xff] }
 0x1f9   : > { %v2957_v50 = vadd.f32 %v2862_v6, %v6813_v27  ;;  %v3275_v48 = vsel %vm612_vm1, %v3230_v34, 0.0  ;;  %v3331_v28 = vmul.f32 %v3230_v34, %v3230_v34  ;;  %3436 = vst.msk [vmem:[%s6755_s23 + $0x70] sm:$0xff] %vm612_vm1, %v3230_v34  ;;  %v3233_v54 = vadd.f32 %v4820_v7, %v2958_v2  ;;  %v7329_v27 = vld [vmem:[#allocation25_spill] sm:$0xff] }
 0x1fa   : > { %v4759_v58 = vpop.f32.mrf.mxu1  ;;  %v3147_v38 = vpop.f32.mrf.mxu0  ;;  %v3276_v19 = vadd.f32 %v3275_v48, %v3274_v18  ;;  %v3375_v41 = vadd.f32 %v3374_v9, %v3373_v44  ;;  %v2419_v32 = vadd.f32 %v7330_v5, %v7329_v27  ;;  %v3378_v21 = vsel %vm612_vm1, %v3332_v39, 0.0  ;;  %v7334_v44 = vld [vmem:[#allocation27_spill] sm:$0xff]  ;;  %v7335_v18 = vld [vmem:[#allocation36_spill] sm:$0xff] }
 0x1fb   : > { %v3232_v37 = vadd.f32 %v3137_v45, %v2957_v50  ;;  %v2960_v52 = vadd.f32 %v4759_v58, %v6819_v26  ;;  %v3376_v30 = vsel %vm612_vm1, %v3331_v28, 0.0  ;;  %3439 = vst.msk [vmem:[%s6755_s23 + $0x88] sm:$0xff] %vm612_vm1, %v3233_v54  ;;  %v3334_v4 = vmul.f32 %v3233_v54, %v3233_v54 }
 0x1fc   : > { %v2872_v1 = vpop.f32.mrf.mxu1  ;;  %v4826_v56 = vpop.f32.mrf.mxu0  ;;  %v3377_v23 = vadd.f32 %v3376_v30, %v3375_v41  ;;  %v3278_v15 = vadd.f32 %v3277_v10, %v3276_v19  ;;  %v2689_v13 = vadd.f32 %v7331_v59, %v2417_v47  ;;  %v3281_v40 = vsel %vm612_vm1, %v3233_v54, 0.0 }
 0x1fd   : > { %v3279_v60 = vsel %vm612_vm1, %v3232_v37, 0.0  ;;  %v3333_v26 = vmul.f32 %v3232_v37, %v3232_v37  ;;  %3438 = vst.msk [vmem:[%s6755_s23 + $0x80] sm:$0xff] %vm612_vm1, %v3232_v37  ;;  %v3235_v0 = vadd.f32 %v4823_v49, %v2960_v52  ;;  %v2959_v3 = vadd.f32 %v2872_v1, %v6822_v20  ;;  %v7333_v49 = vld [vmem:[#allocation40_spill] sm:$0xff] }
 0x1fe   : > { %v4762_v7 = vpop.f32.mrf.mxu1  ;;  %v3157_v51 = vpop.f32.mrf.mxu0  ;;  %v3280_v55 = vadd.f32 %v3279_v60, %v3278_v15  ;;  %v3379_v33 = vadd.f32 %v3378_v21, %v3377_v23  ;;  %v2692_v8 = vadd.f32 %v7332_v43, %v2420_v61  ;;  %v2691_v9 = vadd.f32 %v7333_v49, %v2419_v32  ;;  %v7336_v23 = vld [vmem:[#allocation29_spill] sm:$0xff]  ;;  %v7340_v49 = vld [vmem:[#allocation39_spill] sm:$0xff] }
 0x1ff   : > { %v3380_v12 = vsel %vm612_vm1, %v3333_v26, 0.0  ;;  %v2962_v63 = vadd.f32 %v4762_v7, %v6844_v42  ;;  %v3336_v11 = vmul.f32 %v3235_v0, %v3235_v0  ;;  %3441 = vst.msk [vmem:[%s6755_s23 + $0x98] sm:$0xff] %vm612_vm1, %v3235_v0  ;;  %v3234_v45 = vadd.f32 %v3147_v38, %v2959_v3  ;;  %v7337_v15 = vld [vmem:[#allocation41_spill] sm:$0xff] }
 0x200   : > { %v2882_v57 = vpop.f32.mrf.mxu1  ;;  %v4829_v46 = vpop.f32.mrf.mxu0  ;;  %v3381_v20 = vadd.f32 %v3380_v12, %v3379_v33  ;;  %v3282_v24 = vadd.f32 %v3281_v40, %v3280_v55  ;;  %v3382_v42 = vsel %vm612_vm1, %v3334_v4, 0.0  ;;  %v2422_v50 = vadd.f32 %v7335_v18, %v7334_v44 }
 0x201   : > { %v3237_v62 = vadd.f32 %v4826_v56, %v2962_v63  ;;  %v2961_v29 = vadd.f32 %v2882_v57, %v6851_v25  ;;  %v3283_v47 = vsel %vm612_vm1, %v3234_v45, 0.0  ;;  %v3335_v34 = vmul.f32 %v3234_v45, %v3234_v45  ;;  %3440 = vst.msk [vmem:[%s6755_s23 + $0x90] sm:$0xff] %vm612_vm1, %v3234_v45 }
 0x202   : > { %v4765_v2 = vpop.f32.mrf.mxu1  ;;  %v3167_v6 = vpop.f32.mrf.mxu0  ;;  %v3284_v39 = vadd.f32 %v3283_v47, %v3282_v24  ;;  %v3383_v48 = vadd.f32 %v3382_v42, %v3381_v20  ;;  %v3285_v25 = vsel %vm612_vm1, %v3235_v0, 0.0  ;;  %v3386_v41 = vsel %vm612_vm1, %v3336_v11, 0.0  ;;  %v7339_v20 = vld [vmem:[#allocation6_spill] sm:$0xff] }
 0x203   : > { %3443 = vst.msk [vmem:[%s6755_s23 + $0xa8] sm:$0xff] %vm612_vm1, %v3237_v62  ;;  %v3384_v28 = vsel %vm612_vm1, %v3335_v34, 0.0  ;;  %v3236_v54 = vadd.f32 %v3157_v51, %v2961_v29  ;;  %v2964_v58 = vadd.f32 %v4765_v2, %v6882_v31  ;;  %v3338_v22 = vmul.f32 %v3237_v62, %v3237_v62 }
 0x204   : > { %v2892_v38 = vpop.f32.mrf.mxu1  ;;  %v4832_v19 = vpop.f32.mrf.mxu0  ;;  %v3385_v37 = vadd.f32 %v3384_v28, %v3383_v48  ;;  %v3286_v52 = vadd.f32 %v3285_v25, %v3284_v39  ;;  %v2421_v60 = vadd.f32 %v7337_v15, %v7336_v23  ;;  %v3289_v21 = vsel %vm612_vm1, %v3237_v62, 0.0  ;;  %v7341_v48 = vld [vmem:[#allocation8_spill] sm:$0xff]  ;;  %v7342_v28 = vld [vmem:[#allocation2_spill] sm:$0xff] }
 0x205   : > { %v2963_v16 = vadd.f32 %v2892_v38, %v6889_v36  ;;  %v3287_v61 = vsel %vm612_vm1, %v3236_v54, 0.0  ;;  %v3337_v27 = vmul.f32 %v3236_v54, %v3236_v54  ;;  %3442 = vst.msk [vmem:[%s6755_s23 + $0xa0] sm:$0xff] %vm612_vm1, %v3236_v54  ;;  %v3239_v5 = vadd.f32 %v4829_v46, %v2964_v58  ;;  %v7338_v36 = vld [vmem:[#allocation31_spill] sm:$0xff] }
 0x206   : > { %v4768_v32 = vpop.f32.mrf.mxu1  ;;  %v3177_v10 = vpop.f32.mrf.mxu0  ;;  %v3288_v31 = vadd.f32 %v3287_v61, %v3286_v52  ;;  %v3387_v30 = vadd.f32 %v3386_v41, %v3385_v37  ;;  %v2424_v26 = vadd.f32 %v6727_v35, %v7338_v36  ;;  %v3390_v33 = vsel %vm612_vm1, %v3338_v22, 0.0 }
 0x207   : > { %v3238_v1 = vadd.f32 %v3167_v6, %v2963_v16  ;;  %v2966_v56 = vadd.f32 %v4768_v32, %v6896_v14  ;;  %v3388_v4 = vsel %vm612_vm1, %v3337_v27, 0.0  ;;  %3445 = vst.msk [vmem:[%s6755_s23 + $0xb8] sm:$0xff] %vm612_vm1, %v3239_v5  ;;  %v3340_v12 = vmul.f32 %v3239_v5, %v3239_v5 }
 0x208   : > { %v2902_v0 = vpop.f32.mrf.mxu1  ;;  %v4835_v3 = vpop.f32.mrf.mxu0  ;;  %v3389_v7 = vadd.f32 %v3388_v4, %v3387_v30  ;;  %v3290_v51 = vadd.f32 %v3289_v21, %v3288_v31  ;;  %v2694_v24 = vadd.f32 %v7339_v20, %v2422_v50  ;;  %v3293_v62 = vsel %vm612_vm1, %v3239_v5, 0.0 }
 0x209   : > { %v3291_v55 = vsel %vm612_vm1, %v3238_v1, 0.0  ;;  %v3339_v14 = vmul.f32 %v3238_v1, %v3238_v1  ;;  %3444 = vst.msk [vmem:[%s6755_s23 + $0xb0] sm:$0xff] %vm612_vm1, %v3238_v1  ;;  %v3241_v35 = vadd.f32 %v4832_v19, %v2966_v56  ;;  %v2965_v63 = vadd.f32 %v2902_v0, %v2689_v13 }
 0x20a   : > { %v4771_v59 = vpop.f32.mrf.mxu1  ;;  %v3187_v40 = vpop.f32.mrf.mxu0  ;;  %v3292_v11 = vadd.f32 %v3291_v55, %v3290_v51  ;;  %v3391_v45 = vadd.f32 %v3390_v33, %v3389_v7  ;;  %v2693_v44 = vadd.f32 %v7340_v49, %v2421_v60  ;;  %v2696_v25 = vadd.f32 %v7341_v48, %v2424_v26 }
 0x20b   : > { %v3392_v57 = vsel %vm612_vm1, %v3339_v14, 0.0  ;;  %v2968_v46 = vadd.f32 %v4771_v59, %v2692_v8  ;;  %v3342_v29 = vmul.f32 %v3241_v35, %v3241_v35  ;;  %3447 = vst.msk [vmem:[%s6755_s23 + $0xc8] sm:$0xff] %vm612_vm1, %v3241_v35  ;;  %v3240_v43 = vadd.f32 %v3177_v10, %v2965_v63 }
 0x20c   : > { %v2912_v42 = vpop.f32.mrf.mxu1  ;;  %v4838_v47 = vpop.f32.mrf.mxu0  ;;  %v3393_v13 = vadd.f32 %v3392_v57, %v3391_v45  ;;  %v3294_v34 = vadd.f32 %v3293_v62, %v3292_v11  ;;  %v3394_v8 = vsel %vm612_vm1, %v3340_v12, 0.0  ;;  %v2423_v54 = vadd.f32 %v6736_v53, %v7342_v28 }
 0x20d   : > { %v3243_v2 = vadd.f32 %v4835_v3, %v2968_v46  ;;  %v2967_v6 = vadd.f32 %v2912_v42, %v2691_v9  ;;  %v3295_v18 = vsel %vm612_vm1, %v3240_v43, 0.0  ;;  %v3341_v50 = vmul.f32 %v3240_v43, %v3240_v43  ;;  %3446 = vst.msk [vmem:[%s6755_s23 + $0xc0] sm:$0xff] %vm612_vm1, %v3240_v43 }
 0x20e   : > { %v4774_v39 = vpop.f32.mrf.mxu1  ;;  %v3296_v58 = vadd.f32 %v3295_v18, %v3294_v34  ;;  %v3395_v38 = vadd.f32 %v3394_v8, %v3393_v13  ;;  %v3197_v9 = vpop.f32.mrf.mxu0  ;;  %v3297_v19 = vsel %vm612_vm1, %v3241_v35, 0.0  ;;  %v3398_v22 = vsel %vm612_vm1, %v3342_v29, 0.0 }
 0x20f   : > { %3449 = vst.msk [vmem:[%s6755_s23 + $0xd8] sm:$0xff] %vm612_vm1, %v3243_v2  ;;  %v3396_v41 = vsel %vm612_vm1, %v3341_v50, 0.0  ;;  %v3242_v37 = vadd.f32 %v3187_v40, %v2967_v6  ;;  %v2970_v52 = vadd.f32 %v4774_v39, %v2694_v24  ;;  %v3344_v53 = vmul.f32 %v3243_v2, %v3243_v2 }
 0x210   : > { %v2922_v16 = vpop.f32.mrf.mxu1  ;;  %v3397_v61 = vadd.f32 %v3396_v41, %v3395_v38  ;;  %v3298_v27 = vadd.f32 %v3297_v19, %v3296_v58  ;;  %v4841_v60 = vpop.f32.mrf.mxu0  ;;  %v2695_v36 = vadd.f32 %v6729_v17, %v2423_v54  ;;  %v3301_v26 = vsel %vm612_vm1, %v3243_v2, 0.0 }
 0x211   : > { %v2969_v5 = vadd.f32 %v2922_v16, %v2693_v44  ;;  %v3299_v32 = vsel %vm612_vm1, %v3242_v37, 0.0  ;;  %v3343_v10 = vmul.f32 %v3242_v37, %v3242_v37  ;;  %3448 = vst.msk [vmem:[%s6755_s23 + $0xd0] sm:$0xff] %vm612_vm1, %v3242_v37  ;;  %v3245_v31 = vadd.f32 %v4838_v47, %v2970_v52 }
 0x212   : > { %v4777_v30 = vpop.f32.mrf.mxu1  ;;  %v3300_v1 = vadd.f32 %v3299_v32, %v3298_v27  ;;  %v3399_v56 = vadd.f32 %v3398_v22, %v3397_v61  ;;  %v3402_v55 = vsel %vm612_vm1, %v3344_v53, 0.0  ;;  %v3207_v59 = vpop.f32.mrf.mxu0 }
 0x213   : > { %v3244_v23 = vadd.f32 %v3197_v9, %v2969_v5  ;;  %v2972_v15 = vadd.f32 %v4777_v30, %v2696_v25  ;;  %v3400_v21 = vsel %vm612_vm1, %v3343_v10, 0.0  ;;  %3451 = vst.msk [vmem:[%s6755_s23 + $0xe8] sm:$0xff] %vm612_vm1, %v3245_v31  ;;  %v3346_v14 = vmul.f32 %v3245_v31, %v3245_v31 }
 0x214   : > { %v2932_v4 = vpop.f32.mrf.mxu1  ;;  %v3401_v0 = vadd.f32 %v3400_v21, %v3399_v56  ;;  %v3302_v3 = vadd.f32 %v3301_v26, %v3300_v1  ;;  %v3305_v40 = vsel %vm612_vm1, %v3245_v31, 0.0 }
 0x215   : > { %v3303_v7 = vsel %vm612_vm1, %v3244_v23, 0.0  ;;  %v3345_v51 = vmul.f32 %v3244_v23, %v3244_v23  ;;  %3450 = vst.msk [vmem:[%s6755_s23 + $0xe0] sm:$0xff] %vm612_vm1, %v3244_v23  ;;  %v3247_v17 = vadd.f32 %v4841_v60, %v2972_v15  ;;  %v2971_v33 = vadd.f32 %v2932_v4, %v2695_v36 }
 0x216   : > { %v3304_v12 = vadd.f32 %v3303_v7, %v3302_v3  ;;  %v3403_v35 = vadd.f32 %v3402_v55, %v3401_v0  ;;  %v3406_v46 = vsel %vm612_vm1, %v3346_v14, 0.0 }
 0x217   : > { %v3404_v63 = vsel %vm612_vm1, %v3345_v51, 0.0  ;;  %3453 = vst.msk [vmem:[%s6755_s23 + $0xf8] sm:$0xff] %vm612_vm1, %v3247_v17  ;;  %v3246_v11 = vadd.f32 %v3207_v59, %v2971_v33  ;;  %v3348_v20 = vmul.f32 %v3247_v17, %v3247_v17  ;;  %v3309_v42 = vsel %vm612_vm1, %v3247_v17, 0.0 }
 0x218   : > { %v3405_v45 = vadd.f32 %v3404_v63, %v3403_v35  ;;  %v3306_v57 = vadd.f32 %v3305_v40, %v3304_v12 }
 0x219   : > { %v3307_v24 = vsel %vm612_vm1, %v3246_v11, 0.0  ;;  %v3347_v62 = vmul.f32 %v3246_v11, %v3246_v11  ;;  %3452 = vst.msk [vmem:[%s6755_s23 + $0xf0] sm:$0xff] %vm612_vm1, %v3246_v11  ;;  %v3410_v2 = vsel %vm612_vm1, %v3348_v20, 0.0 }
 0x21a   : > { %v3308_v29 = vadd.f32 %v3307_v24, %v3306_v57  ;;  %v3407_v43 = vadd.f32 %v3406_v46, %v3405_v45 }
 0x21b   : > { %v3408_v47 = vsel %vm612_vm1, %v3347_v62, 0.0 }
 0x21c   : > { %v3310_v13 = vadd.f32 %v3309_v42, %v3308_v29  ;;  %v3409_v34 = vadd.f32 %v3408_v47, %v3407_v43 }
 0x21e   : > { %v3311_v6 = vrot.slane %v3310_v13, 4  ;;  %v3411_v49 = vadd.f32 %v3410_v2, %v3409_v34 }
 0x220   : > { %v3312_v44 = vadd.f32 %v3311_v6, %v3310_v13  ;;  %v3412_v8 = vrot.slane %v3411_v49, 4 }
 0x222   : > { %v3313_v18 = vrot.slane %v3312_v44, 2  ;;  %v3413_v50 = vadd.f32 %v3412_v8, %v3411_v49 }
 0x224   : > { %v3314_v39 = vadd.f32 %v3313_v18, %v3312_v44  ;;  %v3414_v48 = vrot.slane %v3413_v50, 2 }
 0x226   : > { %v3315_v25 = vrot.slane %v3314_v39, 1  ;;  %v3415_v28 = vadd.f32 %v3414_v48, %v3413_v50 }
 0x228   : > { %v3416_v54 = vrot.slane %v3415_v28, 1  ;;  %v3316_v58 = vadd.f32 %v3315_v25, %v3314_v39 }
 0x22a   : > { %v3417_v38 = vadd.f32 %v3416_v54, %v3415_v28 }
 0x22c   : > { %v3419_v9 = vsel %vm3418_vm3, %v3316_v58, %v3417_v38 }
 0x22d   : > { %3421 = vst.msk [vmem:[%s235_s27] sm:$0x3] %vm3420_vm4, %v3419_v9 }
 0x22e PF: > { %s16_s18 = sadd.s32 1, %s4875_s18  }
 0x22f   : > { %p13_p4 = scmp.ge.s32.totalorder %s16_s18, 4  }
 0x231   :  { %15 = sbr.rel (!%p13_p4) target bundleno = 1 (0x1), region = 86 }

// kernel: dncnn_rl_forward.5
= control target key start
LH: loop header
LB: loop body
LE: loop exit
PB: predicated region body
PF: predicated region fallthrough
CT: control target
= control target key end

     0   :  { %s4790_s18 = smov 0   ;;  %s6841_s0 = inlined_call_operand.vmem [shape: f32[2,18,18,64], index: 0, kind: input, shape index: {}]   ;;  %s6842_s1 = inlined_call_operand.vmem [shape: f32[3,3,64,4], index: 1, kind: input, shape index: {}]   ;;  %s6843_s2 = inlined_call_operand.vmem [shape: f32[1,64], index: 2, kind: input, shape index: {}]   ;;  %s6844_s3 = inlined_call_operand.vmem [shape: f32[1,64], index: 3, kind: input, shape index: {}]   ;;  %s6845_s4 = inlined_call_operand.vmem [shape: f32[2,256,4], index: 4, kind: input, shape index: {}]   ;;  %s6846_s5 = inlined_call_operand.vmem [shape: f32[2,256,4], index: 5, kind: output, shape index: {}]  }
   0x1 LB: > { %s3421_s19 = sadd.s32 4294967295, %s4758_s18   ;;  %p3425_p0 = scmp.ge.s32.totalorder %s4758_s18, 1  ;;  %s4758_s18 = sphi %s4790_s18, %s15_s18  }
   0x2   : > { %p197_p1 = scmp.lt.s32.totalorder %s4758_s18, 3 }
   0x4   : > { %p198_p2 = pnand %p3425_p0, %p197_p1 }
   0x6   : > { %201 = sbr.rel (%p198_p2) target bundleno = 540 (0x21c), region = 40 }
   0xb   : > { %v3440_v0 = vld [vmem:[%s6842_s1 + $0x78] sm:$0xff]  ;;  %v3439_v1 = vld [vmem:[%s6842_s1 + $0x70] sm:$0xff]  ;;  %p230_p3 = scmp.lt.s32.totalorder %s3421_s19, 1  ;;  %v3438_v2 = vld [vmem:[%s6842_s1 + $0x68] sm:$0xff]  ;;  %vm531_vm0 = vcmask 1046528   ;;  %vm621_vm1 = vcmask 523264  }
   0xc   : > { %4725 = vmatprep.subr.mxu1 %v3440_v0  ;;  %4149 = vmatprep.subr.mxu0 %v3440_v0  ;;  %v3437_v3 = vld [vmem:[%s6842_s1 + $0x60] sm:$0xff]  ;;  %v3436_v5 = vld [vmem:[%s6842_s1 + $0x58] sm:$0xff]  ;;  %v3435_v6 = vld [vmem:[%s6842_s1 + $0x50] sm:$0xff]  ;;  %vm1200_vm2 = vcmask 1045504   ;;  %vm3321_vm3 = vcmask 31744  }
   0xd   : > { %4733 = vmatpush3.msra.mxu1 %v3440_v0  ;;  %4150 = vmatpush3.msra.mxu0 %v3440_v0  ;;  %s7179_s19 = smov (!%p230_p3, %s3421_s19), 1  ;;  %v4816_v4 = vld [vmem:[%s6843_s2] ss:$0 sm:$0xff]  ;;  %v3434_v21 = vld [vmem:[%s6842_s1 + $0x48] sm:$0xff]  ;;  %v482_v42 = vld [vmem:[%s6842_s1 + $0x38] sm:$0xff] }
   0xe   : > { %4726 = vmatprep.subr.mxu1 %v3439_v1  ;;  %4151 = vmatprep.subr.mxu0 %v3439_v1  ;;  %s4741_s28 = smul.u32 432, %s7179_s19  ;;  %v4832_v7 = vld [vmem:[%s6844_s3] ss:$0 sm:$0xff]  ;;  %v3512_v47 = vld [vmem:[%s6842_s1 + $0xb8] sm:$0xff]  ;;  %v481_v0 = vld [vmem:[%s6842_s1 + $0x30] sm:$0xff] }
   0xf   : > { %4734 = vmatpush3.msra.mxu1 %v3439_v1  ;;  %4152 = vmatpush3.msra.mxu0 %v3439_v1  ;;  %v3433_v29 = vld [vmem:[%s6842_s1 + $0x40] sm:$0xff]  ;;  %v3511_v1 = vld [vmem:[%s6842_s1 + $0xb0] sm:$0xff] }
  0x10   : > { %4727 = vmatprep.subr.mxu1 %v3438_v2  ;;  %4153 = vmatprep.subr.mxu0 %v3438_v2  ;;  %s4827_s12 = scalar_lea.vmem %s6841_s0, %s4741_s28 }
  0x11   : > { %4735 = vmatpush3.msra.mxu1 %v3438_v2  ;;  %4154 = vmatpush3.msra.mxu0 %v3438_v2  ;;  %v245_v8 = vld [vmem:[%s4827_s12] sm:$0xff]  ;;  %v246_v9 = vld [vmem:[%s4827_s12 + $0x8] sm:$0xff]  ;;  %v247_v15 = vld [vmem:[%s4827_s12 + $0x10] sm:$0x3] }
  0x12   : > { %4728 = vmatprep.subr.mxu1 %v3437_v3  ;;  %4155 = vmatprep.subr.mxu0 %v3437_v3  ;;  %v269_v10 = vld [vmem:[%s4827_s12 + $0xc0] sm:$0xff]  ;;  %v306_v11 = vmul.f32 %v4816_v4, %v245_v8  ;;  %v307_v12 = vmul.f32 %v4816_v4, %v246_v9  ;;  %v270_v13 = vld [vmem:[%s4827_s12 + $0xc8] sm:$0xff]  ;;  %v271_v16 = vld [vmem:[%s4827_s12 + $0xd0] sm:$0x3]  ;;  %v308_v18 = vmul.f32 %v4816_v4, %v247_v15 }
  0x13   : > { %4736 = vmatpush3.msra.mxu1 %v3437_v3  ;;  %4156 = vmatpush3.msra.mxu0 %v3437_v3  ;;  %v330_v14 = vmul.f32 %v4816_v4, %v269_v10  ;;  %v331_v17 = vmul.f32 %v4816_v4, %v270_v13  ;;  %v332_v19 = vmul.f32 %v4816_v4, %v271_v16  ;;  %v248_v20 = vld [vmem:[%s4827_s12 + $0x18] sm:$0xff]  ;;  %v249_v25 = vld [vmem:[%s4827_s12 + $0x20] sm:$0xff]  ;;  %v250_v53 = vld [vmem:[%s4827_s12 + $0x28] sm:$0x3] }
  0x14   : > { %4729 = vmatprep.subr.mxu1 %v3436_v5  ;;  %4157 = vmatprep.subr.mxu0 %v3436_v5  ;;  %v367_v22 = vadd.f32 %v4832_v7, %v306_v11  ;;  %v368_v23 = vadd.f32 %v4832_v7, %v307_v12  ;;  %v4856_v27 = vadd.f32 %v4832_v7, %v308_v18  ;;  %v272_v38 = vld [vmem:[%s4827_s12 + $0xd8] sm:$0xff]  ;;  %v273_v48 = vld [vmem:[%s4827_s12 + $0xe0] sm:$0xff]  ;;  %v274_v54 = vld [vmem:[%s4827_s12 + $0xe8] sm:$0x3] }
  0x15   : > { %4737 = vmatpush3.msra.mxu1 %v3436_v5  ;;  %4158 = vmatpush3.msra.mxu0 %v3436_v5  ;;  %v391_v24 = vadd.f32 %v4832_v7, %v330_v14  ;;  %v392_v26 = vadd.f32 %v4832_v7, %v331_v17  ;;  %v4859_v28 = vadd.f32 %v4832_v7, %v332_v19  ;;  %v251_v55 = vld [vmem:[%s4827_s12 + $0x30] sm:$0xff]  ;;  %v252_v59 = vld [vmem:[%s4827_s12 + $0x38] sm:$0xff]  ;;  %v480_v12 = vld [vmem:[%s6842_s1 + $0x28] sm:$0xff] }
  0x16   : > { %4730 = vmatprep.subr.mxu1 %v3435_v6  ;;  %4159 = vmatprep.subr.mxu0 %v3435_v6  ;;  %v4864_v30 = vmax.f32 %v367_v22, 0.0  ;;  %v4866_v31 = vmax.f32 %v368_v23, 0.0  ;;  %v309_v33 = vmul.f32 %v4816_v4, %v248_v20  ;;  %v6854_v35 = vmax.f32 %v4856_v27, 0.0  ;;  %v275_v11 = vld [vmem:[%s4827_s12 + $0xf0] sm:$0xff]  ;;  %v276_v16 = vld [vmem:[%s4827_s12 + $0xf8] sm:$0xff]  ;;  %v3510_v18 = vld [vmem:[%s6842_s1 + $0xa8] sm:$0xff] }
  0x17   : > { %4738 = vmatpush3.msra.mxu1 %v3435_v6  ;;  %4160 = vmatpush3.msra.mxu0 %v3435_v6  ;;  %v4868_v32 = vmax.f32 %v391_v24, 0.0  ;;  %v4871_v34 = vmax.f32 %v392_v26, 0.0  ;;  %v6849_v36 = vmax.f32 %v4859_v28, 0.0  ;;  %v310_v37 = vmul.f32 %v4816_v4, %v249_v25  ;;  %v253_v17 = vld [vmem:[%s4827_s12 + $0x40] sm:$0x3] }
  0x18   : > { %4731 = vmatprep.subr.mxu1 %v3434_v21  ;;  %4161 = vmatprep.subr.mxu0 %v3434_v21  ;;  %v532_v39 = vrot.slane %v4864_v30, 1  ;;  %v533_v40 = vrot.slane %v4866_v31, 1  ;;  %v370_v43 = vadd.f32 %v4832_v7, %v309_v33  ;;  %v535_v45 = vrot.slane %v6854_v35, 1  ;;  %v479_v24 = vld [vmem:[%s6842_s1 + $0x20] sm:$0xff]  ;;  %v286_v35 = vld [vmem:[%s4827_s12 + $0x148] sm:$0x3] }
  0x19   : > { %4739 = vmatpush3.msra.mxu1 %v3434_v21  ;;  %4162 = vmatpush3.msra.mxu0 %v3434_v21  ;;  %v572_v41 = vrot.slane %v4868_v32, 1  ;;  %v573_v44 = vrot.slane %v4871_v34, 1  ;;  %v575_v46 = vrot.slane %v6849_v36, 1  ;;  %v371_v50 = vadd.f32 %v4832_v7, %v310_v37  ;;  %v3509_v37 = vld [vmem:[%s6842_s1 + $0xa0] sm:$0xff] }
  0x1a   : > { %4732 = vmatprep.subr.mxu1 %v3433_v29  ;;  %4163 = vmatprep.subr.mxu0 %v3433_v29  ;;  %v534_v49 = vsel %vm531_vm0, %v532_v39, %v533_v40  ;;  %v4895_v51 = vmax.f32 %v370_v43, 0.0  ;;  %v333_v52 = vmul.f32 %v4816_v4, %v272_v38  ;;  %v536_v57 = vsel %vm531_vm0, %v533_v40, %v535_v45  ;;  %v261_v36 = vld [vmem:[%s4827_s12 + $0x80] sm:$0xff] }
  0x1b   : > { %4740 = vmatpush3.msra.mxu1 %v3433_v29  ;;  %4164 = vmatpush3.msra.mxu0 %v3433_v29  ;;  %v4903_v56 = vsel %vm531_vm0, %v572_v41, %v573_v44  ;;  %v4907_v58 = vsel %vm531_vm0, %v573_v44, %v575_v46  ;;  %v4913_v60 = vmax.f32 %v371_v50, 0.0  ;;  %v334_v62 = vmul.f32 %v4816_v4, %v273_v48 }
  0x1c   : > { %4165 = vmatprep.mubr.msk.f32.mxu0 %vm621_vm1, %v534_v49  ;;  %6944 = vst [vmem:[#allocation2_spill] sm:$0xff] %v4903_v56  ;;  %4213 = vmatprep.subr.mxu1 %v482_v42  ;;  %6945 = vst [vmem:[#allocation3_spill] sm:$0xff] %v4907_v58  ;;  %v537_v61 = vrot.slane %v4895_v51, 1  ;;  %v394_v63 = vadd.f32 %v4832_v7, %v333_v52  ;;  %v311_v2 = vmul.f32 %v4816_v4, %v250_v53  ;;  %v255_v53 = vld [vmem:[%s4827_s12 + $0x50] sm:$0xff] }
  0x1d   : > { %4189 = vmatprep.mubr.msk.f32.mxu1 %vm621_vm1, %v4903_v56  ;;  %4166 = vmatmul.mubr.msk.f32.vlgmr.msra.gmra.mxu0 %vm621_vm1, %v536_v57  ;;  %v335_v3 = vmul.f32 %v4816_v4, %v274_v54  ;;  %v312_v5 = vmul.f32 %v4816_v4, %v251_v55  ;;  %v538_v6 = vrot.slane %v4913_v60, 1  ;;  %v395_v8 = vadd.f32 %v4832_v7, %v334_v62  ;;  %v278_v54 = vld [vmem:[%s4827_s12 + $0x108] sm:$0xff]  ;;  %v478_v55 = vld [vmem:[%s6842_s1 + $0x18] sm:$0xff] }
  0x1e   : > { %4190 = vmatmul.mubr.msk.f32.vlgmr.msra.gmra.mxu1 %vm621_vm1, %v4907_v58  ;;  %4277 = vmatprep.subr.mxu0 %v3512_v47  ;;  %v4931_v9 = vmax.f32 %v394_v63, 0.0  ;;  %v313_v10 = vmul.f32 %v4816_v4, %v252_v59  ;;  %v4939_v13 = vadd.f32 %v4832_v7, %v311_v2  ;;  %v336_v33 = vmul.f32 %v4816_v4, %v275_v11  ;;  %v279_v63 = vld [vmem:[%s4827_s12 + $0x110] sm:$0xff] }
  0x1f   : > { %4214 = vmatpush3.msra.mxu1 %v482_v42  ;;  %4278 = vmatpush3.msra.mxu0 %v3512_v47  ;;  %v4942_v14 = vadd.f32 %v4832_v7, %v335_v3  ;;  %v373_v15 = vadd.f32 %v4832_v7, %v312_v5  ;;  %v4952_v20 = vsel %vm531_vm0, %v537_v61, %v538_v6  ;;  %v4954_v21 = vmax.f32 %v395_v8, 0.0  ;;  %v277_v42 = vld [vmem:[%s4827_s12 + $0x100] sm:$0x3]  ;;  %v254_v47 = vld [vmem:[%s4827_s12 + $0x48] sm:$0xff]  ;;  %v477_v8 = vld [vmem:[%s6842_s1 + $0x10] sm:$0xff] }
  0x20   : > { %4215 = vmatprep.subr.mxu1 %v481_v0  ;;  %4279 = vmatprep.subr.mxu0 %v3511_v1  ;;  %6946 = vst [vmem:[#allocation4_spill] sm:$0xff] %v4952_v20  ;;  %v577_v22 = vrot.slane %v4931_v9, 1  ;;  %v374_v23 = vadd.f32 %v4832_v7, %v313_v10  ;;  %v6853_v25 = vmax.f32 %v4939_v13, 0.0  ;;  %v337_v40 = vmul.f32 %v4816_v4, %v276_v16  ;;  %v3507_v16 = vld [vmem:[%s6842_s1 + $0x90] sm:$0xff] }
  0x21   : > { %4216 = vmatpush3.msra.mxu1 %v481_v0  ;;  %4280 = vmatpush3.msra.mxu0 %v3511_v1  ;;  %v6848_v26 = vmax.f32 %v4942_v14, 0.0  ;;  %v4965_v29 = vmax.f32 %v373_v15, 0.0  ;;  %v578_v38 = vrot.slane %v4954_v21, 1  ;;  %v314_v41 = vmul.f32 %v4816_v4, %v253_v17  ;;  %v3508_v0 = vld [vmem:[%s6842_s1 + $0x98] sm:$0xff] }
  0x22   : > { %4168 = vmatprep.mubr.msk.f32.mxu0 %vm621_vm1, %v4952_v20  ;;  %4217 = vmatprep.subr.mxu1 %v480_v12  ;;  %v4972_v39 = vmax.f32 %v374_v23, 0.0  ;;  %v540_v43 = vrot.slane %v6853_v25, 1  ;;  %v397_v46 = vadd.f32 %v4832_v7, %v336_v33  ;;  %v398_v50 = vadd.f32 %v4832_v7, %v337_v40  ;;  %v280_v40 = vld [vmem:[%s4827_s12 + $0x118] sm:$0x3] }
  0x23   : > { %4218 = vmatpush3.msra.mxu1 %v480_v12  ;;  %4281 = vmatprep.subr.mxu0 %v3510_v18  ;;  %v580_v44 = vrot.slane %v6848_v26, 1  ;;  %v542_v45 = vrot.slane %v4965_v29, 1  ;;  %v4985_v48 = vsel %vm531_vm0, %v577_v22, %v578_v38  ;;  %v4990_v52 = vadd.f32 %v4832_v7, %v314_v41  ;;  %v257_v41 = vld [vmem:[%s4827_s12 + $0x60] sm:$0xff]  ;;  %v292_v20 = vld [vmem:[%s4827_s12 + $0x178] sm:$0x3] }
  0x24   : > { %4282 = vmatpush3.msra.mxu0 %v3510_v18  ;;  %4219 = vmatprep.subr.mxu1 %v479_v24  ;;  %6947 = vst [vmem:[#allocation5_spill] sm:$0xff] %v4985_v48  ;;  %v543_v49 = vrot.slane %v4972_v39, 1  ;;  %v5000_v57 = vsel %vm531_vm0, %v538_v6, %v540_v43  ;;  %v5005_v61 = vmax.f32 %v397_v46, 0.0  ;;  %v338_v62 = vmul.f32 %v4816_v4, %v277_v42  ;;  %v256_v6 = vld [vmem:[%s4827_s12 + $0x58] sm:$0x3]  ;;  %v476_v42 = vld [vmem:[%s6842_s1 + $0x8] sm:$0xff] }
  0x25   : > { %4220 = vmatpush3.msra.mxu1 %v479_v24  ;;  %4283 = vmatprep.subr.mxu0 %v3509_v37  ;;  %6948 = vst [vmem:[#allocation6_spill] sm:$0xff] %v5000_v57  ;;  %v5003_v59 = vsel %vm531_vm0, %v578_v38, %v580_v44  ;;  %v5019_v2 = vmax.f32 %v398_v50, 0.0  ;;  %v6851_v3 = vmax.f32 %v4990_v52, 0.0  ;;  %v315_v5 = vmul.f32 %v4816_v4, %v254_v47  ;;  %v3506_v47 = vld [vmem:[%s6842_s1 + $0x88] sm:$0xff] }
  0x26   : > { %4192 = vmatprep.mubr.msk.f32.mxu1 %vm621_vm1, %v4985_v48  ;;  %6949 = vst [vmem:[#allocation7_spill] sm:$0xff] %v5003_v59  ;;  %4284 = vmatpush3.msra.mxu0 %v3509_v37  ;;  %v5017_v1 = vsel %vm531_vm0, %v542_v45, %v543_v49  ;;  %v582_v10 = vrot.slane %v5005_v61, 1  ;;  %v5031_v11 = vadd.f32 %v4832_v7, %v338_v62  ;;  %v281_v62 = vld [vmem:[%s4827_s12 + $0x120] sm:$0xff] }
  0x27   : > { %4169 = vmatmul.mubr.msk.f32.gmra.mxu0 %vm621_vm1, %v5000_v57  ;;  %4193 = vmatmul.mubr.msk.f32.gmra.mxu1 %vm621_vm1, %v5003_v59  ;;  %6950 = vst [vmem:[#allocation8_spill] sm:$0xff] %v5017_v1  ;;  %v316_v12 = vmul.f32 %v4816_v4, %v255_v53  ;;  %v339_v15 = vmul.f32 %v4816_v4, %v278_v54  ;;  %v583_v17 = vrot.slane %v5019_v2, 1  ;;  %v545_v18 = vrot.slane %v6851_v3, 1  ;;  %v284_v3 = vld [vmem:[%s4827_s12 + $0x138] sm:$0xff]  ;;  %v265_v48 = vld [vmem:[%s4827_s12 + $0xa0] sm:$0x3] }
  0x28   : > { %4171 = vmatprep.mubr.msk.f32.mxu0 %vm621_vm1, %v5017_v1  ;;  %4221 = vmatprep.subr.mxu1 %v478_v55  ;;  %v376_v22 = vadd.f32 %v4832_v7, %v315_v5  ;;  %v340_v23 = vmul.f32 %v4816_v4, %v279_v63  ;;  %v6847_v24 = vmax.f32 %v5031_v11, 0.0  ;;  %v317_v38 = vmul.f32 %v4816_v4, %v256_v6  ;;  %v264_v59 = vld [vmem:[%s4827_s12 + $0x98] sm:$0xff] }
  0x29   : > { %4222 = vmatpush3.msra.mxu1 %v478_v55  ;;  %4285 = vmatprep.subr.mxu0 %v3508_v0  ;;  %v377_v33 = vadd.f32 %v4832_v7, %v316_v12  ;;  %v400_v37 = vadd.f32 %v4832_v7, %v339_v15  ;;  %v5053_v43 = vsel %vm531_vm0, %v582_v10, %v583_v17  ;;  %v258_v55 = vld [vmem:[%s4827_s12 + $0x68] sm:$0xff]  ;;  %v475_v10 = vld [vmem:[%s6842_s1] sm:$0xff] }
  0x2a   : > { %4286 = vmatpush3.msra.mxu0 %v3508_v0  ;;  %4223 = vmatprep.subr.mxu1 %v477_v8  ;;  %6951 = vst [vmem:[#allocation9_spill] sm:$0xff] %v5053_v43  ;;  %v5056_v44 = vsel %vm531_vm0, %v543_v49, %v545_v18  ;;  %v5058_v45 = vmax.f32 %v376_v22, 0.0  ;;  %v401_v46 = vadd.f32 %v4832_v7, %v340_v23  ;;  %v585_v49 = vrot.slane %v6847_v24, 1  ;;  %v3505_v12 = vld [vmem:[%s6842_s1 + $0x80] sm:$0xff] }
  0x2b   : > { %6952 = vst [vmem:[#allocation10_spill] sm:$0xff] %v5056_v44  ;;  %4224 = vmatpush3.msra.mxu1 %v477_v8  ;;  %4287 = vmatprep.subr.mxu0 %v3507_v16  ;;  %v5070_v50 = vmax.f32 %v377_v33, 0.0  ;;  %v5072_v53 = vmax.f32 %v400_v37, 0.0  ;;  %v5075_v54 = vadd.f32 %v4832_v7, %v317_v38  ;;  %v341_v5 = vmul.f32 %v4816_v4, %v280_v40  ;;  %v282_v8 = vld [vmem:[%s4827_s12 + $0x128] sm:$0xff]  ;;  %v259_v38 = vld [vmem:[%s4827_s12 + $0x70] sm:$0x3] }
  0x2c   : > { %4195 = vmatprep.mubr.msk.f32.mxu1 %vm621_vm1, %v5053_v43  ;;  %4172 = vmatmul.mubr.msk.f32.gmra.mxu0 %vm621_vm1, %v5056_v44  ;;  %v547_v63 = vrot.slane %v5058_v45, 1  ;;  %v5080_v0 = vmax.f32 %v401_v46, 0.0  ;;  %v318_v6 = vmul.f32 %v4816_v4, %v257_v41  ;;  %v5092_v15 = vsel %vm531_vm0, %v583_v17, %v585_v49  ;;  %v283_v49 = vld [vmem:[%s4827_s12 + $0x130] sm:$0x3] }
  0x2d   : > { %4288 = vmatpush3.msra.mxu0 %v3507_v16  ;;  %4225 = vmatprep.subr.mxu1 %v476_v42  ;;  %6953 = vst [vmem:[#allocation11_spill] sm:$0xff] %v5092_v15  ;;  %v548_v18 = vrot.slane %v5070_v50, 1  ;;  %v587_v22 = vrot.slane %v5072_v53, 1  ;;  %v6850_v23 = vmax.f32 %v5075_v54, 0.0  ;;  %v5101_v33 = vadd.f32 %v4832_v7, %v341_v5  ;;  %v263_v43 = vld [vmem:[%s4827_s12 + $0x90] sm:$0xff] }
  0x2e   : > { %4226 = vmatpush3.msra.mxu1 %v476_v42  ;;  %4289 = vmatprep.subr.mxu0 %v3506_v47  ;;  %v588_v16 = vrot.slane %v5080_v0, 1  ;;  %v319_v17 = vmul.f32 %v4816_v4, %v258_v55  ;;  %v379_v37 = vadd.f32 %v4832_v7, %v318_v6  ;;  %v342_v42 = vmul.f32 %v4816_v4, %v281_v62  ;;  %v5117_v55 = vld [vmem:[%s6842_s1 + $0xf8] sm:$0xff] }
  0x2f   : > { %4196 = vmatmul.mubr.msk.f32.gmra.mxu1 %vm621_vm1, %v5092_v15  ;;  %4290 = vmatpush3.msra.mxu0 %v3506_v47  ;;  %v5107_v40 = vsel %vm531_vm0, %v547_v63, %v548_v18  ;;  %v550_v41 = vrot.slane %v6850_v23, 1  ;;  %v343_v46 = vmul.f32 %v4816_v4, %v282_v8  ;;  %v6852_v63 = vmax.f32 %v5101_v33, 0.0  ;;  %v260_v6 = vld [vmem:[%s4827_s12 + $0x78] sm:$0xff] }
  0x30   : > { %6954 = vst [vmem:[#allocation12_spill] sm:$0xff] %v5107_v40  ;;  %4227 = vmatprep.subr.mxu1 %v475_v10  ;;  %4291 = vmatprep.subr.mxu0 %v3505_v12  ;;  %v5122_v47 = vsel %vm531_vm0, %v587_v22, %v588_v16  ;;  %v380_v62 = vadd.f32 %v4832_v7, %v319_v17  ;;  %v5126_v5 = vmax.f32 %v379_v37, 0.0  ;;  %v5141_v17 = vld [vmem:[%s6842_s1 + $0x138] sm:$0xff] }
  0x31   : > { %4174 = vmatprep.mubr.msk.f32.mxu0 %vm621_vm1, %v5107_v40  ;;  %6955 = vst [vmem:[#allocation13_spill] sm:$0xff] %v5122_v47  ;;  %4228 = vmatpush3.msra.mxu1 %v475_v10  ;;  %v5132_v8 = vsel %vm531_vm0, %v548_v18, %v550_v41  ;;  %v403_v24 = vadd.f32 %v4832_v7, %v342_v42  ;;  %v590_v10 = vrot.slane %v6852_v63, 1 }
  0x32   : > { %4198 = vmatprep.mubr.msk.f32.mxu1 %vm621_vm1, %v5122_v47  ;;  %6956 = vst [vmem:[#allocation14_spill] sm:$0xff] %v5132_v8  ;;  %v404_v22 = vadd.f32 %v4832_v7, %v343_v46  ;;  %v320_v26 = vmul.f32 %v4816_v4, %v259_v38  ;;  %4175 = vmatmul.mubr.msk.f32.gmra.mxu0 %vm621_vm1, %v5132_v8  ;;  %v5147_v18 = vmax.f32 %v380_v62, 0.0  ;;  %v552_v37 = vrot.slane %v5126_v5, 1 }
  0x33   : > { %v344_v41 = vmul.f32 %v4816_v4, %v283_v49  ;;  %4341 = vmatprep.subr.mxu1 %v5117_v55  ;;  %v5152_v38 = vmax.f32 %v403_v24, 0.0  ;;  %v321_v23 = vmul.f32 %v4816_v4, %v260_v6  ;;  %4292 = vmatpush3.msra.mxu0 %v3505_v12  ;;  %v5162_v62 = vsel %vm531_vm0, %v588_v16, %v590_v10  ;;  %v262_v10 = vld [vmem:[%s4827_s12 + $0x88] sm:$0x3] }
  0x34   : > { %v5154_v42 = vmax.f32 %v404_v22, 0.0  ;;  %v5157_v46 = vadd.f32 %v4832_v7, %v320_v26  ;;  %6957 = vst [vmem:[#allocation15_spill] sm:$0xff] %v5162_v62  ;;  %v553_v49 = vrot.slane %v5147_v18, 1  ;;  %v322_v24 = vmul.f32 %v4816_v4, %v261_v36  ;;  %v285_v22 = vld [vmem:[%s4827_s12 + $0x140] sm:$0xff]  ;;  %4405 = vmatprep.subr.mxu0 %v5141_v17  ;;  %4199 = vmatmul.mubr.msk.f32.gmra.mxu1 %vm621_vm1, %v5162_v62 }
  0x35   : > { %v5166_v63 = vadd.f32 %v4832_v7, %v344_v41  ;;  %v592_v26 = vrot.slane %v5152_v38, 1  ;;  %v382_v6 = vadd.f32 %v4832_v7, %v321_v23  ;;  %v345_v19 = vmul.f32 %v4816_v4, %v284_v3 }
  0x36   : > { %v593_v12 = vrot.slane %v5154_v42, 1  ;;  %v5179_v41 = vsel %vm531_vm0, %v552_v37, %v553_v49  ;;  %v383_v25 = vadd.f32 %v4832_v7, %v322_v24  ;;  %v6960_v23 = vmax.f32 %v5157_v46, 0.0 }
  0x37   : > { %6958 = vst [vmem:[#allocation16_spill] sm:$0xff] %v5179_v41  ;;  %v6867_v36 = vmax.f32 %v5166_v63, 0.0  ;;  %4177 = vmatprep.mubr.msk.f32.mxu0 %vm621_vm1, %v5179_v41  ;;  %v5192_v37 = vmax.f32 %v382_v6, 0.0  ;;  %v346_v47 = vmul.f32 %v4816_v4, %v285_v22  ;;  %v406_v15 = vadd.f32 %v4832_v7, %v345_v19 }
  0x38   : > { %v5188_v16 = vsel %vm531_vm0, %v592_v26, %v593_v12  ;;  %v555_v62 = vrot.slane %v6960_v23, 1  ;;  %v5199_v24 = vmax.f32 %v383_v25, 0.0  ;;  %v323_v26 = vmul.f32 %v4816_v4, %v262_v10 }
  0x39   : > { %6959 = vst [vmem:[#allocation17_spill] sm:$0xff] %v5188_v16  ;;  %4201 = vmatprep.mubr.msk.f32.mxu1 %vm621_vm1, %v5188_v16  ;;  %v595_v3 = vrot.slane %v6867_v36, 1  ;;  %v557_v22 = vrot.slane %v5192_v37, 1  ;;  %v407_v23 = vadd.f32 %v4832_v7, %v346_v47  ;;  %v347_v16 = vmul.f32 %v4816_v4, %v286_v35  ;;  %v287_v36 = vld [vmem:[%s4827_s12 + $0x150] sm:$0xff] }
  0x3a   : > { %v5206_v6 = vsel %vm531_vm0, %v553_v49, %v555_v62  ;;  %v558_v25 = vrot.slane %v5199_v24, 1  ;;  %v5218_v10 = vmax.f32 %v406_v15, 0.0  ;;  %v5221_v62 = vadd.f32 %v4832_v7, %v323_v26 }
  0x3b   : > { %6961 = vst [vmem:[#allocation18_spill] sm:$0xff] %v5206_v6  ;;  %4178 = vmatmul.mubr.msk.f32.gmra.mxu0 %vm621_vm1, %v5206_v6  ;;  %v5215_v19 = vsel %vm531_vm0, %v593_v12, %v595_v3  ;;  %v5225_v47 = vmax.f32 %v407_v23, 0.0  ;;  %v5228_v35 = vadd.f32 %v4832_v7, %v347_v16  ;;  %v324_v49 = vmul.f32 %v4816_v4, %v263_v43  ;;  %v288_v3 = vld [vmem:[%s4827_s12 + $0x158] sm:$0xff] }
  0x3c   : > { %6962 = vst [vmem:[#allocation19_spill] sm:$0xff] %v5215_v19  ;;  %4202 = vmatmul.mubr.msk.f32.gmra.mxu1 %vm621_vm1, %v5215_v19  ;;  %v325_v12 = vmul.f32 %v4816_v4, %v264_v59  ;;  %v5235_v15 = vsel %vm531_vm0, %v557_v22, %v558_v25  ;;  %v597_v26 = vrot.slane %v5218_v10, 1  ;;  %v6884_v58 = vmax.f32 %v5221_v62, 0.0 }
  0x3d   : > { %6963 = vst [vmem:[#allocation20_spill] sm:$0xff] %v5235_v15  ;;  %v348_v23 = vmul.f32 %v4816_v4, %v287_v36  ;;  %4180 = vmatprep.mubr.msk.f32.mxu0 %vm621_vm1, %v5235_v15  ;;  %v598_v43 = vrot.slane %v5225_v47, 1  ;;  %v6885_v59 = vmax.f32 %v5228_v35, 0.0  ;;  %v385_v16 = vadd.f32 %v4832_v7, %v324_v49  ;;  %v289_v15 = vld [vmem:[%s4827_s12 + $0x160] sm:$0x3] }
  0x3e   : > { %v386_v19 = vadd.f32 %v4832_v7, %v325_v12  ;;  %v560_v22 = vrot.slane %v6884_v58, 1  ;;  %v349_v56 = vmul.f32 %v4816_v4, %v288_v3  ;;  %v326_v6 = vmul.f32 %v4816_v4, %v265_v48  ;;  %v266_v58 = vld [vmem:[%s4827_s12 + $0xa8] sm:$0xff] }
  0x3f   : > { %v409_v36 = vadd.f32 %v4832_v7, %v348_v23  ;;  %v5253_v41 = vsel %vm531_vm0, %v597_v26, %v598_v43  ;;  %v600_v49 = vrot.slane %v6885_v59, 1  ;;  %v5257_v12 = vmax.f32 %v385_v16, 0.0  ;;  %v267_v59 = vld [vmem:[%s4827_s12 + $0xb0] sm:$0xff]  ;;  %v290_v16 = vld [vmem:[%s4827_s12 + $0x168] sm:$0xff] }
  0x40   : > { %6964 = vst [vmem:[#allocation21_spill] sm:$0xff] %v5253_v41  ;;  %v5259_v8 = vmax.f32 %v386_v19, 0.0  ;;  %4204 = vmatprep.mubr.msk.f32.mxu1 %vm621_vm1, %v5253_v41  ;;  %v5265_v3 = vsel %vm531_vm0, %v558_v25, %v560_v22  ;;  %v410_v48 = vadd.f32 %v4832_v7, %v349_v56  ;;  %v5271_v26 = vadd.f32 %v4832_v7, %v326_v6  ;;  %v291_v22 = vld [vmem:[%s4827_s12 + $0x170] sm:$0xff] }
  0x41   : > { %6965 = vst [vmem:[#allocation22_spill] sm:$0xff] %v5265_v3  ;;  %v5268_v23 = vmax.f32 %v409_v36, 0.0  ;;  %4181 = vmatmul.mubr.msk.f32.gmra.mxu0 %vm621_vm1, %v5265_v3  ;;  %v5278_v19 = vsel %vm531_vm0, %v598_v43, %v600_v49  ;;  %v562_v41 = vrot.slane %v5257_v12, 1  ;;  %v350_v56 = vmul.f32 %v4816_v4, %v289_v15  ;;  %v268_v49 = vld [vmem:[%s4827_s12 + $0xb8] sm:$0x3] }
  0x42   : > { %6966 = vst [vmem:[#allocation23_spill] sm:$0xff] %v5278_v19  ;;  %v563_v25 = vrot.slane %v5259_v8, 1  ;;  %4205 = vmatmul.mubr.msk.f32.gmra.mxu1 %vm621_vm1, %v5278_v19  ;;  %v5286_v6 = vmax.f32 %v410_v48, 0.0  ;;  %v6904_v3 = vmax.f32 %v5271_v26, 0.0  ;;  %v327_v43 = vmul.f32 %v4816_v4, %v266_v58 }
  0x43   : > { %v602_v36 = vrot.slane %v5268_v23, 1  ;;  %v5296_v15 = vadd.f32 %v4832_v7, %v350_v56  ;;  %v328_v44 = vmul.f32 %v4816_v4, %v267_v59  ;;  %v351_v19 = vmul.f32 %v4816_v4, %v290_v16 }
  0x44   : > { %6967 = vst [vmem:[#allocation24_spill] sm:$0xff] %v5286_v6  ;;  %v5293_v40 = vsel %vm531_vm0, %v562_v41, %v563_v25  ;;  %v603_v48 = vrot.slane %v5286_v6, 1  ;;  %v565_v1 = vrot.slane %v6904_v3, 1  ;;  %v388_v58 = vadd.f32 %v4832_v7, %v327_v43 }
  0x45   : > { %6968 = vst [vmem:[#allocation25_spill] sm:$0xff] %v5293_v40  ;;  %4183 = vmatprep.mubr.msk.f32.mxu0 %vm621_vm1, %v5293_v40  ;;  %v352_v41 = vmul.f32 %v4816_v4, %v291_v22  ;;  %v6905_v57 = vmax.f32 %v5296_v15, 0.0  ;;  %v389_v56 = vadd.f32 %v4832_v7, %v328_v44  ;;  %v412_v59 = vadd.f32 %v4832_v7, %v351_v19 }
  0x46   : > { %v329_v16 = vmul.f32 %v4816_v4, %v268_v49  ;;  %v5313_v40 = vsel %vm531_vm0, %v602_v36, %v603_v48  ;;  %v5316_v6 = vsel %vm531_vm0, %v563_v25, %v565_v1  ;;  %v5318_v3 = vmax.f32 %v388_v58, 0.0 }
  0x47   : > { %6969 = vst [vmem:[#allocation26_spill] sm:$0xff] %v5313_v40  ;;  %6970 = vst [vmem:[#allocation27_spill] sm:$0xff] %v5316_v6  ;;  %v413_v43 = vadd.f32 %v4832_v7, %v352_v41  ;;  %4207 = vmatprep.mubr.msk.f32.mxu1 %vm621_vm1, %v5313_v40  ;;  %4184 = vmatmul.mubr.msk.f32.gmra.mxu0 %vm621_vm1, %v5316_v6  ;;  %v605_v44 = vrot.slane %v6905_v57, 1  ;;  %v5327_v19 = vmax.f32 %v389_v56, 0.0  ;;  %v5329_v22 = vmax.f32 %v412_v59, 0.0 }
  0x48   : > { %v5332_v1 = vadd.f32 %v4832_v7, %v329_v16  ;;  %v567_v25 = vrot.slane %v5318_v3, 1  ;;  %v353_v49 = vmul.f32 %v4816_v4, %v292_v20  ;;  %v1202_v58 = vrot.slane %v4866_v31, 2 }
  0x49   : > { %v5335_v36 = vmax.f32 %v413_v43, 0.0  ;;  %v5340_v41 = vsel %vm531_vm0, %v603_v48, %v605_v44  ;;  %v568_v57 = vrot.slane %v5327_v19, 1  ;;  %v607_v56 = vrot.slane %v5329_v22, 1 }
  0x4a   : > { %6971 = vst [vmem:[#allocation28_spill] sm:$0xff] %v5340_v41  ;;  %v6910_v59 = vmax.f32 %v5332_v1, 0.0  ;;  %4208 = vmatmul.mubr.msk.f32.gmra.mxu1 %vm621_vm1, %v5340_v41  ;;  %v5349_v43 = vadd.f32 %v4832_v7, %v353_v49  ;;  %v6972_v4 = vmax.f32 %v4856_v27, 0.0  ;;  %v1206_v40 = vrot.slane %v4895_v51, 2 }
  0x4b   : > { %v608_v16 = vrot.slane %v5335_v36, 1  ;;  %v5354_v48 = vsel %vm531_vm0, %v567_v25, %v568_v57  ;;  %v6975_v49 = vrot.slane %v4864_v30, 2  ;;  %v1207_v25 = vrot.slane %v4913_v60, 2 }
  0x4c   : > { %v1204_v20 = vrot.slane %v6972_v4, 2  ;;  %6973 = vst [vmem:[#allocation29_spill] sm:$0xff] %v5354_v48  ;;  %v570_v44 = vrot.slane %v6910_v59, 1  ;;  %4186 = vmatprep.mubr.msk.f32.mxu0 %vm621_vm1, %v5354_v48  ;;  %v6915_v7 = vmax.f32 %v5349_v43, 0.0 }
  0x4d   : > { %v5362_v41 = vsel %vm531_vm0, %v607_v56, %v608_v16  ;;  %v1203_v27 = vsel %vm1200_vm2, %v6975_v49, %v1202_v58  ;;  %v5384_v48 = vsel %vm1200_vm2, %v1206_v40, %v1207_v25  ;;  %v3551_v40 = vld [vmem:[%s6842_s1 + $0xf0] sm:$0xff] }
  0x4e   : > { %6974 = vst [vmem:[#allocation30_spill] sm:$0xff] %v5362_v41  ;;  %4210 = vmatprep.mubr.msk.f32.mxu1 %vm621_vm1, %v5362_v41  ;;  %v5372_v4 = vsel %vm531_vm0, %v568_v57, %v570_v44  ;;  %v610_v56 = vrot.slane %v6915_v7, 1  ;;  %v1205_v59 = vsel %vm1200_vm2, %v1202_v58, %v1204_v20  ;;  %v6978_v41 = vmax.f32 %v4939_v13, 0.0  ;;  %v3591_v58 = vld [vmem:[%s6842_s1 + $0x130] sm:$0xff] }
  0x4f   : > { %6976 = vst [vmem:[#allocation31_spill] sm:$0xff] %v5372_v4  ;;  %4187 = vmatmul.mubr.msk.f32.gmra.mxu0 %vm621_vm1, %v5372_v4  ;;  %v1211_v44 = vrot.slane %v4965_v29, 2  ;;  %v1212_v7 = vrot.slane %v4972_v39, 2 }
  0x50   : > { %4293 = vmatprep.mubr.msk.f32.mxu0 %vm621_vm1, %v1203_v27  ;;  %v5381_v49 = vsel %vm531_vm0, %v608_v16, %v610_v56  ;;  %v1209_v57 = vrot.slane %v6978_v41, 2  ;;  %v6979_v41 = vmax.f32 %v4990_v52, 0.0  ;;  %v3550_v52 = vld [vmem:[%s6842_s1 + $0xe8] sm:$0xff]  ;;  %v1221_v56 = vrot.slane %v5126_v5, 2 }
  0x51   : > { %6977 = vst [vmem:[#allocation32_spill] sm:$0xff] %v5381_v49  ;;  %4211 = vmatmul.mubr.msk.f32.gmra.mxu1 %vm621_vm1, %v5381_v49  ;;  %v3590_v27 = vld [vmem:[%s6842_s1 + $0x128] sm:$0xff] }
  0x52   : > { %4229 = vmatprep.mubr.msk.f32.mxu1 %vm621_vm1, %v4864_v30  ;;  %v5402_v13 = vsel %vm1200_vm2, %v1207_v25, %v1209_v57  ;;  %v1214_v16 = vrot.slane %v6979_v41, 2  ;;  %v5412_v30 = vsel %vm1200_vm2, %v1211_v44, %v1212_v7  ;;  %v1222_v57 = vrot.slane %v5147_v18, 2 }
  0x53   : > { %4294 = vmatmul.mubr.msk.f32.vlgmr.msra.gmra.mxu0 %vm621_vm1, %v1205_v59  ;;  %v1217_v59 = vrot.slane %v5070_v50, 2  ;;  %v6981_v44 = vmax.f32 %v5157_v46, 0.0  ;;  %v3548_v46 = vld [vmem:[%s6842_s1 + $0xd8] sm:$0xff] }
  0x54   : > { %4406 = vmatpush3.msra.mxu0 %v5141_v17  ;;  %4296 = vmatprep.mubr.msk.f32.mxu0 %vm621_vm1, %v5384_v48  ;;  %v1216_v17 = vrot.slane %v5058_v45, 2  ;;  %v5461_v41 = vsel %vm1200_vm2, %v1221_v56, %v1222_v57  ;;  %v1231_v56 = vrot.slane %v5257_v12, 2 }
  0x55   : > { %4407 = vmatprep.subr.mxu0 %v3591_v58  ;;  %4230 = vmatmul.mubr.msk.f32.vlgmr.msra.gmra.mxu1 %vm621_vm1, %v4866_v31  ;;  %v5427_v31 = vsel %vm1200_vm2, %v1212_v7, %v1214_v16  ;;  %v1226_v16 = vrot.slane %v5192_v37, 2 }
  0x56   : > { %4408 = vmatpush3.msra.mxu0 %v3591_v58  ;;  %4342 = vmatpush3.msra.mxu1 %v5117_v55  ;;  %v6980_v55 = vmax.f32 %v5075_v54, 0.0  ;;  %v5437_v25 = vsel %vm1200_vm2, %v1216_v17, %v1217_v59  ;;  %v3549_v54 = vld [vmem:[%s6842_s1 + $0xe0] sm:$0xff]  ;;  %v1224_v58 = vrot.slane %v6981_v44, 2  ;;  %v1227_v17 = vrot.slane %v5199_v24, 2 }
  0x57   : > { %4232 = vmatprep.mubr.msk.f32.mxu1 %vm621_vm1, %v4895_v51  ;;  %4297 = vmatmul.mubr.msk.f32.gmra.mxu0 %vm621_vm1, %v5402_v13  ;;  %v6983_v44 = vmax.f32 %v5271_v26, 0.0  ;;  %v3546_v26 = vld [vmem:[%s6842_s1 + $0xc8] sm:$0xff] }
  0x58   : > { %4343 = vmatprep.subr.mxu1 %v3551_v40  ;;  %4299 = vmatprep.mubr.msk.f32.mxu0 %vm621_vm1, %v5412_v30  ;;  %v1219_v20 = vrot.slane %v6980_v55, 2 }
  0x59   : > { %4344 = vmatpush3.msra.mxu1 %v3551_v40  ;;  %4409 = vmatprep.subr.mxu0 %v3590_v27  ;;  %v3589_v40 = vld [vmem:[%s6842_s1 + $0x120] sm:$0xff] }
  0x5a   : > { %4233 = vmatmul.mubr.msk.f32.gmra.mxu1 %vm621_vm1, %v4913_v60  ;;  %4345 = vmatprep.subr.mxu1 %v3550_v52  ;;  %v5451_v7 = vsel %vm1200_vm2, %v1217_v59, %v1219_v20  ;;  %v5475_v59 = vsel %vm1200_vm2, %v1222_v57, %v1224_v58  ;;  %v3588_v20 = vld [vmem:[%s6842_s1 + $0x118] sm:$0xff]  ;;  %v1234_v58 = vrot.slane %v6983_v44, 2  ;;  %v1241_v44 = vrot.slane %v4868_v32, 2 }
  0x5b   : > { %4235 = vmatprep.mubr.msk.f32.mxu1 %vm621_vm1, %v4965_v29  ;;  %4346 = vmatpush3.msra.mxu1 %v3550_v52  ;;  %v6982_v52 = vmax.f32 %v5221_v62, 0.0  ;;  %v3547_v62 = vld [vmem:[%s6842_s1 + $0xd0] sm:$0xff] }
  0x5c   : > { %4300 = vmatmul.mubr.msk.f32.gmra.mxu0 %vm621_vm1, %v5427_v31  ;;  %4347 = vmatprep.subr.mxu1 %v3549_v54 }
  0x5d   : > { %4302 = vmatprep.mubr.msk.f32.mxu0 %vm621_vm1, %v5437_v25  ;;  %4410 = vmatpush3.msra.mxu0 %v3590_v27  ;;  %v1229_v55 = vrot.slane %v6982_v52, 2  ;;  %v5485_v27 = vsel %vm1200_vm2, %v1226_v16, %v1227_v17  ;;  %v1237_v52 = vrot.slane %v5327_v19, 2 }
  0x5e   : > { %4236 = vmatmul.mubr.msk.f32.gmra.mxu1 %vm621_vm1, %v4972_v39  ;;  %4411 = vmatprep.subr.mxu0 %v3589_v40 }
  0x5f   : > { %4238 = vmatprep.mubr.msk.f32.mxu1 %vm621_vm1, %v5058_v45  ;;  %4348 = vmatpush3.msra.mxu1 %v3549_v54  ;;  %v1232_v54 = vrot.slane %v5259_v8, 2  ;;  %v5499_v57 = vsel %vm1200_vm2, %v1227_v17, %v1229_v55  ;;  %v6985_v55 = vmax.f32 %v5332_v1, 0.0  ;;  %v3545_v1 = vld [vmem:[%s6842_s1 + $0xc0] sm:$0xff] }
  0x60   : > { %4303 = vmatmul.mubr.msk.f32.gmra.mxu0 %vm621_vm1, %v5451_v7  ;;  %4349 = vmatprep.subr.mxu1 %v3548_v46 }
  0x61   : > { %4305 = vmatprep.mubr.msk.f32.mxu0 %vm621_vm1, %v5461_v41  ;;  %4412 = vmatpush3.msra.mxu0 %v3589_v40  ;;  %v3587_v40 = vld [vmem:[%s6842_s1 + $0x110] sm:$0xff]  ;;  %v5509_v16 = vsel %vm1200_vm2, %v1231_v56, %v1232_v54  ;;  %v5523_v17 = vsel %vm1200_vm2, %v1232_v54, %v1234_v58  ;;  %v3586_v56 = vld [vmem:[%s6842_s1 + $0x108] sm:$0xff]  ;;  %v6988_v58 = vmax.f32 %v4859_v28, 0.0  ;;  %v5566_v28 = vld [vmem:[%s6842_s1 + $0x178] sm:$0xff] }
  0x62   : > { %4239 = vmatmul.mubr.msk.f32.gmra.mxu1 %vm621_vm1, %v5070_v50  ;;  %4413 = vmatprep.subr.mxu0 %v3588_v20  ;;  %6984 = vst [vmem:[#allocation33_spill] sm:$0xff] %v5509_v16 }
  0x63   : > { %4241 = vmatprep.mubr.msk.f32.mxu1 %vm621_vm1, %v5126_v5  ;;  %4350 = vmatpush3.msra.mxu1 %v3548_v46  ;;  %v1236_v46 = vrot.slane %v5318_v3, 2 }
  0x64   : > { %4306 = vmatmul.mubr.msk.f32.gmra.mxu0 %vm621_vm1, %v5475_v59  ;;  %4351 = vmatprep.subr.mxu1 %v3547_v62 }
  0x65   : > { %4308 = vmatprep.mubr.msk.f32.mxu0 %vm621_vm1, %v5485_v27  ;;  %4414 = vmatpush3.msra.mxu0 %v3588_v20  ;;  %v1239_v20 = vrot.slane %v6985_v55, 2  ;;  %v1246_v55 = vrot.slane %v4931_v9, 2 }
  0x66   : > { %4242 = vmatmul.mubr.msk.f32.gmra.mxu1 %vm621_vm1, %v5147_v18  ;;  %4415 = vmatprep.subr.mxu0 %v3587_v40 }
  0x67   : > { %4244 = vmatprep.mubr.msk.f32.mxu1 %vm621_vm1, %v5192_v37  ;;  %4352 = vmatpush3.msra.mxu1 %v3547_v62  ;;  %v5533_v62 = vsel %vm1200_vm2, %v1236_v46, %v1237_v52  ;;  %v5547_v54 = vsel %vm1200_vm2, %v1237_v52, %v1239_v20  ;;  %v3585_v46 = vld [vmem:[%s6842_s1 + $0x100] sm:$0xff]  ;;  %v5573_v52 = vld [vmem:[%s6842_s1 + $0x1b8] sm:$0xff] }
  0x68   : > { %4309 = vmatmul.mubr.msk.f32.gmra.mxu0 %vm621_vm1, %v5499_v57  ;;  %6986 = vst [vmem:[#allocation34_spill] sm:$0xff] %v5533_v62  ;;  %4353 = vmatprep.subr.mxu1 %v3546_v26  ;;  %6987 = vst [vmem:[#allocation35_spill] sm:$0xff] %v5547_v54 }
  0x69   : > { %4311 = vmatprep.mubr.msk.f32.mxu0 %vm621_vm1, %v5509_v16  ;;  %4416 = vmatpush3.msra.mxu0 %v3587_v40  ;;  %v1242_v16 = vrot.slane %v4871_v34, 2  ;;  %v1244_v40 = vrot.slane %v6988_v58, 2  ;;  %v1251_v58 = vrot.slane %v5005_v61, 2 }
  0x6a   : > { %4245 = vmatmul.mubr.msk.f32.gmra.mxu1 %vm621_vm1, %v5199_v24  ;;  %4417 = vmatprep.subr.mxu0 %v3586_v56 }
  0x6b   : > { %4247 = vmatprep.mubr.msk.f32.mxu1 %vm621_vm1, %v5257_v12  ;;  %4354 = vmatpush3.msra.mxu1 %v3546_v26  ;;  %v5557_v26 = vsel %vm1200_vm2, %v1241_v44, %v1242_v16  ;;  %v5578_v20 = vsel %vm1200_vm2, %v1242_v16, %v1244_v40  ;;  %v6991_v16 = vmax.f32 %v5031_v11, 0.0 }
  0x6c   : > { %4312 = vmatmul.mubr.msk.f32.gmra.mxu0 %vm621_vm1, %v5523_v17  ;;  %4355 = vmatprep.subr.mxu1 %v3545_v1 }
  0x6d   : > { %4314 = vmatprep.mubr.msk.f32.mxu0 %vm621_vm1, %v5533_v62  ;;  %4418 = vmatpush3.msra.mxu0 %v3586_v56  ;;  %v1247_v62 = vrot.slane %v4954_v21, 2  ;;  %v6989_v56 = vmax.f32 %v4942_v14, 0.0  ;;  %v1254_v40 = vrot.slane %v6991_v16, 2  ;;  %v1261_v16 = vrot.slane %v5152_v38, 2 }
  0x6e   : > { %4248 = vmatmul.mubr.msk.f32.gmra.mxu1 %vm621_vm1, %v5259_v8  ;;  %4419 = vmatprep.subr.mxu0 %v3585_v46 }
  0x6f   : > { %4250 = vmatprep.mubr.msk.f32.mxu1 %vm621_vm1, %v5318_v3  ;;  %4356 = vmatpush3.msra.mxu1 %v3545_v1  ;;  %v1249_v44 = vrot.slane %v6989_v56, 2  ;;  %v5585_v1 = vsel %vm1200_vm2, %v1246_v55, %v1247_v62  ;;  %v1256_v55 = vrot.slane %v5072_v53, 2  ;;  %v1257_v56 = vrot.slane %v5080_v0, 2 }
  0x70   : > { %4315 = vmatmul.mubr.msk.f32.gmra.mxu0 %vm621_vm1, %v5547_v54  ;;  %6990 = vst [vmem:[#allocation36_spill] sm:$0xff] %v5585_v1  ;;  %v1252_v54 = vrot.slane %v5019_v2, 2  ;;  %4469 = vmatprep.subr.mxu1 %v5566_v28 }
  0x71   : > { %4317 = vmatprep.mubr.msk.f32.mxu0 %vm621_vm1, %v5557_v26  ;;  %4420 = vmatpush3.msra.mxu0 %v3585_v46  ;;  %v5598_v14 = vsel %vm1200_vm2, %v1247_v62, %v1249_v44  ;;  %v6994_v62 = vmax.f32 %v5101_v33, 0.0 }
  0x72   : > { %4251 = vmatmul.mubr.msk.f32.gmra.mxu1 %vm621_vm1, %v5327_v19  ;;  %4533 = vmatprep.subr.mxu0 %v5573_v52  ;;  %v5605_v46 = vsel %vm1200_vm2, %v1251_v58, %v1252_v54  ;;  %v5616_v11 = vsel %vm1200_vm2, %v1252_v54, %v1254_v40  ;;  %v5623_v58 = vsel %vm1200_vm2, %v1256_v55, %v1257_v56  ;;  %v6996_v54 = vmax.f32 %v5166_v63, 0.0 }
  0x73   : > { %4253 = vmatprep.mubr.msk.f32.mxu1 %vm621_vm1, %v4868_v32  ;;  %6992 = vst [vmem:[#allocation37_spill] sm:$0xff] %v5605_v46  ;;  %6993 = vst [vmem:[#allocation38_spill] sm:$0xff] %v5616_v11  ;;  %v1259_v44 = vrot.slane %v6994_v62, 2  ;;  %v1266_v62 = vrot.slane %v5218_v10, 2 }
  0x74   : > { %4318 = vmatmul.mubr.msk.f32.gmra.mxu0 %vm621_vm1, %v5578_v20  ;;  %6995 = vst [vmem:[#allocation39_spill] sm:$0xff] %v5623_v58  ;;  %v1264_v40 = vrot.slane %v6996_v54, 2  ;;  %v1271_v54 = vrot.slane %v5268_v23, 2 }
  0x75   : > { %4320 = vmatprep.mubr.msk.f32.mxu0 %vm621_vm1, %v5585_v1  ;;  %v1262_v1 = vrot.slane %v5154_v42, 2  ;;  %v5634_v33 = vsel %vm1200_vm2, %v1257_v56, %v1259_v44  ;;  %v6998_v56 = vmax.f32 %v5228_v35, 0.0 }
  0x76   : > { %4254 = vmatmul.mubr.msk.f32.gmra.mxu1 %vm621_vm1, %v4871_v34 }
  0x77   : > { %4256 = vmatprep.mubr.msk.f32.mxu1 %vm621_vm1, %v4931_v9  ;;  %v5641_v55 = vsel %vm1200_vm2, %v1261_v16, %v1262_v1  ;;  %v5652_v63 = vsel %vm1200_vm2, %v1262_v1, %v1264_v40  ;;  %v1269_v44 = vrot.slane %v6998_v56, 2  ;;  %v7000_v1 = vmax.f32 %v5296_v15, 0.0 }
  0x78   : > { %4321 = vmatmul.mubr.msk.f32.gmra.mxu0 %vm621_vm1, %v5598_v14  ;;  %6997 = vst [vmem:[#allocation40_spill] sm:$0xff] %v5641_v55  ;;  %v1276_v56 = vrot.slane %v5329_v22, 2 }
  0x79   : > { %4323 = vmatprep.mubr.msk.f32.mxu0 %vm621_vm1, %v5605_v46  ;;  %v1267_v46 = vrot.slane %v5225_v47, 2  ;;  %v1274_v40 = vrot.slane %v7000_v1, 2  ;;  %v7004_v1 = vld [vmem:[#allocation6_spill] sm:$0xff] }
  0x7a   : > { %4257 = vmatmul.mubr.msk.f32.gmra.mxu1 %vm621_vm1, %v4954_v21 }
  0x7b   : > { %4259 = vmatprep.mubr.msk.f32.mxu1 %vm621_vm1, %v5005_v61  ;;  %v5659_v16 = vsel %vm1200_vm2, %v1266_v62, %v1267_v46  ;;  %v5670_v35 = vsel %vm1200_vm2, %v1267_v46, %v1269_v44  ;;  %v7001_v46 = vmax.f32 %v5349_v43, 0.0  ;;  %v7003_v43 = vld [vmem:[#allocation4_spill] sm:$0xff] }
  0x7c   : > { %4324 = vmatmul.mubr.msk.f32.gmra.mxu0 %vm621_vm1, %v5616_v11 }
  0x7d   : > { %4326 = vmatprep.mubr.msk.f32.mxu0 %vm621_vm1, %v5623_v58  ;;  %v6999_v58 = vld [vmem:[#allocation24_spill] sm:$0xff]  ;;  %v1279_v44 = vrot.slane %v7001_v46, 2 }
  0x7e   : > { %4260 = vmatmul.mubr.msk.f32.gmra.mxu1 %vm621_vm1, %v5019_v2  ;;  %v1272_v11 = vrot.slane %v6999_v58, 2  ;;  %v7007_v46 = vld [vmem:[#allocation12_spill] sm:$0xff] }
  0x7f   : > { %4262 = vmatprep.mubr.msk.f32.mxu1 %vm621_vm1, %v5072_v53 }
  0x80   : > { %4327 = vmatmul.mubr.msk.f32.gmra.mxu0 %vm621_vm1, %v5634_v33  ;;  %v5677_v62 = vsel %vm1200_vm2, %v1271_v54, %v1272_v11  ;;  %v5688_v15 = vsel %vm1200_vm2, %v1272_v11, %v1274_v40  ;;  %v7005_v40 = vld [vmem:[#allocation8_spill] sm:$0xff] }
  0x81   : > { %4329 = vmatprep.mubr.msk.f32.mxu0 %vm621_vm1, %v5641_v55  ;;  %v1277_v55 = vrot.slane %v5335_v36, 2 }
  0x82   : > { %4263 = vmatmul.mubr.msk.f32.gmra.mxu1 %vm621_vm1, %v5080_v0 }
  0x83   : > { %4265 = vmatprep.mubr.msk.f32.mxu1 %vm621_vm1, %v5152_v38  ;;  %v5695_v54 = vsel %vm1200_vm2, %v1276_v56, %v1277_v55  ;;  %v5704_v11 = vsel %vm1200_vm2, %v1277_v55, %v1279_v44  ;;  %v3671_v55 = vld [vmem:[%s6842_s1 + $0x1b0] sm:$0xff]  ;;  %v3629_v44 = vld [vmem:[%s6842_s1 + $0x160] sm:$0xff] }
  0x84   : > { %4330 = vmatmul.mubr.msk.f32.gmra.mxu0 %vm621_vm1, %v5652_v63  ;;  %7002 = vst [vmem:[#allocation24_spill] sm:$0xff] %v5704_v11  ;;  %v3631_v56 = vld [vmem:[%s6842_s1 + $0x170] sm:$0xff] }
  0x85   : > { %4332 = vmatprep.mubr.msk.f32.mxu0 %vm621_vm1, %v5659_v16 }
  0x86   : > { %4266 = vmatmul.mubr.msk.f32.gmra.mxu1 %vm621_vm1, %v5154_v42 }
  0x87   : > { %4268 = vmatprep.mubr.msk.f32.mxu1 %vm621_vm1, %v5218_v10 }
  0x88   : > { %4333 = vmatmul.mubr.msk.f32.gmra.mxu0 %vm621_vm1, %v5670_v35 }
  0x89   : > { %4335 = vmatprep.mubr.msk.f32.mxu0 %vm621_vm1, %v5677_v62 }
  0x8a   : > { %4269 = vmatmul.mubr.msk.f32.gmra.mxu1 %vm621_vm1, %v5225_v47 }
  0x8b   : > { %4271 = vmatprep.mubr.msk.f32.mxu1 %vm621_vm1, %v5268_v23 }
  0x8c   : > { %4336 = vmatmul.mubr.msk.f32.gmra.mxu0 %vm621_vm1, %v5688_v15 }
  0x8d   : > { %4338 = vmatprep.mubr.msk.f32.mxu0 %vm621_vm1, %v5695_v54 }
  0x8e   : > { %4272 = vmatmul.mubr.msk.f32.gmra.mxu1 %vm621_vm1, %v6999_v58 }
  0x8f   : > { %4274 = vmatprep.mubr.msk.f32.mxu1 %vm621_vm1, %v5329_v22 }
  0x90   : > { %4339 = vmatmul.mubr.msk.f32.gmra.mxu0 %vm621_vm1, %v5704_v11  ;;  %v7029_v11 = vld [vmem:[#allocation30_spill] sm:$0xff] }
  0x91   : > { %4421 = vmatprep.mubr.msk.f32.mxu0 %vm621_vm1, %v7003_v43  ;;  %v7009_v43 = vld [vmem:[#allocation16_spill] sm:$0xff] }
  0x92   : > { %4275 = vmatmul.mubr.msk.f32.gmra.mxu1 %vm621_vm1, %v5335_v36 }
  0x93   : > { %4357 = vmatprep.mubr.msk.f32.mxu1 %vm621_vm1, %v4895_v51  ;;  %v7006_v51 = vld [vmem:[#allocation10_spill] sm:$0xff] }
  0x94   : > { %4422 = vmatmul.mubr.msk.f32.vlgmr.msra.gmra.mxu0 %vm621_vm1, %v7004_v1  ;;  %v7010_v1 = vld [vmem:[#allocation18_spill] sm:$0xff] }
  0x95   : > { %4534 = vmatpush3.msra.mxu0 %v5573_v52  ;;  %4424 = vmatprep.mubr.msk.f32.mxu0 %vm621_vm1, %v7005_v40  ;;  %v3630_v52 = vld [vmem:[%s6842_s1 + $0x168] sm:$0xff] }
  0x96   : > { %4358 = vmatmul.mubr.msk.f32.vlgmr.msra.gmra.mxu1 %vm621_vm1, %v4913_v60  ;;  %4535 = vmatprep.subr.mxu0 %v3671_v55  ;;  %v3670_v60 = vld [vmem:[%s6842_s1 + $0x1a8] sm:$0xff] }
  0x97   : > { %4470 = vmatpush3.msra.mxu1 %v5566_v28  ;;  %4360 = vmatprep.mubr.msk.f32.mxu1 %vm621_vm1, %v4965_v29  ;;  %v7008_v28 = vld [vmem:[#allocation14_spill] sm:$0xff] }
  0x98   : > { %4425 = vmatmul.mubr.msk.f32.gmra.mxu0 %vm621_vm1, %v7006_v51  ;;  %4471 = vmatprep.subr.mxu1 %v3631_v56 }
  0x99   : > { %4427 = vmatprep.mubr.msk.f32.mxu0 %vm621_vm1, %v7007_v46  ;;  %4472 = vmatpush3.msra.mxu1 %v3631_v56  ;;  %v3628_v56 = vld [vmem:[%s6842_s1 + $0x158] sm:$0xff] }
  0x9a   : > { %4361 = vmatmul.mubr.msk.f32.gmra.mxu1 %vm621_vm1, %v4972_v39  ;;  %4536 = vmatpush3.msra.mxu0 %v3671_v55  ;;  %v3669_v55 = vld [vmem:[%s6842_s1 + $0x1a0] sm:$0xff] }
  0x9b   : > { %4363 = vmatprep.mubr.msk.f32.mxu1 %vm621_vm1, %v5058_v45  ;;  %4473 = vmatprep.subr.mxu1 %v3630_v52 }
  0x9c   : > { %4428 = vmatmul.mubr.msk.f32.gmra.mxu0 %vm621_vm1, %v7008_v28  ;;  %4474 = vmatpush3.msra.mxu1 %v3630_v52  ;;  %v7011_v52 = vld [vmem:[#allocation20_spill] sm:$0xff] }
  0x9d   : > { %4430 = vmatprep.mubr.msk.f32.mxu0 %vm621_vm1, %v7009_v43  ;;  %4537 = vmatprep.subr.mxu0 %v3670_v60  ;;  %v295_v28 = vld [vmem:[%s4827_s12 + $0x190] sm:$0x3] }
  0x9e   : > { %4364 = vmatmul.mubr.msk.f32.gmra.mxu1 %vm621_vm1, %v5070_v50  ;;  %4538 = vmatpush3.msra.mxu0 %v3670_v60  ;;  %v3668_v60 = vld [vmem:[%s6842_s1 + $0x198] sm:$0xff] }
  0x9f   : > { %4366 = vmatprep.mubr.msk.f32.mxu1 %vm621_vm1, %v5126_v5  ;;  %4475 = vmatprep.subr.mxu1 %v3629_v44 }
  0xa0   : > { %4431 = vmatmul.mubr.msk.f32.gmra.mxu0 %vm621_vm1, %v7010_v1  ;;  %4476 = vmatpush3.msra.mxu1 %v3629_v44  ;;  %v7012_v44 = vld [vmem:[#allocation22_spill] sm:$0xff]  ;;  %v7013_v1 = vld [vmem:[#allocation25_spill] sm:$0xff] }
  0xa1   : > { %4433 = vmatprep.mubr.msk.f32.mxu0 %vm621_vm1, %v7011_v52  ;;  %4539 = vmatprep.subr.mxu0 %v3669_v55  ;;  %v3627_v52 = vld [vmem:[%s6842_s1 + $0x150] sm:$0xff] }
  0xa2   : > { %4367 = vmatmul.mubr.msk.f32.gmra.mxu1 %vm621_vm1, %v5147_v18  ;;  %4540 = vmatpush3.msra.mxu0 %v3669_v55  ;;  %v3667_v55 = vld [vmem:[%s6842_s1 + $0x190] sm:$0xff] }
  0xa3   : > { %4369 = vmatprep.mubr.msk.f32.mxu1 %vm621_vm1, %v5192_v37  ;;  %4477 = vmatprep.subr.mxu1 %v3628_v56 }
  0xa4   : > { %4434 = vmatmul.mubr.msk.f32.gmra.mxu0 %vm621_vm1, %v7012_v44  ;;  %4478 = vmatpush3.msra.mxu1 %v3628_v56  ;;  %v3626_v56 = vld [vmem:[%s6842_s1 + $0x148] sm:$0xff]  ;;  %v7021_v44 = vld [vmem:[#allocation13_spill] sm:$0xff] }
  0xa5   : > { %4436 = vmatprep.mubr.msk.f32.mxu0 %vm621_vm1, %v7013_v1  ;;  %4541 = vmatprep.subr.mxu0 %v3668_v60  ;;  %v7014_v1 = vld [vmem:[#allocation29_spill] sm:$0xff] }
  0xa6   : > { %4370 = vmatmul.mubr.msk.f32.gmra.mxu1 %vm621_vm1, %v5199_v24  ;;  %4542 = vmatpush3.msra.mxu0 %v3668_v60  ;;  %v3666_v60 = vld [vmem:[%s6842_s1 + $0x188] sm:$0xff] }
  0xa7   : > { %4372 = vmatprep.mubr.msk.f32.mxu1 %vm621_vm1, %v5257_v12  ;;  %4479 = vmatprep.subr.mxu1 %v3627_v52 }
  0xa8   : > { %4437 = vmatmul.mubr.msk.f32.gmra.mxu0 %vm621_vm1, %v5316_v6  ;;  %4480 = vmatpush3.msra.mxu1 %v3627_v52  ;;  %v3625_v52 = vld [vmem:[%s6842_s1 + $0x140] sm:$0xff]  ;;  %v7020_v6 = vld [vmem:[#allocation11_spill] sm:$0xff] }
  0xa9   : > { %4439 = vmatprep.mubr.msk.f32.mxu0 %vm621_vm1, %v7014_v1  ;;  %4543 = vmatprep.subr.mxu0 %v3667_v55  ;;  %v7015_v1 = vld [vmem:[#allocation2_spill] sm:$0xff] }
  0xaa   : > { %4373 = vmatmul.mubr.msk.f32.gmra.mxu1 %vm621_vm1, %v5259_v8  ;;  %4544 = vmatpush3.msra.mxu0 %v3667_v55  ;;  %v3665_v55 = vld [vmem:[%s6842_s1 + $0x180] sm:$0xff] }
  0xab   : > { %4375 = vmatprep.mubr.msk.f32.mxu1 %vm621_vm1, %v5318_v3  ;;  %4481 = vmatprep.subr.mxu1 %v3626_v56 }
  0xac   : > { %4440 = vmatmul.mubr.msk.f32.gmra.mxu0 %vm621_vm1, %v5372_v4  ;;  %4482 = vmatpush3.msra.mxu1 %v3626_v56  ;;  %v7016_v56 = vld [vmem:[#allocation3_spill] sm:$0xff]  ;;  %v3752_v4 = vld [vmem:[%s6842_s1 + $0x238] sm:$0xff] }
  0xad   : > { %4442 = vmatprep.mubr.msk.f32.mxu0 %vm621_vm1, %v7015_v1  ;;  %4545 = vmatprep.subr.mxu0 %v3666_v60  ;;  %v5823_v1 = vld [vmem:[%s6842_s1 + $0x1f8] sm:$0xff] }
  0xae   : > { %4376 = vmatmul.mubr.msk.f32.gmra.mxu1 %vm621_vm1, %v5327_v19  ;;  %4546 = vmatpush3.msra.mxu0 %v3666_v60  ;;  %v7017_v60 = vld [vmem:[#allocation5_spill] sm:$0xff] }
  0xaf   : > { %4378 = vmatprep.mubr.msk.f32.mxu1 %vm621_vm1, %v4868_v32  ;;  %4483 = vmatprep.subr.mxu1 %v3625_v52 }
  0xb0   : > { %4443 = vmatmul.mubr.msk.f32.gmra.mxu0 %vm621_vm1, %v7016_v56  ;;  %4484 = vmatpush3.msra.mxu1 %v3625_v52  ;;  %v7018_v52 = vld [vmem:[#allocation7_spill] sm:$0xff] }
  0xb1   : > { %4445 = vmatprep.mubr.msk.f32.mxu0 %vm621_vm1, %v7017_v60  ;;  %4547 = vmatprep.subr.mxu0 %v3665_v55  ;;  %v7019_v60 = vld [vmem:[#allocation9_spill] sm:$0xff]  ;;  %v294_v56 = vld [vmem:[%s4827_s12 + $0x188] sm:$0xff] }
  0xb2   : > { %4379 = vmatmul.mubr.msk.f32.gmra.mxu1 %vm621_vm1, %v4871_v34  ;;  %4548 = vmatpush3.msra.mxu0 %v3665_v55  ;;  %v293_v55 = vld [vmem:[%s4827_s12 + $0x180] sm:$0xff] }
  0xb3   : > { %4381 = vmatprep.mubr.msk.f32.mxu1 %vm621_vm1, %v4931_v9  ;;  %4597 = vmatprep.subr.mxu1 %v5823_v1 }
  0xb4   : > { %4446 = vmatmul.mubr.msk.f32.gmra.mxu0 %vm621_vm1, %v7018_v52  ;;  %4661 = vmatprep.subr.mxu0 %v3752_v4 }
  0xb5   : > { %4448 = vmatprep.mubr.msk.f32.mxu0 %vm621_vm1, %v7019_v60  ;;  %v5854_v60 = vld [vmem:[%s6843_s2] ss:$0 sm:$0xff] }
  0xb6   : > { %4382 = vmatmul.mubr.msk.f32.gmra.mxu1 %vm621_vm1, %v4954_v21  ;;  %v354_v52 = vmul.f32 %v5854_v60, %v293_v55  ;;  %v355_v43 = vmul.f32 %v5854_v60, %v294_v56  ;;  %v356_v46 = vmul.f32 %v5854_v60, %v295_v28  ;;  %v5871_v55 = vld [vmem:[%s6844_s3] ss:$0 sm:$0xff] }
  0xb7   : > { %4384 = vmatprep.mubr.msk.f32.mxu1 %vm621_vm1, %v5005_v61 }
  0xb8   : > { %4449 = vmatmul.mubr.msk.f32.gmra.mxu0 %vm621_vm1, %v7020_v6  ;;  %v7022_v6 = vld [vmem:[#allocation15_spill] sm:$0xff]  ;;  %v415_v56 = vadd.f32 %v5871_v55, %v354_v52  ;;  %v416_v51 = vadd.f32 %v5871_v55, %v355_v43  ;;  %v5882_v28 = vadd.f32 %v5871_v55, %v356_v46 }
  0xb9   : > { %4451 = vmatprep.mubr.msk.f32.mxu0 %vm621_vm1, %v7021_v44  ;;  %v7023_v44 = vld [vmem:[#allocation17_spill] sm:$0xff]  ;;  %v7026_v43 = vld [vmem:[#allocation23_spill] sm:$0xff] }
  0xba   : > { %4385 = vmatmul.mubr.msk.f32.gmra.mxu1 %vm621_vm1, %v5019_v2  ;;  %v5886_v40 = vmax.f32 %v415_v56, 0.0  ;;  %v5888_v52 = vmax.f32 %v416_v51, 0.0  ;;  %v7028_v51 = vld [vmem:[#allocation28_spill] sm:$0xff] }
  0xbb   : > { %4387 = vmatprep.mubr.msk.f32.mxu1 %vm621_vm1, %v5072_v53 }
  0xbc   : > { %4452 = vmatmul.mubr.msk.f32.gmra.mxu0 %vm621_vm1, %v7022_v6  ;;  %v7024_v6 = vld [vmem:[#allocation19_spill] sm:$0xff]  ;;  %v1884_v46 = vrot.slane %v5886_v40, 1  ;;  %v1885_v56 = vrot.slane %v5888_v52, 1 }
  0xbd   : > { %4454 = vmatprep.mubr.msk.f32.mxu0 %vm621_vm1, %v7023_v44  ;;  %v7025_v44 = vld [vmem:[#allocation21_spill] sm:$0xff] }
  0xbe   : > { %4388 = vmatmul.mubr.msk.f32.gmra.mxu1 %vm621_vm1, %v5080_v0 }
  0xbf   : > { %4390 = vmatprep.mubr.msk.f32.mxu1 %vm621_vm1, %v5152_v38 }
  0xc0   : > { %4455 = vmatmul.mubr.msk.f32.gmra.mxu0 %vm621_vm1, %v7024_v6  ;;  %v7027_v6 = vld [vmem:[#allocation26_spill] sm:$0xff] }
  0xc1   : > { %4457 = vmatprep.mubr.msk.f32.mxu0 %vm621_vm1, %v7025_v44  ;;  %v6936_v44 = vmax.f32 %v5882_v28, 0.0 }
  0xc2   : > { %4391 = vmatmul.mubr.msk.f32.gmra.mxu1 %vm621_vm1, %v5154_v42 }
  0xc3   : > { %4393 = vmatprep.mubr.msk.f32.mxu1 %vm621_vm1, %v5218_v10 }
  0xc4   : > { %4458 = vmatmul.mubr.msk.f32.gmra.mxu0 %vm621_vm1, %v7026_v43  ;;  %v5912_v43 = vsel %vm531_vm0, %v1884_v46, %v1885_v56  ;;  %v7032_v46 = vld [vmem:[#allocation33_spill] sm:$0xff] }
  0xc5   : > { %4460 = vmatprep.mubr.msk.f32.mxu0 %vm621_vm1, %v7027_v6  ;;  %v1887_v6 = vrot.slane %v6936_v44, 1  ;;  %7030 = vst [vmem:[#allocation4_spill] sm:$0xff] %v5912_v43 }
  0xc6   : > { %4394 = vmatmul.mubr.msk.f32.gmra.mxu1 %vm621_vm1, %v5225_v47 }
  0xc7   : > { %4396 = vmatprep.mubr.msk.f32.mxu1 %vm621_vm1, %v5268_v23 }
  0xc8   : > { %4461 = vmatmul.mubr.msk.f32.gmra.mxu0 %vm621_vm1, %v7028_v51 }
  0xc9   : > { %4463 = vmatprep.mubr.msk.f32.mxu0 %vm621_vm1, %v7029_v11  ;;  %v5921_v11 = vsel %vm531_vm0, %v1885_v56, %v1887_v6  ;;  %v3751_v6 = vld [vmem:[%s6842_s1 + $0x230] sm:$0xff] }
  0xca   : > { %4397 = vmatmul.mubr.msk.f32.gmra.mxu1 %vm621_vm1, %v6999_v58  ;;  %7031 = vst [vmem:[#allocation6_spill] sm:$0xff] %v5921_v11 }
  0xcb   : > { %4399 = vmatprep.mubr.msk.f32.mxu1 %vm621_vm1, %v5329_v22 }
  0xcc   : > { %4464 = vmatmul.mubr.msk.f32.gmra.mxu0 %vm621_vm1, %v5381_v49 }
  0xcd   : > { %4466 = vmatprep.mubr.msk.f32.mxu0 %vm621_vm1, %v5912_v43 }
  0xce   : > { %4400 = vmatmul.mubr.msk.f32.gmra.mxu1 %vm621_vm1, %v5335_v36 }
  0xcf   : > { %4402 = vmatprep.mubr.msk.f32.mxu1 %vm621_vm1, %v5886_v40 }
  0xd0   : > { %4467 = vmatmul.mubr.msk.f32.gmra.mxu0 %vm621_vm1, %v5921_v11 }
  0xd1   : > { %4549 = vmatprep.mubr.msk.f32.mxu0 %vm621_vm1, %v4965_v29  ;;  %v3711_v29 = vld [vmem:[%s6842_s1 + $0x1f0] sm:$0xff] }
  0xd2   : > { %4403 = vmatmul.mubr.msk.f32.gmra.mxu1 %vm621_vm1, %v5888_v52 }
  0xd3   : > { %4485 = vmatprep.mubr.msk.f32.mxu1 %vm621_vm1, %v5384_v48 }
  0xd4   : > { %4550 = vmatmul.mubr.msk.f32.vlgmr.msra.gmra.mxu0 %vm621_vm1, %v4972_v39  ;;  %v3710_v39 = vld [vmem:[%s6842_s1 + $0x1e8] sm:$0xff] }
  0xd5   : > { %4662 = vmatpush3.msra.mxu0 %v3752_v4  ;;  %4552 = vmatprep.mubr.msk.f32.mxu0 %vm621_vm1, %v5058_v45  ;;  %v3750_v45 = vld [vmem:[%s6842_s1 + $0x228] sm:$0xff]  ;;  %v3748_v4 = vld [vmem:[%s6842_s1 + $0x218] sm:$0xff] }
  0xd6   : > { %4486 = vmatmul.mubr.msk.f32.vlgmr.msra.gmra.mxu1 %vm621_vm1, %v5402_v13  ;;  %4663 = vmatprep.subr.mxu0 %v3751_v6 }
  0xd7   : > { %4598 = vmatpush3.msra.mxu1 %v5823_v1  ;;  %4488 = vmatprep.mubr.msk.f32.mxu1 %vm621_vm1, %v5412_v30  ;;  %v3747_v1 = vld [vmem:[%s6842_s1 + $0x210] sm:$0xff] }
  0xd8   : > { %4553 = vmatmul.mubr.msk.f32.gmra.mxu0 %vm621_vm1, %v5070_v50  ;;  %4599 = vmatprep.subr.mxu1 %v3711_v29  ;;  %v3709_v50 = vld [vmem:[%s6842_s1 + $0x1e0] sm:$0xff] }
  0xd9   : > { %4555 = vmatprep.mubr.msk.f32.mxu0 %vm621_vm1, %v5126_v5  ;;  %4600 = vmatpush3.msra.mxu1 %v3711_v29  ;;  %v3749_v5 = vld [vmem:[%s6842_s1 + $0x220] sm:$0xff]  ;;  %v3746_v29 = vld [vmem:[%s6842_s1 + $0x208] sm:$0xff] }
  0xda   : > { %4489 = vmatmul.mubr.msk.f32.gmra.mxu1 %vm621_vm1, %v5427_v31  ;;  %4664 = vmatpush3.msra.mxu0 %v3751_v6 }
  0xdb   : > { %4491 = vmatprep.mubr.msk.f32.mxu1 %vm621_vm1, %v5437_v25  ;;  %4601 = vmatprep.subr.mxu1 %v3710_v39 }
  0xdc   : > { %4556 = vmatmul.mubr.msk.f32.gmra.mxu0 %vm621_vm1, %v5147_v18  ;;  %4602 = vmatpush3.msra.mxu1 %v3710_v39 }
  0xdd   : > { %4558 = vmatprep.mubr.msk.f32.mxu0 %vm621_vm1, %v5192_v37  ;;  %4665 = vmatprep.subr.mxu0 %v3750_v45  ;;  %v5978_v18 = vpop.f32.mrf.mxu0  ;;  %v3708_v37 = vld [vmem:[%s6842_s1 + $0x1d8] sm:$0xff] }
  0xde   : > { %4492 = vmatmul.mubr.msk.f32.gmra.mxu1 %vm621_vm1, %v5451_v7  ;;  %4666 = vmatpush3.msra.mxu0 %v3750_v45  ;;  %v5980_v48 = vpop.f32.mrf.mxu1  ;;  %v3705_v45 = vld [vmem:[%s6842_s1 + $0x1c0] sm:$0xff] }
  0xdf   : > { %4494 = vmatprep.mubr.msk.f32.mxu1 %vm621_vm1, %v5461_v41  ;;  %4603 = vmatprep.subr.mxu1 %v3709_v50 }
  0xe0   : > { %4559 = vmatmul.mubr.msk.f32.gmra.mxu0 %vm621_vm1, %v5199_v24  ;;  %4604 = vmatpush3.msra.mxu1 %v3709_v50  ;;  %v5996_v24 = vpop.f32.mrf.mxu0  ;;  %v5998_v13 = vpop.f32.mrf.mxu1  ;;  %v7034_v50 = vld [vmem:[#allocation35_spill] sm:$0xff] }
  0xe1   : > { %4561 = vmatprep.mubr.msk.f32.mxu0 %vm621_vm1, %v5257_v12  ;;  %4667 = vmatprep.subr.mxu0 %v3749_v5  ;;  %v3707_v12 = vld [vmem:[%s6842_s1 + $0x1d0] sm:$0xff] }
  0xe2   : > { %4495 = vmatmul.mubr.msk.f32.gmra.mxu1 %vm621_vm1, %v5475_v59  ;;  %4668 = vmatpush3.msra.mxu0 %v3749_v5  ;;  %v3745_v5 = vld [vmem:[%s6842_s1 + $0x200] sm:$0xff] }
  0xe3   : > { %4497 = vmatprep.mubr.msk.f32.mxu1 %vm621_vm1, %v5485_v27  ;;  %4605 = vmatprep.subr.mxu1 %v3708_v37 }
  0xe4   : > { %4562 = vmatmul.mubr.msk.f32.gmra.mxu0 %vm621_vm1, %v5259_v8  ;;  %4606 = vmatpush3.msra.mxu1 %v3708_v37 }
  0xe5   : > { %4564 = vmatprep.mubr.msk.f32.mxu0 %vm621_vm1, %v5318_v3  ;;  %4669 = vmatprep.subr.mxu0 %v3748_v4  ;;  %v3706_v3 = vld [vmem:[%s6842_s1 + $0x1c8] sm:$0xff] }
  0xe6   : > { %4498 = vmatmul.mubr.msk.f32.gmra.mxu1 %vm621_vm1, %v5499_v57  ;;  %4670 = vmatpush3.msra.mxu0 %v3748_v4  ;;  %v7035_v4 = vld [vmem:[#allocation36_spill] sm:$0xff] }
  0xe7   : > { %4500 = vmatprep.mubr.msk.f32.mxu1 %vm621_vm1, %v7032_v46  ;;  %v6014_v8 = vpop.f32.mrf.mxu0  ;;  %v6016_v56 = vpop.f32.mrf.mxu1  ;;  %4607 = vmatprep.subr.mxu1 %v3707_v12 }
  0xe8   : > { %4565 = vmatmul.mubr.msk.f32.gmra.mxu0 %vm621_vm1, %v5327_v19  ;;  %4608 = vmatpush3.msra.mxu1 %v3707_v12  ;;  %v7033_v19 = vld [vmem:[#allocation34_spill] sm:$0xff] }
  0xe9   : > { %4567 = vmatprep.mubr.msk.f32.mxu0 %vm621_vm1, %v4868_v32  ;;  %v6025_v6 = vpop.f32.mrf.mxu0  ;;  %4671 = vmatprep.subr.mxu0 %v3747_v1  ;;  %v6034_v39 = vpop.f32.mrf.mxu1 }
  0xea   : > { %4501 = vmatmul.mubr.msk.f32.gmra.mxu1 %vm621_vm1, %v5523_v17  ;;  %4672 = vmatpush3.msra.mxu0 %v3747_v1 }
  0xeb   : > { %4503 = vmatprep.mubr.msk.f32.mxu1 %vm621_vm1, %v7033_v19  ;;  %4609 = vmatprep.subr.mxu1 %v3706_v3 }
  0xec   : > { %4568 = vmatmul.mubr.msk.f32.gmra.mxu0 %vm621_vm1, %v4871_v34  ;;  %v6038_v32 = vpop.f32.mrf.mxu0  ;;  %4610 = vmatpush3.msra.mxu1 %v3706_v3 }
  0xed   : > { %4570 = vmatprep.mubr.msk.f32.mxu0 %vm621_vm1, %v4931_v9  ;;  %4673 = vmatprep.subr.mxu0 %v3746_v29 }
  0xee   : > { %4504 = vmatmul.mubr.msk.f32.gmra.mxu1 %vm621_vm1, %v7034_v50  ;;  %4674 = vmatpush3.msra.mxu0 %v3746_v29  ;;  %v6054_v37 = vpop.f32.mrf.mxu0 }
  0xef   : > { %4506 = vmatprep.mubr.msk.f32.mxu1 %vm621_vm1, %v5557_v26  ;;  %v6052_v34 = vpop.f32.mrf.mxu1  ;;  %4611 = vmatprep.subr.mxu1 %v3705_v45 }
  0xf0   : > { %4571 = vmatmul.mubr.msk.f32.gmra.mxu0 %vm621_vm1, %v4954_v21  ;;  %4612 = vmatpush3.msra.mxu1 %v3705_v45 }
  0xf1   : > { %4573 = vmatprep.mubr.msk.f32.mxu0 %vm621_vm1, %v5005_v61  ;;  %4675 = vmatprep.subr.mxu0 %v3745_v5  ;;  %v6062_v9 = vpop.f32.mrf.mxu1  ;;  %v7036_v61 = vld [vmem:[#allocation37_spill] sm:$0xff] }
  0xf2   : > { %4507 = vmatmul.mubr.msk.f32.gmra.mxu1 %vm621_vm1, %v5578_v20  ;;  %4676 = vmatpush3.msra.mxu0 %v3745_v5  ;;  %v6066_v12 = vpop.f32.mrf.mxu0  ;;  %v7040_v5 = vld [vmem:[#allocation40_spill] sm:$0xff] }
  0xf3   : > { %4509 = vmatprep.mubr.msk.f32.mxu1 %vm621_vm1, %v7035_v4 }
  0xf4   : > { %4574 = vmatmul.mubr.msk.f32.gmra.mxu0 %vm621_vm1, %v5019_v2  ;;  %v6074_v21 = vpop.f32.mrf.mxu1  ;;  %v6078_v1 = vpop.f32.mrf.mxu0  ;;  %v7037_v2 = vld [vmem:[#allocation38_spill] sm:$0xff] }
  0xf5   : > { %4576 = vmatprep.mubr.msk.f32.mxu0 %vm621_vm1, %v5072_v53  ;;  %v7038_v53 = vld [vmem:[#allocation39_spill] sm:$0xff] }
  0xf6   : > { %4510 = vmatmul.mubr.msk.f32.gmra.mxu1 %vm621_vm1, %v5598_v14  ;;  %v6082_v3 = vpop.f32.mrf.mxu1 }
  0xf7   : > { %4512 = vmatprep.mubr.msk.f32.mxu1 %vm621_vm1, %v7036_v61 }
  0xf8   : > { %4577 = vmatmul.mubr.msk.f32.gmra.mxu0 %vm621_vm1, %v5080_v0 }
  0xf9   : > { %4579 = vmatprep.mubr.msk.f32.mxu0 %vm621_vm1, %v5152_v38  ;;  %v296_v38 = vld [vmem:[%s4827_s12 + $0x198] sm:$0xff] }
  0xfa   : > { %4513 = vmatmul.mubr.msk.f32.gmra.mxu1 %vm621_vm1, %v7037_v2 }
  0xfb   : > { %4515 = vmatprep.mubr.msk.f32.mxu1 %vm621_vm1, %v7038_v53  ;;  %v6090_v29 = vpop.f32.mrf.mxu0 }
  0xfc   : > { %4580 = vmatmul.mubr.msk.f32.gmra.mxu0 %vm621_vm1, %v5154_v42  ;;  %v6094_v45 = vpop.f32.mrf.mxu1  ;;  %v357_v42 = vmul.f32 %v5854_v60, %v296_v38 }
  0xfd   : > { %7039 = vst [vmem:[#allocation28_spill] sm:$0xff] %v6094_v45  ;;  %4582 = vmatprep.mubr.msk.f32.mxu0 %vm621_vm1, %v5218_v10  ;;  %v6100_v0 = vpop.f32.mrf.mxu0  ;;  %v297_v10 = vld [vmem:[%s4827_s12 + $0x1a0] sm:$0xff] }
  0xfe   : > { %4516 = vmatmul.mubr.msk.f32.gmra.mxu1 %vm621_vm1, %v5634_v33  ;;  %v6105_v44 = vpop.f32.mrf.mxu1  ;;  %v418_v38 = vadd.f32 %v5871_v55, %v357_v42 }
  0xff   : > { %4518 = vmatprep.mubr.msk.f32.mxu1 %vm621_vm1, %v7040_v5  ;;  %7041 = vst [vmem:[#allocation33_spill] sm:$0xff] %v6105_v44  ;;  %v7045_v44 = vmax.f32 %v5882_v28, 0.0 }
 0x100   : > { %4583 = vmatmul.mubr.msk.f32.gmra.mxu0 %vm621_vm1, %v5225_v47  ;;  %v6144_v42 = vmax.f32 %v418_v38, 0.0  ;;  %v7048_v38 = vld [vmem:[#allocation24_spill] sm:$0xff] }
 0x101   : > { %4585 = vmatprep.mubr.msk.f32.mxu0 %vm621_vm1, %v5268_v23  ;;  %v6115_v11 = vpop.f32.mrf.mxu0  ;;  %v358_v23 = vmul.f32 %v5854_v60, %v297_v10  ;;  %v2159_v10 = vrot.slane %v5886_v40, 2  ;;  %v2162_v45 = vrot.slane %v7045_v44, 2 }
 0x102   : > { %4519 = vmatmul.mubr.msk.f32.gmra.mxu1 %vm621_vm1, %v5652_v63  ;;  %v6119_v43 = vpop.f32.mrf.mxu1 }
 0x103   : > { %4521 = vmatprep.mubr.msk.f32.mxu1 %vm621_vm1, %v5659_v16  ;;  %7042 = vst [vmem:[#allocation34_spill] sm:$0xff] %v6119_v43  ;;  %v6123_v47 = vpop.f32.mrf.mxu0  ;;  %v2160_v43 = vrot.slane %v5888_v52, 2 }
 0x104   : > { %4586 = vmatmul.mubr.msk.f32.gmra.mxu0 %vm621_vm1, %v6999_v58  ;;  %v6133_v49 = vpop.f32.mrf.mxu1 }
 0x105   : > { %4588 = vmatprep.mubr.msk.f32.mxu0 %vm621_vm1, %v5329_v22  ;;  %7043 = vst [vmem:[#allocation35_spill] sm:$0xff] %v6133_v49  ;;  %v419_v22 = vadd.f32 %v5871_v55, %v358_v23  ;;  %v6174_v28 = vsel %vm1200_vm2, %v2160_v43, %v2162_v45 }
 0x106   : > { %4522 = vmatmul.mubr.msk.f32.gmra.mxu1 %vm621_vm1, %v5670_v35  ;;  %7050 = vst [vmem:[#allocation40_spill] sm:$0xff] %v6174_v28 }
 0x107   : > { %4524 = vmatprep.mubr.msk.f32.mxu1 %vm621_vm1, %v5677_v62  ;;  %v6137_v58 = vpop.f32.mrf.mxu0  ;;  %v6161_v23 = vmax.f32 %v419_v22, 0.0  ;;  %v7052_v22 = vld [vmem:[#allocation8_spill] sm:$0xff] }
 0x108   : > { %4589 = vmatmul.mubr.msk.f32.gmra.mxu0 %vm621_vm1, %v5335_v36 }
 0x109   : > { %4591 = vmatprep.mubr.msk.f32.mxu0 %vm621_vm1, %v5886_v40  ;;  %v6152_v49 = vpop.f32.mrf.mxu0  ;;  %v6159_v40 = vsel %vm1200_vm2, %v2159_v10, %v2160_v43  ;;  %7047 = vst [vmem:[#allocation38_spill] sm:$0xff] %v6161_v23 }
 0x10a   : > { %4525 = vmatmul.mubr.msk.f32.gmra.mxu1 %vm621_vm1, %v5688_v15  ;;  %v6150_v36 = vpop.f32.mrf.mxu1  ;;  %7046 = vst [vmem:[#allocation37_spill] sm:$0xff] %v6159_v40 }
 0x10b   : > { %4527 = vmatprep.mubr.msk.f32.mxu1 %vm621_vm1, %v5695_v54  ;;  %7044 = vst [vmem:[#allocation36_spill] sm:$0xff] %v6150_v36 }
 0x10c   : > { %4592 = vmatmul.mubr.msk.f32.gmra.mxu0 %vm621_vm1, %v5888_v52  ;;  %v6167_v36 = vpop.f32.mrf.mxu1 }
 0x10d   : > { %4594 = vmatprep.mubr.msk.f32.mxu0 %vm621_vm1, %v6144_v42  ;;  %7049 = vst [vmem:[#allocation39_spill] sm:$0xff] %v6167_v36 }
 0x10e   : > { %4528 = vmatmul.mubr.msk.f32.gmra.mxu1 %vm621_vm1, %v7048_v38 }
 0x10f   : > { %4530 = vmatprep.mubr.msk.f32.mxu1 %vm621_vm1, %v6159_v40  ;;  %v6171_v44 = vpop.f32.mrf.mxu0 }
 0x110   : > { %4595 = vmatmul.mubr.msk.f32.gmra.mxu0 %vm621_vm1, %v6161_v23  ;;  %v7056_v23 = vld [vmem:[#allocation14_spill] sm:$0xff] }
 0x111   : > { %v6178_v52 = vpop.f32.mrf.mxu0  ;;  %4677 = vmatprep.mubr.msk.f32.mxu0 %vm621_vm1, %v5412_v30  ;;  %v6182_v10 = vpop.f32.mrf.mxu1  ;;  %v7054_v30 = vld [vmem:[#allocation10_spill] sm:$0xff] }
 0x112   : > { %7051 = vst [vmem:[#allocation41_spill] sm:$0xff] %v6182_v10  ;;  %4531 = vmatmul.mubr.msk.f32.gmra.mxu1 %vm621_vm1, %v6174_v28  ;;  %v7055_v28 = vld [vmem:[#allocation12_spill] sm:$0xff] }
 0x113   : > { %4613 = vmatprep.mubr.msk.f32.mxu1 %vm621_vm1, %v7052_v22  ;;  %v4295_v36 = vpop.f32.mrf.mxu0  ;;  %v6188_v40 = vpop.f32.mrf.mxu1 }
 0x114   : > { %7053 = vst [vmem:[#allocation8_spill] sm:$0xff] %v6188_v40  ;;  %4678 = vmatmul.mubr.msk.f32.vlgmr.msra.gmra.mxu0 %vm621_vm1, %v5427_v31 }
 0x115   : > { %v1420_v43 = vpop.f32.mrf.mxu0  ;;  %4680 = vmatprep.mubr.msk.f32.mxu0 %vm621_vm1, %v5437_v25  ;;  %v4231_v45 = vpop.f32.mrf.mxu1 }
 0x116   : > { %4614 = vmatmul.mubr.msk.f32.vlgmr.msra.gmra.mxu1 %vm621_vm1, %v7054_v30  ;;  %v1047_v10 = vadd.f32 %v4231_v45, %v5978_v18  ;;  %v7057_v30 = vld [vmem:[#allocation16_spill] sm:$0xff] }
 0x117   : > { %4616 = vmatprep.mubr.msk.f32.mxu1 %vm621_vm1, %v7055_v28  ;;  %v1041_v22 = vpop.f32.mrf.mxu1  ;;  %v4298_v38 = vpop.f32.mrf.mxu0 }
 0x118   : > { %4681 = vmatmul.mubr.msk.f32.gmra.mxu0 %vm621_vm1, %v5451_v7  ;;  %v6201_v40 = vadd.f32 %v4295_v36, %v1047_v10  ;;  %v1042_v31 = vadd.f32 %v1041_v22, %v5996_v24  ;;  %v7058_v10 = vld [vmem:[#allocation18_spill] sm:$0xff] }
 0x119   : > { %4683 = vmatprep.mubr.msk.f32.mxu0 %vm621_vm1, %v5461_v41  ;;  %v1430_v18 = vpop.f32.mrf.mxu0 }
 0x11a   : > { %v4234_v25 = vpop.f32.mrf.mxu1  ;;  %4617 = vmatmul.mubr.msk.f32.gmra.mxu1 %vm621_vm1, %v7056_v23  ;;  %v6208_v45 = vadd.f32 %v1420_v43, %v1042_v31  ;;  %v7059_v31 = vld [vmem:[#allocation20_spill] sm:$0xff] }
 0x11b   : > { %v1057_v28 = vadd.f32 %v4234_v25, %v6014_v8  ;;  %4619 = vmatprep.mubr.msk.f32.mxu1 %vm621_vm1, %v7057_v30 }
 0x11c   : > { %v1051_v7 = vpop.f32.mrf.mxu1  ;;  %v4301_v36 = vpop.f32.mrf.mxu0  ;;  %4684 = vmatmul.mubr.msk.f32.gmra.mxu0 %vm621_vm1, %v5475_v59 }
 0x11d   : > { %v6215_v24 = vadd.f32 %v4298_v38, %v1057_v28  ;;  %v1052_v41 = vadd.f32 %v1051_v7, %v6025_v6  ;;  %4686 = vmatprep.mubr.msk.f32.mxu0 %vm621_vm1, %v5485_v27  ;;  %v7061_v7 = vld [vmem:[#allocation25_spill] sm:$0xff] }
 0x11e   : > { %v4237_v23 = vpop.f32.mrf.mxu1  ;;  %4620 = vmatmul.mubr.msk.f32.gmra.mxu1 %vm621_vm1, %v7058_v10  ;;  %v1440_v8 = vpop.f32.mrf.mxu0 }
 0x11f   : > { %v6222_v43 = vadd.f32 %v1430_v18, %v1052_v41  ;;  %v1067_v22 = vadd.f32 %v4237_v23, %v6038_v32  ;;  %4622 = vmatprep.mubr.msk.f32.mxu1 %vm621_vm1, %v7059_v31  ;;  %v7060_v18 = vld [vmem:[#allocation22_spill] sm:$0xff]  ;;  %v7062_v23 = vld [vmem:[#allocation27_spill] sm:$0xff] }
 0x120   : > { %v1061_v59 = vpop.f32.mrf.mxu1  ;;  %v4304_v38 = vpop.f32.mrf.mxu0  ;;  %4687 = vmatmul.mubr.msk.f32.gmra.mxu0 %vm621_vm1, %v5499_v57 }
 0x121   : > { %v6229_v6 = vadd.f32 %v4301_v36, %v1067_v22  ;;  %v1062_v27 = vadd.f32 %v1061_v59, %v6054_v37  ;;  %4689 = vmatprep.mubr.msk.f32.mxu0 %vm621_vm1, %v7032_v46  ;;  %v7063_v22 = vld [vmem:[#allocation29_spill] sm:$0xff] }
 0x122   : > { %v4240_v25 = vpop.f32.mrf.mxu1  ;;  %4623 = vmatmul.mubr.msk.f32.gmra.mxu1 %vm621_vm1, %v7060_v18  ;;  %v1450_v32 = vpop.f32.mrf.mxu0  ;;  %v7065_v18 = vld [vmem:[#allocation2_spill] sm:$0xff] }
 0x123   : > { %v6236_v28 = vadd.f32 %v1440_v8, %v1062_v27  ;;  %v1077_v30 = vadd.f32 %v4240_v25, %v6066_v12  ;;  %4625 = vmatprep.mubr.msk.f32.mxu1 %vm621_vm1, %v7061_v7  ;;  %v7066_v7 = vld [vmem:[#allocation3_spill] sm:$0xff] }
 0x124   : > { %v1071_v57 = vpop.f32.mrf.mxu1  ;;  %v4307_v36 = vpop.f32.mrf.mxu0  ;;  %4690 = vmatmul.mubr.msk.f32.gmra.mxu0 %vm621_vm1, %v5523_v17 }
 0x125   : > { %v6243_v37 = vadd.f32 %v4304_v38, %v1077_v30  ;;  %v1072_v46 = vadd.f32 %v1071_v57, %v6078_v1  ;;  %4692 = vmatprep.mubr.msk.f32.mxu0 %vm621_vm1, %v7033_v19  ;;  %v7064_v38 = vld [vmem:[#allocation31_spill] sm:$0xff] }
 0x126   : > { %v4243_v41 = vpop.f32.mrf.mxu1  ;;  %4626 = vmatmul.mubr.msk.f32.gmra.mxu1 %vm621_vm1, %v7062_v23  ;;  %v1460_v12 = vpop.f32.mrf.mxu0 }
 0x127   : > { %v6250_v10 = vadd.f32 %v1450_v32, %v1072_v46  ;;  %v1087_v8 = vadd.f32 %v4243_v41, %v6090_v29  ;;  %4628 = vmatprep.mubr.msk.f32.mxu1 %vm621_vm1, %v7063_v22  ;;  %v7067_v46 = vld [vmem:[#allocation5_spill] sm:$0xff] }
 0x128   : > { %v1081_v17 = vpop.f32.mrf.mxu1  ;;  %v4310_v31 = vpop.f32.mrf.mxu0  ;;  %4693 = vmatmul.mubr.msk.f32.gmra.mxu0 %vm621_vm1, %v7034_v50 }
 0x129   : > { %v6257_v1 = vadd.f32 %v4307_v36, %v1087_v8  ;;  %v1082_v19 = vadd.f32 %v1081_v17, %v6100_v0  ;;  %4695 = vmatprep.mubr.msk.f32.mxu0 %vm621_vm1, %v5557_v26  ;;  %v7069_v17 = vld [vmem:[#allocation9_spill] sm:$0xff] }
 0x12a   : > { %v4246_v59 = vpop.f32.mrf.mxu1  ;;  %4629 = vmatmul.mubr.msk.f32.gmra.mxu1 %vm621_vm1, %v7064_v38  ;;  %v1470_v29 = vpop.f32.mrf.mxu0 }
 0x12b   : > { %v6264_v27 = vadd.f32 %v1460_v12, %v1082_v19  ;;  %v1097_v25 = vadd.f32 %v4246_v59, %v6115_v11  ;;  %4631 = vmatprep.mubr.msk.f32.mxu1 %vm621_vm1, %v7065_v18  ;;  %v7068_v12 = vld [vmem:[#allocation7_spill] sm:$0xff] }
 0x12c   : > { %v1091_v50 = vpop.f32.mrf.mxu1  ;;  %v4313_v32 = vpop.f32.mrf.mxu0  ;;  %4696 = vmatmul.mubr.msk.f32.gmra.mxu0 %vm621_vm1, %v5578_v20  ;;  %v7070_v59 = vld [vmem:[#allocation11_spill] sm:$0xff] }
 0x12d   : > { %v6271_v0 = vadd.f32 %v4310_v31, %v1097_v25  ;;  %v1092_v26 = vadd.f32 %v1091_v50, %v6123_v47  ;;  %4698 = vmatprep.mubr.msk.f32.mxu0 %vm621_vm1, %v7035_v4  ;;  %v7071_v25 = vld [vmem:[#allocation13_spill] sm:$0xff] }
 0x12e   : > { %v4249_v30 = vpop.f32.mrf.mxu1  ;;  %4632 = vmatmul.mubr.msk.f32.gmra.mxu1 %vm621_vm1, %v7066_v7  ;;  %v1480_v11 = vpop.f32.mrf.mxu0 }
 0x12f   : > { %v6278_v57 = vadd.f32 %v1470_v29, %v1092_v26  ;;  %v1107_v36 = vadd.f32 %v4249_v30, %v6137_v58  ;;  %4634 = vmatprep.mubr.msk.f32.mxu1 %vm621_vm1, %v7067_v46  ;;  %v298_v26 = vld [vmem:[%s4827_s12 + $0x1a8] sm:$0x3]  ;;  %s3787_s12 = sshll.u32 %s7179_s19, 8 }
 0x130   : > { %v1101_v20 = vpop.f32.mrf.mxu1  ;;  %v4316_v41 = vpop.f32.mrf.mxu0  ;;  %4699 = vmatmul.mubr.msk.f32.gmra.mxu0 %vm621_vm1, %v5598_v14  ;;  %v359_v46 = vmul.f32 %v5854_v60, %v298_v26  ;;  %v7082_v26 = vld [vmem:[#allocation33_spill] sm:$0xff]  ;;  %s6646_s23 = scalar_lea.vmem %s6845_s4, %s3787_s12  ;;  %s6660_s25 = scalar_lea.vmem %s6846_s5, %s3787_s12 }
 0x131   : > { %v6285_v47 = vadd.f32 %v4313_v32, %v1107_v36  ;;  %v1102_v4 = vadd.f32 %v1101_v20, %v6152_v49  ;;  %4701 = vmatprep.mubr.msk.f32.mxu0 %vm621_vm1, %v7036_v61  ;;  %v7072_v32 = vld [vmem:[#allocation15_spill] sm:$0xff] }
 0x132   : > { %v4252_v23 = vpop.f32.mrf.mxu1  ;;  %4635 = vmatmul.mubr.msk.f32.gmra.mxu1 %vm621_vm1, %v7068_v12  ;;  %v1490_v58 = vpop.f32.mrf.mxu0  ;;  %v7075_v12 = vld [vmem:[#allocation21_spill] sm:$0xff] }
 0x133   : > { %v6292_v8 = vadd.f32 %v1480_v11, %v1102_v4  ;;  %v1117_v22 = vadd.f32 %v4252_v23, %v6171_v44  ;;  %4637 = vmatprep.mubr.msk.f32.mxu1 %vm621_vm1, %v7069_v17  ;;  %v7073_v11 = vld [vmem:[#allocation17_spill] sm:$0xff]  ;;  %v7076_v17 = vld [vmem:[#allocation23_spill] sm:$0xff] }
 0x134   : > { %v1111_v14 = vpop.f32.mrf.mxu1  ;;  %v4319_v31 = vpop.f32.mrf.mxu0  ;;  %4702 = vmatmul.mubr.msk.f32.gmra.mxu0 %vm621_vm1, %v7037_v2 }
 0x135   : > { %v6299_v49 = vadd.f32 %v4316_v41, %v1117_v22  ;;  %v1112_v61 = vadd.f32 %v1111_v14, %v6178_v52  ;;  %4704 = vmatprep.mubr.msk.f32.mxu0 %vm621_vm1, %v7038_v53  ;;  %v7074_v41 = vld [vmem:[#allocation19_spill] sm:$0xff] }
 0x136   : > { %v4255_v19 = vpop.f32.mrf.mxu1  ;;  %4638 = vmatmul.mubr.msk.f32.gmra.mxu1 %vm621_vm1, %v7070_v59  ;;  %v1500_v44 = vpop.f32.mrf.mxu0 }
 0x137   : > { %v6306_v38 = vadd.f32 %v1490_v58, %v1112_v61  ;;  %v1127_v29 = vadd.f32 %v4255_v19, %v5980_v48  ;;  %4640 = vmatprep.mubr.msk.f32.mxu1 %vm621_vm1, %v7071_v25  ;;  %v7077_v61 = vld [vmem:[#allocation26_spill] sm:$0xff] }
 0x138   : > { %v1121_v2 = vpop.f32.mrf.mxu1  ;;  %v4322_v18 = vpop.f32.mrf.mxu0  ;;  %4705 = vmatmul.mubr.msk.f32.gmra.mxu0 %vm621_vm1, %v5634_v33 }
 0x139   : > { %v6313_v52 = vadd.f32 %v4319_v31, %v1127_v29  ;;  %v1122_v53 = vadd.f32 %v1121_v2, %v5998_v13  ;;  %4707 = vmatprep.mubr.msk.f32.mxu0 %vm621_vm1, %v7040_v5  ;;  %v7078_v29 = vld [vmem:[#allocation38_spill] sm:$0xff] }
 0x13a   : > { %v4258_v50 = vpop.f32.mrf.mxu1  ;;  %4641 = vmatmul.mubr.msk.f32.gmra.mxu1 %vm621_vm1, %v7072_v32  ;;  %v1510_v48 = vpop.f32.mrf.mxu0  ;;  %v2983_v25 = vrot.slane %v7078_v29, 2  ;;  %v2707_v32 = vrot.slane %v6144_v42, 1 }
 0x13b   : > { %v6321_v30 = vadd.f32 %v1500_v44, %v1122_v53  ;;  %v1137_v7 = vadd.f32 %v4258_v50, %v6016_v56  ;;  %4643 = vmatprep.mubr.msk.f32.mxu1 %vm621_vm1, %v7073_v11  ;;  %v2982_v44 = vrot.slane %v6144_v42, 2  ;;  %v7080_v53 = vld [vmem:[#allocation30_spill] sm:$0xff]  ;;  %v7083_v11 = vld [vmem:[#allocation37_spill] sm:$0xff] }
 0x13c   : > { %v1131_v33 = vpop.f32.mrf.mxu1  ;;  %v4325_v36 = vpop.f32.mrf.mxu0  ;;  %4708 = vmatmul.mubr.msk.f32.gmra.mxu0 %vm621_vm1, %v5652_v63  ;;  %v7085_v42 = vld [vmem:[#allocation34_spill] sm:$0xff] }
 0x13d   : > { %v6328_v13 = vadd.f32 %v4322_v18, %v1137_v7  ;;  %v1132_v5 = vadd.f32 %v1131_v33, %v6034_v39  ;;  %4710 = vmatprep.mubr.msk.f32.mxu0 %vm621_vm1, %v5659_v16  ;;  %v420_v39 = vadd.f32 %v5871_v55, %v359_v46 }
 0x13e   : > { %v4261_v20 = vpop.f32.mrf.mxu1  ;;  %4644 = vmatmul.mubr.msk.f32.gmra.mxu1 %vm621_vm1, %v7074_v41  ;;  %v1520_v56 = vpop.f32.mrf.mxu0 }
 0x13f   : > { %v6336_v4 = vadd.f32 %v1510_v48, %v1132_v5  ;;  %v1147_v23 = vadd.f32 %v4261_v20, %v6052_v34  ;;  %4646 = vmatprep.mubr.msk.f32.mxu1 %vm621_vm1, %v7075_v12  ;;  %v7084_v5 = vld [vmem:[#allocation32_spill] sm:$0xff]  ;;  %v2984_v20 = vsel %vm1200_vm2, %v2982_v44, %v2983_v25 }
 0x140   : > { %v1141_v63 = vpop.f32.mrf.mxu1  ;;  %v4328_v58 = vpop.f32.mrf.mxu0  ;;  %4711 = vmatmul.mubr.msk.f32.gmra.mxu0 %vm621_vm1, %v5670_v35 }
 0x141   : > { %v6343_v16 = vadd.f32 %v4325_v36, %v1147_v23  ;;  %v1142_v60 = vadd.f32 %v1141_v63, %v6062_v9  ;;  %4713 = vmatprep.mubr.msk.f32.mxu0 %vm621_vm1, %v5677_v62  ;;  %v474_v9 = vmax.f32 %v420_v39, 0.0  ;;  %v7086_v23 = vld [vmem:[#allocation4_spill] sm:$0xff] }
 0x142   : > { %v4264_v22 = vpop.f32.mrf.mxu1  ;;  %4647 = vmatmul.mubr.msk.f32.gmra.mxu1 %vm621_vm1, %v7076_v17  ;;  %v1530_v34 = vpop.f32.mrf.mxu0  ;;  %v7088_v17 = vld [vmem:[#allocation35_spill] sm:$0xff] }
 0x143   : > { %v6351_v14 = vadd.f32 %v1520_v56, %v1142_v60  ;;  %v1157_v31 = vadd.f32 %v4264_v22, %v6074_v21  ;;  %4649 = vmatprep.mubr.msk.f32.mxu1 %vm621_vm1, %v7077_v61  ;;  %v2985_v33 = vrot.slane %v474_v9, 2  ;;  %v2710_v12 = vrot.slane %v474_v9, 1  ;;  %v7087_v60 = vld [vmem:[#allocation40_spill] sm:$0xff] }
 0x144   : > { %v1151_v35 = vpop.f32.mrf.mxu1  ;;  %v4331_v19 = vpop.f32.mrf.mxu0  ;;  %4714 = vmatmul.mubr.msk.f32.gmra.mxu0 %vm621_vm1, %v5688_v15  ;;  %v7079_v15 = vld [vmem:[#allocation28_spill] sm:$0xff] }
 0x145   : > { %v6358_v62 = vadd.f32 %v4328_v58, %v1157_v31  ;;  %v1152_v55 = vadd.f32 %v1151_v35, %v6082_v3  ;;  %4716 = vmatprep.mubr.msk.f32.mxu0 %vm621_vm1, %v5695_v54  ;;  %v7081_v54 = vld [vmem:[#allocation24_spill] sm:$0xff]  ;;  %v2986_v31 = vsel %vm1200_vm2, %v2983_v25, %v2985_v33  ;;  %v7089_v35 = vld [vmem:[#allocation6_spill] sm:$0xff]  ;;  %v7091_v25 = vld [vmem:[#allocation39_spill] sm:$0xff] }
 0x146   : > { %v4267_v59 = vpop.f32.mrf.mxu1  ;;  %4650 = vmatmul.mubr.msk.f32.gmra.mxu1 %vm621_vm1, %v7028_v51  ;;  %v1540_v21 = vpop.f32.mrf.mxu0  ;;  %v2708_v51 = vrot.slane %v7078_v29, 1  ;;  %v7090_v9 = vld [vmem:[#allocation36_spill] sm:$0xff] }
 0x147   : > { %v6367_v2 = vadd.f32 %v1530_v34, %v1152_v55  ;;  %v1167_v18 = vadd.f32 %v4267_v59, %v7079_v15  ;;  %4652 = vmatprep.mubr.msk.f32.mxu1 %vm621_vm1, %v7080_v53 }
 0x148   : > { %v1161_v3 = vpop.f32.mrf.mxu1  ;;  %v4334_v50 = vpop.f32.mrf.mxu0  ;;  %4717 = vmatmul.mubr.msk.f32.gmra.mxu0 %vm621_vm1, %v7081_v54  ;;  %v2709_v39 = vsel %vm531_vm0, %v2707_v32, %v2708_v51  ;;  %v7092_v54 = vld [vmem:[#allocation41_spill] sm:$0xff] }
 0x149   : > { %v6376_v48 = vadd.f32 %v4331_v19, %v1167_v18  ;;  %v1162_v7 = vadd.f32 %v1161_v3, %v7082_v26  ;;  %4719 = vmatprep.mubr.msk.f32.mxu0 %vm621_vm1, %v7083_v11 }
 0x14a   : > { %v4270_v36 = vpop.f32.mrf.mxu1  ;;  %4653 = vmatmul.mubr.msk.f32.gmra.mxu1 %vm621_vm1, %v7084_v5  ;;  %v1550_v46 = vpop.f32.mrf.mxu0 }
 0x14b   : > { %v6384_v41 = vadd.f32 %v1540_v21, %v1162_v7  ;;  %v1177_v56 = vadd.f32 %v4270_v36, %v7085_v42  ;;  %4655 = vmatprep.mubr.msk.f32.mxu1 %vm621_vm1, %v7086_v23  ;;  %v2711_v21 = vsel %vm531_vm0, %v2708_v51, %v2710_v12  ;;  %v7093_v51 = vld [vmem:[#allocation8_spill] sm:$0xff] }
 0x14c   : > { %v1171_v63 = vpop.f32.mrf.mxu1  ;;  %v4337_v58 = vpop.f32.mrf.mxu0  ;;  %4720 = vmatmul.mubr.msk.f32.gmra.mxu0 %vm621_vm1, %v7087_v60 }
 0x14d   : > { %v6392_v22 = vadd.f32 %v4334_v50, %v1177_v56  ;;  %v1172_v34 = vadd.f32 %v1171_v63, %v7088_v17  ;;  %4722 = vmatprep.mubr.msk.f32.mxu0 %vm621_vm1, %v2984_v20 }
 0x14e   : > { %v4273_v61 = vpop.f32.mrf.mxu1  ;;  %4656 = vmatmul.mubr.msk.f32.gmra.mxu1 %vm621_vm1, %v7089_v35  ;;  %v1560_v19 = vpop.f32.mrf.mxu0 }
 0x14f   : > { %v6399_v55 = vadd.f32 %v1550_v46, %v1172_v34  ;;  %v1187_v59 = vadd.f32 %v4273_v61, %v7090_v9  ;;  %4658 = vmatprep.mubr.msk.f32.mxu1 %vm621_vm1, %v2709_v39 }
 0x150   : > { %v1181_v44 = vpop.f32.mrf.mxu1  ;;  %v4340_v29 = vpop.f32.mrf.mxu0  ;;  %4723 = vmatmul.mubr.msk.f32.gmra.mxu0 %vm621_vm1, %v2986_v31 }
 0x151   : > { %v6405_v15 = vadd.f32 %v4337_v58, %v1187_v59  ;;  %v1182_v18 = vadd.f32 %v1181_v44, %v7091_v25 }
 0x152   : > { %v4276_v53 = vpop.f32.mrf.mxu1  ;;  %4659 = vmatmul.mubr.msk.f32.gmra.mxu1 %vm621_vm1, %v2711_v21  ;;  %v1570_v3 = vpop.f32.mrf.mxu0 }
 0x153   : > { %v6409_v50 = vadd.f32 %v1560_v19, %v1182_v18  ;;  %v1197_v32 = vadd.f32 %v4276_v53, %v7092_v54 }
 0x154   : > { %v1191_v26 = vpop.f32.mrf.mxu1  ;;  %v4423_v7 = vpop.f32.mrf.mxu0 }
 0x155   : > { %v6412_v11 = vadd.f32 %v4340_v29, %v1197_v32  ;;  %v1192_v33 = vadd.f32 %v1191_v26, %v7093_v51 }
 0x156   : > { %v4359_v36 = vpop.f32.mrf.mxu1  ;;  %v1968_v5 = vpop.f32.mrf.mxu0 }
 0x157   : > { %v6415_v46 = vadd.f32 %v1570_v3, %v1192_v33  ;;  %v1852_v20 = vadd.f32 %v4359_v36, %v6201_v40 }
 0x158   : > { %v1692_v42 = vpop.f32.mrf.mxu1  ;;  %v4426_v56 = vpop.f32.mrf.mxu0 }
 0x159   : > { %v6418_v23 = vadd.f32 %v4423_v7, %v1852_v20  ;;  %v1851_v12 = vadd.f32 %v1692_v42, %v6208_v45 }
 0x15a   : > { %v4362_v63 = vpop.f32.mrf.mxu1  ;;  %v1978_v58 = vpop.f32.mrf.mxu0 }
 0x15b   : > { %v6421_v60 = vadd.f32 %v1968_v5, %v1851_v12  ;;  %v1854_v39 = vadd.f32 %v4362_v63, %v6215_v24 }
 0x15c   : > { %v1702_v17 = vpop.f32.mrf.mxu1  ;;  %v4429_v34 = vpop.f32.mrf.mxu0 }
 0x15d   : > { %v6424_v31 = vadd.f32 %v4426_v56, %v1854_v39  ;;  %v1853_v61 = vadd.f32 %v1702_v17, %v6222_v43 }
 0x15e   : > { %v4365_v35 = vpop.f32.mrf.mxu1  ;;  %v1988_v40 = vpop.f32.mrf.mxu0 }
 0x15f   : > { %v6427_v19 = vadd.f32 %v1978_v58, %v1853_v61  ;;  %v1856_v9 = vadd.f32 %v4365_v35, %v6229_v6 }
 0x160   : > { %v1712_v59 = vpop.f32.mrf.mxu1  ;;  %v4432_v45 = vpop.f32.mrf.mxu0 }
 0x161   : > { %v6430_v21 = vadd.f32 %v4429_v34, %v1856_v9  ;;  %v1855_v44 = vadd.f32 %v1712_v59, %v6236_v28 }
 0x162   : > { %v4368_v29 = vpop.f32.mrf.mxu1  ;;  %v1998_v24 = vpop.f32.mrf.mxu0 }
 0x163   : > { %v6433_v25 = vadd.f32 %v1988_v40, %v1855_v44  ;;  %v1858_v18 = vadd.f32 %v4368_v29, %v6243_v37 }
 0x164   : > { %v1722_v53 = vpop.f32.mrf.mxu1  ;;  %v4435_v43 = vpop.f32.mrf.mxu0 }
 0x165   : > { %v6436_v3 = vadd.f32 %v4432_v45, %v1858_v18  ;;  %v1857_v54 = vadd.f32 %v1722_v53, %v6250_v10 }
 0x166   : > { %v4371_v32 = vpop.f32.mrf.mxu1  ;;  %v2008_v6 = vpop.f32.mrf.mxu0 }
 0x167   : > { %v6439_v26 = vadd.f32 %v1998_v24, %v1857_v54  ;;  %v1860_v7 = vadd.f32 %v4371_v32, %v6257_v1 }
 0x168   : > { %v1732_v51 = vpop.f32.mrf.mxu1  ;;  %v4438_v28 = vpop.f32.mrf.mxu0 }
 0x169   : > { %v6442_v33 = vadd.f32 %v4435_v43, %v1860_v7  ;;  %v1859_v36 = vadd.f32 %v1732_v51, %v6264_v27 }
 0x16a   : > { %v4374_v5 = vpop.f32.mrf.mxu1  ;;  %v2018_v37 = vpop.f32.mrf.mxu0 }
 0x16b   : > { %v6445_v20 = vadd.f32 %v2008_v6, %v1859_v36  ;;  %v1862_v42 = vadd.f32 %v4374_v5, %v6271_v0 }
 0x16c   : > { %v1742_v56 = vpop.f32.mrf.mxu1  ;;  %v4441_v10 = vpop.f32.mrf.mxu0 }
 0x16d   : > { %v6448_v12 = vadd.f32 %v4438_v28, %v1862_v42  ;;  %v1861_v63 = vadd.f32 %v1742_v56, %v6278_v57 }
 0x16e   : > { %v4377_v58 = vpop.f32.mrf.mxu1  ;;  %v2028_v1 = vpop.f32.mrf.mxu0 }
 0x16f   : > { %v6451_v39 = vadd.f32 %v2018_v37, %v1861_v63  ;;  %v1864_v17 = vadd.f32 %v4377_v58, %v6285_v47 }
 0x170   : > { %v1752_v34 = vpop.f32.mrf.mxu1  ;;  %v4444_v27 = vpop.f32.mrf.mxu0 }
 0x171   : > { %v6454_v61 = vadd.f32 %v4441_v10, %v1864_v17  ;;  %v1863_v35 = vadd.f32 %v1752_v34, %v6292_v8 }
 0x172   : > { %v4380_v40 = vpop.f32.mrf.mxu1  ;;  %v2038_v0 = vpop.f32.mrf.mxu0 }
 0x173   : > { %v6457_v9 = vadd.f32 %v2028_v1, %v1863_v35  ;;  %v1866_v59 = vadd.f32 %v4380_v40, %v6299_v49 }
 0x174   : > { %v1762_v45 = vpop.f32.mrf.mxu1  ;;  %v4447_v57 = vpop.f32.mrf.mxu0 }
 0x175   : > { %v6460_v44 = vadd.f32 %v4444_v27, %v1866_v59  ;;  %v1865_v29 = vadd.f32 %v1762_v45, %v6306_v38 }
 0x176   : > { %v4383_v24 = vpop.f32.mrf.mxu1  ;;  %v2048_v47 = vpop.f32.mrf.mxu0 }
 0x177   : > { %v6463_v18 = vadd.f32 %v2038_v0, %v1865_v29  ;;  %v1868_v53 = vadd.f32 %v4383_v24, %v6313_v52 }
 0x178   : > { %v1772_v43 = vpop.f32.mrf.mxu1  ;;  %v4450_v8 = vpop.f32.mrf.mxu0 }
 0x179   : > { %v6466_v54 = vadd.f32 %v4447_v57, %v1868_v53  ;;  %v1867_v32 = vadd.f32 %v1772_v43, %v6321_v30 }
 0x17a   : > { %v4386_v6 = vpop.f32.mrf.mxu1  ;;  %v2058_v49 = vpop.f32.mrf.mxu0 }
 0x17b   : > { %v6469_v7 = vadd.f32 %v2048_v47, %v1867_v32  ;;  %v1870_v51 = vadd.f32 %v4386_v6, %v6328_v13 }
 0x17c   : > { %v1782_v28 = vpop.f32.mrf.mxu1  ;;  %v4453_v38 = vpop.f32.mrf.mxu0 }
 0x17d   : > { %v6472_v36 = vadd.f32 %v4450_v8, %v1870_v51  ;;  %v1869_v5 = vadd.f32 %v1782_v28, %v6336_v4 }
 0x17e   : > { %v4389_v37 = vpop.f32.mrf.mxu1  ;;  %v2068_v52 = vpop.f32.mrf.mxu0 }
 0x17f   : > { %7094 = vst [vmem:[#allocation10_spill] sm:$0xff] %v6472_v36  ;;  %v6475_v42 = vadd.f32 %v2058_v49, %v1869_v5  ;;  %v1872_v56 = vadd.f32 %v4389_v37, %v6343_v16 }
 0x180   : > { %v1792_v10 = vpop.f32.mrf.mxu1  ;;  %v4456_v30 = vpop.f32.mrf.mxu0 }
 0x181   : > { %7095 = vst [vmem:[#allocation12_spill] sm:$0xff] %v6475_v42  ;;  %v6478_v63 = vadd.f32 %v4453_v38, %v1872_v56  ;;  %v1871_v58 = vadd.f32 %v1792_v10, %v6351_v14 }
 0x182   : > { %v4392_v1 = vpop.f32.mrf.mxu1  ;;  %v2078_v13 = vpop.f32.mrf.mxu0 }
 0x183   : > { %7096 = vst [vmem:[#allocation14_spill] sm:$0xff] %v6478_v63  ;;  %v6481_v17 = vadd.f32 %v2068_v52, %v1871_v58  ;;  %v1874_v34 = vadd.f32 %v4392_v1, %v6358_v62 }
 0x184   : > { %v1802_v27 = vpop.f32.mrf.mxu1  ;;  %v4459_v4 = vpop.f32.mrf.mxu0 }
 0x185   : > { %7097 = vst [vmem:[#allocation16_spill] sm:$0xff] %v6481_v17  ;;  %v6484_v35 = vadd.f32 %v4456_v30, %v1874_v34  ;;  %v1873_v40 = vadd.f32 %v1802_v27, %v6367_v2 }
 0x186   : > { %v4395_v0 = vpop.f32.mrf.mxu1  ;;  %v2088_v16 = vpop.f32.mrf.mxu0 }
 0x187   : > { %7098 = vst [vmem:[#allocation18_spill] sm:$0xff] %v6484_v35  ;;  %v6487_v59 = vadd.f32 %v2078_v13, %v1873_v40  ;;  %v1876_v45 = vadd.f32 %v4395_v0, %v6376_v48 }
 0x188   : > { %v1812_v57 = vpop.f32.mrf.mxu1  ;;  %v4462_v14 = vpop.f32.mrf.mxu0 }
 0x189   : > { %7099 = vst [vmem:[#allocation20_spill] sm:$0xff] %v6487_v59  ;;  %v6490_v29 = vadd.f32 %v4459_v4, %v1876_v45  ;;  %v1875_v24 = vadd.f32 %v1812_v57, %v6384_v41 }
 0x18a   : > { %v4398_v47 = vpop.f32.mrf.mxu1  ;;  %v2098_v62 = vpop.f32.mrf.mxu0 }
 0x18b   : > { %7100 = vst [vmem:[#allocation22_spill] sm:$0xff] %v6490_v29  ;;  %v6493_v53 = vadd.f32 %v2088_v16, %v1875_v24  ;;  %v1878_v43 = vadd.f32 %v4398_v47, %v6392_v22 }
 0x18c   : > { %v1822_v8 = vpop.f32.mrf.mxu1  ;;  %v4465_v2 = vpop.f32.mrf.mxu0 }
 0x18d   : > { %7101 = vst [vmem:[#allocation25_spill] sm:$0xff] %v6493_v53  ;;  %v6496_v32 = vadd.f32 %v4462_v14, %v1878_v43  ;;  %v1877_v6 = vadd.f32 %v1822_v8, %v6399_v55 }
 0x18e   : > { %v4401_v49 = vpop.f32.mrf.mxu1  ;;  %v2108_v48 = vpop.f32.mrf.mxu0 }
 0x18f   : > { %7102 = vst [vmem:[#allocation27_spill] sm:$0xff] %v6496_v32  ;;  %v6499_v51 = vadd.f32 %v2098_v62, %v1877_v6  ;;  %v1880_v28 = vadd.f32 %v4401_v49, %v6405_v15 }
 0x190   : > { %v1832_v38 = vpop.f32.mrf.mxu1  ;;  %v4468_v41 = vpop.f32.mrf.mxu0 }
 0x191   : > { %7103 = vst [vmem:[#allocation29_spill] sm:$0xff] %v6499_v51  ;;  %v6502_v5 = vadd.f32 %v4465_v2, %v1880_v28  ;;  %v1879_v37 = vadd.f32 %v1832_v38, %v6409_v50 }
 0x192   : > { %v4404_v52 = vpop.f32.mrf.mxu1  ;;  %v2118_v22 = vpop.f32.mrf.mxu0 }
 0x193   : > { %7104 = vst [vmem:[#allocation31_spill] sm:$0xff] %v6502_v5  ;;  %v6505_v56 = vadd.f32 %v2108_v48, %v1879_v37  ;;  %v1882_v10 = vadd.f32 %v4404_v52, %v6412_v11 }
 0x194   : > { %v1842_v30 = vpop.f32.mrf.mxu1  ;;  %v6508_v55 = vpop.f32.mrf.mxu0 }
 0x195   : > { %7105 = vst [vmem:[#allocation2_spill] sm:$0xff] %v6505_v56  ;;  %v6510_v58 = vadd.f32 %v4468_v41, %v1882_v10  ;;  %v1881_v1 = vadd.f32 %v1842_v30, %v6415_v46 }
 0x196   : > { %v4487_v15 = vpop.f32.mrf.mxu1  ;;  %v6513_v13 = vpop.f32.mrf.mxu0 }
 0x197   : > { %7106 = vst [vmem:[#allocation3_spill] sm:$0xff] %v6510_v58  ;;  %v6515_v34 = vadd.f32 %v2118_v22, %v1881_v1 }
 0x198   : > { %v2243_v27 = vpop.f32.mrf.mxu1  ;;  %v6517_v50 = vpop.f32.mrf.mxu0 }
 0x199   : > { %7107 = vst [vmem:[#allocation5_spill] sm:$0xff] %v6515_v34 }
 0x19a   : > { %v6519_v4 = vpop.f32.mrf.mxu1  ;;  %v6521_v40 = vpop.f32.mrf.mxu0 }
 0x19c   : > { %v6523_v11 = vpop.f32.mrf.mxu1  ;;  %v6525_v0 = vpop.f32.mrf.mxu0 }
 0x19e   : > { %v6527_v16 = vpop.f32.mrf.mxu1  ;;  %v6529_v45 = vpop.f32.mrf.mxu0 }
 0x1a0   : > { %v6531_v46 = vpop.f32.mrf.mxu1  ;;  %v6533_v57 = vpop.f32.mrf.mxu0 }
 0x1a2   : > { %v6535_v14 = vpop.f32.mrf.mxu1  ;;  %v6537_v24 = vpop.f32.mrf.mxu0 }
 0x1a4   : > { %v6539_v47 = vpop.f32.mrf.mxu1  ;;  %v6541_v62 = vpop.f32.mrf.mxu0 }
 0x1a6   : > { %v6543_v43 = vpop.f32.mrf.mxu1  ;;  %v6545_v8 = vpop.f32.mrf.mxu0 }
 0x1a8   : > { %v6547_v2 = vpop.f32.mrf.mxu1  ;;  %v6549_v6 = vpop.f32.mrf.mxu0 }
 0x1aa   : > { %v6551_v49 = vpop.f32.mrf.mxu1  ;;  %v6553_v48 = vpop.f32.mrf.mxu0 }
 0x1ac   : > { %v6555_v28 = vpop.f32.mrf.mxu1  ;;  %v6557_v38 = vpop.f32.mrf.mxu0 }
 0x1ae   : > { %v6559_v41 = vpop.f32.mrf.mxu1  ;;  %v6561_v37 = vpop.f32.mrf.mxu0 }
 0x1b0   : > { %v6563_v52 = vpop.f32.mrf.mxu1  ;;  %v6565_v22 = vpop.f32.mrf.mxu0 }
 0x1b2   : > { %v6567_v10 = vpop.f32.mrf.mxu1  ;;  %v6569_v30 = vpop.f32.mrf.mxu0 }
 0x1b4   : > { %v6571_v1 = vpop.f32.mrf.mxu1  ;;  %v6573_v34 = vpop.f32.mrf.mxu0 }
 0x1b6   : > { %v6575_v58 = vpop.f32.mrf.mxu1  ;;  %v6577_v56 = vpop.f32.mrf.mxu0 }
 0x1b7   : > { %7108 = vst [vmem:[#allocation7_spill] sm:$0xff] %v6577_v56 }
 0x1b8   : > { %v6579_v5 = vpop.f32.mrf.mxu1  ;;  %v6581_v51 = vpop.f32.mrf.mxu0 }
 0x1b9   : > { %7109 = vst [vmem:[#allocation9_spill] sm:$0xff] %v6581_v51 }
 0x1ba   : > { %v6583_v32 = vpop.f32.mrf.mxu1  ;;  %v6585_v53 = vpop.f32.mrf.mxu0 }
 0x1bb   : > { %7110 = vst [vmem:[#allocation11_spill] sm:$0xff] %v6583_v32  ;;  %7111 = vst [vmem:[#allocation13_spill] sm:$0xff] %v6585_v53 }
 0x1bc   : > { %v6587_v29 = vpop.f32.mrf.mxu1  ;;  %v6589_v59 = vpop.f32.mrf.mxu0 }
 0x1bd   : > { %7112 = vst [vmem:[#allocation15_spill] sm:$0xff] %v6587_v29  ;;  %7113 = vst [vmem:[#allocation17_spill] sm:$0xff] %v6589_v59 }
 0x1be   : > { %v6591_v35 = vpop.f32.mrf.mxu1  ;;  %v6593_v17 = vpop.f32.mrf.mxu0 }
 0x1bf   : > { %7114 = vst [vmem:[#allocation19_spill] sm:$0xff] %v6591_v35  ;;  %7115 = vst [vmem:[#allocation21_spill] sm:$0xff] %v6593_v17 }
 0x1c0   : > { %v6595_v63 = vpop.f32.mrf.mxu1  ;;  %v6597_v42 = vpop.f32.mrf.mxu0 }
 0x1c1   : > { %7116 = vst [vmem:[#allocation23_spill] sm:$0xff] %v6595_v63  ;;  %7117 = vst [vmem:[#allocation26_spill] sm:$0xff] %v6597_v42 }
 0x1c2   : > { %v6599_v56 = vpop.f32.mrf.mxu1  ;;  %v6601_v36 = vpop.f32.mrf.mxu0 }
 0x1c3   : > { %7118 = vst [vmem:[#allocation38_spill] sm:$0xff] %v6599_v56  ;;  %7119 = vst [vmem:[#allocation28_spill] sm:$0xff] %v6601_v36 }
 0x1c4   : > { %v6603_v51 = vpop.f32.mrf.mxu1  ;;  %v6605_v32 = vpop.f32.mrf.mxu0 }
 0x1c5   : > { %7120 = vst [vmem:[#allocation30_spill] sm:$0xff] %v6603_v51  ;;  %7121 = vst [vmem:[#allocation24_spill] sm:$0xff] %v6605_v32 }
 0x1c6   : > { %v6607_v53 = vpop.f32.mrf.mxu1  ;;  %v6609_v59 = vpop.f32.mrf.mxu0 }
 0x1c7   : > { %7122 = vst [vmem:[#allocation33_spill] sm:$0xff] %v6607_v53  ;;  %7123 = vst [vmem:[#allocation37_spill] sm:$0xff] %v6609_v59  ;;  %v2403_v59 = vadd.f32 %v4487_v15, %v6418_v23 }
 0x1c8   : > { %v6611_v35 = vpop.f32.mrf.mxu1  ;;  %v6613_v17 = vpop.f32.mrf.mxu0 }
 0x1c9   : > { %7124 = vst [vmem:[#allocation32_spill] sm:$0xff] %v6611_v35  ;;  %7125 = vst [vmem:[#allocation34_spill] sm:$0xff] %v6613_v17 }
 0x1ca   : > { %v6615_v63 = vpop.f32.mrf.mxu1  ;;  %v6617_v42 = vpop.f32.mrf.mxu0 }
 0x1cb   : > { %7126 = vst [vmem:[#allocation4_spill] sm:$0xff] %v6617_v42  ;;  %v2402_v42 = vadd.f32 %v2243_v27, %v6421_v60  ;;  %v2404_v60 = vadd.f32 %v6523_v11, %v6427_v19  ;;  %v3257_v19 = vld [vmem:[%s6646_s23] sm:$0xff] }
 0x1cc   : > { %v6619_v56 = vpop.f32.mrf.mxu1  ;;  %v6621_v36 = vpop.f32.mrf.mxu0 }
 0x1cd   : > { %7127 = vst [vmem:[#allocation40_spill] sm:$0xff] %v6619_v56  ;;  %7128 = vst [vmem:[#allocation35_spill] sm:$0xff] %v6621_v36 }
 0x1ce   : > { %v6623_v51 = vpop.f32.mrf.mxu1  ;;  %v6625_v32 = vpop.f32.mrf.mxu0 }
 0x1cf   : > { %7129 = vst [vmem:[#allocation6_spill] sm:$0xff] %v6623_v51  ;;  %7130 = vst [vmem:[#allocation36_spill] sm:$0xff] %v6625_v32  ;;  %v2675_v51 = vadd.f32 %v6508_v55, %v2403_v59  ;;  %v2405_v32 = vadd.f32 %v6519_v4, %v6424_v31  ;;  %v2407_v59 = vadd.f32 %v6527_v16, %v6430_v21  ;;  %v3258_v55 = vld [vmem:[%s6646_s23 + $0x8] sm:$0xff] }
 0x1d0   : > { %v6627_v29 = vpop.f32.mrf.mxu1  ;;  %v6629_v53 = vpop.f32.mrf.mxu0  ;;  %v2409_v16 = vadd.f32 %v6535_v14, %v6436_v3  ;;  %v2411_v14 = vadd.f32 %v6543_v43, %v6442_v33 }
 0x1d1   : > { %7131 = vst [vmem:[#allocation39_spill] sm:$0xff] %v6627_v29  ;;  %7132 = vst [vmem:[#allocation41_spill] sm:$0xff] %v6629_v53  ;;  %v2677_v53 = vadd.f32 %v6517_v50, %v2405_v32  ;;  %v2406_v29 = vadd.f32 %v6531_v46, %v6433_v25  ;;  %v3260_v25 = vld [vmem:[%s6646_s23 + $0x18] sm:$0xff] }
 0x1d2   : > { %v6632_v35 = vpop.f32.mrf.mxu1  ;;  %v6634_v17 = vpop.f32.mrf.mxu0 }
 0x1d3   : > { %7133 = vst [vmem:[#allocation8_spill] sm:$0xff] %v6632_v35  ;;  %7134 = vst [vmem:[#allocation42_spill] sm:$0xff] %v6634_v17  ;;  %v2674_v17 = vadd.f32 %v6513_v13, %v2402_v42 }
 0x1d4   : > { %v6638_v56 = vpop.f32.mrf.mxu1  ;;  %v4679_v36 = vpop.f32.mrf.mxu0 }
 0x1d5   : > { %7135 = vst [vmem:[#allocation43_spill] sm:$0xff] %v6638_v56 }
 0x1d6   : > { %v4615_v23 = vpop.f32.mrf.mxu1  ;;  %v3066_v15 = vpop.f32.mrf.mxu0 }
 0x1d7   : > { %v2951_v27 = vadd.f32 %v4615_v23, %v2675_v51  ;;  %v2676_v51 = vadd.f32 %v6521_v40, %v2404_v60 }
 0x1d8   : > { %v2791_v31 = vpop.f32.mrf.mxu1  ;;  %v4682_v4 = vpop.f32.mrf.mxu0 }
 0x1d9   : > { %v3226_v56 = vadd.f32 %v4679_v36, %v2951_v27  ;;  %v2950_v35 = vadd.f32 %v2791_v31, %v2674_v17  ;;  %v2679_v17 = vadd.f32 %v6525_v0, %v2407_v59  ;;  %v2408_v0 = vadd.f32 %v6539_v47, %v6439_v26  ;;  %v3262_v59 = vld [vmem:[%s6646_s23 + $0x28] sm:$0xff] }
 0x1da   : > { %v4618_v21 = vpop.f32.mrf.mxu1  ;;  %v3076_v42 = vpop.f32.mrf.mxu0  ;;  %v2410_v47 = vadd.f32 %v6547_v2, %v6445_v20  ;;  %v2413_v20 = vadd.f32 %v6551_v49, %v6448_v12  ;;  %v2415_v49 = vadd.f32 %v6559_v41, %v6454_v61 }
 0x1db   : > { %v3290_v13 = vsub.f32 %v3258_v55, %v3226_v56  ;;  %v3225_v32 = vadd.f32 %v3066_v15, %v2950_v35  ;;  %v2953_v36 = vadd.f32 %v4618_v21, %v2677_v53  ;;  %v2678_v56 = vadd.f32 %v6529_v45, %v2406_v29  ;;  %v3259_v35 = vld [vmem:[%s6646_s23 + $0x10] sm:$0xff] }
 0x1dc   : > { %v2801_v50 = vpop.f32.mrf.mxu1  ;;  %v4685_v11 = vpop.f32.mrf.mxu0  ;;  %v2681_v29 = vadd.f32 %v6533_v57, %v2409_v16  ;;  %v2680_v33 = vadd.f32 %v6537_v24, %v2408_v0 }
 0x1dd   : > { %3323 = vst.msk [vmem:[%s6660_s25 + $0x8] sm:$0xff] %vm3321_vm3, %v3290_v13  ;;  %v3289_v46 = vsub.f32 %v3257_v19, %v3225_v32  ;;  %v3228_v23 = vadd.f32 %v4682_v4, %v2953_v36  ;;  %v2952_v27 = vadd.f32 %v2801_v50, %v2676_v51  ;;  %v3261_v19 = vld [vmem:[%s6646_s23 + $0x20] sm:$0xff]  ;;  %v2683_v13 = vadd.f32 %v6541_v62, %v2411_v14  ;;  %v3264_v32 = vld [vmem:[%s6646_s23 + $0x38] sm:$0xff] }
 0x1de   : > { %v4621_v40 = vpop.f32.mrf.mxu1  ;;  %v3086_v53 = vpop.f32.mrf.mxu0  ;;  %v2682_v50 = vadd.f32 %v6545_v8, %v2410_v47  ;;  %v2412_v62 = vadd.f32 %v6555_v28, %v6451_v39  ;;  %v2685_v8 = vadd.f32 %v6549_v6, %v2413_v20  ;;  %v2414_v28 = vadd.f32 %v6563_v52, %v6457_v9 }
 0x1df   : > { %3322 = vst.msk [vmem:[%s6660_s25] sm:$0xff] %vm3321_vm3, %v3289_v46  ;;  %v3292_v15 = vsub.f32 %v3260_v25, %v3228_v23  ;;  %v3227_v60 = vadd.f32 %v3076_v42, %v2952_v27  ;;  %v2955_v3 = vadd.f32 %v4621_v40, %v2679_v17  ;;  %v2417_v9 = vadd.f32 %v6567_v10, %v6460_v44 }
 0x1e0   : > { %v2811_v55 = vpop.f32.mrf.mxu1  ;;  %v4688_v31 = vpop.f32.mrf.mxu0  ;;  %v2684_v61 = vadd.f32 %v6553_v48, %v2412_v62  ;;  %v2419_v10 = vadd.f32 %v6575_v58, %v6466_v54  ;;  %v7138_v62 = vld [vmem:[#allocation7_spill] sm:$0xff] }
 0x1e1   : > { %3325 = vst.msk [vmem:[%s6660_s25 + $0x18] sm:$0xff] %vm3321_vm3, %v3292_v15  ;;  %v3291_v45 = vsub.f32 %v3259_v35, %v3227_v60  ;;  %v3230_v4 = vadd.f32 %v4685_v11, %v2955_v3  ;;  %v2954_v26 = vadd.f32 %v2811_v55, %v2678_v56  ;;  %v3263_v11 = vld [vmem:[%s6646_s23 + $0x30] sm:$0xff]  ;;  %v3266_v56 = vld [vmem:[%s6646_s23 + $0x48] sm:$0xff]  ;;  %v3265_v15 = vld [vmem:[%s6646_s23 + $0x40] sm:$0xff] }
 0x1e2   : > { %v4624_v21 = vpop.f32.mrf.mxu1  ;;  %v3096_v42 = vpop.f32.mrf.mxu0  ;;  %v3268_v55 = vld [vmem:[%s6646_s23 + $0x58] sm:$0xff] }
 0x1e3   : > { %3324 = vst.msk [vmem:[%s6660_s25 + $0x10] sm:$0xff] %vm3321_vm3, %v3291_v45  ;;  %v3294_v43 = vsub.f32 %v3262_v59, %v3230_v4  ;;  %v3229_v51 = vadd.f32 %v3086_v53, %v2954_v26  ;;  %v2957_v57 = vadd.f32 %v4624_v21, %v2681_v29  ;;  %v2687_v59 = vadd.f32 %v6557_v38, %v2415_v49  ;;  %v3267_v26 = vld [vmem:[%s6646_s23 + $0x50] sm:$0xff] }
 0x1e4   : > { %v2821_v36 = vpop.f32.mrf.mxu1  ;;  %v4691_v17 = vpop.f32.mrf.mxu0  ;;  %v2686_v4 = vadd.f32 %v6561_v37, %v2414_v28  ;;  %v2416_v38 = vadd.f32 %v6571_v1, %v6463_v18  ;;  %v2689_v37 = vadd.f32 %v6565_v22, %v2417_v9  ;;  %v2418_v1 = vadd.f32 %v6579_v5, %v6469_v7  ;;  %v3273_v9 = vld [vmem:[%s6646_s23 + $0x80] sm:$0xff] }
 0x1e5   : > { %3327 = vst.msk [vmem:[%s6660_s25 + $0x28] sm:$0xff] %vm3321_vm3, %v3294_v43  ;;  %v3293_v2 = vsub.f32 %v3261_v19, %v3229_v51  ;;  %v3232_v25 = vadd.f32 %v4688_v31, %v2957_v57  ;;  %v2956_v24 = vadd.f32 %v2821_v36, %v2680_v33  ;;  %v3270_v33 = vld [vmem:[%s6646_s23 + $0x68] sm:$0xff] }
 0x1e6   : > { %v4627_v16 = vpop.f32.mrf.mxu1  ;;  %v3106_v46 = vpop.f32.mrf.mxu0  ;;  %v2688_v54 = vadd.f32 %v6569_v30, %v2416_v38  ;;  %v7147_v38 = vld [vmem:[#allocation17_spill] sm:$0xff] }
 0x1e7   : > { %3326 = vst.msk [vmem:[%s6660_s25 + $0x20] sm:$0xff] %vm3321_vm3, %v3293_v2  ;;  %v3296_v23 = vsub.f32 %v3264_v32, %v3232_v25  ;;  %v3231_v27 = vadd.f32 %v3096_v42, %v2956_v24  ;;  %v2959_v12 = vadd.f32 %v4627_v16, %v2683_v13  ;;  %v3269_v32 = vld [vmem:[%s6646_s23 + $0x60] sm:$0xff]  ;;  %v2691_v2 = vadd.f32 %v6573_v34, %v2419_v10  ;;  %v3272_v25 = vld [vmem:[%s6646_s23 + $0x78] sm:$0xff]  ;;  %v7137_v16 = vld [vmem:[#allocation11_spill] sm:$0xff] }
 0x1e8   : > { %v2831_v35 = vpop.f32.mrf.mxu1  ;;  %v4694_v40 = vpop.f32.mrf.mxu0  ;;  %v7140_v34 = vld [vmem:[#allocation15_spill] sm:$0xff] }
 0x1e9   : > { %3329 = vst.msk [vmem:[%s6660_s25 + $0x38] sm:$0xff] %vm3321_vm3, %v3296_v23  ;;  %v3295_v53 = vsub.f32 %v3263_v11, %v3231_v27  ;;  %v3234_v0 = vadd.f32 %v4691_v17, %v2959_v12  ;;  %v2958_v39 = vadd.f32 %v2831_v35, %v2682_v50  ;;  %v7136_v11 = vld [vmem:[#allocation10_spill] sm:$0xff]  ;;  %v2690_v23 = vadd.f32 %v7138_v62, %v2418_v1  ;;  %v3271_v27 = vld [vmem:[%s6646_s23 + $0x70] sm:$0xff] }
 0x1ea   : > { %v4630_v60 = vpop.f32.mrf.mxu1  ;;  %v3116_v3 = vpop.f32.mrf.mxu0  ;;  %v2421_v7 = vadd.f32 %v7137_v16, %v7136_v11  ;;  %v3278_v16 = vld [vmem:[%s6646_s23 + $0xa8] sm:$0xff] }
 0x1eb   : > { %3328 = vst.msk [vmem:[%s6660_s25 + $0x30] sm:$0xff] %vm3321_vm3, %v3295_v53  ;;  %v3298_v41 = vsub.f32 %v3266_v56, %v3234_v0  ;;  %v3233_v14 = vadd.f32 %v3106_v46, %v2958_v39  ;;  %v2961_v6 = vadd.f32 %v4630_v60, %v2685_v8  ;;  %v7139_v56 = vld [vmem:[#allocation12_spill] sm:$0xff]  ;;  %v7141_v0 = vld [vmem:[#allocation14_spill] sm:$0xff]  ;;  %v7142_v39 = vld [vmem:[#allocation19_spill] sm:$0xff] }
 0x1ec   : > { %v2841_v31 = vpop.f32.mrf.mxu1  ;;  %v4697_v29 = vpop.f32.mrf.mxu0  ;;  %v2420_v35 = vadd.f32 %v7140_v34, %v7139_v56  ;;  %v2423_v28 = vadd.f32 %v7142_v39, %v7141_v0  ;;  %v3277_v34 = vld [vmem:[%s6646_s23 + $0xa0] sm:$0xff] }
 0x1ed   : > { %3331 = vst.msk [vmem:[%s6660_s25 + $0x48] sm:$0xff] %vm3321_vm3, %v3298_v41  ;;  %v3297_v52 = vsub.f32 %v3265_v15, %v3233_v14  ;;  %v3236_v45 = vadd.f32 %v4694_v40, %v2961_v6  ;;  %v2960_v48 = vadd.f32 %v2841_v31, %v2684_v61  ;;  %v3274_v15 = vld [vmem:[%s6646_s23 + $0x88] sm:$0xff]  ;;  %v7143_v61 = vld [vmem:[#allocation9_spill] sm:$0xff] }
 0x1ee   : > { %v4633_v47 = vpop.f32.mrf.mxu1  ;;  %v3126_v19 = vpop.f32.mrf.mxu0  ;;  %v2693_v41 = vadd.f32 %v7143_v61, %v2421_v7  ;;  %v7145_v31 = vld [vmem:[#allocation23_spill] sm:$0xff] }
 0x1ef   : > { %3330 = vst.msk [vmem:[%s6660_s25 + $0x40] sm:$0xff] %vm3321_vm3, %v3297_v52  ;;  %v3300_v21 = vsub.f32 %v3268_v55, %v3236_v45  ;;  %v3235_v42 = vadd.f32 %v3116_v3, %v2960_v48  ;;  %v2963_v44 = vadd.f32 %v4633_v47, %v2687_v59  ;;  %v7144_v55 = vld [vmem:[#allocation16_spill] sm:$0xff]  ;;  %v7146_v48 = vld [vmem:[#allocation13_spill] sm:$0xff] }
 0x1f0   : > { %v2851_v43 = vpop.f32.mrf.mxu1  ;;  %v4700_v51 = vpop.f32.mrf.mxu0 }
 0x1f1   : > { %3333 = vst.msk [vmem:[%s6660_s25 + $0x58] sm:$0xff] %vm3321_vm3, %v3300_v21  ;;  %v3299_v57 = vsub.f32 %v3267_v26, %v3235_v42  ;;  %v3238_v13 = vadd.f32 %v4697_v29, %v2963_v44  ;;  %v2962_v18 = vadd.f32 %v2851_v43, %v2686_v4  ;;  %v2422_v29 = vadd.f32 %v7145_v31, %v7144_v55  ;;  %v3276_v42 = vld [vmem:[%s6646_s23 + $0x98] sm:$0xff]  ;;  %v7149_v43 = vld [vmem:[#allocation38_spill] sm:$0xff] }
 0x1f2   : > { %v4636_v36 = vpop.f32.mrf.mxu1  ;;  %v3136_v17 = vpop.f32.mrf.mxu0  ;;  %v2692_v4 = vadd.f32 %v7146_v48, %v2420_v35  ;;  %v2695_v21 = vadd.f32 %v7147_v38, %v2423_v28 }
 0x1f3   : > { %3332 = vst.msk [vmem:[%s6660_s25 + $0x50] sm:$0xff] %vm3321_vm3, %v3299_v57  ;;  %v3302_v58 = vsub.f32 %v3270_v33, %v3238_v13  ;;  %v3237_v20 = vadd.f32 %v3126_v19, %v2962_v18  ;;  %v2965_v22 = vadd.f32 %v4636_v36, %v2689_v37  ;;  %v7148_v33 = vld [vmem:[#allocation18_spill] sm:$0xff]  ;;  %v7150_v18 = vld [vmem:[#allocation21_spill] sm:$0xff] }
 0x1f4   : > { %v2861_v24 = vpop.f32.mrf.mxu1  ;;  %v4703_v50 = vpop.f32.mrf.mxu0  ;;  %v2694_v1 = vadd.f32 %v7150_v18, %v2422_v29  ;;  %v7161_v29 = vld [vmem:[#allocation37_spill] sm:$0xff] }
 0x1f5   : > { %3335 = vst.msk [vmem:[%s6660_s25 + $0x68] sm:$0xff] %vm3321_vm3, %v3302_v58  ;;  %v3301_v5 = vsub.f32 %v3269_v32, %v3237_v20  ;;  %v3240_v46 = vadd.f32 %v4700_v51, %v2965_v22  ;;  %v2964_v30 = vadd.f32 %v2861_v24, %v2688_v54  ;;  %v2425_v51 = vadd.f32 %v7149_v43, %v7148_v33  ;;  %v3275_v32 = vld [vmem:[%s6646_s23 + $0x90] sm:$0xff]  ;;  %v7152_v58 = vld [vmem:[#allocation30_spill] sm:$0xff] }
 0x1f6   : > { %v4639_v12 = vpop.f32.mrf.mxu1  ;;  %v3146_v49 = vpop.f32.mrf.mxu0  ;;  %v7151_v54 = vld [vmem:[#allocation20_spill] sm:$0xff]  ;;  %v7153_v24 = vld [vmem:[#allocation22_spill] sm:$0xff] }
 0x1f7   : > { %3334 = vst.msk [vmem:[%s6660_s25 + $0x60] sm:$0xff] %vm3321_vm3, %v3301_v5  ;;  %v3304_v40 = vsub.f32 %v3272_v25, %v3240_v46  ;;  %v3239_v8 = vadd.f32 %v3136_v17, %v2964_v30  ;;  %v2967_v53 = vadd.f32 %v4639_v12, %v2691_v2  ;;  %v2424_v20 = vadd.f32 %v7152_v58, %v7151_v54  ;;  %v7155_v46 = vld [vmem:[#allocation26_spill] sm:$0xff]  ;;  %v7156_v12 = vld [vmem:[#allocation25_spill] sm:$0xff] }
 0x1f8   : > { %v2871_v60 = vpop.f32.mrf.mxu1  ;;  %v4706_v3 = vpop.f32.mrf.mxu0  ;;  %v2697_v30 = vadd.f32 %v7155_v46, %v2425_v51  ;;  %v7166_v51 = vld [vmem:[#allocation34_spill] sm:$0xff]  ;;  %v7171_v46 = vld [vmem:[#allocation3_spill] sm:$0xff] }
 0x1f9   : > { %3337 = vst.msk [vmem:[%s6660_s25 + $0x78] sm:$0xff] %vm3321_vm3, %v3304_v40  ;;  %v3303_v14 = vsub.f32 %v3271_v27, %v3239_v8  ;;  %v3242_v6 = vadd.f32 %v4703_v50, %v2967_v53  ;;  %v2966_v59 = vadd.f32 %v2871_v60, %v2690_v23  ;;  %v7154_v50 = vld [vmem:[#allocation33_spill] sm:$0xff]  ;;  %v7158_v8 = vld [vmem:[#allocation28_spill] sm:$0xff] }
 0x1fa   : > { %v4642_v52 = vpop.f32.mrf.mxu1  ;;  %v3156_v45 = vpop.f32.mrf.mxu0  ;;  %v2427_v11 = vadd.f32 %v7154_v50, %v7153_v24  ;;  %v2696_v53 = vadd.f32 %v7158_v8, %v2424_v20  ;;  %v7169_v20 = vld [vmem:[#allocation4_spill] sm:$0xff]  ;;  %v7170_v50 = vld [vmem:[#allocation35_spill] sm:$0xff]  ;;  %v7174_v8 = vld [vmem:[#allocation5_spill] sm:$0xff] }
 0x1fb   : > { %3336 = vst.msk [vmem:[%s6660_s25 + $0x70] sm:$0xff] %vm3321_vm3, %v3303_v14  ;;  %v3306_v26 = vsub.f32 %v3274_v15, %v3242_v6  ;;  %v3241_v47 = vadd.f32 %v3146_v49, %v2966_v59  ;;  %v2969_v19 = vadd.f32 %v4642_v52, %v2693_v41  ;;  %v7157_v49 = vld [vmem:[#allocation32_spill] sm:$0xff]  ;;  %v7160_v14 = vld [vmem:[#allocation27_spill] sm:$0xff] }
 0x1fc   : > { %v2881_v44 = vpop.f32.mrf.mxu1  ;;  %v4709_v10 = vpop.f32.mrf.mxu0  ;;  %v2426_v56 = vadd.f32 %v7157_v49, %v7156_v12  ;;  %v7159_v15 = vld [vmem:[#allocation24_spill] sm:$0xff]  ;;  %v2429_v6 = vadd.f32 %v6615_v63, %v7160_v14 }
 0x1fd   : > { %3339 = vst.msk [vmem:[%s6660_s25 + $0x88] sm:$0xff] %vm3321_vm3, %v3306_v26  ;;  %v3305_v37 = vsub.f32 %v3273_v9, %v3241_v47  ;;  %v3244_v57 = vadd.f32 %v4706_v3, %v2969_v19  ;;  %v2968_v13 = vadd.f32 %v2881_v44, %v2692_v4  ;;  %v2699_v60 = vadd.f32 %v7159_v15, %v2427_v11  ;;  %v3280_v3 = vld [vmem:[%s6646_s23 + $0xb8] sm:$0xff]  ;;  %v3279_v52 = vld [vmem:[%s6646_s23 + $0xb0] sm:$0xff] }
 0x1fe   : > { %v4645_v36 = vpop.f32.mrf.mxu1  ;;  %v3166_v17 = vpop.f32.mrf.mxu0  ;;  %v2698_v9 = vadd.f32 %v7161_v29, %v2426_v56  ;;  %v7162_v4 = vld [vmem:[#allocation29_spill] sm:$0xff]  ;;  %v7163_v26 = vld [vmem:[#allocation40_spill] sm:$0xff] }
 0x1ff   : > { %3338 = vst.msk [vmem:[%s6660_s25 + $0x80] sm:$0xff] %vm3321_vm3, %v3305_v37  ;;  %v3308_v22 = vsub.f32 %v3276_v42, %v3244_v57  ;;  %v3243_v2 = vadd.f32 %v3156_v45, %v2968_v13  ;;  %v2971_v25 = vadd.f32 %v4645_v36, %v2695_v21  ;;  %v2428_v47 = vadd.f32 %v7163_v26, %v7162_v4  ;;  %v7164_v21 = vld [vmem:[#allocation31_spill] sm:$0xff]  ;;  %v7165_v42 = vld [vmem:[#allocation6_spill] sm:$0xff]  ;;  %v7173_v49 = vld [vmem:[#allocation36_spill] sm:$0xff] }
 0x200   : > { %v2891_v7 = vpop.f32.mrf.mxu1  ;;  %v4712_v5 = vpop.f32.mrf.mxu0  ;;  %v2431_v44 = vadd.f32 %v7165_v42, %v7164_v21  ;;  %v2701_v37 = vadd.f32 %v7166_v51, %v2429_v6  ;;  %v3288_v26 = vld [vmem:[%s6646_s23 + $0xf8] sm:$0xff]  ;;  %v3287_v42 = vld [vmem:[%s6646_s23 + $0xf0] sm:$0xff] }
 0x201   : > { %3341 = vst.msk [vmem:[%s6660_s25 + $0x98] sm:$0xff] %vm3321_vm3, %v3308_v22  ;;  %v3307_v62 = vsub.f32 %v3275_v32, %v3243_v2  ;;  %v3246_v23 = vadd.f32 %v4709_v10, %v2971_v25  ;;  %v2970_v27 = vadd.f32 %v2891_v7, %v2694_v1  ;;  %v3282_v10 = vld [vmem:[%s6646_s23 + $0xc8] sm:$0xff]  ;;  %v7167_v1 = vld [vmem:[#allocation2_spill] sm:$0xff]  ;;  %v2700_v22 = vadd.f32 %v7169_v20, %v2428_v47 }
 0x202   : > { %v4648_v35 = vpop.f32.mrf.mxu1  ;;  %v3176_v40 = vpop.f32.mrf.mxu0  ;;  %v7168_v32 = vld [vmem:[#allocation39_spill] sm:$0xff]  ;;  %v2703_v11 = vadd.f32 %v7170_v50, %v2431_v44 }
 0x203   : > { %3340 = vst.msk [vmem:[%s6660_s25 + $0x90] sm:$0xff] %vm3321_vm3, %v3307_v62  ;;  %v3310_v0 = vsub.f32 %v3278_v16, %v3246_v23  ;;  %v3245_v39 = vadd.f32 %v3166_v17, %v2970_v27  ;;  %v2973_v28 = vadd.f32 %v4648_v35, %v2697_v30  ;;  %v2430_v36 = vadd.f32 %v7168_v32, %v7167_v1  ;;  %v3281_v17 = vld [vmem:[%s6646_s23 + $0xc0] sm:$0xff]  ;;  %v3284_v16 = vld [vmem:[%s6646_s23 + $0xd8] sm:$0xff]  ;;  %v7172_v30 = vld [vmem:[#allocation8_spill] sm:$0xff] }
 0x204   : > { %v2901_v61 = vpop.f32.mrf.mxu1  ;;  %v4715_v41 = vpop.f32.mrf.mxu0  ;;  %v2433_v62 = vadd.f32 %v7172_v30, %v7171_v46 }
 0x205   : > { %3343 = vst.msk [vmem:[%s6660_s25 + $0xa8] sm:$0xff] %vm3321_vm3, %v3310_v0  ;;  %v3309_v59 = vsub.f32 %v3277_v34, %v3245_v39  ;;  %v3248_v55 = vadd.f32 %v4712_v5, %v2973_v28  ;;  %v2972_v31 = vadd.f32 %v2901_v61, %v2696_v53  ;;  %v2702_v56 = vadd.f32 %v7173_v49, %v2430_v36  ;;  %v3283_v34 = vld [vmem:[%s6646_s23 + $0xd0] sm:$0xff]  ;;  %v7175_v53 = vld [vmem:[#allocation43_spill] sm:$0xff]  ;;  %v7176_v61 = vld [vmem:[#allocation41_spill] sm:$0xff] }
 0x206   : > { %v4651_v45 = vpop.f32.mrf.mxu1  ;;  %v3186_v48 = vpop.f32.mrf.mxu0  ;;  %v2432_v0 = vadd.f32 %v7175_v53, %v7174_v8 }
 0x207   : > { %3342 = vst.msk [vmem:[%s6660_s25 + $0xa0] sm:$0xff] %vm3321_vm3, %v3309_v59  ;;  %v3312_v19 = vsub.f32 %v3280_v3, %v3248_v55  ;;  %v3247_v38 = vadd.f32 %v3176_v40, %v2972_v31  ;;  %v2975_v63 = vadd.f32 %v4651_v45, %v2699_v60  ;;  %v3286_v60 = vld [vmem:[%s6646_s23 + $0xe8] sm:$0xff]  ;;  %v3285_v55 = vld [vmem:[%s6646_s23 + $0xe0] sm:$0xff] }
 0x208   : > { %v2911_v33 = vpop.f32.mrf.mxu1  ;;  %v4718_v43 = vpop.f32.mrf.mxu0 }
 0x209   : > { %3345 = vst.msk [vmem:[%s6660_s25 + $0xb8] sm:$0xff] %vm3321_vm3, %v3312_v19  ;;  %v3311_v57 = vsub.f32 %v3279_v52, %v3247_v38  ;;  %v3250_v13 = vadd.f32 %v4715_v41, %v2975_v63  ;;  %v2974_v18 = vadd.f32 %v2911_v33, %v2698_v9  ;;  %v2705_v41 = vadd.f32 %v7176_v61, %v2433_v62  ;;  %v7177_v9 = vld [vmem:[#allocation42_spill] sm:$0xff] }
 0x20a   : > { %v4654_v54 = vpop.f32.mrf.mxu1  ;;  %v3196_v58 = vpop.f32.mrf.mxu0  ;;  %v2704_v52 = vadd.f32 %v7177_v9, %v2432_v0 }
 0x20b   : > { %3344 = vst.msk [vmem:[%s6660_s25 + $0xb0] sm:$0xff] %vm3321_vm3, %v3311_v57  ;;  %v3314_v2 = vsub.f32 %v3282_v10, %v3250_v13  ;;  %v3249_v25 = vadd.f32 %v3186_v48, %v2974_v18  ;;  %v2977_v24 = vadd.f32 %v4654_v54, %v2701_v37 }
 0x20c   : > { %v2921_v7 = vpop.f32.mrf.mxu1  ;;  %v4721_v5 = vpop.f32.mrf.mxu0 }
 0x20d   : > { %3347 = vst.msk [vmem:[%s6660_s25 + $0xc8] sm:$0xff] %vm3321_vm3, %v3314_v2  ;;  %v3313_v23 = vsub.f32 %v3281_v17, %v3249_v25  ;;  %v3252_v27 = vadd.f32 %v4718_v43, %v2977_v24  ;;  %v2976_v12 = vadd.f32 %v2921_v7, %v2700_v22 }
 0x20e   : > { %v4657_v35 = vpop.f32.mrf.mxu1  ;;  %v3206_v40 = vpop.f32.mrf.mxu0 }
 0x20f   : > { %3346 = vst.msk [vmem:[%s6660_s25 + $0xc0] sm:$0xff] %vm3321_vm3, %v3313_v23  ;;  %v3316_v39 = vsub.f32 %v3284_v16, %v3252_v27  ;;  %v3251_v28 = vadd.f32 %v3196_v58, %v2976_v12  ;;  %v2979_v15 = vadd.f32 %v4657_v35, %v2703_v11 }
 0x210   : > { %v2931_v3 = vpop.f32.mrf.mxu1  ;;  %v4724_v29 = vpop.f32.mrf.mxu0 }
 0x211   : > { %3349 = vst.msk [vmem:[%s6660_s25 + $0xd8] sm:$0xff] %vm3321_vm3, %v3316_v39  ;;  %v3315_v14 = vsub.f32 %v3283_v34, %v3251_v28  ;;  %v3254_v6 = vadd.f32 %v4721_v5, %v2979_v15  ;;  %v2978_v59 = vadd.f32 %v2931_v3, %v2702_v56 }
 0x212   : > { %v4660_v31 = vpop.f32.mrf.mxu1  ;;  %v3216_v21 = vpop.f32.mrf.mxu0 }
 0x213   : > { %3348 = vst.msk [vmem:[%s6660_s25 + $0xd0] sm:$0xff] %vm3321_vm3, %v3315_v14  ;;  %v3318_v45 = vsub.f32 %v3286_v60, %v3254_v6  ;;  %v3253_v48 = vadd.f32 %v3206_v40, %v2978_v59  ;;  %v2981_v4 = vadd.f32 %v4660_v31, %v2705_v41 }
 0x214   : > { %v2941_v47 = vpop.f32.mrf.mxu1 }
 0x215   : > { %3351 = vst.msk [vmem:[%s6660_s25 + $0xe8] sm:$0xff] %vm3321_vm3, %v3318_v45  ;;  %v3317_v19 = vsub.f32 %v3285_v55, %v3253_v48  ;;  %v3256_v38 = vadd.f32 %v4724_v29, %v2981_v4  ;;  %v2980_v63 = vadd.f32 %v2941_v47, %v2704_v52 }
 0x217   : > { %3350 = vst.msk [vmem:[%s6660_s25 + $0xe0] sm:$0xff] %vm3321_vm3, %v3317_v19  ;;  %v3320_v44 = vsub.f32 %v3288_v26, %v3256_v38  ;;  %v3255_v10 = vadd.f32 %v3216_v21, %v2980_v63 }
 0x219   : > { %3353 = vst.msk [vmem:[%s6660_s25 + $0xf8] sm:$0xff] %vm3321_vm3, %v3320_v44  ;;  %v3319_v33 = vsub.f32 %v3287_v42, %v3255_v10 }
 0x21b   : > { %3352 = vst.msk [vmem:[%s6660_s25 + $0xf0] sm:$0xff] %vm3321_vm3, %v3319_v33 }
 0x21c PF: > { %s15_s18 = sadd.s32 1, %s4758_s18  }
 0x21d   : > { %p12_p4 = scmp.ge.s32.totalorder %s15_s18, 4  }
 0x21f   :  { %14 = sbr.rel (!%p12_p4) target bundleno = 1 (0x1), region = 81 }

</bundles_post_ra>
